<compile_context>
chip_gen: v7x
topology: tpu7x:2x2x1
jax: 0.10.0
libtpu: 0.0.40
codegen_flags: <defaults>
</compile_context>

<pallas_src>
import functools
import math

import jax
import jax.numpy as jnp
import numpy as np
from jax import lax
from jax.experimental import pallas as pl
from jax.experimental.pallas import tpu as pltpu

EPS = 1e-5

# Set to jnp.bfloat16 for ~2x MXU throughput and half the dot-operand VMEM.
# Kept at float32 by default so the 1e-2 check against the f32 reference (and the
# one-pass E[x^2]-mu^2 batch statistics) stays comfortably inside tolerance.
DEFAULT_COMPUTE_DTYPE = jnp.float32


# ----------------------------------- kernels -----------------------------------
def _stats(v):
    """Per-lane partial (sum, sum_sq) over the tile rows -> (1, 2, C)."""
    return jnp.concatenate(
        [jnp.sum(v, axis=0, keepdims=True),
         jnp.sum(v * v, axis=0, keepdims=True)], axis=0)[None]


def _conv1_kernel(cd, x_ref, w1_ref, t_ref, s_ref):
    """Pass 1: conv1 (1x1) + partial BN1 statistics."""
    t = jnp.dot(x_ref[...].astype(cd), w1_ref[...],
                preferred_element_type=jnp.float32)
    t_ref[...] = t
    s_ref[...] = _stats(t)


def _deconv_kernel(cd, W, Cm, HP, split,
                   t_ref, tn_ref, m_ref, p1_ref, w2_ref,
                   d_ref, s_ref, text_ref):
    """Pass 2: folded BN1 + ReLU + ConvTranspose2d taps + partial BN2 statistics."""
    TM = t_ref.shape[0]
    scale1 = p1_ref[0:1, :]
    shift1 = p1_ref[1:2, :]

    # BN1 fold + ReLU on this tile and on the (next-tile) halo rows, staged in a VMEM
    # scratch so the three shifted taps become plain offset loads (no XLU roll).
    t00 = jnp.maximum(t_ref[...] * scale1 + shift1, 0.0)
    halo = jnp.maximum(tn_ref[pl.ds(0, HP), :] * scale1 + shift1, 0.0)
    text_ref[pl.ds(0, TM), :] = t00
    text_ref[pl.ds(TM, HP), :] = halo

    mw = m_ref[:, 0:1]                                # (w < W-1): (h, w+1) inside image
    mh = m_ref[:, 1:2]                                # (h < H-1): (h+1, w) inside image
    t01 = text_ref[pl.ds(1, TM), :] * mw              # t[h,   w+1]
    t10 = text_ref[pl.ds(W, TM), :] * mh              # t[h+1, w  ]
    t11 = text_ref[pl.ds(W + 1, TM), :] * (mw * mh)   # t[h+1, w+1]

    w2 = w2_ref[...]
    if split:
        # Per-shift dots skipping the structurally-zero tap blocks (9 of 16 are nonzero).
        d_all = jnp.dot(t00.astype(cd), w2[:, 0:4 * Cm],
                        preferred_element_type=jnp.float32)          # [ee|eo|oe|oo]
        d01 = jnp.dot(t01.astype(cd), w2[:, 4 * Cm:6 * Cm],
                      preferred_element_type=jnp.float32)            # [eo|oo]
        d10 = jnp.dot(t10.astype(cd), w2[:, 6 * Cm:8 * Cm],
                      preferred_element_type=jnp.float32)            # [oe|oo]
        d11 = jnp.dot(t11.astype(cd), w2[:, 8 * Cm:9 * Cm],
                      preferred_element_type=jnp.float32)            # [oo]
        d = jnp.concatenate(
            [d_all[:, 0:Cm],
             d_all[:, Cm:2 * Cm] + d01[:, 0:Cm],
             d_all[:, 2 * Cm:3 * Cm] + d10[:, 0:Cm],
             d_all[:, 3 * Cm:4 * Cm] + d01[:, Cm:2 * Cm] + d10[:, Cm:2 * Cm] + d11],
            axis=1)
    else:
        # Small Cmid: one fused wide dot keeps the MXU columns busy.
        tcat = jnp.concatenate([t00, t01, t10, t11], axis=1).astype(cd)
        d = jnp.dot(tcat, w2, preferred_element_type=jnp.float32)

    d_ref[...] = d
    s_ref[...] = _stats(d)


def _conv3_kernel(cd, Cm, d_ref, p2_ref, w3_ref, r_ref, s_ref):
    """Pass 3: folded BN2 + ReLU + conv3 (per-parity dots) + partial BN3 statistics."""
    a = jnp.maximum(d_ref[...] * p2_ref[0:1, :] + p2_ref[1:2, :], 0.0).astype(cd)
    w3 = w3_ref[...]
    r = jnp.concatenate(
        [jnp.dot(a[:, p * Cm:(p + 1) * Cm], w3, preferred_element_type=jnp.float32)
         for p in range(4)], axis=1)
    r_ref[...] = r
    s_ref[...] = _stats(r)


def _bn3_kernel(r_ref, p3_ref, y_ref):
    """Pass 4: folded BN3 + ReLU."""
    y_ref[...] = jnp.maximum(r_ref[...] * p3_ref[0:1, :] + p3_ref[1:2, :], 0.0)


# --------------------------------- host helpers ---------------------------------
def _physical_vmem_bytes():
    try:
        return int(getattr(pltpu.get_tpu_info(), "vmem_capacity_bytes",
                           64 * 1024 * 1024))
    except Exception:
        return 64 * 1024 * 1024


def _pick_tm(M, per_row_bytes, vmem_limit, min_rows):
    """Largest divisor of M that is a multiple of 8, >= min_rows, and keeps the
    per-tile live set within roughly half the VMEM limit."""
    target = int(max(vmem_limit // 2, 1 << 20) // max(per_row_bytes, 1))
    target = min(max(target, min_rows), 8192, M)
    best = None
    for d in range(1, int(math.isqrt(M)) + 1):
        if M % d == 0:
            for c in (d, M // d):
                if c % 8 == 0 and min_rows <= c <= target and (best is None or c > best):
                    best = c
    return best if best is not None else M


def _pack_w2(w2, split, cd):
    """Deconv taps (kh*3+kw, Cin, Cout) -> per-shift column blocks.
    Shift rows: t00=t[h,w], t01=t[h,w+1], t10=t[h+1,w], t11=t[h+1,w+1]."""
    Cm = w2.shape[1]
    if split:
        wt = jnp.concatenate([w2[4], w2[5], w2[7], w2[8]], axis=1)   # t00 -> [ee|eo|oe|oo]
        w01 = jnp.concatenate([w2[3], w2[6]], axis=1)                # t01 -> [eo|oo]
        w10 = jnp.concatenate([w2[1], w2[2]], axis=1)                # t10 -> [oe|oo]
        w11 = w2[0]                                                  # t11 -> [oo]
        return jnp.concatenate([wt, w01, w10, w11], axis=1).astype(cd)     # (Cm, 9*Cm)
    zero = jnp.zeros((Cm, Cm), w2.dtype)
    rows = [jnp.concatenate([w2[4], w2[5], w2[7], w2[8]], axis=1),
            jnp.concatenate([zero, w2[3], zero, w2[6]], axis=1),
            jnp.concatenate([zero, zero, w2[1], w2[2]], axis=1),
            jnp.concatenate([zero, zero, zero, w2[0]], axis=1)]
    return jnp.concatenate(rows, axis=0).astype(cd)                        # (4Cm, 4Cm)


def _fold_bn(stat_sums, count, gamma, beta):
    """(sum, sum_sq) rows -> folded (scale, shift) rows (f32)."""
    mean = stat_sums[0] / count
    var = jnp.maximum(stat_sums[1] / count - mean * mean, 0.0)
    scale = gamma.reshape(-1) * lax.rsqrt(var + EPS)
    shift = beta.reshape(-1) - mean * scale
    return jnp.stack([scale, shift], axis=0)


def init_params(key, in_channels, n_filters):
    """Deterministic synthetic parameters matching DecoderBlock's shapes."""
    cmid = in_channels // 4
    ks = jax.random.split(key, 12)

    def nrm(k, shape, scale):
        return (scale * jax.random.normal(k, shape)).astype(jnp.float32)

    return dict(
        # conv1: PyTorch weight (cmid, Cin, 1, 1) stored transposed as (Cin, cmid)
        w1=nrm(ks[0], (in_channels, cmid), 0.2),
        b1=nrm(ks[1], (1, cmid), 0.1),
        g1=1.0 + nrm(ks[2], (1, cmid), 0.1),
        be1=nrm(ks[3], (1, cmid), 0.1),
        # deconv2: PyTorch weight (cmid_in, cmid_out, 3, 3) stored as 9 taps (kh*3+kw, Cin, Cout)
        w2=nrm(ks[4], (9, cmid, cmid), 0.2),
        b2=nrm(ks[5], (1, cmid), 0.1),
        g2=1.0 + nrm(ks[6], (1, cmid), 0.1),
        be2=nrm(ks[7], (1, cmid), 0.1),
        # conv3: PyTorch weight (n_filters, cmid, 1, 1) stored transposed as (cmid, n_filters)
        w3=nrm(ks[8], (cmid, n_filters), 0.2),
        b3=nrm(ks[9], (1, n_filters), 0.1),
        g3=1.0 + nrm(ks[10], (1, n_filters), 0.1),
        be3=nrm(ks[11], (1, n_filters), 0.1),
    )


# ----------------------------------- wrapper -----------------------------------
def decoder_block(x_nchw, params, *, tm_rows=None, force_split_deconv=None,
                  compute_dtype=DEFAULT_COMPUTE_DTYPE):
    """Forward pass of DecoderBlock. Input/output are NCHW float32."""
    N, Cin, H, W = x_nchw.shape
    Cm = Cin // 4
    Co = params["w3"].shape[1]
    Cop = Co if 4 * Co >= 128 else 32          # pad so output lanes are >= 128 (dense vst)
    M = N * H * W
    HP = ((W + 1 + 7) // 8) * 8                # halo rows, rounded to full sublanes
    cd = compute_dtype
    split = (Cm >= 128) if force_split_deconv is None else bool(force_split_deconv)

    # Generation-aware sizing: ~48 MiB limit on v7x (64 MiB phys), ~96 MiB on v5e/v6e.
    vmem_limit = int(_physical_vmem_bytes() * 0.75)
    per_row_bytes = 4 * (24 * Cm + 12 * Cop + 16)       # rough upper bound across passes
    TM = _pick_tm(M, per_row_bytes, vmem_limit, min_rows=min(HP, M)) \
        if tm_rows is None else int(tm_rows)
    if M % TM != 0 or TM < HP or (TM % 8 != 0 and TM != M):
        raise ValueError(f"bad row tile TM={TM} for M={M}, W={W}")
    nt = M // TM

    # --- layout glue + constant inputs (plain JAX, outside the kernels) ---
    # TODO(synk): in a real model keep NHWC end-to-end (or fuse the parity de-interleave
    # into the consumer) so these wrapper-side transposes disappear.
    x2d = jnp.transpose(x_nchw, (0, 2, 3, 1)).reshape(M, Cin)
    idx = jnp.arange(M, dtype=jnp.int32)
    mask = jnp.stack([(idx % W) < (W - 1), ((idx // W) % H) < (H - 1)],
                     axis=1).astype(jnp.float32)                       # (M, 2)

    w1c = params["w1"].astype(cd)
    w2p = _pack_w2(params["w2"], split, cd)
    w3p = jnp.pad(params["w3"], ((0, 0), (0, Cop - Co))).astype(cd)
    g3p = jnp.pad(params["g3"], ((0, 0), (0, Cop - Co)))
    be3p = jnp.pad(params["be3"], ((0, 0), (0, Cop - Co)))

    cparams = pltpu.CompilerParams(dimension_semantics=("parallel",),
                                   vmem_limit_bytes=vmem_limit)
    f32 = jnp.float32

    # --- pass 1: conv1 + BN1 partial stats -------------------------------------
    t2d, s1 = pl.pallas_call(
        functools.partial(_conv1_kernel, cd),
        grid=(nt,),
        in_specs=[pl.BlockSpec((TM, Cin), lambda i: (i, 0)),
                  pl.BlockSpec((Cin, Cm), lambda i: (0, 0))],
        out_specs=[pl.BlockSpec((TM, Cm), lambda i: (i, 0)),
                   pl.BlockSpec((1, 2, Cm), lambda i: (i, 0, 0))],
        out_shape=[jax.ShapeDtypeStruct((M, Cm), f32),
                   jax.ShapeDtypeStruct((nt, 2, Cm), f32)],
        compiler_params=cparams,
    )(x2d, w1c)
    p1f = _fold_bn(jnp.sum(s1, axis=0), M, params["g1"], params["be1"])

    # --- pass 2: BN1-fold + ReLU + deconv taps + BN2 partial stats --------------
    d2d, s2 = pl.pallas_call(
        functools.partial(_deconv_kernel, cd, W, Cm, HP, split),
        grid=(nt,),
        in_specs=[pl.BlockSpec((TM, Cm), lambda i: (i, 0)),
                  pl.BlockSpec((TM, Cm), lambda i: (jnp.minimum(i + 1, nt - 1), 0)),
                  pl.BlockSpec((TM, 2), lambda i: (i, 0)),
                  pl.BlockSpec((2, Cm), lambda i: (0, 0)),
                  pl.BlockSpec(w2p.shape, lambda i: (0, 0))],
        out_specs=[pl.BlockSpec((TM, 4 * Cm), lambda i: (i, 0)),
                   pl.BlockSpec((1, 2, 4 * Cm), lambda i: (i, 0, 0))],
        out_shape=[jax.ShapeDtypeStruct((M, 4 * Cm), f32),
                   jax.ShapeDtypeStruct((nt, 2, 4 * Cm), f32)],
        scratch_shapes=[pltpu.VMEM((TM + HP, Cm), f32)],
        compiler_params=cparams,
    )(t2d, t2d, mask, p1f, w2p)
    s2p = jnp.sum(s2, axis=0).reshape(2, 4, Cm).sum(axis=1)       # pool the 4 parities
    p2f = jnp.tile(_fold_bn(s2p, 4 * M, params["g2"], params["be2"]), (1, 4))

    # --- pass 3: BN2-fold + ReLU + conv3 + BN3 partial stats --------------------
    r2d, s3 = pl.pallas_call(
        functools.partial(_conv3_kernel, cd, Cm),
        grid=(nt,),
        in_specs=[pl.BlockSpec((TM, 4 * Cm), lambda i: (i, 0)),
                  pl.BlockSpec((2, 4 * Cm), lambda i: (0, 0)),
                  pl.BlockSpec((Cm, Cop), lambda i: (0, 0))],
        out_specs=[pl.BlockSpec((TM, 4 * Cop), lambda i: (i, 0)),
                   pl.BlockSpec((1, 2, 4 * Cop), lambda i: (i, 0, 0))],
        out_shape=[jax.ShapeDtypeStruct((M, 4 * Cop), f32),
                   jax.ShapeDtypeStruct((nt, 2, 4 * Cop), f32)],
        compiler_params=cparams,
    )(d2d, p2f, w3p)
    s3p = jnp.sum(s3, axis=0).reshape(2, 4, Cop).sum(axis=1)
    p3f = jnp.tile(_fold_bn(s3p, 4 * M, g3p, be3p), (1, 4))

    # --- pass 4: BN3-fold + ReLU -------------------------------------------------
    y2d = pl.pallas_call(
        _bn3_kernel,
        grid=(nt,),
        in_specs=[pl.BlockSpec((TM, 4 * Cop), lambda i: (i, 0)),
                  pl.BlockSpec((2, 4 * Cop), lambda i: (0, 0))],
        out_specs=pl.BlockSpec((TM, 4 * Cop), lambda i: (i, 0)),
        out_shape=jax.ShapeDtypeStruct((M, 4 * Cop), f32),
        compiler_params=cparams,
    )(r2d, p3f)

    # Lane-packed parities (ee, eo, oe, oo) -> (2H, 2W), drop pad channels, back to NCHW.
    y = y2d.reshape(N, H, W, 2, 2, Cop)[..., :Co]           # (n, h, w, ph, pw, c)
    y = jnp.transpose(y, (0, 1, 3, 2, 4, 5)).reshape(N, 2 * H, 2 * W, Co)
    return jnp.transpose(y, (0, 3, 1, 2))


# ----------------------------- pure-JAX reference -----------------------------
def _bn_train(x, gamma, beta):
    mu = jnp.mean(x, axis=(0, 2, 3), keepdims=True)
    var = jnp.mean((x - mu) ** 2, axis=(0, 2, 3), keepdims=True)
    return (x - mu) * lax.rsqrt(var + EPS) * gamma.reshape(1, -1, 1, 1) + beta.reshape(1, -1, 1, 1)


def decoder_block_reference(x_nchw, params):
    dn = ("NCHW", "OIHW", "NCHW")
    hi = lax.Precision.HIGHEST
    Cin, Cmid = params["w1"].shape
    Cout = params["w3"].shape[1]

    w1_oihw = params["w1"].T.reshape(Cmid, Cin, 1, 1)
    t = lax.conv_general_dilated(x_nchw, w1_oihw, (1, 1), "VALID",
                                 dimension_numbers=dn, precision=hi)
    t = t + params["b1"].reshape(1, -1, 1, 1)
    t = jnp.maximum(_bn_train(t, params["g1"], params["be1"]), 0.0)

    # ConvTranspose2d == lhs-dilated correlation with spatially-flipped, io-swapped weights.
    w2_pt = params["w2"].reshape(3, 3, Cmid, Cmid).transpose(2, 3, 0, 1)   # (Cin, Cout, kh, kw)
    w2_conv = jnp.flip(jnp.transpose(w2_pt, (1, 0, 2, 3)), axis=(2, 3))    # (Cout, Cin, kh, kw)
    d = lax.conv_general_dilated(t, w2_conv, window_strides=(1, 1),
                                 padding=((1, 2), (1, 2)), lhs_dilation=(2, 2),
                                 dimension_numbers=dn, precision=hi)
    d = d + params["b2"].reshape(1, -1, 1, 1)
    d = jnp.maximum(_bn_train(d, params["g2"], params["be2"]), 0.0)

    w3_oihw = params["w3"].T.reshape(Cout, Cmid, 1, 1)
    r = lax.conv_general_dilated(d, w3_oihw, (1, 1), "VALID",
                                 dimension_numbers=dn, precision=hi)
    r = r + params["b3"].reshape(1, -1, 1, 1)
    r = jnp.maximum(_bn_train(r, params["g3"], params["be3"]), 0.0)
    return r


if __name__ == "__main__":
    base_key = jax.random.PRNGKey(0)

    cases = [
        # (N, Cin, H, W, n_filters, config)
        (2, 32, 16, 16, 16, {}),                                          # auto tile, fused deconv
        (2, 32, 16, 16, 16, dict(tm_rows=128)),                           # 4-tile grid: halo path
        (2, 32, 16, 16, 16, dict(tm_rows=128, force_split_deconv=True)),  # split-tap deconv path
        (1, 32, 10, 12, 8, dict(tm_rows=40)),                             # mid-row tile boundary + Cout pad
    ]
    for i, (N, Cin, H, W, nf, cfg) in enumerate(cases):
        kx, kp = jax.random.split(jax.random.fold_in(base_key, i))
        x = jax.random.normal(kx, (N, Cin, H, W), dtype=jnp.float32)
        params = init_params(kp, Cin, nf)
        fwd = jax.jit(functools.partial(decoder_block, **cfg))
        y = jax.block_until_ready(fwd(x, params))
        y_ref = decoder_block_reference(x, params)
        assert y.shape == (N, nf, 2 * H, 2 * W)
        np.testing.assert_allclose(np.asarray(y), np.asarray(y_ref),
                                   rtol=1e-2, atol=1e-2)
    print("KERNEL_OK")
</pallas_src>

<mosaic_0001>
module attributes {stable_mosaic.version = 11 : i64} {
  func.func @_conv1_kernel(%arg0: i32, %arg1: memref<512x32xf32, #tpu.memory_space<vmem>>, %arg2: memref<32x8xf32, #tpu.memory_space<vmem>>, %arg3: memref<512x8xf32, #tpu.memory_space<vmem>>, %arg4: memref<1x2x8xf32, #tpu.memory_space<vmem>>) attributes {dimension_semantics = [#tpu.dimension_semantics<parallel>], iteration_bounds = array<i64: 1>, scalar_prefetch = 0 : i64, scratch_operands = 0 : i64, tpu.core_type = #tpu.core_type<tc>, window_params = [{transform_indices = @transform_0, window_bounds = array<i64: 512, 32>}, {pipeline_mode = #tpu.pipeline_mode<synchronous>, transform_indices = @transform_1, window_bounds = array<i64: 32, 8>}, {transform_indices = @transform_2, window_bounds = array<i64: 512, 8>}, {transform_indices = @transform_3, window_bounds = array<i64: 1, 2, 8>}]} {
    %c0 = arith.constant 0 : index
    %c0_0 = arith.constant 0 : index
    %0 = vector.load %arg1[%c0, %c0_0] : memref<512x32xf32, #tpu.memory_space<vmem>>, vector<512x32xf32>
    %c0_1 = arith.constant 0 : index
    %c0_2 = arith.constant 0 : index
    %1 = vector.load %arg2[%c0_1, %c0_2] : memref<32x8xf32, #tpu.memory_space<vmem>>, vector<32x8xf32>
    %cst = arith.constant dense<0.000000e+00> : vector<512x8xf32>
    %2 = tpu.matmul %0, %1, %cst {dimension_numbers = #tpu.dot_dimension_numbers<[1], [0], [0], [1], [0, 0, 1, 1], [], []>} : vector<512x32xf32>, vector<32x8xf32>, vector<512x8xf32> -> vector<512x8xf32>
    %c0_3 = arith.constant 0 : index
    %c0_4 = arith.constant 0 : index
    %3 = vector.load %arg3[%c0_3, %c0_4] : memref<512x8xf32, #tpu.memory_space<vmem>>, vector<512x8xf32>
    tpu.vector_store %arg3[%c0_3, %c0_4], %2 {strides = array<i32>} : memref<512x8xf32, #tpu.memory_space<vmem>>, vector<512x8xf32>,
    %cst_5 = arith.constant dense<0.000000e+00> : vector<8xf32>
    %4 = vector.multi_reduction <add>, %2, %cst_5 [0] : vector<512x8xf32> to vector<8xf32>
    %5 = vector.shape_cast %4 : vector<8xf32> to vector<1x8xf32>
    %6 = arith.mulf %2, %2 : vector<512x8xf32>
    %cst_6 = arith.constant dense<0.000000e+00> : vector<8xf32>
    %7 = vector.multi_reduction <add>, %6, %cst_6 [0] : vector<512x8xf32> to vector<8xf32>
    %8 = vector.shape_cast %7 : vector<8xf32> to vector<1x8xf32>
    %9 = tpu.concatenate %5, %8 in 0 : vector<1x8xf32>, vector<1x8xf32> -> vector<2x8xf32>
    %10 = vector.shape_cast %9 : vector<2x8xf32> to vector<1x2x8xf32>
    %c0_7 = arith.constant 0 : index
    %c0_8 = arith.constant 0 : index
    %c0_9 = arith.constant 0 : index
    %11 = vector.load %arg4[%c0_7, %c0_8, %c0_9] : memref<1x2x8xf32, #tpu.memory_space<vmem>>, vector<1x2x8xf32>
    tpu.vector_store %arg4[%c0_7, %c0_8, %c0_9], %10 {strides = array<i32>} : memref<1x2x8xf32, #tpu.memory_space<vmem>>, vector<1x2x8xf32>,
    return
  }
  func.func @transform_0(%arg0: i32) -> (i32, i32) {
    %c0_i32 = arith.constant 0 : i32
    %c0_i32_0 = arith.constant 0 : i32
    return %arg0, %c0_i32 : i32, i32
  }
  func.func @transform_1(%arg0: i32) -> (i32, i32) {
    %c0_i32 = arith.constant 0 : i32
    %c0_i32_0 = arith.constant 0 : i32
    %c0_i32_1 = arith.constant 0 : i32
    return %c0_i32, %c0_i32_0 : i32, i32
  }
  func.func @transform_2(%arg0: i32) -> (i32, i32) {
    %c0_i32 = arith.constant 0 : i32
    %c0_i32_0 = arith.constant 0 : i32
    return %arg0, %c0_i32 : i32, i32
  }
  func.func @transform_3(%arg0: i32) -> (i32, i32, i32) {
    %c0_i32 = arith.constant 0 : i32
    %c0_i32_0 = arith.constant 0 : i32
    %c0_i32_1 = arith.constant 0 : i32
    return %arg0, %c0_i32, %c0_i32_0 : i32, i32, i32
  }
}

module attributes {stable_mosaic.version = 11 : i64} {
  func.func @_deconv_kernel(%arg0: i32, %arg1: memref<512x8xf32, #tpu.memory_space<vmem>>, %arg2: memref<512x8xf32, #tpu.memory_space<vmem>>, %arg3: memref<512x2xf32, #tpu.memory_space<vmem>>, %arg4: memref<2x8xf32, #tpu.memory_space<vmem>>, %arg5: memref<32x32xf32, #tpu.memory_space<vmem>>, %arg6: memref<512x32xf32, #tpu.memory_space<vmem>>, %arg7: memref<1x2x32xf32, #tpu.memory_space<vmem>>, %arg8: memref<536x8xf32, #tpu.memory_space<vmem>>) attributes {dimension_semantics = [#tpu.dimension_semantics<parallel>], iteration_bounds = array<i64: 1>, scalar_prefetch = 0 : i64, scratch_operands = 1 : i64, tpu.core_type = #tpu.core_type<tc>, window_params = [{transform_indices = @transform_0, window_bounds = array<i64: 512, 8>}, {transform_indices = @transform_1, window_bounds = array<i64: 512, 8>}, {transform_indices = @transform_2, window_bounds = array<i64: 512, 2>}, {pipeline_mode = #tpu.pipeline_mode<synchronous>, transform_indices = @transform_3, window_bounds = array<i64: 2, 8>}, {pipeline_mode = #tpu.pipeline_mode<synchronous>, transform_indices = @transform_4, window_bounds = array<i64: 32, 32>}, {transform_indices = @transform_5, window_bounds = array<i64: 512, 32>}, {transform_indices = @transform_6, window_bounds = array<i64: 1, 2, 32>}]} {
    %c0 = arith.constant 0 : index
    %c0_0 = arith.constant 0 : index
    %0 = vector.load %arg4[%c0, %c0_0] : memref<2x8xf32, #tpu.memory_space<vmem>>, vector<1x8xf32>
    %c1 = arith.constant 1 : index
    %c0_1 = arith.constant 0 : index
    %1 = vector.load %arg4[%c1, %c0_1] : memref<2x8xf32, #tpu.memory_space<vmem>>, vector<1x8xf32>
    %c0_2 = arith.constant 0 : index
    %c0_3 = arith.constant 0 : index
    %2 = vector.load %arg1[%c0_2, %c0_3] : memref<512x8xf32, #tpu.memory_space<vmem>>, vector<512x8xf32>
    %3 = vector.broadcast %0 : vector<1x8xf32> to vector<512x8xf32>
    %4 = arith.mulf %2, %3 : vector<512x8xf32>
    %5 = vector.broadcast %1 : vector<1x8xf32> to vector<512x8xf32>
    %6 = arith.addf %4, %5 : vector<512x8xf32>
    %cst = arith.constant 0.000000e+00 : f32
    %7 = vector.broadcast %cst : f32 to vector<512x8xf32>
    %8 = arith.maximumf %6, %7 : vector<512x8xf32>
    %c0_4 = arith.constant 0 : index
    %c0_5 = arith.constant 0 : index
    %9 = vector.load %arg2[%c0_4, %c0_5] : memref<512x8xf32, #tpu.memory_space<vmem>>, vector<24x8xf32>
    %10 = vector.broadcast %0 : vector<1x8xf32> to vector<24x8xf32>
    %11 = arith.mulf %9, %10 : vector<24x8xf32>
    %12 = vector.broadcast %1 : vector<1x8xf32> to vector<24x8xf32>
    %13 = arith.addf %11, %12 : vector<24x8xf32>
    %cst_6 = arith.constant 0.000000e+00 : f32
    %14 = vector.broadcast %cst_6 : f32 to vector<24x8xf32>
    %15 = arith.maximumf %13, %14 : vector<24x8xf32>
    %c0_7 = arith.constant 0 : index
    %c0_8 = arith.constant 0 : index
    %16 = vector.load %arg8[%c0_7, %c0_8] : memref<536x8xf32, #tpu.memory_space<vmem>>, vector<512x8xf32>
    tpu.vector_store %arg8[%c0_7, %c0_8], %8 {strides = array<i32>} : memref<536x8xf32, #tpu.memory_space<vmem>>, vector<512x8xf32>,
    %c512 = arith.constant 512 : index
    %c0_9 = arith.constant 0 : index
    %17 = vector.load %arg8[%c512, %c0_9] : memref<536x8xf32, #tpu.memory_space<vmem>>, vector<24x8xf32>
    tpu.vector_store %arg8[%c512, %c0_9], %15 {strides = array<i32>} : memref<536x8xf32, #tpu.memory_space<vmem>>, vector<24x8xf32>,
    %c0_10 = arith.constant 0 : index
    %c0_11 = arith.constant 0 : index
    %18 = vector.load %arg3[%c0_10, %c0_11] : memref<512x2xf32, #tpu.memory_space<vmem>>, vector<512x1xf32>
    %c0_12 = arith.constant 0 : index
    %c1_13 = arith.constant 1 : index
    %19 = vector.load %arg3[%c0_12, %c1_13] : memref<512x2xf32, #tpu.memory_space<vmem>>, vector<512x1xf32>
    %c1_14 = arith.constant 1 : index
    %c0_15 = arith.constant 0 : index
    %20 = vector.load %arg8[%c1_14, %c0_15] : memref<536x8xf32, #tpu.memory_space<vmem>>, vector<512x8xf32>
    %21 = vector.broadcast %18 : vector<512x1xf32> to vector<512x8xf32>
    %22 = arith.mulf %20, %21 : vector<512x8xf32>
    %c16 = arith.constant 16 : index
    %c0_16 = arith.constant 0 : index
    %23 = vector.load %arg8[%c16, %c0_16] : memref<536x8xf32, #tpu.memory_space<vmem>>, vector<512x8xf32>
    %24 = vector.broadcast %19 : vector<512x1xf32> to vector<512x8xf32>
    %25 = arith.mulf %23, %24 : vector<512x8xf32>
    %c17 = arith.constant 17 : index
    %c0_17 = arith.constant 0 : index
    %26 = vector.load %arg8[%c17, %c0_17] : memref<536x8xf32, #tpu.memory_space<vmem>>, vector<512x8xf32>
    %27 = arith.mulf %18, %19 : vector<512x1xf32>
    %28 = vector.broadcast %27 : vector<512x1xf32> to vector<512x8xf32>
    %29 = arith.mulf %26, %28 : vector<512x8xf32>
    %c0_18 = arith.constant 0 : index
    %c0_19 = arith.constant 0 : index
    %30 = vector.load %arg5[%c0_18, %c0_19] : memref<32x32xf32, #tpu.memory_space<vmem>>, vector<32x32xf32>
    %31 = tpu.concatenate %8, %22, %25, %29 in 1 : vector<512x8xf32>, vector<512x8xf32>, vector<512x8xf32>, vector<512x8xf32> -> vector<512x32xf32>
    %cst_20 = arith.constant dense<0.000000e+00> : vector<512x32xf32>
    %32 = tpu.matmul %31, %30, %cst_20 {dimension_numbers = #tpu.dot_dimension_numbers<[1], [0], [0], [1], [0, 0, 1, 1], [], []>} : vector<512x32xf32>, vector<32x32xf32>, vector<512x32xf32> -> vector<512x32xf32>
    %c0_21 = arith.constant 0 : index
    %c0_22 = arith.constant 0 : index
    %33 = vector.load %arg6[%c0_21, %c0_22] : memref<512x32xf32, #tpu.memory_space<vmem>>, vector<512x32xf32>
    tpu.vector_store %arg6[%c0_21, %c0_22], %32 {strides = array<i32>} : memref<512x32xf32, #tpu.memory_space<vmem>>, vector<512x32xf32>,
    %cst_23 = arith.constant dense<0.000000e+00> : vector<32xf32>
    %34 = vector.multi_reduction <add>, %32, %cst_23 [0] : vector<512x32xf32> to vector<32xf32>
    %35 = vector.shape_cast %34 : vector<32xf32> to vector<1x32xf32>
    %36 = arith.mulf %32, %32 : vector<512x32xf32>
    %cst_24 = arith.constant dense<0.000000e+00> : vector<32xf32>
    %37 = vector.multi_reduction <add>, %36, %cst_24 [0] : vector<512x32xf32> to vector<32xf32>
    %38 = vector.shape_cast %37 : vector<32xf32> to vector<1x32xf32>
    %39 = tpu.concatenate %35, %38 in 0 : vector<1x32xf32>, vector<1x32xf32> -> vector<2x32xf32>
    %40 = vector.shape_cast %39 : vector<2x32xf32> to vector<1x2x32xf32>
    %c0_25 = arith.constant 0 : index
    %c0_26 = arith.constant 0 : index
    %c0_27 = arith.constant 0 : index
    %41 = vector.load %arg7[%c0_25, %c0_26, %c0_27] : memref<1x2x32xf32, #tpu.memory_space<vmem>>, vector<1x2x32xf32>
    tpu.vector_store %arg7[%c0_25, %c0_26, %c0_27], %40 {strides = array<i32>} : memref<1x2x32xf32, #tpu.memory_space<vmem>>, vector<1x2x32xf32>,
    return
  }
  func.func @transform_0(%arg0: i32) -> (i32, i32) {
    %c0_i32 = arith.constant 0 : i32
    %c0_i32_0 = arith.constant 0 : i32
    return %arg0, %c0_i32 : i32, i32
  }
  func.func @transform_1(%arg0: i32) -> (i32, i32) {
    %c1_i32 = arith.constant 1 : i32
    %0 = arith.addi %arg0, %c1_i32 : i32
    %c0_i32 = arith.constant 0 : i32
    %1 = arith.minsi %0, %c0_i32 : i32
    %c0_i32_0 = arith.constant 0 : i32
    %c0_i32_1 = arith.constant 0 : i32
    return %1, %c0_i32_0 : i32, i32
  }
  func.func @transform_2(%arg0: i32) -> (i32, i32) {
    %c0_i32 = arith.constant 0 : i32
    %c0_i32_0 = arith.constant 0 : i32
    return %arg0, %c0_i32 : i32, i32
  }
  func.func @transform_3(%arg0: i32) -> (i32, i32) {
    %c0_i32 = arith.constant 0 : i32
    %c0_i32_0 = arith.constant 0 : i32
    %c0_i32_1 = arith.constant 0 : i32
    return %c0_i32, %c0_i32_0 : i32, i32
  }
  func.func @transform_4(%arg0: i32) -> (i32, i32) {
    %c0_i32 = arith.constant 0 : i32
    %c0_i32_0 = arith.constant 0 : i32
    %c0_i32_1 = arith.constant 0 : i32
    return %c0_i32, %c0_i32_0 : i32, i32
  }
  func.func @transform_5(%arg0: i32) -> (i32, i32) {
    %c0_i32 = arith.constant 0 : i32
    %c0_i32_0 = arith.constant 0 : i32
    return %arg0, %c0_i32 : i32, i32
  }
  func.func @transform_6(%arg0: i32) -> (i32, i32, i32) {
    %c0_i32 = arith.constant 0 : i32
    %c0_i32_0 = arith.constant 0 : i32
    %c0_i32_1 = arith.constant 0 : i32
    return %arg0, %c0_i32, %c0_i32_0 : i32, i32, i32
  }
}

module attributes {stable_mosaic.version = 11 : i64} {
  func.func @_conv3_kernel(%arg0: i32, %arg1: memref<512x32xf32, #tpu.memory_space<vmem>>, %arg2: memref<2x32xf32, #tpu.memory_space<vmem>>, %arg3: memref<8x32xf32, #tpu.memory_space<vmem>>, %arg4: memref<512x128xf32, #tpu.memory_space<vmem>>, %arg5: memref<1x2x128xf32, #tpu.memory_space<vmem>>) attributes {dimension_semantics = [#tpu.dimension_semantics<parallel>], iteration_bounds = array<i64: 1>, scalar_prefetch = 0 : i64, scratch_operands = 0 : i64, tpu.core_type = #tpu.core_type<tc>, window_params = [{transform_indices = @transform_0, window_bounds = array<i64: 512, 32>}, {pipeline_mode = #tpu.pipeline_mode<synchronous>, transform_indices = @transform_1, window_bounds = array<i64: 2, 32>}, {pipeline_mode = #tpu.pipeline_mode<synchronous>, transform_indices = @transform_2, window_bounds = array<i64: 8, 32>}, {transform_indices = @transform_3, window_bounds = array<i64: 512, 128>}, {transform_indices = @transform_4, window_bounds = array<i64: 1, 2, 128>}]} {
    %c0 = arith.constant 0 : index
    %c0_0 = arith.constant 0 : index
    %0 = vector.load %arg1[%c0, %c0_0] : memref<512x32xf32, #tpu.memory_space<vmem>>, vector<512x32xf32>
    %c0_1 = arith.constant 0 : index
    %c0_2 = arith.constant 0 : index
    %1 = vector.load %arg2[%c0_1, %c0_2] : memref<2x32xf32, #tpu.memory_space<vmem>>, vector<1x32xf32>
    %2 = vector.broadcast %1 : vector<1x32xf32> to vector<512x32xf32>
    %3 = arith.mulf %0, %2 : vector<512x32xf32>
    %c1 = arith.constant 1 : index
    %c0_3 = arith.constant 0 : index
    %4 = vector.load %arg2[%c1, %c0_3] : memref<2x32xf32, #tpu.memory_space<vmem>>, vector<1x32xf32>
    %5 = vector.broadcast %4 : vector<1x32xf32> to vector<512x32xf32>
    %6 = arith.addf %3, %5 : vector<512x32xf32>
    %cst = arith.constant 0.000000e+00 : f32
    %7 = vector.broadcast %cst : f32 to vector<512x32xf32>
    %8 = arith.maximumf %6, %7 : vector<512x32xf32>
    %c0_4 = arith.constant 0 : index
    %c0_5 = arith.constant 0 : index
    %9 = vector.load %arg3[%c0_4, %c0_5] : memref<8x32xf32, #tpu.memory_space<vmem>>, vector<8x32xf32>
    %10 = vector.extract_strided_slice %8 {offsets = [0, 0], sizes = [512, 8], strides = [1, 1]} : vector<512x32xf32> to vector<512x8xf32>
    %cst_6 = arith.constant dense<0.000000e+00> : vector<512x32xf32>
    %11 = tpu.matmul %10, %9, %cst_6 {dimension_numbers = #tpu.dot_dimension_numbers<[1], [0], [0], [1], [0, 0, 1, 1], [], []>} : vector<512x8xf32>, vector<8x32xf32>, vector<512x32xf32> -> vector<512x32xf32>
    %12 = vector.extract_strided_slice %8 {offsets = [0, 8], sizes = [512, 8], strides = [1, 1]} : vector<512x32xf32> to vector<512x8xf32>
    %cst_7 = arith.constant dense<0.000000e+00> : vector<512x32xf32>
    %13 = tpu.matmul %12, %9, %cst_7 {dimension_numbers = #tpu.dot_dimension_numbers<[1], [0], [0], [1], [0, 0, 1, 1], [], []>} : vector<512x8xf32>, vector<8x32xf32>, vector<512x32xf32> -> vector<512x32xf32>
    %14 = vector.extract_strided_slice %8 {offsets = [0, 16], sizes = [512, 8], strides = [1, 1]} : vector<512x32xf32> to vector<512x8xf32>
    %cst_8 = arith.constant dense<0.000000e+00> : vector<512x32xf32>
    %15 = tpu.matmul %14, %9, %cst_8 {dimension_numbers = #tpu.dot_dimension_numbers<[1], [0], [0], [1], [0, 0, 1, 1], [], []>} : vector<512x8xf32>, vector<8x32xf32>, vector<512x32xf32> -> vector<512x32xf32>
    %16 = vector.extract_strided_slice %8 {offsets = [0, 24], sizes = [512, 8], strides = [1, 1]} : vector<512x32xf32> to vector<512x8xf32>
    %cst_9 = arith.constant dense<0.000000e+00> : vector<512x32xf32>
    %17 = tpu.matmul %16, %9, %cst_9 {dimension_numbers = #tpu.dot_dimension_numbers<[1], [0], [0], [1], [0, 0, 1, 1], [], []>} : vector<512x8xf32>, vector<8x32xf32>, vector<512x32xf32> -> vector<512x32xf32>
    %18 = tpu.concatenate %11, %13, %15, %17 in 1 : vector<512x32xf32>, vector<512x32xf32>, vector<512x32xf32>, vector<512x32xf32> -> vector<512x128xf32>
    %c0_10 = arith.constant 0 : index
    %c0_11 = arith.constant 0 : index
    %19 = vector.load %arg4[%c0_10, %c0_11] : memref<512x128xf32, #tpu.memory_space<vmem>>, vector<512x128xf32>
    tpu.vector_store %arg4[%c0_10, %c0_11], %18 {strides = array<i32>} : memref<512x128xf32, #tpu.memory_space<vmem>>, vector<512x128xf32>,
    %cst_12 = arith.constant dense<0.000000e+00> : vector<128xf32>
    %20 = vector.multi_reduction <add>, %18, %cst_12 [0] : vector<512x128xf32> to vector<128xf32>
    %21 = vector.shape_cast %20 : vector<128xf32> to vector<1x128xf32>
    %22 = arith.mulf %18, %18 : vector<512x128xf32>
    %cst_13 = arith.constant dense<0.000000e+00> : vector<128xf32>
    %23 = vector.multi_reduction <add>, %22, %cst_13 [0] : vector<512x128xf32> to vector<128xf32>
    %24 = vector.shape_cast %23 : vector<128xf32> to vector<1x128xf32>
    %25 = tpu.concatenate %21, %24 in 0 : vector<1x128xf32>, vector<1x128xf32> -> vector<2x128xf32>
    %26 = vector.shape_cast %25 : vector<2x128xf32> to vector<1x2x128xf32>
    %c0_14 = arith.constant 0 : index
    %c0_15 = arith.constant 0 : index
    %c0_16 = arith.constant 0 : index
    %27 = vector.load %arg5[%c0_14, %c0_15, %c0_16] : memref<1x2x128xf32, #tpu.memory_space<vmem>>, vector<1x2x128xf32>
    tpu.vector_store %arg5[%c0_14, %c0_15, %c0_16], %26 {strides = array<i32>} : memref<1x2x128xf32, #tpu.memory_space<vmem>>, vector<1x2x128xf32>,
    return
  }
  func.func @transform_0(%arg0: i32) -> (i32, i32) {
    %c0_i32 = arith.constant 0 : i32
    %c0_i32_0 = arith.constant 0 : i32
    return %arg0, %c0_i32 : i32, i32
  }
  func.func @transform_1(%arg0: i32) -> (i32, i32) {
    %c0_i32 = arith.constant 0 : i32
    %c0_i32_0 = arith.constant 0 : i32
    %c0_i32_1 = arith.constant 0 : i32
    return %c0_i32, %c0_i32_0 : i32, i32
  }
  func.func @transform_2(%arg0: i32) -> (i32, i32) {
    %c0_i32 = arith.constant 0 : i32
    %c0_i32_0 = arith.constant 0 : i32
    %c0_i32_1 = arith.constant 0 : i32
    return %c0_i32, %c0_i32_0 : i32, i32
  }
  func.func @transform_3(%arg0: i32) -> (i32, i32) {
    %c0_i32 = arith.constant 0 : i32
    %c0_i32_0 = arith.constant 0 : i32
    return %arg0, %c0_i32 : i32, i32
  }
  func.func @transform_4(%arg0: i32) -> (i32, i32, i32) {
    %c0_i32 = arith.constant 0 : i32
    %c0_i32_0 = arith.constant 0 : i32
    %c0_i32_1 = arith.constant 0 : i32
    return %arg0, %c0_i32, %c0_i32_0 : i32, i32, i32
  }
}

module attributes {stable_mosaic.version = 11 : i64} {
  func.func @_bn3_kernel(%arg0: i32, %arg1: memref<512x128xf32, #tpu.memory_space<vmem>>, %arg2: memref<2x128xf32, #tpu.memory_space<vmem>>, %arg3: memref<512x128xf32, #tpu.memory_space<vmem>>) attributes {dimension_semantics = [#tpu.dimension_semantics<parallel>], iteration_bounds = array<i64: 1>, scalar_prefetch = 0 : i64, scratch_operands = 0 : i64, tpu.core_type = #tpu.core_type<tc>, window_params = [{transform_indices = @transform_0, window_bounds = array<i64: 512, 128>}, {pipeline_mode = #tpu.pipeline_mode<synchronous>, transform_indices = @transform_1, window_bounds = array<i64: 2, 128>}, {transform_indices = @transform_2, window_bounds = array<i64: 512, 128>}]} {
    %c0 = arith.constant 0 : index
    %c0_0 = arith.constant 0 : index
    %0 = vector.load %arg1[%c0, %c0_0] : memref<512x128xf32, #tpu.memory_space<vmem>>, vector<512x128xf32>
    %c0_1 = arith.constant 0 : index
    %c0_2 = arith.constant 0 : index
    %1 = vector.load %arg2[%c0_1, %c0_2] : memref<2x128xf32, #tpu.memory_space<vmem>>, vector<1x128xf32>
    %2 = vector.broadcast %1 : vector<1x128xf32> to vector<512x128xf32>
    %3 = arith.mulf %0, %2 : vector<512x128xf32>
    %c1 = arith.constant 1 : index
    %c0_3 = arith.constant 0 : index
    %4 = vector.load %arg2[%c1, %c0_3] : memref<2x128xf32, #tpu.memory_space<vmem>>, vector<1x128xf32>
    %5 = vector.broadcast %4 : vector<1x128xf32> to vector<512x128xf32>
    %6 = arith.addf %3, %5 : vector<512x128xf32>
    %cst = arith.constant 0.000000e+00 : f32
    %7 = vector.broadcast %cst : f32 to vector<512x128xf32>
    %8 = arith.maximumf %6, %7 : vector<512x128xf32>
    %c0_4 = arith.constant 0 : index
    %c0_5 = arith.constant 0 : index
    %9 = vector.load %arg3[%c0_4, %c0_5] : memref<512x128xf32, #tpu.memory_space<vmem>>, vector<512x128xf32>
    tpu.vector_store %arg3[%c0_4, %c0_5], %8 {strides = array<i32>} : memref<512x128xf32, #tpu.memory_space<vmem>>, vector<512x128xf32>,
    return
  }
  func.func @transform_0(%arg0: i32) -> (i32, i32) {
    %c0_i32 = arith.constant 0 : i32
    %c0_i32_0 = arith.constant 0 : i32
    return %arg0, %c0_i32 : i32, i32
  }
  func.func @transform_1(%arg0: i32) -> (i32, i32) {
    %c0_i32 = arith.constant 0 : i32
    %c0_i32_0 = arith.constant 0 : i32
    %c0_i32_1 = arith.constant 0 : i32
    return %c0_i32, %c0_i32_0 : i32, i32
  }
  func.func @transform_2(%arg0: i32) -> (i32, i32) {
    %c0_i32 = arith.constant 0 : i32
    %c0_i32_0 = arith.constant 0 : i32
    return %arg0, %c0_i32 : i32, i32
  }
}

</mosaic_0001>

<bundles_post_ra>
// kernel: tile.14
= control target key start
LH: loop header
LB: loop body
LE: loop exit
PB: predicated region body
PF: predicated region fallthrough
CT: control target
= control target key end

     0   :  { %s29_s10 = smov 3  ;;  %s10_s11 = smov 3  ;;  %vm12_vm0 = vcmask 64512   ;;  %vm19_vm1 = vcmask 261312   ;;  %vm26_vm2 = vcmask 195712   ;;  %vm33_vm3 = vcmask 130112   ;;  %s67_s0 = inlined_call_operand.vmem [shape: f32[2,4,8], index: 0, kind: input, shape index: {}]   ;;  %s68_s1 = inlined_call_operand.vmem [shape: f32[2,32], index: 1, kind: output, shape index: {}]  }
   0x1   :  { %v41_v0 = vld [vmem:[%s67_s0 + $0x4] sm:$0xf]  ;;  %v8_v1 = vld [vmem:[%s67_s0] sm:$0xf]  ;;  %s15_s0 = smov 3  ;;  %s22_s12 = smov 3 }
   0x2   :  { %7 = vst [vmem:[#allocation1 + $0x8] sm:$0xf] %v41_v0  ;;  %9 = vst [vmem:[#allocation1] sm:$0xf] %v8_v1  ;;  %s45_s13 = smov 24   ;;  %s46_s14 = smov 8  }
   0x3   :  { %s47_s15 = smov 16  }
   0x9   :  { %v16_v2 = vld [vmem:[#allocation1 + $0x3] ss:$8 sm:%s15_s0]   ;;  %v30_v3 = vld [vmem:[#allocation1 + $0x1] ss:$8 sm:%s29_s10]   ;;  %v11_v4 = vld [vmem:[#allocation1] ss:$8 sm:%s10_s11]  }
   0xa   :  { %17 = vrot.lane.b32.xlu0 %v16_v2, %s45_s13  ;;  %31 = vrot.lane.b32.xlu1 %v30_v3, %s46_s14  ;;  %v23_v5 = vld [vmem:[#allocation1 + $0x2] ss:$8 sm:%s22_s12]   ;;  %13 = vst.msk [vmem:[#allocation0] sm:$0x3] %vm12_vm0, %v11_v4  }
   0xe   :  { %24 = vrot.lane.b32.xlu0 %v23_v5, %s47_s15 }
  0x7c   :  { %v18_v6 = vpop.permute.xlu0 %17   ;;  %v32_v7 = vpop.permute.xlu1 %31  }
  0x7d   :  { %20 = vst.msk [vmem:[#allocation0] sm:$0x3] %vm19_vm1, %v18_v6  }
  0x80   :  { %v25_v8 = vpop.permute.xlu0 %24  }
  0x81   :  { %27 = vst.msk [vmem:[#allocation0] sm:$0x3] %vm26_vm2, %v25_v8  }
  0x82   :  { %34 = vst.msk [vmem:[#allocation0] sm:$0x3] %vm33_vm3, %v32_v7  }
  0x89   :  { %v38_v9 = vld [vmem:[#allocation0] sm:$0x3] }
  0x8a   :  { %40 = vst [vmem:[%s68_s1] sm:$0x3] %v38_v9 }

// kernel: tile.19
= control target key start
LH: loop header
LB: loop body
LE: loop exit
PB: predicated region body
PF: predicated region fallthrough
CT: control target
= control target key end

     0   :  { %s29_s10 = smov 3  ;;  %s10_s11 = smov 3  ;;  %vm12_vm0 = vcmask 261120   ;;  %vm19_vm1 = vcmask 1048320   ;;  %vm26_vm2 = vcmask 785920   ;;  %vm33_vm3 = vcmask 523520   ;;  %s67_s0 = inlined_call_operand.vmem [shape: f32[2,4,32], index: 0, kind: input, shape index: {}]   ;;  %s68_s1 = inlined_call_operand.vmem [shape: f32[2,128], index: 1, kind: output, shape index: {}]  }
   0x1   :  { %v41_v0 = vld [vmem:[%s67_s0 + $0x4] sm:$0xf]  ;;  %v8_v1 = vld [vmem:[%s67_s0] sm:$0xf]  ;;  %s15_s0 = smov 3  ;;  %s22_s12 = smov 3 }
   0x2   :  { %7 = vst [vmem:[#allocation1 + $0x8] sm:$0xf] %v41_v0  ;;  %9 = vst [vmem:[#allocation1] sm:$0xf] %v8_v1  ;;  %s45_s13 = smov 96   ;;  %s46_s14 = smov 32  }
   0x3   :  { %s47_s15 = smov 64  }
   0x9   :  { %v16_v2 = vld [vmem:[#allocation1 + $0x3] ss:$8 sm:%s15_s0]   ;;  %v30_v3 = vld [vmem:[#allocation1 + $0x1] ss:$8 sm:%s29_s10]   ;;  %v11_v4 = vld [vmem:[#allocation1] ss:$8 sm:%s10_s11]  }
   0xa   :  { %17 = vrot.lane.b32.xlu0 %v16_v2, %s45_s13  ;;  %31 = vrot.lane.b32.xlu1 %v30_v3, %s46_s14  ;;  %v23_v5 = vld [vmem:[#allocation1 + $0x2] ss:$8 sm:%s22_s12]   ;;  %13 = vst.msk [vmem:[#allocation0] sm:$0x3] %vm12_vm0, %v11_v4  }
   0xe   :  { %24 = vrot.lane.b32.xlu0 %v23_v5, %s47_s15 }
  0x7c   :  { %v18_v6 = vpop.permute.xlu0 %17   ;;  %v32_v7 = vpop.permute.xlu1 %31  }
  0x7d   :  { %20 = vst.msk [vmem:[#allocation0] sm:$0x3] %vm19_vm1, %v18_v6  }
  0x80   :  { %v25_v8 = vpop.permute.xlu0 %24  }
  0x81   :  { %27 = vst.msk [vmem:[#allocation0] sm:$0x3] %vm26_vm2, %v25_v8  }
  0x82   :  { %34 = vst.msk [vmem:[#allocation0] sm:$0x3] %vm33_vm3, %v32_v7  }
  0x89   :  { %v38_v9 = vld [vmem:[#allocation0] sm:$0x3] }
  0x8a   :  { %40 = vst [vmem:[%s68_s1] sm:$0x3] %v38_v9 }

// kernel: decoder_block.4
= control target key start
LH: loop header
LB: loop body
LE: loop exit
PB: predicated region body
PF: predicated region fallthrough
CT: control target
= control target key end

     0   :  { %9 = vsyncpa [#allocation3], 0  ;;  %s1356_s12 = smov [#allocation2]   ;;  %s2046_s0 = inlined_call_operand.hbm [shape: f32[512,32], index: 0, kind: input, shape index: {}]   ;;  %s2047_s1 = inlined_call_operand.vmem [shape: f32[32,8], index: 1, kind: input, shape index: {}]   ;;  %s2048_s2 = inlined_call_operand.vmem [shape: f32[512,8], index: 2, kind: output, shape index: {0}]   ;;  %s2049_s3 = inlined_call_operand.vmem [shape: f32[1,2,8], index: 3, kind: output, shape index: {1}]  }
   0x1   :  { %s15_s13 = sshll.u32 %s1356_s12, 4  ;;  %s1332_s16 = scalar_lea.hbm %s2046_s0, 8192  ;;  %s16_s13 = int_to_ptr.vmem [resolvable:$true] %s15_s13 }
   0x2   :  { %p1333_p0 = scmp.ne.s32.totalorder %s2046_s0, %s1332_s16  ;;  %p1336_p1 = scmp.lt.u32.totalorder %s1332_s16, %s2046_s0 }
   0x4   :  { %p1338_p2 = pnand %p1336_p1, %p1333_p0 }
   0x6   :  { %1341 = shalt.err (!%p1338_p2)
}
   0x7   :  { %s1342_s21 = scalar_lea.vmem %s16_s13, 8192  ;;  %p1347_p4 = scmp.lt.s32.totalorder %s16_s13, %s16_s13 }
   0x8   :  { %p1343_p3 = scmp.ne.s32.totalorder %s16_s13, %s1342_s21  ;;  %p1348_p5 = scmp.lt.s32.totalorder %s1342_s21, %s1342_s21 }
   0xa   :  { %p1349_p6 = por %p1348_p5, %p1347_p4 }
   0xc   :  { %p1350_p7 = pnand %p1349_p6, %p1343_p3 }
   0xe   :  { %1353 = shalt.err (!%p1350_p7)
}
   0xf   :  { %s1357_s22 = smov 128   ;;  %s1358_s23 = smov 8  }
  0x10   :  { %21 = dma.hbm_to_vmem [thread:$0]  %s2046_s0, 8192, %s16_s13, [#allocation3], %s1357_s22, %s1357_s22, %s1358_s23  }
  0x11   :  { %1354 = dma.done.wait [#allocation3], 8192  }
  0x12   :  { %1355 = vsyncadd [#allocation3], 4294959104  ;;  %vm95_vm0 = vcmask 261120   ;;  %v91_v0 = vld [vmem:[%s2047_s1] sm:$0xff]  ;;  %v92_v1 = vld [vmem:[%s2047_s1 + $0x8] sm:$0xff]  ;;  %vm673_vm1 = vcmask 64512  }
  0x13   :  { %v93_v2 = vld [vmem:[%s2047_s1 + $0x10] sm:$0xff]  ;;  %v1317_v3 = vpack.c.bf16 %v92_v1, %v91_v0  ;;  %v94_v4 = vld [vmem:[%s2047_s1 + $0x18] sm:$0xff]  ;;  %v27_v5 = vld [vmem:[#allocation2] sm:$0xff]  ;;  %vm1068_vm2 = vcmask 1040384   ;;  %vm1070_vm3 = vcmask 58368  }
  0x14   :  { %v1321_v6 = vpack.c.bf16 %v94_v4, %v93_v2  ;;  %1221 = vmatprep.mubr.msk.f32.mxu0 %vm95_vm0, %v27_v5  ;;  %v28_v7 = vld [vmem:[#allocation2 + $0x8] sm:$0xff]  ;;  %v29_v8 = vld [vmem:[#allocation2 + $0x10] sm:$0xff]  ;;  %v30_v9 = vld [vmem:[#allocation2 + $0x18] sm:$0xff] }
  0x15   :  { %1318 = vmatprep.subr.bf16.mxu0 %v1317_v3  ;;  %1325 = vmatprep.subr.bf16.mxu1 %v1317_v3  ;;  %v59_v10 = vld [vmem:[#allocation2 + $0x100] sm:$0xff]  ;;  %v60_v11 = vld [vmem:[#allocation2 + $0x108] sm:$0xff]  ;;  %v61_v12 = vld [vmem:[#allocation2 + $0x110] sm:$0xff] }
  0x16   :  { %1320 = vmatpush3.bf16.msra.mxu0 %v1317_v3  ;;  %1327 = vmatpush3.bf16.msra.mxu1 %v1317_v3  ;;  %v31_v13 = vld [vmem:[#allocation2 + $0x20] sm:$0xff]  ;;  %v62_v14 = vld [vmem:[#allocation2 + $0x118] sm:$0xff]  ;;  %v32_v15 = vld [vmem:[#allocation2 + $0x28] sm:$0xff] }
  0x17   :  { %1322 = vmatprep.subr.bf16.mxu0 %v1321_v6  ;;  %1326 = vmatprep.subr.bf16.mxu1 %v1321_v6  ;;  %v63_v16 = vld [vmem:[#allocation2 + $0x120] sm:$0xff]  ;;  %v33_v17 = vld [vmem:[#allocation2 + $0x30] sm:$0xff]  ;;  %v64_v18 = vld [vmem:[#allocation2 + $0x128] sm:$0xff] }
  0x18   :  { %1269 = vmatprep.mubr.msk.f32.mxu1 %vm95_vm0, %v59_v10  ;;  %v34_v19 = vld [vmem:[#allocation2 + $0x38] sm:$0xff]  ;;  %v65_v20 = vld [vmem:[#allocation2 + $0x130] sm:$0xff]  ;;  %v35_v21 = vld [vmem:[#allocation2 + $0x40] sm:$0xff] }
  0x19   :  { %v66_v22 = vld [vmem:[#allocation2 + $0x138] sm:$0xff]  ;;  %v36_v23 = vld [vmem:[#allocation2 + $0x48] sm:$0xff]  ;;  %v67_v24 = vld [vmem:[#allocation2 + $0x140] sm:$0xff] }
  0x1a   :  { %1324 = vmatpush3.bf16.msra.mxu0 %v1321_v6  ;;  %1328 = vmatpush3.bf16.msra.mxu1 %v1321_v6  ;;  %v37_v25 = vld [vmem:[#allocation2 + $0x50] sm:$0xff]  ;;  %v68_v26 = vld [vmem:[#allocation2 + $0x148] sm:$0xff]  ;;  %v38_v27 = vld [vmem:[#allocation2 + $0x58] sm:$0xff] }
  0x1b   :  { %v69_v28 = vld [vmem:[#allocation2 + $0x150] sm:$0xff]  ;;  %v39_v29 = vld [vmem:[#allocation2 + $0x60] sm:$0xff]  ;;  %v70_v30 = vld [vmem:[#allocation2 + $0x158] sm:$0xff] }
  0x1c   :  { %v40_v31 = vld [vmem:[#allocation2 + $0x68] sm:$0xff]  ;;  %v71_v32 = vld [vmem:[#allocation2 + $0x160] sm:$0xff]  ;;  %v41_v33 = vld [vmem:[#allocation2 + $0x70] sm:$0xff] }
  0x1d   :  { %1222 = vmatmul.mubr.msk.f32.vlgmr.msra.gmra.mrb[0].mxu0 %vm95_vm0, %v28_v7  ;;  %1270 = vmatmul.mubr.msk.f32.vlgmr.msra.gmra.mrb[0].mxu1 %vm95_vm0, %v60_v11  ;;  %v72_v34 = vld [vmem:[#allocation2 + $0x168] sm:$0xff]  ;;  %v42_v35 = vld [vmem:[#allocation2 + $0x78] sm:$0xff]  ;;  %v73_v36 = vld [vmem:[#allocation2 + $0x170] sm:$0xff] }
  0x1e   :  { %1224 = vmatprep.mubr.msk.f32.mxu0 %vm95_vm0, %v29_v8  ;;  %1272 = vmatprep.mubr.msk.f32.mxu1 %vm95_vm0, %v61_v12  ;;  %v43_v37 = vld [vmem:[#allocation2 + $0x80] sm:$0xff]  ;;  %v74_v38 = vld [vmem:[#allocation2 + $0x178] sm:$0xff]  ;;  %v44_v39 = vld [vmem:[#allocation2 + $0x88] sm:$0xff] }
  0x1f   :  { %v75_v40 = vld [vmem:[#allocation2 + $0x180] sm:$0xff]  ;;  %v45_v41 = vld [vmem:[#allocation2 + $0x90] sm:$0xff]  ;;  %v76_v42 = vld [vmem:[#allocation2 + $0x188] sm:$0xff] }
  0x20   :  { %v46_v43 = vld [vmem:[#allocation2 + $0x98] sm:$0xff]  ;;  %v77_v44 = vld [vmem:[#allocation2 + $0x190] sm:$0xff]  ;;  %v47_v45 = vld [vmem:[#allocation2 + $0xa0] sm:$0xff] }
  0x21   :  { %1225 = vmatmul.mubr.msk.f32.gmra.mrb[2].mxu0 %vm95_vm0, %v30_v9  ;;  %1273 = vmatmul.mubr.msk.f32.gmra.mrb[2].mxu1 %vm95_vm0, %v62_v14  ;;  %v78_v46 = vld [vmem:[#allocation2 + $0x198] sm:$0xff]  ;;  %v48_v47 = vld [vmem:[#allocation2 + $0xa8] sm:$0xff]  ;;  %v79_v48 = vld [vmem:[#allocation2 + $0x1a0] sm:$0xff] }
  0x22   :  { %1227 = vmatprep.mubr.msk.f32.mxu0 %vm95_vm0, %v31_v13  ;;  %1275 = vmatprep.mubr.msk.f32.mxu1 %vm95_vm0, %v63_v16  ;;  %v49_v49 = vld [vmem:[#allocation2 + $0xb0] sm:$0xff]  ;;  %v80_v50 = vld [vmem:[#allocation2 + $0x1a8] sm:$0xff]  ;;  %v50_v51 = vld [vmem:[#allocation2 + $0xb8] sm:$0xff] }
  0x23   :  { %v81_v52 = vld [vmem:[#allocation2 + $0x1b0] sm:$0xff]  ;;  %v51_v53 = vld [vmem:[#allocation2 + $0xc0] sm:$0xff]  ;;  %v82_v54 = vld [vmem:[#allocation2 + $0x1b8] sm:$0xff] }
  0x24   :  { %v52_v55 = vld [vmem:[#allocation2 + $0xc8] sm:$0xff]  ;;  %v83_v56 = vld [vmem:[#allocation2 + $0x1c0] sm:$0xff]  ;;  %v53_v57 = vld [vmem:[#allocation2 + $0xd0] sm:$0xff] }
  0x25   :  { %1228 = vmatmul.mubr.msk.f32.gmra.mrb[4].mxu0 %vm95_vm0, %v32_v15  ;;  %1276 = vmatmul.mubr.msk.f32.gmra.mrb[4].mxu1 %vm95_vm0, %v64_v18  ;;  %v84_v58 = vld [vmem:[#allocation2 + $0x1c8] sm:$0xff]  ;;  %v54_v59 = vld [vmem:[#allocation2 + $0xd8] sm:$0xff]  ;;  %v85_v60 = vld [vmem:[#allocation2 + $0x1d0] sm:$0xff] }
  0x26   :  { %1230 = vmatprep.mubr.msk.f32.mxu0 %vm95_vm0, %v33_v17  ;;  %1278 = vmatprep.mubr.msk.f32.mxu1 %vm95_vm0, %v65_v20  ;;  %v55_v61 = vld [vmem:[#allocation2 + $0xe0] sm:$0xff]  ;;  %v86_v62 = vld [vmem:[#allocation2 + $0x1d8] sm:$0xff]  ;;  %v56_v63 = vld [vmem:[#allocation2 + $0xe8] sm:$0xff] }
  0x27   :  { %v87_v0 = vld [vmem:[#allocation2 + $0x1e0] sm:$0xff]  ;;  %v57_v1 = vld [vmem:[#allocation2 + $0xf0] sm:$0xff]  ;;  %v88_v2 = vld [vmem:[#allocation2 + $0x1e8] sm:$0xff] }
  0x28   :  { %v58_v3 = vld [vmem:[#allocation2 + $0xf8] sm:$0xff]  ;;  %v89_v4 = vld [vmem:[#allocation2 + $0x1f0] sm:$0xff] }
  0x29   :  { %1231 = vmatmul.mubr.msk.f32.gmra.mrb[6].mxu0 %vm95_vm0, %v34_v19  ;;  %1279 = vmatmul.mubr.msk.f32.gmra.mrb[6].mxu1 %vm95_vm0, %v66_v22  ;;  %v90_v5 = vld [vmem:[#allocation2 + $0x1f8] sm:$0xff] }
  0x2a   :  { %1233 = vmatprep.mubr.msk.f32.mxu0 %vm95_vm0, %v35_v21  ;;  %1281 = vmatprep.mubr.msk.f32.mxu1 %vm95_vm0, %v67_v24 }
  0x2d   :  { %1234 = vmatmul.mubr.msk.f32.gmra.mrb[8].mxu0 %vm95_vm0, %v36_v23  ;;  %1282 = vmatmul.mubr.msk.f32.gmra.mrb[8].mxu1 %vm95_vm0, %v68_v26 }
  0x2e   :  { %1236 = vmatprep.mubr.msk.f32.mxu0 %vm95_vm0, %v37_v25  ;;  %1284 = vmatprep.mubr.msk.f32.mxu1 %vm95_vm0, %v69_v28 }
  0x31   :  { %1237 = vmatmul.mubr.msk.f32.gmra.mrb[10].mxu0 %vm95_vm0, %v38_v27  ;;  %1285 = vmatmul.mubr.msk.f32.gmra.mrb[10].mxu1 %vm95_vm0, %v70_v30 }
  0x32   :  { %1239 = vmatprep.mubr.msk.f32.mxu0 %vm95_vm0, %v39_v29  ;;  %1287 = vmatprep.mubr.msk.f32.mxu1 %vm95_vm0, %v71_v32 }
  0x35   :  { %1240 = vmatmul.mubr.msk.f32.gmra.mrb[12].mxu0 %vm95_vm0, %v40_v31  ;;  %1288 = vmatmul.mubr.msk.f32.gmra.mrb[12].mxu1 %vm95_vm0, %v72_v34 }
  0x36   :  { %1242 = vmatprep.mubr.msk.f32.mxu0 %vm95_vm0, %v41_v33  ;;  %1290 = vmatprep.mubr.msk.f32.mxu1 %vm95_vm0, %v73_v36 }
  0x39   :  { %1243 = vmatmul.mubr.msk.f32.gmra.mrb[14].mxu0 %vm95_vm0, %v42_v35  ;;  %1291 = vmatmul.mubr.msk.f32.gmra.mrb[14].mxu1 %vm95_vm0, %v74_v38 }
  0x3a   :  { %1245 = vmatprep.mubr.msk.f32.mxu0 %vm95_vm0, %v43_v37  ;;  %1293 = vmatprep.mubr.msk.f32.mxu1 %vm95_vm0, %v75_v40 }
  0x3d   :  { %1246 = vmatmul.mubr.msk.f32.gmra.mrb[16].mxu0 %vm95_vm0, %v44_v39  ;;  %1294 = vmatmul.mubr.msk.f32.gmra.mrb[16].mxu1 %vm95_vm0, %v76_v42 }
  0x3e   :  { %1248 = vmatprep.mubr.msk.f32.mxu0 %vm95_vm0, %v45_v41  ;;  %1296 = vmatprep.mubr.msk.f32.mxu1 %vm95_vm0, %v77_v44 }
  0x41   :  { %1249 = vmatmul.mubr.msk.f32.gmra.mrb[18].mxu0 %vm95_vm0, %v46_v43  ;;  %1297 = vmatmul.mubr.msk.f32.gmra.mrb[18].mxu1 %vm95_vm0, %v78_v46 }
  0x42   :  { %1251 = vmatprep.mubr.msk.f32.mxu0 %vm95_vm0, %v47_v45  ;;  %1299 = vmatprep.mubr.msk.f32.mxu1 %vm95_vm0, %v79_v48 }
  0x45   :  { %1252 = vmatmul.mubr.msk.f32.gmra.mrb[20].mxu0 %vm95_vm0, %v48_v47  ;;  %1300 = vmatmul.mubr.msk.f32.gmra.mrb[20].mxu1 %vm95_vm0, %v80_v50 }
  0x46   :  { %1254 = vmatprep.mubr.msk.f32.mxu0 %vm95_vm0, %v49_v49  ;;  %1302 = vmatprep.mubr.msk.f32.mxu1 %vm95_vm0, %v81_v52 }
  0x49   :  { %1255 = vmatmul.mubr.msk.f32.gmra.mrb[22].mxu0 %vm95_vm0, %v50_v51  ;;  %1303 = vmatmul.mubr.msk.f32.gmra.mrb[22].mxu1 %vm95_vm0, %v82_v54 }
  0x4a   :  { %1257 = vmatprep.mubr.msk.f32.mxu0 %vm95_vm0, %v51_v53  ;;  %1305 = vmatprep.mubr.msk.f32.mxu1 %vm95_vm0, %v83_v56 }
  0x4d   :  { %1258 = vmatmul.mubr.msk.f32.gmra.mrb[24].mxu0 %vm95_vm0, %v52_v55  ;;  %1306 = vmatmul.mubr.msk.f32.gmra.mrb[24].mxu1 %vm95_vm0, %v84_v58 }
  0x4e   :  { %1260 = vmatprep.mubr.msk.f32.mxu0 %vm95_vm0, %v53_v57  ;;  %1308 = vmatprep.mubr.msk.f32.mxu1 %vm95_vm0, %v85_v60 }
  0x51   :  { %1261 = vmatmul.mubr.msk.f32.gmra.mrb[26].mxu0 %vm95_vm0, %v54_v59  ;;  %1309 = vmatmul.mubr.msk.f32.gmra.mrb[26].mxu1 %vm95_vm0, %v86_v62 }
  0x52   :  { %1263 = vmatprep.mubr.msk.f32.mxu0 %vm95_vm0, %v55_v61  ;;  %1311 = vmatprep.mubr.msk.f32.mxu1 %vm95_vm0, %v87_v0 }
  0x55   :  { %1264 = vmatmul.mubr.msk.f32.gmra.mrb[28].mxu0 %vm95_vm0, %v56_v63  ;;  %1312 = vmatmul.mubr.msk.f32.gmra.mrb[28].mxu1 %vm95_vm0, %v88_v2 }
  0x56   :  { %1266 = vmatprep.mubr.msk.f32.mxu0 %vm95_vm0, %v57_v1  ;;  %1314 = vmatprep.mubr.msk.f32.mxu1 %vm95_vm0, %v89_v4 }
  0x59   :  { %1267 = vmatmul.mubr.msk.f32.gmra.mrb[30].mxu0 %vm95_vm0, %v58_v3  ;;  %1315 = vmatmul.mubr.msk.f32.gmra.mrb[30].mxu1 %vm95_vm0, %v90_v5 }
  0xf0   :  { %v1223_v6 = vpop.f32.mrb[0].mxu0  ;;  %v1478_v14 = vpop.f32.mrb[0].mxu1 }
  0xf1   :  { %675 = vst.msk [vmem:[%s2048_s2 + $0x8] sm:$0xff] %vm673_vm1, %v1223_v6  ;;  %v739_v7 = vsel %vm673_vm1, %v1223_v6, 0.0  ;;  %v872_v8 = vmul.f32 %v1223_v6, %v1223_v6  ;;  %v354_v9 = vpop.f32.mrb[1].mxu0  ;;  %707 = vst.msk [vmem:[%s2048_s2 + $0x108] sm:$0xff] %vm673_vm1, %v1478_v14  ;;  %v1486_v17 = vpop.f32.mrb[1].mxu1 }
  0xf2   :  { %674 = vst.msk [vmem:[%s2048_s2] sm:$0xff] %vm673_vm1, %v354_v9  ;;  %v738_v10 = vsel %vm673_vm1, %v354_v9, 0.0  ;;  %v871_v11 = vmul.f32 %v354_v9, %v354_v9  ;;  %706 = vst.msk [vmem:[%s2048_s2 + $0x100] sm:$0xff] %vm673_vm1, %v1486_v17 }
  0xf3   :  { %v936_v12 = vsel %vm673_vm1, %v872_v8, 0.0  ;;  %v740_v13 = vadd.f32 %v739_v7, %v738_v10 }
  0xf4   :  { %v935_v15 = vsel %vm673_vm1, %v871_v11, 0.0  ;;  %v1226_v16 = vpop.f32.mrb[2].mxu0  ;;  %v1502_v24 = vpop.f32.mrb[2].mxu1 }
  0xf5   :  { %v937_v18 = vadd.f32 %v936_v12, %v935_v15  ;;  %677 = vst.msk [vmem:[%s2048_s2 + $0x18] sm:$0xff] %vm673_vm1, %v1226_v16  ;;  %v364_v19 = vpop.f32.mrb[3].mxu0  ;;  %v874_v20 = vmul.f32 %v1226_v16, %v1226_v16  ;;  %v743_v25 = vsel %vm673_vm1, %v1226_v16, 0.0  ;;  %709 = vst.msk [vmem:[%s2048_s2 + $0x118] sm:$0xff] %vm673_vm1, %v1502_v24  ;;  %v1511_v28 = vpop.f32.mrb[3].mxu1 }
  0xf6   :  { %676 = vst.msk [vmem:[%s2048_s2 + $0x10] sm:$0xff] %vm673_vm1, %v364_v19  ;;  %v741_v21 = vsel %vm673_vm1, %v364_v19, 0.0  ;;  %v873_v22 = vmul.f32 %v364_v19, %v364_v19  ;;  %708 = vst.msk [vmem:[%s2048_s2 + $0x110] sm:$0xff] %vm673_vm1, %v1511_v28 }
  0xf7   :  { %v742_v23 = vadd.f32 %v741_v21, %v740_v13  ;;  %v940_v32 = vsel %vm673_vm1, %v874_v20, 0.0 }
  0xf8   :  { %v938_v26 = vsel %vm673_vm1, %v873_v22, 0.0  ;;  %v1229_v27 = vpop.f32.mrb[4].mxu0  ;;  %v1528_v38 = vpop.f32.mrb[4].mxu1 }
  0xf9   :  { %v939_v29 = vadd.f32 %v938_v26, %v937_v18  ;;  %679 = vst.msk [vmem:[%s2048_s2 + $0x28] sm:$0xff] %vm673_vm1, %v1229_v27  ;;  %v374_v30 = vpop.f32.mrb[5].mxu0  ;;  %v744_v31 = vadd.f32 %v743_v25, %v742_v23  ;;  %v876_v33 = vmul.f32 %v1229_v27, %v1229_v27  ;;  %v747_v39 = vsel %vm673_vm1, %v1229_v27, 0.0  ;;  %711 = vst.msk [vmem:[%s2048_s2 + $0x128] sm:$0xff] %vm673_vm1, %v1528_v38  ;;  %v1537_v42 = vpop.f32.mrb[5].mxu1 }
  0xfa   :  { %678 = vst.msk [vmem:[%s2048_s2 + $0x20] sm:$0xff] %vm673_vm1, %v374_v30  ;;  %v745_v34 = vsel %vm673_vm1, %v374_v30, 0.0  ;;  %v875_v35 = vmul.f32 %v374_v30, %v374_v30  ;;  %710 = vst.msk [vmem:[%s2048_s2 + $0x120] sm:$0xff] %vm673_vm1, %v1537_v42 }
  0xfb   :  { %v746_v36 = vadd.f32 %v745_v34, %v744_v31  ;;  %v941_v37 = vadd.f32 %v940_v32, %v939_v29  ;;  %v944_v46 = vsel %vm673_vm1, %v876_v33, 0.0 }
  0xfc   :  { %v942_v40 = vsel %vm673_vm1, %v875_v35, 0.0  ;;  %v1232_v41 = vpop.f32.mrb[6].mxu0  ;;  %v1554_v52 = vpop.f32.mrb[6].mxu1 }
  0xfd   :  { %v943_v43 = vadd.f32 %v942_v40, %v941_v37  ;;  %681 = vst.msk [vmem:[%s2048_s2 + $0x38] sm:$0xff] %vm673_vm1, %v1232_v41  ;;  %v384_v44 = vpop.f32.mrb[7].mxu0  ;;  %v748_v45 = vadd.f32 %v747_v39, %v746_v36  ;;  %v878_v47 = vmul.f32 %v1232_v41, %v1232_v41  ;;  %v751_v53 = vsel %vm673_vm1, %v1232_v41, 0.0  ;;  %713 = vst.msk [vmem:[%s2048_s2 + $0x138] sm:$0xff] %vm673_vm1, %v1554_v52  ;;  %v1563_v56 = vpop.f32.mrb[7].mxu1 }
  0xfe   :  { %680 = vst.msk [vmem:[%s2048_s2 + $0x30] sm:$0xff] %vm673_vm1, %v384_v44  ;;  %v749_v48 = vsel %vm673_vm1, %v384_v44, 0.0  ;;  %v877_v49 = vmul.f32 %v384_v44, %v384_v44  ;;  %712 = vst.msk [vmem:[%s2048_s2 + $0x130] sm:$0xff] %vm673_vm1, %v1563_v56 }
  0xff   :  { %v750_v50 = vadd.f32 %v749_v48, %v748_v45  ;;  %v945_v51 = vadd.f32 %v944_v46, %v943_v43  ;;  %v948_v60 = vsel %vm673_vm1, %v878_v47, 0.0 }
 0x100   :  { %v946_v54 = vsel %vm673_vm1, %v877_v49, 0.0  ;;  %v1235_v55 = vpop.f32.mrb[8].mxu0  ;;  %v1580_v2 = vpop.f32.mrb[8].mxu1 }
 0x101   :  { %v947_v57 = vadd.f32 %v946_v54, %v945_v51  ;;  %683 = vst.msk [vmem:[%s2048_s2 + $0x48] sm:$0xff] %vm673_vm1, %v1235_v55  ;;  %v394_v58 = vpop.f32.mrb[9].mxu0  ;;  %v752_v59 = vadd.f32 %v751_v53, %v750_v50  ;;  %v880_v61 = vmul.f32 %v1235_v55, %v1235_v55  ;;  %v755_v3 = vsel %vm673_vm1, %v1235_v55, 0.0  ;;  %715 = vst.msk [vmem:[%s2048_s2 + $0x148] sm:$0xff] %vm673_vm1, %v1580_v2  ;;  %v1589_v6 = vpop.f32.mrb[9].mxu1 }
 0x102   :  { %682 = vst.msk [vmem:[%s2048_s2 + $0x40] sm:$0xff] %vm673_vm1, %v394_v58  ;;  %v753_v62 = vsel %vm673_vm1, %v394_v58, 0.0  ;;  %v879_v63 = vmul.f32 %v394_v58, %v394_v58  ;;  %714 = vst.msk [vmem:[%s2048_s2 + $0x140] sm:$0xff] %vm673_vm1, %v1589_v6 }
 0x103   :  { %v754_v0 = vadd.f32 %v753_v62, %v752_v59  ;;  %v949_v1 = vadd.f32 %v948_v60, %v947_v57  ;;  %v952_v10 = vsel %vm673_vm1, %v880_v61, 0.0 }
 0x104   :  { %v950_v4 = vsel %vm673_vm1, %v879_v63, 0.0  ;;  %v1238_v5 = vpop.f32.mrb[10].mxu0  ;;  %v1606_v18 = vpop.f32.mrb[10].mxu1 }
 0x105   :  { %v951_v7 = vadd.f32 %v950_v4, %v949_v1  ;;  %685 = vst.msk [vmem:[%s2048_s2 + $0x58] sm:$0xff] %vm673_vm1, %v1238_v5  ;;  %v404_v8 = vpop.f32.mrb[11].mxu0  ;;  %v756_v9 = vadd.f32 %v755_v3, %v754_v0  ;;  %v882_v11 = vmul.f32 %v1238_v5, %v1238_v5  ;;  %v759_v19 = vsel %vm673_vm1, %v1238_v5, 0.0  ;;  %717 = vst.msk [vmem:[%s2048_s2 + $0x158] sm:$0xff] %vm673_vm1, %v1606_v18  ;;  %v1615_v22 = vpop.f32.mrb[11].mxu1 }
 0x106   :  { %684 = vst.msk [vmem:[%s2048_s2 + $0x50] sm:$0xff] %vm673_vm1, %v404_v8  ;;  %v757_v12 = vsel %vm673_vm1, %v404_v8, 0.0  ;;  %v881_v13 = vmul.f32 %v404_v8, %v404_v8  ;;  %716 = vst.msk [vmem:[%s2048_s2 + $0x150] sm:$0xff] %vm673_vm1, %v1615_v22 }
 0x107   :  { %v758_v15 = vadd.f32 %v757_v12, %v756_v9  ;;  %v953_v16 = vadd.f32 %v952_v10, %v951_v7  ;;  %v956_v27 = vsel %vm673_vm1, %v882_v11, 0.0 }
 0x108   :  { %v954_v20 = vsel %vm673_vm1, %v881_v13, 0.0  ;;  %v1241_v21 = vpop.f32.mrb[12].mxu0  ;;  %v1632_v34 = vpop.f32.mrb[12].mxu1 }
 0x109   :  { %v955_v23 = vadd.f32 %v954_v20, %v953_v16  ;;  %687 = vst.msk [vmem:[%s2048_s2 + $0x68] sm:$0xff] %vm673_vm1, %v1241_v21  ;;  %v414_v25 = vpop.f32.mrb[13].mxu0  ;;  %v760_v26 = vadd.f32 %v759_v19, %v758_v15  ;;  %v884_v29 = vmul.f32 %v1241_v21, %v1241_v21  ;;  %v763_v35 = vsel %vm673_vm1, %v1241_v21, 0.0  ;;  %719 = vst.msk [vmem:[%s2048_s2 + $0x168] sm:$0xff] %vm673_vm1, %v1632_v34  ;;  %v1641_v39 = vpop.f32.mrb[13].mxu1 }
 0x10a   :  { %686 = vst.msk [vmem:[%s2048_s2 + $0x60] sm:$0xff] %vm673_vm1, %v414_v25  ;;  %v761_v30 = vsel %vm673_vm1, %v414_v25, 0.0  ;;  %v883_v31 = vmul.f32 %v414_v25, %v414_v25  ;;  %718 = vst.msk [vmem:[%s2048_s2 + $0x160] sm:$0xff] %vm673_vm1, %v1641_v39 }
 0x10b   :  { %v762_v32 = vadd.f32 %v761_v30, %v760_v26  ;;  %v957_v33 = vadd.f32 %v956_v27, %v955_v23  ;;  %v960_v44 = vsel %vm673_vm1, %v884_v29, 0.0 }
 0x10c   :  { %v958_v36 = vsel %vm673_vm1, %v883_v31, 0.0  ;;  %v1244_v37 = vpop.f32.mrb[14].mxu0  ;;  %v1658_v50 = vpop.f32.mrb[14].mxu1 }
 0x10d   :  { %v959_v40 = vadd.f32 %v958_v36, %v957_v33  ;;  %689 = vst.msk [vmem:[%s2048_s2 + $0x78] sm:$0xff] %vm673_vm1, %v1244_v37  ;;  %v424_v41 = vpop.f32.mrb[15].mxu0  ;;  %v764_v43 = vadd.f32 %v763_v35, %v762_v32  ;;  %v886_v45 = vmul.f32 %v1244_v37, %v1244_v37  ;;  %v767_v51 = vsel %vm673_vm1, %v1244_v37, 0.0  ;;  %721 = vst.msk [vmem:[%s2048_s2 + $0x178] sm:$0xff] %vm673_vm1, %v1658_v50  ;;  %v1667_v55 = vpop.f32.mrb[15].mxu1 }
 0x10e   :  { %688 = vst.msk [vmem:[%s2048_s2 + $0x70] sm:$0xff] %vm673_vm1, %v424_v41  ;;  %v765_v46 = vsel %vm673_vm1, %v424_v41, 0.0  ;;  %v885_v47 = vmul.f32 %v424_v41, %v424_v41  ;;  %720 = vst.msk [vmem:[%s2048_s2 + $0x170] sm:$0xff] %vm673_vm1, %v1667_v55 }
 0x10f   :  { %v766_v48 = vadd.f32 %v765_v46, %v764_v43  ;;  %v961_v49 = vadd.f32 %v960_v44, %v959_v40  ;;  %v964_v60 = vsel %vm673_vm1, %v886_v45, 0.0 }
 0x110   :  { %v962_v53 = vsel %vm673_vm1, %v885_v47, 0.0  ;;  %v1247_v54 = vpop.f32.mrb[16].mxu0  ;;  %v1684_v3 = vpop.f32.mrb[16].mxu1 }
 0x111   :  { %v963_v57 = vadd.f32 %v962_v53, %v961_v49  ;;  %691 = vst.msk [vmem:[%s2048_s2 + $0x88] sm:$0xff] %vm673_vm1, %v1247_v54  ;;  %v434_v58 = vpop.f32.mrb[17].mxu0  ;;  %v768_v59 = vadd.f32 %v767_v51, %v766_v48  ;;  %v888_v61 = vmul.f32 %v1247_v54, %v1247_v54  ;;  %v771_v4 = vsel %vm673_vm1, %v1247_v54, 0.0  ;;  %723 = vst.msk [vmem:[%s2048_s2 + $0x188] sm:$0xff] %vm673_vm1, %v1684_v3  ;;  %v1693_v8 = vpop.f32.mrb[17].mxu1 }
 0x112   :  { %690 = vst.msk [vmem:[%s2048_s2 + $0x80] sm:$0xff] %vm673_vm1, %v434_v58  ;;  %v769_v62 = vsel %vm673_vm1, %v434_v58, 0.0  ;;  %v887_v63 = vmul.f32 %v434_v58, %v434_v58  ;;  %722 = vst.msk [vmem:[%s2048_s2 + $0x180] sm:$0xff] %vm673_vm1, %v1693_v8 }
 0x113   :  { %v770_v0 = vadd.f32 %v769_v62, %v768_v59  ;;  %v965_v1 = vadd.f32 %v964_v60, %v963_v57  ;;  %v968_v12 = vsel %vm673_vm1, %v888_v61, 0.0 }
 0x114   :  { %v966_v5 = vsel %vm673_vm1, %v887_v63, 0.0  ;;  %v1250_v7 = vpop.f32.mrb[18].mxu0  ;;  %v1710_v21 = vpop.f32.mrb[18].mxu1 }
 0x115   :  { %v967_v9 = vadd.f32 %v966_v5, %v965_v1  ;;  %693 = vst.msk [vmem:[%s2048_s2 + $0x98] sm:$0xff] %vm673_vm1, %v1250_v7  ;;  %v444_v10 = vpop.f32.mrb[19].mxu0  ;;  %v772_v11 = vadd.f32 %v771_v4, %v770_v0  ;;  %v890_v13 = vmul.f32 %v1250_v7, %v1250_v7  ;;  %v775_v23 = vsel %vm673_vm1, %v1250_v7, 0.0  ;;  %725 = vst.msk [vmem:[%s2048_s2 + $0x198] sm:$0xff] %vm673_vm1, %v1710_v21  ;;  %v1719_v27 = vpop.f32.mrb[19].mxu1 }
 0x116   :  { %692 = vst.msk [vmem:[%s2048_s2 + $0x90] sm:$0xff] %vm673_vm1, %v444_v10  ;;  %v773_v15 = vsel %vm673_vm1, %v444_v10, 0.0  ;;  %v889_v16 = vmul.f32 %v444_v10, %v444_v10  ;;  %724 = vst.msk [vmem:[%s2048_s2 + $0x190] sm:$0xff] %vm673_vm1, %v1719_v27 }
 0x117   :  { %v774_v19 = vadd.f32 %v773_v15, %v772_v11  ;;  %v969_v20 = vadd.f32 %v968_v12, %v967_v9  ;;  %v972_v32 = vsel %vm673_vm1, %v890_v13, 0.0 }
 0x118   :  { %v970_v25 = vsel %vm673_vm1, %v889_v16, 0.0  ;;  %v1253_v26 = vpop.f32.mrb[20].mxu0  ;;  %v1736_v41 = vpop.f32.mrb[20].mxu1 }
 0x119   :  { %v971_v29 = vadd.f32 %v970_v25, %v969_v20  ;;  %695 = vst.msk [vmem:[%s2048_s2 + $0xa8] sm:$0xff] %vm673_vm1, %v1253_v26  ;;  %v454_v30 = vpop.f32.mrb[21].mxu0  ;;  %v776_v31 = vadd.f32 %v775_v23, %v774_v19  ;;  %v892_v33 = vmul.f32 %v1253_v26, %v1253_v26  ;;  %v779_v43 = vsel %vm673_vm1, %v1253_v26, 0.0  ;;  %727 = vst.msk [vmem:[%s2048_s2 + $0x1a8] sm:$0xff] %vm673_vm1, %v1736_v41  ;;  %v1745_v46 = vpop.f32.mrb[21].mxu1 }
 0x11a   :  { %694 = vst.msk [vmem:[%s2048_s2 + $0xa0] sm:$0xff] %vm673_vm1, %v454_v30  ;;  %v777_v35 = vsel %vm673_vm1, %v454_v30, 0.0  ;;  %v891_v36 = vmul.f32 %v454_v30, %v454_v30  ;;  %726 = vst.msk [vmem:[%s2048_s2 + $0x1a0] sm:$0xff] %vm673_vm1, %v1745_v46 }
 0x11b   :  { %v778_v37 = vadd.f32 %v777_v35, %v776_v31  ;;  %v973_v40 = vadd.f32 %v972_v32, %v971_v29  ;;  %v976_v51 = vsel %vm673_vm1, %v892_v33, 0.0 }
 0x11c   :  { %v974_v44 = vsel %vm673_vm1, %v891_v36, 0.0  ;;  %v1256_v45 = vpop.f32.mrb[22].mxu0  ;;  %v1762_v60 = vpop.f32.mrb[22].mxu1 }
 0x11d   :  { %v975_v47 = vadd.f32 %v974_v44, %v973_v40  ;;  %697 = vst.msk [vmem:[%s2048_s2 + $0xb8] sm:$0xff] %vm673_vm1, %v1256_v45  ;;  %v464_v48 = vpop.f32.mrb[23].mxu0  ;;  %v780_v49 = vadd.f32 %v779_v43, %v778_v37  ;;  %v894_v53 = vmul.f32 %v1256_v45, %v1256_v45  ;;  %v783_v61 = vsel %vm673_vm1, %v1256_v45, 0.0  ;;  %729 = vst.msk [vmem:[%s2048_s2 + $0x1b8] sm:$0xff] %vm673_vm1, %v1762_v60  ;;  %v1771_v0 = vpop.f32.mrb[23].mxu1 }
 0x11e   :  { %696 = vst.msk [vmem:[%s2048_s2 + $0xb0] sm:$0xff] %vm673_vm1, %v464_v48  ;;  %v781_v54 = vsel %vm673_vm1, %v464_v48, 0.0  ;;  %v893_v57 = vmul.f32 %v464_v48, %v464_v48  ;;  %728 = vst.msk [vmem:[%s2048_s2 + $0x1b0] sm:$0xff] %vm673_vm1, %v1771_v0 }
 0x11f   :  { %v782_v58 = vadd.f32 %v781_v54, %v780_v49  ;;  %v977_v59 = vadd.f32 %v976_v51, %v975_v47  ;;  %v980_v7 = vsel %vm673_vm1, %v894_v53, 0.0 }
 0x120   :  { %v978_v62 = vsel %vm673_vm1, %v893_v57, 0.0  ;;  %v1259_v63 = vpop.f32.mrb[24].mxu0  ;;  %v1788_v15 = vpop.f32.mrb[24].mxu1 }
 0x121   :  { %v979_v1 = vadd.f32 %v978_v62, %v977_v59  ;;  %699 = vst.msk [vmem:[%s2048_s2 + $0xc8] sm:$0xff] %vm673_vm1, %v1259_v63  ;;  %v474_v4 = vpop.f32.mrb[25].mxu0  ;;  %v784_v5 = vadd.f32 %v783_v61, %v782_v58  ;;  %v896_v9 = vmul.f32 %v1259_v63, %v1259_v63  ;;  %v787_v16 = vsel %vm673_vm1, %v1259_v63, 0.0  ;;  %731 = vst.msk [vmem:[%s2048_s2 + $0x1c8] sm:$0xff] %vm673_vm1, %v1788_v15  ;;  %v1797_v23 = vpop.f32.mrb[25].mxu1 }
 0x122   :  { %698 = vst.msk [vmem:[%s2048_s2 + $0xc0] sm:$0xff] %vm673_vm1, %v474_v4  ;;  %v785_v10 = vsel %vm673_vm1, %v474_v4, 0.0  ;;  %v895_v11 = vmul.f32 %v474_v4, %v474_v4  ;;  %730 = vst.msk [vmem:[%s2048_s2 + $0x1c0] sm:$0xff] %vm673_vm1, %v1797_v23 }
 0x123   :  { %v786_v12 = vadd.f32 %v785_v10, %v784_v5  ;;  %v981_v13 = vadd.f32 %v980_v7, %v979_v1  ;;  %v984_v30 = vsel %vm673_vm1, %v896_v9, 0.0  ;;  %v903_v10 = vmul.f32 %v1486_v17, %v1486_v17 }
 0x124   :  { %v982_v19 = vsel %vm673_vm1, %v895_v11, 0.0  ;;  %v1262_v20 = vpop.f32.mrb[26].mxu0  ;;  %v1814_v37 = vpop.f32.mrb[26].mxu1 }
 0x125   :  { %v983_v25 = vadd.f32 %v982_v19, %v981_v13  ;;  %701 = vst.msk [vmem:[%s2048_s2 + $0xd8] sm:$0xff] %vm673_vm1, %v1262_v20  ;;  %v484_v26 = vpop.f32.mrb[27].mxu0  ;;  %v788_v29 = vadd.f32 %v787_v16, %v786_v12  ;;  %v898_v31 = vmul.f32 %v1262_v20, %v1262_v20  ;;  %v791_v40 = vsel %vm673_vm1, %v1262_v20, 0.0  ;;  %733 = vst.msk [vmem:[%s2048_s2 + $0x1d8] sm:$0xff] %vm673_vm1, %v1814_v37  ;;  %v1823_v45 = vpop.f32.mrb[27].mxu1 }
 0x126   :  { %700 = vst.msk [vmem:[%s2048_s2 + $0xd0] sm:$0xff] %vm673_vm1, %v484_v26  ;;  %v789_v32 = vsel %vm673_vm1, %v484_v26, 0.0  ;;  %v897_v33 = vmul.f32 %v484_v26, %v484_v26  ;;  %732 = vst.msk [vmem:[%s2048_s2 + $0x1d0] sm:$0xff] %vm673_vm1, %v1823_v45 }
 0x127   :  { %v790_v35 = vadd.f32 %v789_v32, %v788_v29  ;;  %v985_v36 = vadd.f32 %v984_v30, %v983_v25  ;;  %v988_v51 = vsel %vm673_vm1, %v898_v31, 0.0  ;;  %v801_v30 = vsel %vm673_vm1, %v1486_v17, 0.0 }
 0x128   :  { %v986_v43 = vsel %vm673_vm1, %v897_v33, 0.0  ;;  %v1265_v44 = vpop.f32.mrb[28].mxu0  ;;  %v1840_v61 = vpop.f32.mrb[28].mxu1  ;;  %v904_v17 = vmul.f32 %v1478_v14, %v1478_v14 }
 0x129   :  { %v987_v47 = vadd.f32 %v986_v43, %v985_v36  ;;  %703 = vst.msk [vmem:[%s2048_s2 + $0xe8] sm:$0xff] %vm673_vm1, %v1265_v44  ;;  %v494_v48 = vpop.f32.mrb[29].mxu0  ;;  %v792_v49 = vadd.f32 %v791_v40, %v790_v35  ;;  %v900_v53 = vmul.f32 %v1265_v44, %v1265_v44  ;;  %v795_v62 = vsel %vm673_vm1, %v1265_v44, 0.0  ;;  %735 = vst.msk [vmem:[%s2048_s2 + $0x1e8] sm:$0xff] %vm673_vm1, %v1840_v61  ;;  %v1849_v4 = vpop.f32.mrb[29].mxu1 }
 0x12a   :  { %702 = vst.msk [vmem:[%s2048_s2 + $0xe0] sm:$0xff] %vm673_vm1, %v494_v48  ;;  %v793_v54 = vsel %vm673_vm1, %v494_v48, 0.0  ;;  %v899_v57 = vmul.f32 %v494_v48, %v494_v48  ;;  %734 = vst.msk [vmem:[%s2048_s2 + $0x1e0] sm:$0xff] %vm673_vm1, %v1849_v4  ;;  %v998_v36 = vsel %vm673_vm1, %v903_v10, 0.0  ;;  %v905_v40 = vmul.f32 %v1511_v28, %v1511_v28 }
 0x12b   :  { %v794_v58 = vadd.f32 %v793_v54, %v792_v49  ;;  %v989_v59 = vadd.f32 %v988_v51, %v987_v47  ;;  %v992_v11 = vsel %vm673_vm1, %v900_v53, 0.0  ;;  %v803_v47 = vsel %vm673_vm1, %v1478_v14, 0.0 }
 0x12c   :  { %v990_v63 = vsel %vm673_vm1, %v899_v57, 0.0  ;;  %v1268_v1 = vpop.f32.mrb[30].mxu0  ;;  %v1868_v25 = vpop.f32.mrb[30].mxu1  ;;  %v805_v48 = vsel %vm673_vm1, %v1511_v28, 0.0  ;;  %v1000_v53 = vsel %vm673_vm1, %v904_v17, 0.0  ;;  %v906_v54 = vmul.f32 %v1502_v24, %v1502_v24 }
 0x12d   :  { %v991_v5 = vadd.f32 %v990_v63, %v989_v59  ;;  %705 = vst.msk [vmem:[%s2048_s2 + $0xf8] sm:$0xff] %vm673_vm1, %v1268_v1  ;;  %v504_v7 = vpop.f32.mrb[31].mxu0  ;;  %v796_v9 = vadd.f32 %v795_v62, %v794_v58  ;;  %v902_v12 = vmul.f32 %v1268_v1, %v1268_v1  ;;  %v799_v26 = vsel %vm673_vm1, %v1268_v1, 0.0  ;;  %737 = vst.msk [vmem:[%s2048_s2 + $0x1f8] sm:$0xff] %vm673_vm1, %v1868_v25  ;;  %v1879_v31 = vpop.f32.mrb[31].mxu1 }
 0x12e   :  { %704 = vst.msk [vmem:[%s2048_s2 + $0xf0] sm:$0xff] %vm673_vm1, %v504_v7  ;;  %v797_v13 = vsel %vm673_vm1, %v504_v7, 0.0  ;;  %v901_v16 = vmul.f32 %v504_v7, %v504_v7  ;;  %736 = vst.msk [vmem:[%s2048_s2 + $0x1f0] sm:$0xff] %vm673_vm1, %v1879_v31  ;;  %v1002_v57 = vsel %vm673_vm1, %v905_v40, 0.0  ;;  %v907_v58 = vmul.f32 %v1537_v42, %v1537_v42 }
 0x12f   :  { %v798_v19 = vadd.f32 %v797_v13, %v796_v9  ;;  %v993_v20 = vadd.f32 %v992_v11, %v991_v5  ;;  %v996_v35 = vsel %vm673_vm1, %v902_v12, 0.0  ;;  %v807_v14 = vsel %vm673_vm1, %v1502_v24, 0.0 }
 0x130   :  { %v994_v29 = vsel %vm673_vm1, %v901_v16, 0.0  ;;  %v809_v28 = vsel %vm673_vm1, %v1537_v42, 0.0  ;;  %v1004_v5 = vsel %vm673_vm1, %v906_v54, 0.0  ;;  %v908_v7 = vmul.f32 %v1528_v38, %v1528_v38 }
 0x131   :  { %v800_v32 = vadd.f32 %v799_v26, %v798_v19  ;;  %v995_v33 = vadd.f32 %v994_v29, %v993_v20  ;;  %v1006_v9 = vsel %vm673_vm1, %v907_v58, 0.0  ;;  %v909_v10 = vmul.f32 %v1563_v56, %v1563_v56 }
 0x132   :  { %v811_v24 = vsel %vm673_vm1, %v1528_v38, 0.0  ;;  %v813_v42 = vsel %vm673_vm1, %v1563_v56, 0.0  ;;  %v1008_v19 = vsel %vm673_vm1, %v908_v7, 0.0  ;;  %v910_v20 = vmul.f32 %v1554_v52, %v1554_v52 }
 0x133   :  { %v997_v43 = vadd.f32 %v996_v35, %v995_v33  ;;  %v802_v44 = vadd.f32 %v801_v30, %v800_v32  ;;  %v1010_v26 = vsel %vm673_vm1, %v909_v10, 0.0  ;;  %v911_v29 = vmul.f32 %v1589_v6, %v1589_v6 }
 0x134   :  { %v815_v38 = vsel %vm673_vm1, %v1554_v52, 0.0  ;;  %v817_v56 = vsel %vm673_vm1, %v1589_v6, 0.0  ;;  %v1012_v17 = vsel %vm673_vm1, %v910_v20, 0.0  ;;  %v819_v52 = vsel %vm673_vm1, %v1580_v2, 0.0 }
 0x135   :  { %v999_v49 = vadd.f32 %v998_v36, %v997_v43  ;;  %v804_v51 = vadd.f32 %v803_v47, %v802_v44  ;;  %v912_v36 = vmul.f32 %v1580_v2, %v1580_v2  ;;  %v1014_v40 = vsel %vm673_vm1, %v911_v29, 0.0 }
 0x136   :  { %v913_v43 = vmul.f32 %v1615_v22, %v1615_v22  ;;  %v821_v6 = vsel %vm673_vm1, %v1615_v22, 0.0  ;;  %v823_v2 = vsel %vm673_vm1, %v1606_v18, 0.0  ;;  %v825_v22 = vsel %vm673_vm1, %v1641_v39, 0.0 }
 0x137   :  { %v806_v59 = vadd.f32 %v805_v48, %v804_v51  ;;  %v1001_v62 = vadd.f32 %v1000_v53, %v999_v49  ;;  %v1016_v51 = vsel %vm673_vm1, %v912_v36, 0.0  ;;  %v914_v53 = vmul.f32 %v1606_v18, %v1606_v18 }
 0x138   :  { %v1018_v54 = vsel %vm673_vm1, %v913_v43, 0.0  ;;  %v827_v18 = vsel %vm673_vm1, %v1632_v34, 0.0 }
 0x139   :  { %v1003_v63 = vadd.f32 %v1002_v57, %v1001_v62  ;;  %v808_v1 = vadd.f32 %v807_v14, %v806_v59  ;;  %v915_v57 = vmul.f32 %v1641_v39, %v1641_v39  ;;  %v829_v39 = vsel %vm673_vm1, %v1667_v55, 0.0 }
 0x13b   :  { %v810_v11 = vadd.f32 %v809_v28, %v808_v1  ;;  %v1005_v12 = vadd.f32 %v1004_v5, %v1003_v63  ;;  %v1020_v28 = vsel %vm673_vm1, %v914_v53, 0.0  ;;  %v916_v63 = vmul.f32 %v1632_v34, %v1632_v34 }
 0x13c   :  { %v1022_v1 = vsel %vm673_vm1, %v915_v57, 0.0  ;;  %v917_v5 = vmul.f32 %v1667_v55, %v1667_v55  ;;  %v831_v34 = vsel %vm673_vm1, %v1658_v50, 0.0  ;;  %v833_v55 = vsel %vm673_vm1, %v1693_v8, 0.0 }
 0x13d   :  { %v1007_v13 = vadd.f32 %v1006_v9, %v1005_v12  ;;  %v812_v16 = vadd.f32 %v811_v24, %v810_v11  ;;  %v1024_v12 = vsel %vm673_vm1, %v916_v63, 0.0  ;;  %v918_v24 = vmul.f32 %v1658_v50, %v1658_v50 }
 0x13e   :  { %v835_v50 = vsel %vm673_vm1, %v1684_v3, 0.0 }
 0x13f   :  { %v814_v30 = vadd.f32 %v813_v42, %v812_v16  ;;  %v1009_v32 = vadd.f32 %v1008_v19, %v1007_v13  ;;  %v1026_v42 = vsel %vm673_vm1, %v917_v5, 0.0  ;;  %v919_v13 = vmul.f32 %v1693_v8, %v1693_v8 }
 0x140   :  { %v1028_v29 = vsel %vm673_vm1, %v918_v24, 0.0  ;;  %v837_v8 = vsel %vm673_vm1, %v1719_v27, 0.0 }
 0x141   :  { %v1011_v33 = vadd.f32 %v1010_v26, %v1009_v32  ;;  %v816_v35 = vadd.f32 %v815_v38, %v814_v30  ;;  %v920_v30 = vmul.f32 %v1684_v3, %v1684_v3  ;;  %v1030_v32 = vsel %vm673_vm1, %v919_v13, 0.0 }
 0x142   :  { %v921_v38 = vmul.f32 %v1719_v27, %v1719_v27  ;;  %v839_v3 = vsel %vm673_vm1, %v1710_v21, 0.0  ;;  %v841_v27 = vsel %vm673_vm1, %v1745_v46, 0.0 }
 0x143   :  { %v818_v44 = vadd.f32 %v817_v56, %v816_v35  ;;  %v1013_v47 = vadd.f32 %v1012_v17, %v1011_v33  ;;  %v1032_v36 = vsel %vm673_vm1, %v920_v30, 0.0 }
 0x144   :  { %v1034_v43 = vsel %vm673_vm1, %v921_v38, 0.0 }
 0x145   :  { %v1015_v48 = vadd.f32 %v1014_v40, %v1013_v47  ;;  %v820_v49 = vadd.f32 %v819_v52, %v818_v44  ;;  %v922_v40 = vmul.f32 %v1710_v21, %v1710_v21  ;;  %v923_v44 = vmul.f32 %v1745_v46, %v1745_v46 }
 0x146   :  { %v843_v21 = vsel %vm673_vm1, %v1736_v41, 0.0  ;;  %v845_v46 = vsel %vm673_vm1, %v1771_v0, 0.0 }
 0x147   :  { %v822_v58 = vadd.f32 %v821_v6, %v820_v49  ;;  %v1017_v59 = vadd.f32 %v1016_v51, %v1015_v48  ;;  %v1036_v49 = vsel %vm673_vm1, %v922_v40, 0.0  ;;  %v924_v51 = vmul.f32 %v1736_v41, %v1736_v41 }
 0x148   :  { %v1038_v53 = vsel %vm673_vm1, %v923_v44, 0.0  ;;  %v847_v41 = vsel %vm673_vm1, %v1762_v60, 0.0 }
 0x149   :  { %v1019_v62 = vadd.f32 %v1018_v54, %v1017_v59  ;;  %v824_v14 = vadd.f32 %v823_v2, %v822_v58  ;;  %v925_v54 = vmul.f32 %v1771_v0, %v1771_v0  ;;  %v849_v0 = vsel %vm673_vm1, %v1797_v23, 0.0 }
 0x14b   :  { %v826_v7 = vadd.f32 %v825_v22, %v824_v14  ;;  %v1021_v9 = vadd.f32 %v1020_v28, %v1019_v62  ;;  %v1040_v22 = vsel %vm673_vm1, %v924_v51, 0.0  ;;  %v926_v62 = vmul.f32 %v1762_v60, %v1762_v60 }
 0x14c   :  { %v1042_v14 = vsel %vm673_vm1, %v925_v54, 0.0  ;;  %v927_v28 = vmul.f32 %v1797_v23, %v1797_v23  ;;  %v851_v60 = vsel %vm673_vm1, %v1788_v15, 0.0  ;;  %v853_v23 = vsel %vm673_vm1, %v1823_v45, 0.0 }
 0x14d   :  { %v1023_v10 = vadd.f32 %v1022_v1, %v1021_v9  ;;  %v828_v11 = vadd.f32 %v827_v18, %v826_v7  ;;  %v1044_v9 = vsel %vm673_vm1, %v926_v62, 0.0  ;;  %v928_v18 = vmul.f32 %v1788_v15, %v1788_v15 }
 0x14e   :  { %v855_v15 = vsel %vm673_vm1, %v1814_v37, 0.0 }
 0x14f   :  { %v830_v16 = vadd.f32 %v829_v39, %v828_v11  ;;  %v1025_v19 = vadd.f32 %v1024_v12, %v1023_v10  ;;  %v1046_v39 = vsel %vm673_vm1, %v927_v28, 0.0  ;;  %v929_v10 = vmul.f32 %v1823_v45, %v1823_v45 }
 0x150   :  { %v1048_v13 = vsel %vm673_vm1, %v928_v18, 0.0  ;;  %v857_v45 = vsel %vm673_vm1, %v1849_v4, 0.0 }
 0x151   :  { %v1027_v20 = vadd.f32 %v1026_v42, %v1025_v19  ;;  %v832_v26 = vadd.f32 %v831_v34, %v830_v16  ;;  %v930_v16 = vmul.f32 %v1814_v37, %v1814_v37  ;;  %v1050_v19 = vsel %vm673_vm1, %v929_v10, 0.0 }
 0x152   :  { %v931_v34 = vmul.f32 %v1849_v4, %v1849_v4  ;;  %v859_v37 = vsel %vm673_vm1, %v1840_v61, 0.0  ;;  %v861_v4 = vsel %vm673_vm1, %v1879_v31, 0.0 }
 0x153   :  { %v834_v56 = vadd.f32 %v833_v55, %v832_v26  ;;  %v1029_v33 = vadd.f32 %v1028_v29, %v1027_v20  ;;  %v1052_v30 = vsel %vm673_vm1, %v930_v16, 0.0 }
 0x154   :  { %v1054_v38 = vsel %vm673_vm1, %v931_v34, 0.0 }
 0x155   :  { %v1031_v35 = vadd.f32 %v1030_v32, %v1029_v33  ;;  %v836_v17 = vadd.f32 %v835_v50, %v834_v56  ;;  %v932_v32 = vmul.f32 %v1840_v61, %v1840_v61  ;;  %v933_v56 = vmul.f32 %v1879_v31, %v1879_v31 }
 0x157   :  { %v838_v47 = vadd.f32 %v837_v8, %v836_v17  ;;  %v1033_v52 = vadd.f32 %v1032_v36, %v1031_v35  ;;  %v1056_v17 = vsel %vm673_vm1, %v932_v32, 0.0  ;;  %v934_v36 = vmul.f32 %v1868_v25, %v1868_v25 }
 0x158   :  { %v1058_v40 = vsel %vm673_vm1, %v933_v56, 0.0 }
 0x159   :  { %v1035_v6 = vadd.f32 %v1034_v43, %v1033_v52  ;;  %v840_v48 = vadd.f32 %v839_v3, %v838_v47  ;;  %v863_v47 = vsel %vm673_vm1, %v1868_v25, 0.0  ;;  %v1060_v61 = vsel %vm673_vm1, %v934_v36, 0.0 }
 0x15b   :  { %v842_v57 = vadd.f32 %v841_v27, %v840_v48  ;;  %v1037_v58 = vadd.f32 %v1036_v49, %v1035_v6 }
 0x15d   :  { %v1039_v59 = vadd.f32 %v1038_v53, %v1037_v58  ;;  %v844_v2 = vadd.f32 %v843_v21, %v842_v57 }
 0x15f   :  { %v846_v63 = vadd.f32 %v845_v46, %v844_v2  ;;  %v1041_v1 = vadd.f32 %v1040_v22, %v1039_v59 }
 0x161   :  { %v1043_v5 = vadd.f32 %v1042_v14, %v1041_v1  ;;  %v848_v7 = vadd.f32 %v847_v41, %v846_v63 }
 0x163   :  { %v850_v11 = vadd.f32 %v849_v0, %v848_v7  ;;  %v1045_v12 = vadd.f32 %v1044_v9, %v1043_v5 }
 0x165   :  { %v1047_v24 = vadd.f32 %v1046_v39, %v1045_v12  ;;  %v852_v42 = vadd.f32 %v851_v60, %v850_v11 }
 0x167   :  { %v854_v55 = vadd.f32 %v853_v23, %v852_v42  ;;  %v1049_v20 = vadd.f32 %v1048_v13, %v1047_v24 }
 0x169   :  { %v1051_v26 = vadd.f32 %v1050_v19, %v1049_v20  ;;  %v856_v29 = vadd.f32 %v855_v15, %v854_v55 }
 0x16b   :  { %v858_v33 = vadd.f32 %v857_v45, %v856_v29  ;;  %v1053_v50 = vadd.f32 %v1052_v30, %v1051_v26 }
 0x16d   :  { %v1055_v8 = vadd.f32 %v1054_v38, %v1053_v50  ;;  %v860_v35 = vadd.f32 %v859_v37, %v858_v33 }
 0x16f   :  { %v862_v43 = vadd.f32 %v861_v4, %v860_v35  ;;  %v1057_v44 = vadd.f32 %v1056_v17, %v1055_v8 }
 0x171   :  { %v864_v52 = vadd.f32 %v863_v47, %v862_v43  ;;  %v1059_v3 = vadd.f32 %v1058_v40, %v1057_v44 }
 0x173   :  { %v865_v27 = vrot.slane %v864_v52, 4  ;;  %v1061_v31 = vadd.f32 %v1060_v61, %v1059_v3 }
 0x175   :  { %v866_v6 = vadd.f32 %v865_v27, %v864_v52  ;;  %v1062_v48 = vrot.slane %v1061_v31, 4 }
 0x177   :  { %v867_v49 = vrot.slane %v866_v6, 2  ;;  %v1063_v51 = vadd.f32 %v1062_v48, %v1061_v31 }
 0x179   :  { %v868_v53 = vadd.f32 %v867_v49, %v866_v6  ;;  %v1064_v54 = vrot.slane %v1063_v51, 2 }
 0x17b   :  { %v869_v57 = vrot.slane %v868_v53, 1  ;;  %v1065_v58 = vadd.f32 %v1064_v54, %v1063_v51 }
 0x17d   :  { %v1066_v21 = vrot.slane %v1065_v58, 1  ;;  %v870_v46 = vadd.f32 %v869_v57, %v868_v53 }
 0x17f   :  { %v1067_v59 = vadd.f32 %v1066_v21, %v1065_v58 }
 0x181   :  { %v1069_v25 = vsel %vm1068_vm2, %v870_v46, %v1067_v59 }
 0x182   :  { %1071 = vst.msk [vmem:[%s2049_s3] sm:$0x3] %vm1070_vm3, %v1069_v25 }
 0x183   :  { %1080 = vsyncpa [#allocation3], 1 }

// kernel: decoder_block.7
= control target key start
LH: loop header
LB: loop body
LE: loop exit
PB: predicated region body
PF: predicated region fallthrough
CT: control target
= control target key end

     0   :  { %s884_s0 = inlined_call_operand.vmem [shape: f32[512,128], index: 0, kind: input, shape index: {}]   ;;  %s885_s1 = inlined_call_operand.vmem [shape: f32[2,128], index: 1, kind: input, shape index: {}]   ;;  %s886_s2 = inlined_call_operand.vmem [shape: f32[512,128], index: 2, kind: output, shape index: {}]  }
   0x1   :  { %v11_v0 = vld [vmem:[%s884_s0] sm:$0xff]  ;;  %v12_v4 = vld [vmem:[%s884_s0 + $0x8] sm:$0xff]  ;;  %v13_v5 = vld [vmem:[%s884_s0 + $0x10] sm:$0xff] }
   0x2   :  { %v368_v1 = vld [vmem:[%s885_s1] ss:$0 sm:$0xff]  ;;  %v373_v2 = vld [vmem:[%s885_s1 + $0x1] ss:$0 sm:$0xff]  ;;  %v14_v6 = vld [vmem:[%s884_s0 + $0x18] sm:$0xff] }
   0x3   :  { %v80_v3 = vmul.f32 %v368_v1, %v11_v0  ;;  %v81_v7 = vmul.f32 %v368_v1, %v12_v4  ;;  %v82_v8 = vmul.f32 %v368_v1, %v13_v5  ;;  %v83_v9 = vmul.f32 %v368_v1, %v14_v6  ;;  %v15_v10 = vld [vmem:[%s884_s0 + $0x20] sm:$0xff]  ;;  %v16_v11 = vld [vmem:[%s884_s0 + $0x28] sm:$0xff]  ;;  %v17_v12 = vld [vmem:[%s884_s0 + $0x30] sm:$0xff] }
   0x4   :  { %v84_v14 = vmul.f32 %v368_v1, %v15_v10  ;;  %v85_v15 = vmul.f32 %v368_v1, %v16_v11  ;;  %v86_v16 = vmul.f32 %v368_v1, %v17_v12  ;;  %v18_v17 = vld [vmem:[%s884_s0 + $0x38] sm:$0xff]  ;;  %v19_v22 = vld [vmem:[%s884_s0 + $0x40] sm:$0xff]  ;;  %v20_v27 = vld [vmem:[%s884_s0 + $0x48] sm:$0xff] }
   0x5   :  { %v149_v13 = vadd.f32 %v373_v2, %v80_v3  ;;  %v150_v18 = vadd.f32 %v373_v2, %v81_v7  ;;  %v151_v19 = vadd.f32 %v373_v2, %v82_v8  ;;  %v152_v20 = vadd.f32 %v373_v2, %v83_v9  ;;  %v21_v28 = vld [vmem:[%s884_s0 + $0x50] sm:$0xff]  ;;  %v22_v29 = vld [vmem:[%s884_s0 + $0x58] sm:$0xff]  ;;  %v23_v34 = vld [vmem:[%s884_s0 + $0x60] sm:$0xff] }
   0x6   :  { %v87_v21 = vmul.f32 %v368_v1, %v18_v17  ;;  %v153_v24 = vadd.f32 %v373_v2, %v84_v14  ;;  %v154_v25 = vadd.f32 %v373_v2, %v85_v15  ;;  %v155_v26 = vadd.f32 %v373_v2, %v86_v16  ;;  %v24_v35 = vld [vmem:[%s884_s0 + $0x68] sm:$0xff]  ;;  %v25_v36 = vld [vmem:[%s884_s0 + $0x70] sm:$0xff]  ;;  %v26_v41 = vld [vmem:[%s884_s0 + $0x78] sm:$0xff] }
   0x7   :  { %v213_v23 = vmax.f32 %v149_v13, 0.0  ;;  %v214_v30 = vmax.f32 %v150_v18, 0.0  ;;  %v215_v31 = vmax.f32 %v151_v19, 0.0  ;;  %v216_v32 = vmax.f32 %v152_v20, 0.0  ;;  %v27_v54 = vld [vmem:[%s884_s0 + $0x80] sm:$0xff]  ;;  %v28_v59 = vld [vmem:[%s884_s0 + $0x88] sm:$0xff] }
   0x8   :  { %v156_v33 = vadd.f32 %v373_v2, %v87_v21  ;;  %v217_v37 = vmax.f32 %v153_v24, 0.0  ;;  %v218_v38 = vmax.f32 %v154_v25, 0.0  ;;  %v219_v39 = vmax.f32 %v155_v26, 0.0  ;;  %v29_v60 = vld [vmem:[%s884_s0 + $0x90] sm:$0xff]  ;;  %v30_v61 = vld [vmem:[%s884_s0 + $0x98] sm:$0xff]  ;;  %v31_v4 = vld [vmem:[%s884_s0 + $0xa0] sm:$0xff] }
   0x9   :  { %277 = vst [vmem:[%s886_s2] sm:$0xff] %v213_v23  ;;  %v88_v40 = vmul.f32 %v368_v1, %v19_v22  ;;  %278 = vst [vmem:[%s886_s2 + $0x8] sm:$0xff] %v214_v30  ;;  %v89_v43 = vmul.f32 %v368_v1, %v20_v27  ;;  %v90_v44 = vmul.f32 %v368_v1, %v21_v28  ;;  %v32_v5 = vld [vmem:[%s884_s0 + $0xa8] sm:$0xff]  ;;  %v33_v6 = vld [vmem:[%s884_s0 + $0xb0] sm:$0xff] }
   0xa   :  { %279 = vst [vmem:[%s886_s2 + $0x10] sm:$0xff] %v215_v31  ;;  %280 = vst [vmem:[%s886_s2 + $0x18] sm:$0xff] %v216_v32  ;;  %v220_v42 = vmax.f32 %v156_v33, 0.0  ;;  %v91_v45 = vmul.f32 %v368_v1, %v22_v29  ;;  %v92_v47 = vmul.f32 %v368_v1, %v23_v34  ;;  %v93_v48 = vmul.f32 %v368_v1, %v24_v35  ;;  %v34_v11 = vld [vmem:[%s884_s0 + $0xb8] sm:$0xff]  ;;  %v35_v24 = vld [vmem:[%s884_s0 + $0xc0] sm:$0xff] }
   0xb   :  { %281 = vst [vmem:[%s886_s2 + $0x20] sm:$0xff] %v217_v37  ;;  %282 = vst [vmem:[%s886_s2 + $0x28] sm:$0xff] %v218_v38  ;;  %v157_v46 = vadd.f32 %v373_v2, %v88_v40  ;;  %v94_v49 = vmul.f32 %v368_v1, %v25_v36  ;;  %v158_v50 = vadd.f32 %v373_v2, %v89_v43  ;;  %v36_v29 = vld [vmem:[%s884_s0 + $0xc8] sm:$0xff]  ;;  %v37_v30 = vld [vmem:[%s884_s0 + $0xd0] sm:$0xff] }
   0xc   :  { %283 = vst [vmem:[%s886_s2 + $0x30] sm:$0xff] %v219_v39  ;;  %284 = vst [vmem:[%s886_s2 + $0x38] sm:$0xff] %v220_v42  ;;  %v159_v51 = vadd.f32 %v373_v2, %v90_v44  ;;  %v160_v52 = vadd.f32 %v373_v2, %v91_v45  ;;  %v95_v53 = vmul.f32 %v368_v1, %v26_v41  ;;  %v38_v31 = vld [vmem:[%s884_s0 + $0xd8] sm:$0xff]  ;;  %v39_v36 = vld [vmem:[%s884_s0 + $0xe0] sm:$0xff] }
   0xd   :  { %v221_v55 = vmax.f32 %v157_v46, 0.0  ;;  %v161_v56 = vadd.f32 %v373_v2, %v92_v47  ;;  %v162_v57 = vadd.f32 %v373_v2, %v93_v48  ;;  %v163_v58 = vadd.f32 %v373_v2, %v94_v49  ;;  %v40_v37 = vld [vmem:[%s884_s0 + $0xe8] sm:$0xff]  ;;  %v41_v38 = vld [vmem:[%s884_s0 + $0xf0] sm:$0xff]  ;;  %v42_v43 = vld [vmem:[%s884_s0 + $0xf8] sm:$0xff] }
   0xe   :  { %v222_v62 = vmax.f32 %v158_v50, 0.0  ;;  %v223_v63 = vmax.f32 %v159_v51, 0.0  ;;  %v224_v0 = vmax.f32 %v160_v52, 0.0  ;;  %v164_v3 = vadd.f32 %v373_v2, %v95_v53 }
   0xf   :  { %285 = vst [vmem:[%s886_s2 + $0x40] sm:$0xff] %v221_v55  ;;  %v225_v7 = vmax.f32 %v161_v56, 0.0  ;;  %v226_v8 = vmax.f32 %v162_v57, 0.0  ;;  %v227_v9 = vmax.f32 %v163_v58, 0.0  ;;  %v96_v10 = vmul.f32 %v368_v1, %v27_v54  ;;  %v43_v56 = vld [vmem:[%s884_s0 + $0x100] sm:$0xff] }
  0x10   :  { %286 = vst [vmem:[%s886_s2 + $0x48] sm:$0xff] %v222_v62  ;;  %287 = vst [vmem:[%s886_s2 + $0x50] sm:$0xff] %v223_v63  ;;  %v228_v12 = vmax.f32 %v164_v3, 0.0  ;;  %v97_v13 = vmul.f32 %v368_v1, %v28_v59  ;;  %v98_v14 = vmul.f32 %v368_v1, %v29_v60  ;;  %v99_v15 = vmul.f32 %v368_v1, %v30_v61  ;;  %v44_v61 = vld [vmem:[%s884_s0 + $0x108] sm:$0xff]  ;;  %v45_v62 = vld [vmem:[%s884_s0 + $0x110] sm:$0xff] }
  0x11   :  { %288 = vst [vmem:[%s886_s2 + $0x58] sm:$0xff] %v224_v0  ;;  %289 = vst [vmem:[%s886_s2 + $0x60] sm:$0xff] %v225_v7  ;;  %v165_v16 = vadd.f32 %v373_v2, %v96_v10  ;;  %v100_v17 = vmul.f32 %v368_v1, %v31_v4  ;;  %v101_v18 = vmul.f32 %v368_v1, %v32_v5  ;;  %v46_v63 = vld [vmem:[%s884_s0 + $0x118] sm:$0xff]  ;;  %v48_v7 = vld [vmem:[%s884_s0 + $0x128] sm:$0xff] }
  0x12   :  { %290 = vst [vmem:[%s886_s2 + $0x68] sm:$0xff] %v226_v8  ;;  %291 = vst [vmem:[%s886_s2 + $0x70] sm:$0xff] %v227_v9  ;;  %v102_v19 = vmul.f32 %v368_v1, %v33_v6  ;;  %v166_v20 = vadd.f32 %v373_v2, %v97_v13  ;;  %v167_v21 = vadd.f32 %v373_v2, %v98_v14  ;;  %v47_v6 = vld [vmem:[%s884_s0 + $0x120] sm:$0xff]  ;;  %v49_v8 = vld [vmem:[%s884_s0 + $0x130] sm:$0xff] }
  0x13   :  { %292 = vst [vmem:[%s886_s2 + $0x78] sm:$0xff] %v228_v12  ;;  %v168_v22 = vadd.f32 %v373_v2, %v99_v15  ;;  %v103_v23 = vmul.f32 %v368_v1, %v34_v11  ;;  %v229_v25 = vmax.f32 %v165_v16, 0.0  ;;  %v169_v26 = vadd.f32 %v373_v2, %v100_v17  ;;  %v50_v13 = vld [vmem:[%s884_s0 + $0x138] sm:$0xff] }
  0x14   :  { %v170_v27 = vadd.f32 %v373_v2, %v101_v18  ;;  %v171_v28 = vadd.f32 %v373_v2, %v102_v19  ;;  %v230_v32 = vmax.f32 %v166_v20, 0.0  ;;  %v231_v33 = vmax.f32 %v167_v21, 0.0 }
  0x15   :  { %v232_v34 = vmax.f32 %v168_v22, 0.0  ;;  %v172_v35 = vadd.f32 %v373_v2, %v103_v23  ;;  %293 = vst [vmem:[%s886_s2 + $0x80] sm:$0xff] %v229_v25  ;;  %v233_v39 = vmax.f32 %v169_v26, 0.0  ;;  %v104_v42 = vmul.f32 %v368_v1, %v35_v24  ;;  %v51_v26 = vld [vmem:[%s884_s0 + $0x140] sm:$0xff] }
  0x16   :  { %v234_v40 = vmax.f32 %v170_v27, 0.0  ;;  %v235_v41 = vmax.f32 %v171_v28, 0.0  ;;  %294 = vst [vmem:[%s886_s2 + $0x88] sm:$0xff] %v230_v32  ;;  %295 = vst [vmem:[%s886_s2 + $0x90] sm:$0xff] %v231_v33  ;;  %v105_v45 = vmul.f32 %v368_v1, %v36_v29  ;;  %v106_v46 = vmul.f32 %v368_v1, %v37_v30  ;;  %v53_v32 = vld [vmem:[%s884_s0 + $0x150] sm:$0xff]  ;;  %v54_v33 = vld [vmem:[%s884_s0 + $0x158] sm:$0xff] }
  0x17   :  { %296 = vst [vmem:[%s886_s2 + $0x98] sm:$0xff] %v232_v34  ;;  %v236_v44 = vmax.f32 %v172_v35, 0.0  ;;  %v107_v47 = vmul.f32 %v368_v1, %v38_v31  ;;  %297 = vst [vmem:[%s886_s2 + $0xa0] sm:$0xff] %v233_v39  ;;  %v173_v48 = vadd.f32 %v373_v2, %v104_v42  ;;  %v108_v49 = vmul.f32 %v368_v1, %v39_v36  ;;  %v52_v31 = vld [vmem:[%s884_s0 + $0x148] sm:$0xff] }
  0x18   :  { %298 = vst [vmem:[%s886_s2 + $0xa8] sm:$0xff] %v234_v40  ;;  %299 = vst [vmem:[%s886_s2 + $0xb0] sm:$0xff] %v235_v41  ;;  %v109_v50 = vmul.f32 %v368_v1, %v40_v37  ;;  %v110_v51 = vmul.f32 %v368_v1, %v41_v38  ;;  %v174_v52 = vadd.f32 %v373_v2, %v105_v45  ;;  %v55_v38 = vld [vmem:[%s884_s0 + $0x160] sm:$0xff]  ;;  %v56_v39 = vld [vmem:[%s884_s0 + $0x168] sm:$0xff] }
  0x19   :  { %300 = vst [vmem:[%s886_s2 + $0xb8] sm:$0xff] %v236_v44  ;;  %v175_v53 = vadd.f32 %v373_v2, %v106_v46  ;;  %v176_v54 = vadd.f32 %v373_v2, %v107_v47  ;;  %v111_v55 = vmul.f32 %v368_v1, %v42_v43  ;;  %v237_v57 = vmax.f32 %v173_v48, 0.0  ;;  %v57_v40 = vld [vmem:[%s884_s0 + $0x170] sm:$0xff]  ;;  %v58_v45 = vld [vmem:[%s884_s0 + $0x178] sm:$0xff] }
  0x1a   :  { %v177_v58 = vadd.f32 %v373_v2, %v108_v49  ;;  %v178_v59 = vadd.f32 %v373_v2, %v109_v50  ;;  %v179_v60 = vadd.f32 %v373_v2, %v110_v51  ;;  %v238_v0 = vmax.f32 %v174_v52, 0.0 }
  0x1b   :  { %v239_v3 = vmax.f32 %v175_v53, 0.0  ;;  %v240_v4 = vmax.f32 %v176_v54, 0.0  ;;  %v180_v5 = vadd.f32 %v373_v2, %v111_v55  ;;  %301 = vst [vmem:[%s886_s2 + $0xc0] sm:$0xff] %v237_v57  ;;  %v112_v12 = vmul.f32 %v368_v1, %v43_v56 }
  0x1c   :  { %v241_v9 = vmax.f32 %v177_v58, 0.0  ;;  %v242_v10 = vmax.f32 %v178_v59, 0.0  ;;  %v243_v11 = vmax.f32 %v179_v60, 0.0  ;;  %302 = vst [vmem:[%s886_s2 + $0xc8] sm:$0xff] %v238_v0  ;;  %v113_v15 = vmul.f32 %v368_v1, %v44_v61  ;;  %v59_v58 = vld [vmem:[%s884_s0 + $0x180] sm:$0xff]  ;;  %v61_v0 = vld [vmem:[%s884_s0 + $0x190] sm:$0xff] }
  0x1d   :  { %303 = vst [vmem:[%s886_s2 + $0xd0] sm:$0xff] %v239_v3  ;;  %304 = vst [vmem:[%s886_s2 + $0xd8] sm:$0xff] %v240_v4  ;;  %v244_v14 = vmax.f32 %v180_v5, 0.0  ;;  %v114_v16 = vmul.f32 %v368_v1, %v45_v62  ;;  %v115_v17 = vmul.f32 %v368_v1, %v46_v63  ;;  %v181_v18 = vadd.f32 %v373_v2, %v112_v12  ;;  %v60_v63 = vld [vmem:[%s884_s0 + $0x188] sm:$0xff]  ;;  %v62_v3 = vld [vmem:[%s884_s0 + $0x198] sm:$0xff] }
  0x1e   :  { %305 = vst [vmem:[%s886_s2 + $0xe0] sm:$0xff] %v241_v9  ;;  %306 = vst [vmem:[%s886_s2 + $0xe8] sm:$0xff] %v242_v10  ;;  %v116_v19 = vmul.f32 %v368_v1, %v47_v6  ;;  %v117_v20 = vmul.f32 %v368_v1, %v48_v7  ;;  %v118_v21 = vmul.f32 %v368_v1, %v49_v8  ;;  %v63_v8 = vld [vmem:[%s884_s0 + $0x1a0] sm:$0xff]  ;;  %v64_v9 = vld [vmem:[%s884_s0 + $0x1a8] sm:$0xff] }
  0x1f   :  { %307 = vst [vmem:[%s886_s2 + $0xf0] sm:$0xff] %v243_v11  ;;  %308 = vst [vmem:[%s886_s2 + $0xf8] sm:$0xff] %v244_v14  ;;  %v182_v22 = vadd.f32 %v373_v2, %v113_v15  ;;  %v183_v23 = vadd.f32 %v373_v2, %v114_v16  ;;  %v184_v24 = vadd.f32 %v373_v2, %v115_v17  ;;  %v245_v27 = vmax.f32 %v181_v18, 0.0  ;;  %v65_v10 = vld [vmem:[%s884_s0 + $0x1b0] sm:$0xff]  ;;  %v66_v15 = vld [vmem:[%s884_s0 + $0x1b8] sm:$0xff] }
  0x20   :  { %v119_v25 = vmul.f32 %v368_v1, %v50_v13  ;;  %v185_v28 = vadd.f32 %v373_v2, %v116_v19  ;;  %v186_v29 = vadd.f32 %v373_v2, %v117_v20  ;;  %v187_v30 = vadd.f32 %v373_v2, %v118_v21 }
  0x21   :  { %v246_v34 = vmax.f32 %v182_v22, 0.0  ;;  %v247_v35 = vmax.f32 %v183_v23, 0.0  ;;  %v248_v36 = vmax.f32 %v184_v24, 0.0  ;;  %309 = vst [vmem:[%s886_s2 + $0x100] sm:$0xff] %v245_v27  ;;  %v120_v44 = vmul.f32 %v368_v1, %v51_v26 }
  0x22   :  { %v188_v37 = vadd.f32 %v373_v2, %v119_v25  ;;  %v249_v41 = vmax.f32 %v185_v28, 0.0  ;;  %v250_v42 = vmax.f32 %v186_v29, 0.0  ;;  %v251_v43 = vmax.f32 %v187_v30, 0.0  ;;  %v67_v28 = vld [vmem:[%s884_s0 + $0x1c0] sm:$0xff] }
  0x23   :  { %310 = vst [vmem:[%s886_s2 + $0x108] sm:$0xff] %v246_v34  ;;  %311 = vst [vmem:[%s886_s2 + $0x110] sm:$0xff] %v247_v35  ;;  %v121_v47 = vmul.f32 %v368_v1, %v52_v31  ;;  %v122_v48 = vmul.f32 %v368_v1, %v53_v32  ;;  %v123_v49 = vmul.f32 %v368_v1, %v54_v33  ;;  %v68_v33 = vld [vmem:[%s884_s0 + $0x1c8] sm:$0xff]  ;;  %v69_v34 = vld [vmem:[%s884_s0 + $0x1d0] sm:$0xff] }
  0x24   :  { %312 = vst [vmem:[%s886_s2 + $0x118] sm:$0xff] %v248_v36  ;;  %v252_v46 = vmax.f32 %v188_v37, 0.0  ;;  %313 = vst [vmem:[%s886_s2 + $0x120] sm:$0xff] %v249_v41  ;;  %v189_v50 = vadd.f32 %v373_v2, %v120_v44  ;;  %v124_v51 = vmul.f32 %v368_v1, %v55_v38  ;;  %v125_v52 = vmul.f32 %v368_v1, %v56_v39  ;;  %v70_v35 = vld [vmem:[%s884_s0 + $0x1d8] sm:$0xff]  ;;  %v72_v41 = vld [vmem:[%s884_s0 + $0x1e8] sm:$0xff] }
  0x25   :  { %314 = vst [vmem:[%s886_s2 + $0x128] sm:$0xff] %v250_v42  ;;  %315 = vst [vmem:[%s886_s2 + $0x130] sm:$0xff] %v251_v43  ;;  %v126_v53 = vmul.f32 %v368_v1, %v57_v40  ;;  %v190_v54 = vadd.f32 %v373_v2, %v121_v47  ;;  %v191_v55 = vadd.f32 %v373_v2, %v122_v48  ;;  %v71_v40 = vld [vmem:[%s884_s0 + $0x1e0] sm:$0xff]  ;;  %v73_v42 = vld [vmem:[%s884_s0 + $0x1f0] sm:$0xff] }
  0x26   :  { %316 = vst [vmem:[%s886_s2 + $0x138] sm:$0xff] %v252_v46  ;;  %v192_v56 = vadd.f32 %v373_v2, %v123_v49  ;;  %v127_v57 = vmul.f32 %v368_v1, %v58_v45  ;;  %v253_v59 = vmax.f32 %v189_v50, 0.0  ;;  %v193_v60 = vadd.f32 %v373_v2, %v124_v51  ;;  %v74_v47 = vld [vmem:[%s884_s0 + $0x1f8] sm:$0xff] }
  0x27   :  { %v194_v61 = vadd.f32 %v373_v2, %v125_v52  ;;  %v195_v62 = vadd.f32 %v373_v2, %v126_v53  ;;  %v254_v4 = vmax.f32 %v190_v54, 0.0  ;;  %v255_v5 = vmax.f32 %v191_v55, 0.0 }
  0x28   :  { %v256_v6 = vmax.f32 %v192_v56, 0.0  ;;  %v196_v7 = vadd.f32 %v373_v2, %v127_v57  ;;  %317 = vst [vmem:[%s886_s2 + $0x140] sm:$0xff] %v253_v59  ;;  %v257_v11 = vmax.f32 %v193_v60, 0.0  ;;  %v128_v14 = vmul.f32 %v368_v1, %v59_v58 }
  0x29   :  { %v258_v12 = vmax.f32 %v194_v61, 0.0  ;;  %v259_v13 = vmax.f32 %v195_v62, 0.0  ;;  %318 = vst [vmem:[%s886_s2 + $0x148] sm:$0xff] %v254_v4  ;;  %319 = vst [vmem:[%s886_s2 + $0x150] sm:$0xff] %v255_v5  ;;  %v129_v17 = vmul.f32 %v368_v1, %v60_v63  ;;  %v130_v18 = vmul.f32 %v368_v1, %v61_v0 }
  0x2a   :  { %320 = vst [vmem:[%s886_s2 + $0x158] sm:$0xff] %v256_v6  ;;  %v260_v16 = vmax.f32 %v196_v7, 0.0  ;;  %v131_v19 = vmul.f32 %v368_v1, %v62_v3  ;;  %321 = vst [vmem:[%s886_s2 + $0x160] sm:$0xff] %v257_v11  ;;  %v197_v20 = vadd.f32 %v373_v2, %v128_v14  ;;  %v132_v21 = vmul.f32 %v368_v1, %v63_v8 }
  0x2b   :  { %322 = vst [vmem:[%s886_s2 + $0x168] sm:$0xff] %v258_v12  ;;  %323 = vst [vmem:[%s886_s2 + $0x170] sm:$0xff] %v259_v13  ;;  %v133_v22 = vmul.f32 %v368_v1, %v64_v9  ;;  %v134_v23 = vmul.f32 %v368_v1, %v65_v10  ;;  %v198_v24 = vadd.f32 %v373_v2, %v129_v17 }
  0x2c   :  { %324 = vst [vmem:[%s886_s2 + $0x178] sm:$0xff] %v260_v16  ;;  %v199_v25 = vadd.f32 %v373_v2, %v130_v18  ;;  %v200_v26 = vadd.f32 %v373_v2, %v131_v19  ;;  %v135_v27 = vmul.f32 %v368_v1, %v66_v15  ;;  %v261_v29 = vmax.f32 %v197_v20, 0.0 }
  0x2d   :  { %v201_v30 = vadd.f32 %v373_v2, %v132_v21  ;;  %v202_v31 = vadd.f32 %v373_v2, %v133_v22  ;;  %v203_v32 = vadd.f32 %v373_v2, %v134_v23  ;;  %v262_v36 = vmax.f32 %v198_v24, 0.0 }
  0x2e   :  { %v263_v37 = vmax.f32 %v199_v25, 0.0  ;;  %v264_v38 = vmax.f32 %v200_v26, 0.0  ;;  %v204_v39 = vadd.f32 %v373_v2, %v135_v27  ;;  %325 = vst [vmem:[%s886_s2 + $0x180] sm:$0xff] %v261_v29  ;;  %v136_v46 = vmul.f32 %v368_v1, %v67_v28 }
  0x2f   :  { %v265_v43 = vmax.f32 %v201_v30, 0.0  ;;  %v266_v44 = vmax.f32 %v202_v31, 0.0  ;;  %v267_v45 = vmax.f32 %v203_v32, 0.0  ;;  %326 = vst [vmem:[%s886_s2 + $0x188] sm:$0xff] %v262_v36  ;;  %v137_v49 = vmul.f32 %v368_v1, %v68_v33 }
  0x30   :  { %327 = vst [vmem:[%s886_s2 + $0x190] sm:$0xff] %v263_v37  ;;  %328 = vst [vmem:[%s886_s2 + $0x198] sm:$0xff] %v264_v38  ;;  %v268_v48 = vmax.f32 %v204_v39, 0.0  ;;  %v138_v50 = vmul.f32 %v368_v1, %v69_v34  ;;  %v139_v51 = vmul.f32 %v368_v1, %v70_v35  ;;  %v205_v52 = vadd.f32 %v373_v2, %v136_v46 }
  0x31   :  { %329 = vst [vmem:[%s886_s2 + $0x1a0] sm:$0xff] %v265_v43  ;;  %330 = vst [vmem:[%s886_s2 + $0x1a8] sm:$0xff] %v266_v44  ;;  %v140_v53 = vmul.f32 %v368_v1, %v71_v40  ;;  %v141_v54 = vmul.f32 %v368_v1, %v72_v41  ;;  %v142_v55 = vmul.f32 %v368_v1, %v73_v42 }
  0x32   :  { %331 = vst [vmem:[%s886_s2 + $0x1b0] sm:$0xff] %v267_v45  ;;  %332 = vst [vmem:[%s886_s2 + $0x1b8] sm:$0xff] %v268_v48  ;;  %v206_v56 = vadd.f32 %v373_v2, %v137_v49  ;;  %v207_v57 = vadd.f32 %v373_v2, %v138_v50  ;;  %v208_v58 = vadd.f32 %v373_v2, %v139_v51  ;;  %v269_v60 = vmax.f32 %v205_v52, 0.0 }
  0x33   :  { %v143_v59 = vmul.f32 %v368_v1, %v74_v47  ;;  %v209_v61 = vadd.f32 %v373_v2, %v140_v53  ;;  %v210_v62 = vadd.f32 %v373_v2, %v141_v54  ;;  %v211_v63 = vadd.f32 %v373_v2, %v142_v55 }
  0x34   :  { %v270_v0 = vmax.f32 %v206_v56, 0.0  ;;  %v271_v3 = vmax.f32 %v207_v57, 0.0  ;;  %v272_v4 = vmax.f32 %v208_v58, 0.0  ;;  %333 = vst [vmem:[%s886_s2 + $0x1c0] sm:$0xff] %v269_v60 }
  0x35   :  { %v212_v5 = vadd.f32 %v373_v2, %v143_v59  ;;  %v273_v6 = vmax.f32 %v209_v61, 0.0  ;;  %v274_v7 = vmax.f32 %v210_v62, 0.0  ;;  %v275_v8 = vmax.f32 %v211_v63, 0.0 }
  0x36   :  { %334 = vst [vmem:[%s886_s2 + $0x1c8] sm:$0xff] %v270_v0  ;;  %335 = vst [vmem:[%s886_s2 + $0x1d0] sm:$0xff] %v271_v3 }
  0x37   :  { %336 = vst [vmem:[%s886_s2 + $0x1d8] sm:$0xff] %v272_v4  ;;  %v276_v1 = vmax.f32 %v212_v5, 0.0  ;;  %337 = vst [vmem:[%s886_s2 + $0x1e0] sm:$0xff] %v273_v6 }
  0x38   :  { %338 = vst [vmem:[%s886_s2 + $0x1e8] sm:$0xff] %v274_v7  ;;  %339 = vst [vmem:[%s886_s2 + $0x1f0] sm:$0xff] %v275_v8 }
  0x39   :  { %340 = vst [vmem:[%s886_s2 + $0x1f8] sm:$0xff] %v276_v1 }

// kernel: decoder_block.6
= control target key start
LH: loop header
LB: loop body
LE: loop exit
PB: predicated region body
PF: predicated region fallthrough
CT: control target
= control target key end

     0   :  { %vm283_vm0 = vcmask 64512   ;;  %s4940_s8 = smov 120   ;;  %s4943_s15 = smov 32   ;;  %vm3552_vm1 = vcmask 261120   ;;  %vm3617_vm2 = vcmask 523264   ;;  %vm3682_vm3 = vcmask 785408   ;;  %s7733_s0 = inlined_call_operand.vmem [shape: f32[512,32], index: 0, kind: input, shape index: {}]   ;;  %s7734_s1 = inlined_call_operand.vmem [shape: f32[2,32], index: 1, kind: input, shape index: {}]   ;;  %s7735_s2 = inlined_call_operand.vmem [shape: f32[8,32], index: 2, kind: input, shape index: {}]   ;;  %s7736_s3 = inlined_call_operand.vmem [shape: f32[512,128], index: 3, kind: output, shape index: {0}]   ;;  %s7737_s4 = inlined_call_operand.vmem [shape: f32[1,2,128], index: 4, kind: output, shape index: {1}]  }
   0x1   :  { %v18_v0 = vld [vmem:[%s7733_s0 + $0x10] sm:$0xff]  ;;  %v4977_v1 = vld [vmem:[%s7734_s1] ss:$0 sm:$0xff]  ;;  %v4982_v2 = vld [vmem:[%s7734_s1 + $0x1] ss:$0 sm:$0xff]  ;;  %s4944_s16 = smov 64  }
   0x2   :  { %v87_v3 = vmul.f32 %v4977_v1, %v18_v0  ;;  %v16_v4 = vld [vmem:[%s7733_s0] sm:$0xff]  ;;  %v19_v5 = vld [vmem:[%s7733_s0 + $0x18] sm:$0xff]  ;;  %v17_v6 = vld [vmem:[%s7733_s0 + $0x8] sm:$0xff]  ;;  %s4945_s17 = smov 96   ;;  %vm4013_vm4 = vcmask 1040384  }
   0x3   :  { %v85_v7 = vmul.f32 %v4977_v1, %v16_v4  ;;  %v88_v8 = vmul.f32 %v4977_v1, %v19_v5  ;;  %v86_v9 = vmul.f32 %v4977_v1, %v17_v6  ;;  %v21_v10 = vld [vmem:[%s7733_s0 + $0x28] sm:$0xff]  ;;  %v20_v11 = vld [vmem:[%s7733_s0 + $0x20] sm:$0xff]  ;;  %v23_v18 = vld [vmem:[%s7733_s0 + $0x38] sm:$0xff] }
   0x4   :  { %v156_v12 = vadd.f32 %v4982_v2, %v87_v3  ;;  %v90_v13 = vmul.f32 %v4977_v1, %v21_v10  ;;  %v89_v17 = vmul.f32 %v4977_v1, %v20_v11  ;;  %v22_v20 = vld [vmem:[%s7733_s0 + $0x30] sm:$0xff]  ;;  %v92_v24 = vmul.f32 %v4977_v1, %v23_v18  ;;  %v25_v28 = vld [vmem:[%s7733_s0 + $0x48] sm:$0xff]  ;;  %v24_v29 = vld [vmem:[%s7733_s0 + $0x40] sm:$0xff] }
   0x5   :  { %v154_v14 = vadd.f32 %v4982_v2, %v85_v7  ;;  %v157_v15 = vadd.f32 %v4982_v2, %v88_v8  ;;  %v155_v16 = vadd.f32 %v4982_v2, %v86_v9  ;;  %v91_v27 = vmul.f32 %v4977_v1, %v22_v20  ;;  %v27_v36 = vld [vmem:[%s7733_s0 + $0x58] sm:$0xff]  ;;  %v26_v37 = vld [vmem:[%s7733_s0 + $0x50] sm:$0xff]  ;;  %v29_v38 = vld [vmem:[%s7733_s0 + $0x68] sm:$0xff] }
   0x6   :  { %v5012_v19 = vmax.f32 %v156_v12, 0.0  ;;  %v159_v23 = vadd.f32 %v4982_v2, %v90_v13  ;;  %v158_v26 = vadd.f32 %v4982_v2, %v89_v17  ;;  %v161_v31 = vadd.f32 %v4982_v2, %v92_v24  ;;  %v28_v39 = vld [vmem:[%s7733_s0 + $0x60] sm:$0xff]  ;;  %v31_v44 = vld [vmem:[%s7733_s0 + $0x78] sm:$0xff]  ;;  %v30_v49 = vld [vmem:[%s7733_s0 + $0x70] sm:$0xff] }
   0x7   :  { %v5017_v21 = vmax.f32 %v154_v14, 0.0  ;;  %v5021_v22 = vmax.f32 %v157_v15, 0.0  ;;  %v5027_v25 = vmax.f32 %v155_v16, 0.0  ;;  %v94_v32 = vmul.f32 %v4977_v1, %v25_v28  ;;  %v5099_v57 = vld [vmem:[%s7735_s2] sm:$0xff]  ;;  %v33_v59 = vld [vmem:[%s7733_s0 + $0x88] sm:$0xff]  ;;  %v35_v62 = vld [vmem:[%s7733_s0 + $0x98] sm:$0xff] }
   0x8   :  { %865 = vrot.lane.b32.xlu1 %v5012_v19, %s4940_s8  ;;  %v5041_v30 = vmax.f32 %v159_v23, 0.0  ;;  %v5047_v33 = vmax.f32 %v158_v26, 0.0  ;;  %v160_v34 = vadd.f32 %v4982_v2, %v91_v27  ;;  %v93_v35 = vmul.f32 %v4977_v1, %v24_v29  ;;  %v32_v60 = vld [vmem:[%s7733_s0 + $0x80] sm:$0xff]  ;;  %4542 = vmatprep.subr.mxu0 %v5099_v57  ;;  %v34_v63 = vld [vmem:[%s7733_s0 + $0x90] sm:$0xff]  ;;  %v49_v0 = vld [vmem:[%s7733_s0 + $0x108] sm:$0xff] }
   0x9   :  { %861 = vrot.lane.b32.xlu0 %v5017_v21, %s4940_s8  ;;  %4544 = vmatprep.mubr.msk.f32.mxu0 %vm283_vm0, %v5017_v21  ;;  %v5065_v40 = vmax.f32 %v161_v31, 0.0  ;;  %v163_v41 = vadd.f32 %v4982_v2, %v94_v32  ;;  %v96_v42 = vmul.f32 %v4977_v1, %v27_v36  ;;  %v95_v43 = vmul.f32 %v4977_v1, %v26_v37  ;;  %v48_v5 = vld [vmem:[%s7733_s0 + $0x100] sm:$0xff]  ;;  %v51_v6 = vld [vmem:[%s7733_s0 + $0x118] sm:$0xff]  ;;  %v50_v7 = vld [vmem:[%s7733_s0 + $0x110] sm:$0xff] }
   0xa   :  { %7758 = vst [vmem:[#allocation2_spill] sm:$0xff] %v5041_v30  ;;  %7759 = vst [vmem:[#allocation3_spill] sm:$0xff] %v5047_v33  ;;  %v5075_v45 = vmax.f32 %v160_v34, 0.0  ;;  %v162_v46 = vadd.f32 %v4982_v2, %v93_v35  ;;  %v98_v47 = vmul.f32 %v4977_v1, %v29_v38  ;;  %v97_v48 = vmul.f32 %v4977_v1, %v28_v39  ;;  %v53_v12 = vld [vmem:[%s7733_s0 + $0x128] sm:$0xff]  ;;  %v52_v13 = vld [vmem:[%s7733_s0 + $0x120] sm:$0xff] }
   0xb   :  { %7760 = vst [vmem:[#allocation4_spill] sm:$0xff] %v5065_v40  ;;  %v100_v50 = vmul.f32 %v4977_v1, %v31_v44  ;;  %v5086_v51 = vmax.f32 %v163_v41, 0.0  ;;  %v165_v52 = vadd.f32 %v4982_v2, %v96_v42  ;;  %v164_v53 = vadd.f32 %v4982_v2, %v95_v43  ;;  %4543 = vmatpush3.msra.mxu0 %v5099_v57  ;;  %v55_v14 = vld [vmem:[%s7733_s0 + $0x138] sm:$0xff]  ;;  %v54_v20 = vld [vmem:[%s7733_s0 + $0x130] sm:$0xff]  ;;  %v37_v28 = vld [vmem:[%s7733_s0 + $0xa8] sm:$0xff] }
   0xc   :  { %867 = vrot.lane.b32.xlu1 %v5021_v22, %s4940_s8  ;;  %7761 = vst [vmem:[#allocation5_spill] sm:$0xff] %v5075_v45  ;;  %v5092_v54 = vmax.f32 %v162_v46, 0.0  ;;  %v167_v55 = vadd.f32 %v4982_v2, %v98_v47  ;;  %v99_v56 = vmul.f32 %v4977_v1, %v30_v49  ;;  %v166_v58 = vadd.f32 %v4982_v2, %v97_v48  ;;  %v36_v29 = vld [vmem:[%s7733_s0 + $0xa0] sm:$0xff]  ;;  %v39_v36 = vld [vmem:[%s7733_s0 + $0xb8] sm:$0xff]  ;;  %v57_v42 = vld [vmem:[%s7733_s0 + $0x148] sm:$0xff] }
   0xd   :  { %863 = vrot.lane.b32.xlu0 %v5027_v25, %s4940_s8  ;;  %7762 = vst [vmem:[#allocation6_spill] sm:$0xff] %v5086_v51  ;;  %v169_v61 = vadd.f32 %v4982_v2, %v100_v50  ;;  %v5122_v3 = vmax.f32 %v165_v52, 0.0  ;;  %v5124_v4 = vmax.f32 %v164_v53, 0.0  ;;  %4545 = vmatmul.mubr.msk.f32.vlgmr.msra.gmra.mrb[0].mxu0 %vm283_vm0, %v5027_v25  ;;  %v102_v10 = vmul.f32 %v4977_v1, %v33_v59  ;;  %v56_v48 = vld [vmem:[%s7733_s0 + $0x140] sm:$0xff]  ;;  %v59_v49 = vld [vmem:[%s7733_s0 + $0x158] sm:$0xff]  ;;  %v58_v50 = vld [vmem:[%s7733_s0 + $0x150] sm:$0xff] }
   0xe   :  { %7763 = vst [vmem:[#allocation7_spill] sm:$0xff] %v5092_v54  ;;  %v5139_v8 = vmax.f32 %v167_v55, 0.0  ;;  %v168_v9 = vadd.f32 %v4982_v2, %v99_v56  ;;  %v101_v11 = vmul.f32 %v4977_v1, %v32_v60  ;;  %4640 = vmatprep.subr.mxu1 %v5099_v57  ;;  %v5154_v15 = vmax.f32 %v166_v58, 0.0  ;;  %4547 = vmatprep.mubr.msk.f32.mxu0 %vm283_vm0, %v5012_v19  ;;  %v61_v58 = vld [vmem:[%s7733_s0 + $0x168] sm:$0xff]  ;;  %v60_v59 = vld [vmem:[%s7733_s0 + $0x160] sm:$0xff]  ;;  %v63_v60 = vld [vmem:[%s7733_s0 + $0x178] sm:$0xff] }
   0xf   :  { %7764 = vst [vmem:[#allocation8_spill] sm:$0xff] %v5122_v3  ;;  %7765 = vst [vmem:[#allocation9_spill] sm:$0xff] %v5124_v4  ;;  %v104_v16 = vmul.f32 %v4977_v1, %v35_v62  ;;  %v103_v17 = vmul.f32 %v4977_v1, %v34_v63  ;;  %v118_v18 = vmul.f32 %v4977_v1, %v49_v0  ;;  %4641 = vmatpush3.msra.mxu1 %v5099_v57 }
  0x10   :  { %871 = vrot.lane.b32.xlu1 %v5041_v30, %s4940_s8  ;;  %v5165_v23 = vmax.f32 %v169_v61, 0.0  ;;  %v117_v24 = vmul.f32 %v4977_v1, %v48_v5  ;;  %v120_v26 = vmul.f32 %v4977_v1, %v51_v6  ;;  %v119_v27 = vmul.f32 %v4977_v1, %v50_v7  ;;  %4738 = vmatprep.subr.mxu0 %v5099_v57  ;;  %v62_v5 = vld [vmem:[%s7733_s0 + $0x170] sm:$0xff] }
  0x11   :  { %869 = vrot.lane.b32.xlu0 %v5047_v33, %s4940_s8  ;;  %4836 = vmatprep.subr.mxu1 %v5099_v57  ;;  %v5181_v31 = vadd.f32 %v4982_v2, %v118_v18  ;;  %v122_v32 = vmul.f32 %v4977_v1, %v53_v12  ;;  %v121_v34 = vmul.f32 %v4977_v1, %v52_v13  ;;  %v5225_v52 = vmax.f32 %v168_v9, 0.0 }
  0x12   :  { %7766 = vst [vmem:[#allocation10_spill] sm:$0xff] %v5165_v23  ;;  %v124_v35 = vmul.f32 %v4977_v1, %v55_v14  ;;  %v5192_v37 = vadd.f32 %v4982_v2, %v117_v24  ;;  %v5195_v38 = vadd.f32 %v4982_v2, %v120_v26  ;;  %v5198_v39 = vadd.f32 %v4982_v2, %v119_v27  ;;  %v65_v26 = vld [vmem:[%s7733_s0 + $0x188] sm:$0xff] }
  0x13   :  { %v123_v41 = vmul.f32 %v4977_v1, %v54_v20  ;;  %v171_v43 = vadd.f32 %v4982_v2, %v102_v10  ;;  %v5206_v44 = vadd.f32 %v4982_v2, %v122_v32  ;;  %v5209_v46 = vadd.f32 %v4982_v2, %v121_v34  ;;  %4548 = vmatmul.mubr.msk.f32.gmra.mrb[2].mxu0 %vm283_vm0, %v5021_v22  ;;  %v64_v34 = vld [vmem:[%s7733_s0 + $0x180] sm:$0xff] }
  0x14   :  { %875 = vrot.lane.b32.xlu1 %v5065_v40, %s4940_s8  ;;  %v5212_v47 = vadd.f32 %v4982_v2, %v124_v35  ;;  %7767 = vst [vmem:[#allocation11_spill] sm:$0xff] %v5225_v52  ;;  %v106_v53 = vmul.f32 %v4977_v1, %v37_v28  ;;  %v105_v55 = vmul.f32 %v4977_v1, %v36_v29  ;;  %v67_v35 = vld [vmem:[%s7733_s0 + $0x198] sm:$0xff] }
  0x15   :  { %873 = vrot.lane.b32.xlu0 %v5075_v45, %s4940_s8  ;;  %v5230_v56 = vadd.f32 %v4982_v2, %v123_v41  ;;  %4550 = vmatprep.mubr.msk.f32.mxu0 %vm283_vm0, %v5047_v33  ;;  %v170_v61 = vadd.f32 %v4982_v2, %v101_v11  ;;  %v173_v62 = vadd.f32 %v4982_v2, %v104_v16  ;;  %v38_v11 = vld [vmem:[%s7733_s0 + $0xb0] sm:$0xff]  ;;  %v5287_v27 = vmax.f32 %v171_v43, 0.0 }
  0x16   :  { %4739 = vmatpush3.msra.mxu0 %v5099_v57  ;;  %v108_v63 = vmul.f32 %v4977_v1, %v39_v36  ;;  %v126_v0 = vmul.f32 %v4977_v1, %v57_v42  ;;  %v172_v6 = vadd.f32 %v4982_v2, %v103_v17  ;;  %v125_v7 = vmul.f32 %v4977_v1, %v56_v48  ;;  %v66_v36 = vld [vmem:[%s7733_s0 + $0x190] sm:$0xff] }
  0x17   :  { %v128_v9 = vmul.f32 %v4977_v1, %v59_v49  ;;  %v127_v10 = vmul.f32 %v4977_v1, %v58_v50  ;;  %v130_v13 = vmul.f32 %v4977_v1, %v61_v58  ;;  %v129_v14 = vmul.f32 %v4977_v1, %v60_v59  ;;  %4551 = vmatmul.mubr.msk.f32.gmra.mrb[4].mxu0 %vm283_vm0, %v5041_v30  ;;  %v69_v49 = vld [vmem:[%s7733_s0 + $0x1a8] sm:$0xff]  ;;  %v68_v50 = vld [vmem:[%s7733_s0 + $0x1a0] sm:$0xff]  ;;  %v71_v58 = vld [vmem:[%s7733_s0 + $0x1b8] sm:$0xff] }
  0x18   :  { %879 = vrot.lane.b32.xlu1 %v5086_v51, %s4940_s8  ;;  %v5263_v12 = vadd.f32 %v4982_v2, %v126_v0  ;;  %v132_v16 = vmul.f32 %v4977_v1, %v63_v60  ;;  %v5271_v17 = vadd.f32 %v4982_v2, %v125_v7  ;;  %v131_v24 = vmul.f32 %v4977_v1, %v62_v5  ;;  %v70_v0 = vld [vmem:[%s7733_s0 + $0x1b0] sm:$0xff] }
  0x19   :  { %877 = vrot.lane.b32.xlu0 %v5092_v54, %s4940_s8  ;;  %v5274_v18 = vadd.f32 %v4982_v2, %v128_v9  ;;  %v5277_v20 = vadd.f32 %v4982_v2, %v127_v10  ;;  %4553 = vmatprep.mubr.msk.f32.mxu0 %vm283_vm0, %v5075_v45  ;;  %v5290_v28 = vadd.f32 %v4982_v2, %v130_v13  ;;  %v5309_v41 = vmax.f32 %v170_v61, 0.0  ;;  %v40_v13 = vld [vmem:[%s7733_s0 + $0xc0] sm:$0xff] }
  0x1a   :  { %v5293_v29 = vadd.f32 %v4982_v2, %v129_v14  ;;  %v5296_v32 = vadd.f32 %v4982_v2, %v132_v16  ;;  %v175_v42 = vadd.f32 %v4982_v2, %v106_v53  ;;  %v107_v43 = vmul.f32 %v4977_v1, %v38_v11  ;;  %v43_v14 = vld [vmem:[%s7733_s0 + $0xd8] sm:$0xff] }
  0x1b   :  { %v5314_v48 = vadd.f32 %v4982_v2, %v131_v24  ;;  %v5325_v59 = vmax.f32 %v173_v62, 0.0  ;;  %v174_v53 = vadd.f32 %v4982_v2, %v105_v55  ;;  %v177_v60 = vadd.f32 %v4982_v2, %v108_v63  ;;  %4554 = vmatmul.mubr.msk.f32.gmra.mrb[6].mxu0 %vm283_vm0, %v5065_v40  ;;  %v41_v55 = vld [vmem:[%s7733_s0 + $0xc8] sm:$0xff] }
  0x1c   :  { %883 = vrot.lane.b32.xlu1 %v5122_v3, %s4940_s8  ;;  %v134_v61 = vmul.f32 %v4977_v1, %v65_v26  ;;  %v5335_v5 = vmax.f32 %v172_v6, 0.0  ;;  %v133_v7 = vmul.f32 %v4977_v1, %v64_v34  ;;  %v136_v62 = vmul.f32 %v4977_v1, %v67_v35  ;;  %4556 = vmatprep.mubr.msk.f32.mxu0 %vm283_vm0, %v5092_v54  ;;  %v73_v35 = vld [vmem:[%s7733_s0 + $0x1c8] sm:$0xff] }
  0x1d   :  { %881 = vrot.lane.b32.xlu0 %v5124_v4, %s4940_s8  ;;  %v135_v9 = vmul.f32 %v4977_v1, %v66_v36  ;;  %v138_v6 = vmul.f32 %v4977_v1, %v69_v49  ;;  %v137_v10 = vmul.f32 %v4977_v1, %v68_v50  ;;  %v140_v11 = vmul.f32 %v4977_v1, %v71_v58  ;;  %v72_v58 = vld [vmem:[%s7733_s0 + $0x1c0] sm:$0xff] }
  0x1e   :  { %v5348_v63 = vadd.f32 %v4982_v2, %v134_v61  ;;  %v5362_v16 = vadd.f32 %v4982_v2, %v133_v7  ;;  %v5365_v24 = vadd.f32 %v4982_v2, %v136_v62  ;;  %v139_v34 = vmul.f32 %v4977_v1, %v70_v0  ;;  %v75_v61 = vld [vmem:[%s7733_s0 + $0x1d8] sm:$0xff]  ;;  %v74_v0 = vld [vmem:[%s7733_s0 + $0x1d0] sm:$0xff] }
  0x1f   :  { %v5368_v26 = vadd.f32 %v4982_v2, %v135_v9  ;;  %v5375_v36 = vadd.f32 %v4982_v2, %v138_v6  ;;  %v5378_v49 = vadd.f32 %v4982_v2, %v137_v10  ;;  %v5381_v50 = vadd.f32 %v4982_v2, %v140_v11  ;;  %4557 = vmatmul.mubr.msk.f32.gmra.mrb[8].mxu0 %vm283_vm0, %v5086_v51  ;;  %v77_v10 = vld [vmem:[%s7733_s0 + $0x1e8] sm:$0xff]  ;;  %v76_v11 = vld [vmem:[%s7733_s0 + $0x1e0] sm:$0xff]  ;;  %v78_v51 = vld [vmem:[%s7733_s0 + $0x1f0] sm:$0xff] }
  0x20   :  { %887 = vrot.lane.b32.xlu1 %v5139_v8, %s4940_s8  ;;  %v5394_v7 = vmax.f32 %v175_v42, 0.0  ;;  %v5396_v62 = vmax.f32 %v174_v53, 0.0  ;;  %v176_v9 = vadd.f32 %v4982_v2, %v107_v43  ;;  %v5400_v6 = vadd.f32 %v4982_v2, %v139_v34  ;;  %v79_v42 = vld [vmem:[%s7733_s0 + $0x1f8] sm:$0xff]  ;;  %4559 = vmatprep.mubr.msk.f32.mxu0 %vm283_vm0, %v5124_v4 }
  0x21   :  { %885 = vrot.lane.b32.xlu0 %v5154_v15, %s4940_s8  ;;  %v5415_v43 = vmax.f32 %v177_v60, 0.0  ;;  %v110_v53 = vmul.f32 %v4977_v1, %v41_v55  ;;  %v109_v34 = vmul.f32 %v4977_v1, %v40_v13  ;;  %v142_v54 = vmul.f32 %v4977_v1, %v73_v35  ;;  %v42_v55 = vld [vmem:[%s7733_s0 + $0xd0] sm:$0xff] }
  0x22   :  { %v112_v4 = vmul.f32 %v4977_v1, %v43_v14  ;;  %v141_v45 = vmul.f32 %v4977_v1, %v72_v58  ;;  %v144_v60 = vmul.f32 %v4977_v1, %v75_v61  ;;  %v143_v40 = vmul.f32 %v4977_v1, %v74_v0 }
  0x23   :  { %v5433_v13 = vadd.f32 %v4982_v2, %v142_v54  ;;  %v146_v35 = vmul.f32 %v4977_v1, %v77_v10  ;;  %v145_v33 = vmul.f32 %v4977_v1, %v76_v11  ;;  %v148_v30 = vmul.f32 %v4977_v1, %v79_v42  ;;  %4560 = vmatmul.mubr.msk.f32.gmra.mrb[10].mxu0 %vm283_vm0, %v5122_v3 }
  0x24   :  { %891 = vrot.lane.b32.xlu1 %v5165_v23, %s4940_s8  ;;  %v5441_v14 = vadd.f32 %v4982_v2, %v141_v45  ;;  %v5444_v58 = vadd.f32 %v4982_v2, %v144_v60  ;;  %v5447_v61 = vadd.f32 %v4982_v2, %v143_v40  ;;  %v147_v54 = vmul.f32 %v4977_v1, %v78_v51 }
  0x25   :  { %889 = vrot.lane.b32.xlu0 %v5225_v52, %s4940_s8  ;;  %4562 = vmatprep.mubr.msk.f32.mxu0 %vm283_vm0, %v5154_v15  ;;  %v179_v0 = vadd.f32 %v4982_v2, %v110_v53  ;;  %v5456_v10 = vadd.f32 %v4982_v2, %v146_v35  ;;  %v5459_v45 = vadd.f32 %v4982_v2, %v145_v33  ;;  %v5466_v40 = vmax.f32 %v176_v9, 0.0  ;;  %v45_v53 = vld [vmem:[%s7733_s0 + $0xe8] sm:$0xff] }
  0x26   :  { %v5462_v11 = vadd.f32 %v4982_v2, %v148_v30  ;;  %v178_v51 = vadd.f32 %v4982_v2, %v109_v34  ;;  %v111_v42 = vmul.f32 %v4977_v1, %v42_v55  ;;  %v5474_v60 = vadd.f32 %v4982_v2, %v147_v54  ;;  %v44_v30 = vld [vmem:[%s7733_s0 + $0xe0] sm:$0xff] }
  0x27   :  { %4563 = vmatmul.mubr.msk.f32.gmra.mrb[12].mxu0 %vm283_vm0, %v5139_v8  ;;  %v5485_v33 = vmax.f32 %v179_v0, 0.0  ;;  %v181_v9 = vadd.f32 %v4982_v2, %v112_v4  ;;  %v114_v34 = vmul.f32 %v4977_v1, %v45_v53  ;;  %v113_v54 = vmul.f32 %v4977_v1, %v44_v30  ;;  %v46_v0 = vld [vmem:[%s7733_s0 + $0xf0] sm:$0xff] }
  0x28   :  { %895 = vrot.lane.b32.xlu1 %v5287_v27, %s4940_s8  ;;  %4565 = vmatprep.mubr.msk.f32.mxu0 %vm283_vm0, %v5225_v52  ;;  %v5491_v55 = vmax.f32 %v178_v51, 0.0  ;;  %v180_v35 = vadd.f32 %v4982_v2, %v111_v42  ;;  %v47_v52 = vld [vmem:[%s7733_s0 + $0xf8] sm:$0xff]  ;;  %s4941_s0 = smov 112  }
  0x29   :  { %893 = vrot.lane.b32.xlu0 %v5309_v41, %s4940_s8  ;;  %v5507_v4 = vmax.f32 %v181_v9, 0.0  ;;  %v183_v51 = vadd.f32 %v4982_v2, %v114_v34  ;;  %v116_v42 = vmul.f32 %v4977_v1, %v47_v52  ;;  %v182_v30 = vadd.f32 %v4982_v2, %v113_v54 }
  0x2a   :  { %v5513_v53 = vmax.f32 %v180_v35, 0.0 }
  0x2b   :  { %4566 = vmatmul.mubr.msk.f32.gmra.mrb[14].mxu0 %vm283_vm0, %v5165_v23  ;;  %v115_v23 = vmul.f32 %v4977_v1, %v46_v0  ;;  %v5523_v9 = vmax.f32 %v183_v51, 0.0  ;;  %v185_v52 = vadd.f32 %v4982_v2, %v116_v42  ;;  %v5528_v34 = vmax.f32 %v182_v30, 0.0 }
  0x2c   :  { %899 = vrot.lane.b32.xlu1 %v5325_v59, %s4940_s8  ;;  %4568 = vmatprep.mubr.msk.f32.mxu0 %vm283_vm0, %v5309_v41  ;;  %v5564_v0 = vmax.f32 %v5195_v38, 0.0  ;;  %v5583_v38 = vmax.f32 %v5209_v46, 0.0  ;;  %v5606_v46 = vmax.f32 %v5263_v12, 0.0  ;;  %v5625_v12 = vmax.f32 %v5277_v20, 0.0 }
  0x2d   :  { %897 = vrot.lane.b32.xlu0 %v5335_v5, %s4940_s8  ;;  %v184_v1 = vadd.f32 %v4982_v2, %v115_v23  ;;  %v5537_v35 = vmax.f32 %v185_v52, 0.0  ;;  %v5550_v2 = vmax.f32 %v5181_v31, 0.0  ;;  %v5555_v23 = vmax.f32 %v5192_v37, 0.0 }
  0x2e   :  { %v5569_v31 = vmax.f32 %v5198_v39, 0.0  ;;  %v5578_v37 = vmax.f32 %v5206_v44, 0.0  ;;  %v5592_v39 = vmax.f32 %v5212_v47, 0.0  ;;  %v5597_v44 = vmax.f32 %v5230_v56, 0.0 }
  0x2f   :  { %4569 = vmatmul.mubr.msk.f32.gmra.mrb[16].mxu0 %vm283_vm0, %v5287_v27  ;;  %v5541_v54 = vmax.f32 %v184_v1, 0.0  ;;  %v5611_v47 = vmax.f32 %v5271_v17, 0.0  ;;  %v5620_v56 = vmax.f32 %v5274_v18, 0.0  ;;  %v5634_v17 = vmax.f32 %v5290_v28, 0.0 }
  0x30   :  { %903 = vrot.lane.b32.xlu1 %v5394_v7, %s4940_s8  ;;  %4571 = vmatprep.mubr.msk.f32.mxu0 %vm283_vm0, %v5335_v5  ;;  %v5639_v18 = vmax.f32 %v5293_v29, 0.0  ;;  %v5648_v20 = vmax.f32 %v5296_v32, 0.0  ;;  %v5653_v28 = vmax.f32 %v5314_v48, 0.0  ;;  %v5662_v29 = vmax.f32 %v5348_v63, 0.0 }
  0x31   :  { %901 = vrot.lane.b32.xlu0 %v5396_v62, %s4940_s8  ;;  %v5667_v32 = vmax.f32 %v5362_v16, 0.0  ;;  %v5676_v48 = vmax.f32 %v5365_v24, 0.0  ;;  %v5681_v63 = vmax.f32 %v5368_v26, 0.0  ;;  %v5690_v16 = vmax.f32 %v5375_v36, 0.0 }
  0x32   :  { %v5695_v24 = vmax.f32 %v5378_v49, 0.0  ;;  %v5704_v26 = vmax.f32 %v5381_v50, 0.0  ;;  %v5709_v36 = vmax.f32 %v5400_v6, 0.0  ;;  %v5718_v49 = vmax.f32 %v5433_v13, 0.0 }
  0x33   :  { %4572 = vmatmul.mubr.msk.f32.gmra.mrb[18].mxu0 %vm283_vm0, %v5325_v59  ;;  %v5723_v50 = vmax.f32 %v5441_v14, 0.0  ;;  %v5732_v6 = vmax.f32 %v5444_v58, 0.0  ;;  %v5737_v13 = vmax.f32 %v5447_v61, 0.0  ;;  %v5747_v58 = vmax.f32 %v5456_v10, 0.0 }
  0x34   :  { %907 = vrot.lane.b32.xlu1 %v5415_v43, %s4940_s8  ;;  %4574 = vmatprep.mubr.msk.f32.mxu0 %vm283_vm0, %v5396_v62  ;;  %v5752_v61 = vmax.f32 %v5459_v45, 0.0  ;;  %v5762_v10 = vmax.f32 %v5462_v11, 0.0  ;;  %v5768_v45 = vmax.f32 %v5474_v60, 0.0 }
  0x35   :  { %905 = vrot.lane.b32.xlu0 %v5466_v40, %s4940_s8 }
  0x36   :  { %7768 = vst [vmem:[#allocation12_spill] sm:$0xff] %v5768_v45 }
  0x37   :  { %4575 = vmatmul.mubr.msk.f32.gmra.mrb[20].mxu0 %vm283_vm0, %v5394_v7 }
  0x38   :  { %911 = vrot.lane.b32.xlu1 %v5485_v33, %s4940_s8  ;;  %4577 = vmatprep.mubr.msk.f32.mxu0 %vm283_vm0, %v5466_v40 }
  0x39   :  { %909 = vrot.lane.b32.xlu0 %v5491_v55, %s4940_s8 }
  0x3b   :  { %4578 = vmatmul.mubr.msk.f32.gmra.mrb[22].mxu0 %vm283_vm0, %v5415_v43 }
  0x3c   :  { %915 = vrot.lane.b32.xlu1 %v5507_v4, %s4940_s8  ;;  %4580 = vmatprep.mubr.msk.f32.mxu0 %vm283_vm0, %v5491_v55 }
  0x3d   :  { %913 = vrot.lane.b32.xlu0 %v5513_v53, %s4940_s8 }
  0x3f   :  { %4581 = vmatmul.mubr.msk.f32.gmra.mrb[24].mxu0 %vm283_vm0, %v5485_v33 }
  0x40   :  { %919 = vrot.lane.b32.xlu1 %v5523_v9, %s4940_s8  ;;  %4583 = vmatprep.mubr.msk.f32.mxu0 %vm283_vm0, %v5513_v53 }
  0x41   :  { %917 = vrot.lane.b32.xlu0 %v5528_v34, %s4940_s8 }
  0x43   :  { %4584 = vmatmul.mubr.msk.f32.gmra.mrb[26].mxu0 %vm283_vm0, %v5507_v4 }
  0x44   :  { %923 = vrot.lane.b32.xlu1 %v5537_v35, %s4940_s8  ;;  %4586 = vmatprep.mubr.msk.f32.mxu0 %vm283_vm0, %v5528_v34 }
  0x45   :  { %921 = vrot.lane.b32.xlu0 %v5541_v54, %s4940_s8 }
  0x47   :  { %4587 = vmatmul.mubr.msk.f32.gmra.mrb[28].mxu0 %vm283_vm0, %v5523_v9 }
  0x48   :  { %927 = vrot.lane.b32.xlu1 %v5550_v2, %s4940_s8  ;;  %4589 = vmatprep.mubr.msk.f32.mxu0 %vm283_vm0, %v5541_v54 }
  0x49   :  { %925 = vrot.lane.b32.xlu0 %v5555_v23, %s4940_s8 }
  0x4b   :  { %4590 = vmatmul.mubr.msk.f32.gmra.mrb[30].mxu0 %vm283_vm0, %v5537_v35 }
  0x4c   :  { %931 = vrot.lane.b32.xlu1 %v5564_v0, %s4940_s8  ;;  %4592 = vmatprep.mubr.msk.f32.mxu0 %vm283_vm0, %v5555_v23 }
  0x4d   :  { %929 = vrot.lane.b32.xlu0 %v5569_v31, %s4940_s8 }
  0x4f   :  { %4593 = vmatmul.mubr.msk.f32.gmra.mrb[32].mxu0 %vm283_vm0, %v5550_v2 }
  0x50   :  { %935 = vrot.lane.b32.xlu1 %v5578_v37, %s4940_s8  ;;  %4595 = vmatprep.mubr.msk.f32.mxu0 %vm283_vm0, %v5569_v31 }
  0x51   :  { %933 = vrot.lane.b32.xlu0 %v5583_v38, %s4940_s8 }
  0x53   :  { %4596 = vmatmul.mubr.msk.f32.gmra.mrb[34].mxu0 %vm283_vm0, %v5564_v0 }
  0x54   :  { %939 = vrot.lane.b32.xlu1 %v5592_v39, %s4940_s8  ;;  %4598 = vmatprep.mubr.msk.f32.mxu0 %vm283_vm0, %v5583_v38 }
  0x55   :  { %937 = vrot.lane.b32.xlu0 %v5597_v44, %s4940_s8 }
  0x57   :  { %4599 = vmatmul.mubr.msk.f32.gmra.mrb[36].mxu0 %vm283_vm0, %v5578_v37 }
  0x58   :  { %943 = vrot.lane.b32.xlu1 %v5606_v46, %s4940_s8  ;;  %4601 = vmatprep.mubr.msk.f32.mxu0 %vm283_vm0, %v5597_v44 }
  0x59   :  { %941 = vrot.lane.b32.xlu0 %v5611_v47, %s4940_s8 }
  0x5b   :  { %4602 = vmatmul.mubr.msk.f32.gmra.mrb[38].mxu0 %vm283_vm0, %v5592_v39 }
  0x5c   :  { %947 = vrot.lane.b32.xlu1 %v5620_v56, %s4940_s8  ;;  %4604 = vmatprep.mubr.msk.f32.mxu0 %vm283_vm0, %v5611_v47 }
  0x5d   :  { %945 = vrot.lane.b32.xlu0 %v5625_v12, %s4940_s8 }
  0x5f   :  { %4605 = vmatmul.mubr.msk.f32.gmra.mrb[40].mxu0 %vm283_vm0, %v5606_v46 }
  0x60   :  { %951 = vrot.lane.b32.xlu1 %v5634_v17, %s4940_s8  ;;  %4607 = vmatprep.mubr.msk.f32.mxu0 %vm283_vm0, %v5625_v12 }
  0x61   :  { %949 = vrot.lane.b32.xlu0 %v5639_v18, %s4940_s8 }
  0x63   :  { %4608 = vmatmul.mubr.msk.f32.gmra.mrb[42].mxu0 %vm283_vm0, %v5620_v56 }
  0x64   :  { %955 = vrot.lane.b32.xlu1 %v5648_v20, %s4940_s8  ;;  %4610 = vmatprep.mubr.msk.f32.mxu0 %vm283_vm0, %v5639_v18 }
  0x65   :  { %953 = vrot.lane.b32.xlu0 %v5653_v28, %s4940_s8 }
  0x67   :  { %4611 = vmatmul.mubr.msk.f32.gmra.mrb[44].mxu0 %vm283_vm0, %v5634_v17 }
  0x68   :  { %959 = vrot.lane.b32.xlu1 %v5662_v29, %s4940_s8  ;;  %4613 = vmatprep.mubr.msk.f32.mxu0 %vm283_vm0, %v5653_v28 }
  0x69   :  { %957 = vrot.lane.b32.xlu0 %v5667_v32, %s4940_s8 }
  0x6b   :  { %4614 = vmatmul.mubr.msk.f32.gmra.mrb[46].mxu0 %vm283_vm0, %v5648_v20 }
  0x6c   :  { %963 = vrot.lane.b32.xlu1 %v5676_v48, %s4940_s8  ;;  %4616 = vmatprep.mubr.msk.f32.mxu0 %vm283_vm0, %v5667_v32 }
  0x6d   :  { %961 = vrot.lane.b32.xlu0 %v5681_v63, %s4940_s8 }
  0x6f   :  { %4617 = vmatmul.mubr.msk.f32.gmra.mrb[48].mxu0 %vm283_vm0, %v5662_v29 }
  0x70   :  { %967 = vrot.lane.b32.xlu1 %v5690_v16, %s4940_s8  ;;  %4619 = vmatprep.mubr.msk.f32.mxu0 %vm283_vm0, %v5681_v63 }
  0x71   :  { %965 = vrot.lane.b32.xlu0 %v5695_v24, %s4940_s8 }
  0x73   :  { %4620 = vmatmul.mubr.msk.f32.gmra.mrb[50].mxu0 %vm283_vm0, %v5676_v48 }
  0x74   :  { %971 = vrot.lane.b32.xlu1 %v5704_v26, %s4940_s8  ;;  %4622 = vmatprep.mubr.msk.f32.mxu0 %vm283_vm0, %v5695_v24 }
  0x75   :  { %969 = vrot.lane.b32.xlu0 %v5709_v36, %s4940_s8 }
  0x77   :  { %4623 = vmatmul.mubr.msk.f32.gmra.mrb[52].mxu0 %vm283_vm0, %v5690_v16 }
  0x78   :  { %975 = vrot.lane.b32.xlu1 %v5718_v49, %s4940_s8  ;;  %4625 = vmatprep.mubr.msk.f32.mxu0 %vm283_vm0, %v5709_v36 }
  0x79   :  { %973 = vrot.lane.b32.xlu0 %v5723_v50, %s4940_s8 }
  0x7a   :  { %v866_v14 = vpop.permute.xlu1 %865 }
  0x7b   :  { %v862_v51 = vpop.permute.xlu0 %861  ;;  %4626 = vmatmul.mubr.msk.f32.gmra.mrb[54].mxu0 %vm283_vm0, %v5704_v26 }
  0x7c   :  { %4642 = vmatprep.mubr.msk.f32.mxu1 %vm283_vm0, %v862_v51  ;;  %979 = vrot.lane.b32.xlu1 %v5732_v6, %s4940_s8 }
  0x7d   :  { %977 = vrot.lane.b32.xlu0 %v5737_v13, %s4940_s8  ;;  %4628 = vmatprep.mubr.msk.f32.mxu0 %vm283_vm0, %v5723_v50 }
  0x7e   :  { %v868_v42 = vpop.permute.xlu1 %867 }
  0x7f   :  { %v864_v30 = vpop.permute.xlu0 %863  ;;  %4629 = vmatmul.mubr.msk.f32.gmra.mrb[56].mxu0 %vm283_vm0, %v5718_v49 }
  0x80   :  { %4643 = vmatmul.mubr.msk.f32.vlgmr.msra.gmra.mrb[0].mxu1 %vm283_vm0, %v864_v30  ;;  %983 = vrot.lane.b32.xlu1 %v5747_v58, %s4940_s8  ;;  %v7769_v30 = vld [vmem:[#allocation2_spill] sm:$0xff] }
  0x81   :  { %981 = vrot.lane.b32.xlu0 %v5752_v61, %s4940_s8  ;;  %4645 = vmatprep.mubr.msk.f32.mxu1 %vm283_vm0, %v866_v14 }
  0x82   :  { %v872_v52 = vpop.permute.xlu1 %871  ;;  %4837 = vmatpush3.msra.mxu1 %v5099_v57  ;;  %4631 = vmatprep.mubr.msk.f32.mxu0 %vm283_vm0, %v5737_v13 }
  0x83   :  { %v870_v1 = vpop.permute.xlu0 %869  ;;  %4632 = vmatmul.mubr.msk.f32.gmra.mrb[58].mxu0 %vm283_vm0, %v5732_v6 }
  0x84   :  { %4646 = vmatmul.mubr.msk.f32.gmra.mrb[2].mxu1 %vm283_vm0, %v868_v42  ;;  %987 = vrot.lane.b32.xlu1 %v5762_v10, %s4940_s8 }
  0x85   :  { %985 = vrot.lane.b32.xlu0 %v5768_v45, %s4940_s8  ;;  %4648 = vmatprep.mubr.msk.f32.mxu1 %vm283_vm0, %v870_v1  ;;  %s4942_s8 = smov 104  }
  0x86   :  { %v876_v11 = vpop.permute.xlu1 %875  ;;  %4634 = vmatprep.mubr.msk.f32.mxu0 %vm283_vm0, %v5752_v61 }
  0x87   :  { %v874_v60 = vpop.permute.xlu0 %873  ;;  %4635 = vmatmul.mubr.msk.f32.gmra.mrb[60].mxu0 %vm283_vm0, %v5747_v58 }
  0x88   :  { %4649 = vmatmul.mubr.msk.f32.gmra.mrb[4].mxu1 %vm283_vm0, %v872_v52  ;;  %1504 = vrot.lane.b32.xlu1 %v5027_v25, %s4941_s0  ;;  %v7770_v52 = vld [vmem:[#allocation3_spill] sm:$0xff] }
  0x89   :  { %1502 = vrot.lane.b32.xlu0 %v5017_v21, %s4941_s0  ;;  %4651 = vmatprep.mubr.msk.f32.mxu1 %vm283_vm0, %v874_v60  ;;  %v7771_v60 = vld [vmem:[#allocation4_spill] sm:$0xff] }
  0x8a   :  { %v880_v57 = vpop.permute.xlu1 %879  ;;  %4637 = vmatprep.mubr.msk.f32.mxu0 %vm283_vm0, %v5768_v45 }
  0x8b   :  { %v878_v14 = vpop.permute.xlu0 %877  ;;  %4638 = vmatmul.mubr.msk.f32.gmra.mrb[62].mxu0 %vm283_vm0, %v5762_v10 }
  0x8c   :  { %4652 = vmatmul.mubr.msk.f32.gmra.mrb[6].mxu1 %vm283_vm0, %v876_v11  ;;  %1508 = vrot.lane.b32.xlu1 %v5021_v22, %s4941_s0 }
  0x8d   :  { %1506 = vrot.lane.b32.xlu0 %v5012_v19, %s4941_s0  ;;  %4654 = vmatprep.mubr.msk.f32.mxu1 %vm283_vm0, %v878_v14 }
  0x8e   :  { %v884_v51 = vpop.permute.xlu1 %883 }
  0x8f   :  { %v882_v42 = vpop.permute.xlu0 %881 }
  0x90   :  { %4655 = vmatmul.mubr.msk.f32.gmra.mrb[8].mxu1 %vm283_vm0, %v880_v57  ;;  %1512 = vrot.lane.b32.xlu1 %v7769_v30, %s4941_s0  ;;  %v7772_v57 = vld [vmem:[#allocation5_spill] sm:$0xff] }
  0x91   :  { %1510 = vrot.lane.b32.xlu0 %v7770_v52, %s4941_s0  ;;  %4657 = vmatprep.mubr.msk.f32.mxu1 %vm283_vm0, %v882_v42  ;;  %v7773_v52 = vld [vmem:[#allocation6_spill] sm:$0xff] }
  0x92   :  { %v888_v1 = vpop.permute.xlu1 %887 }
  0x93   :  { %v886_v11 = vpop.permute.xlu0 %885 }
  0x94   :  { %4658 = vmatmul.mubr.msk.f32.gmra.mrb[10].mxu1 %vm283_vm0, %v884_v51  ;;  %1516 = vrot.lane.b32.xlu1 %v7771_v60, %s4941_s0  ;;  %v7774_v51 = vld [vmem:[#allocation7_spill] sm:$0xff] }
  0x95   :  { %1514 = vrot.lane.b32.xlu0 %v7772_v57, %s4941_s0  ;;  %4660 = vmatprep.mubr.msk.f32.mxu1 %vm283_vm0, %v886_v11  ;;  %v7775_v11 = vld [vmem:[#allocation9_spill] sm:$0xff] }
  0x96   :  { %v892_v14 = vpop.permute.xlu1 %891 }
  0x97   :  { %v890_v42 = vpop.permute.xlu0 %889 }
  0x98   :  { %4661 = vmatmul.mubr.msk.f32.gmra.mrb[12].mxu1 %vm283_vm0, %v888_v1  ;;  %1520 = vrot.lane.b32.xlu1 %v7773_v52, %s4941_s0 }
  0x99   :  { %1518 = vrot.lane.b32.xlu0 %v7774_v51, %s4941_s0  ;;  %4663 = vmatprep.mubr.msk.f32.mxu1 %vm283_vm0, %v890_v42 }
  0x9a   :  { %v896_v60 = vpop.permute.xlu1 %895 }
  0x9b   :  { %v894_v30 = vpop.permute.xlu0 %893 }
  0x9c   :  { %4664 = vmatmul.mubr.msk.f32.gmra.mrb[14].mxu1 %vm283_vm0, %v892_v14  ;;  %1524 = vrot.lane.b32.xlu1 %v5122_v3, %s4941_s0 }
  0x9d   :  { %1522 = vrot.lane.b32.xlu0 %v7775_v11, %s4941_s0  ;;  %4666 = vmatprep.mubr.msk.f32.mxu1 %vm283_vm0, %v894_v30  ;;  %v7776_v11 = vld [vmem:[#allocation10_spill] sm:$0xff]  ;;  %v7777_v30 = vld [vmem:[#allocation11_spill] sm:$0xff] }
  0x9e   :  { %v900_v1 = vpop.permute.xlu1 %899 }
  0x9f   :  { %v898_v57 = vpop.permute.xlu0 %897 }
  0xa0   :  { %4667 = vmatmul.mubr.msk.f32.gmra.mrb[16].mxu1 %vm283_vm0, %v896_v60  ;;  %1528 = vrot.lane.b32.xlu1 %v5139_v8, %s4941_s0 }
  0xa1   :  { %1526 = vrot.lane.b32.xlu0 %v5154_v15, %s4941_s0  ;;  %4669 = vmatprep.mubr.msk.f32.mxu1 %vm283_vm0, %v898_v57 }
  0xa2   :  { %v904_v14 = vpop.permute.xlu1 %903 }
  0xa3   :  { %v902_v42 = vpop.permute.xlu0 %901 }
  0xa4   :  { %4670 = vmatmul.mubr.msk.f32.gmra.mrb[18].mxu1 %vm283_vm0, %v900_v1  ;;  %1532 = vrot.lane.b32.xlu1 %v7776_v11, %s4941_s0 }
  0xa5   :  { %1530 = vrot.lane.b32.xlu0 %v7777_v30, %s4941_s0  ;;  %4672 = vmatprep.mubr.msk.f32.mxu1 %vm283_vm0, %v902_v42 }
  0xa6   :  { %v908_v60 = vpop.permute.xlu1 %907 }
  0xa7   :  { %v906_v3 = vpop.permute.xlu0 %905 }
  0xa8   :  { %4673 = vmatmul.mubr.msk.f32.gmra.mrb[20].mxu1 %vm283_vm0, %v904_v14  ;;  %1536 = vrot.lane.b32.xlu1 %v5287_v27, %s4941_s0 }
  0xa9   :  { %1534 = vrot.lane.b32.xlu0 %v5309_v41, %s4941_s0  ;;  %4675 = vmatprep.mubr.msk.f32.mxu1 %vm283_vm0, %v906_v3 }
  0xaa   :  { %v912_v57 = vpop.permute.xlu1 %911 }
  0xab   :  { %v910_v1 = vpop.permute.xlu0 %909 }
  0xac   :  { %4676 = vmatmul.mubr.msk.f32.gmra.mrb[22].mxu1 %vm283_vm0, %v908_v60  ;;  %1540 = vrot.lane.b32.xlu1 %v5325_v59, %s4941_s0 }
  0xad   :  { %1538 = vrot.lane.b32.xlu0 %v5335_v5, %s4941_s0  ;;  %4678 = vmatprep.mubr.msk.f32.mxu1 %vm283_vm0, %v910_v1 }
  0xae   :  { %v916_v14 = vpop.permute.xlu1 %915 }
  0xaf   :  { %v914_v42 = vpop.permute.xlu0 %913 }
  0xb0   :  { %4679 = vmatmul.mubr.msk.f32.gmra.mrb[24].mxu1 %vm283_vm0, %v912_v57  ;;  %1544 = vrot.lane.b32.xlu1 %v5394_v7, %s4941_s0 }
  0xb1   :  { %1542 = vrot.lane.b32.xlu0 %v5396_v62, %s4941_s0  ;;  %4681 = vmatprep.mubr.msk.f32.mxu1 %vm283_vm0, %v914_v42 }
  0xb2   :  { %v920_v3 = vpop.permute.xlu1 %919 }
  0xb3   :  { %v918_v60 = vpop.permute.xlu0 %917 }
  0xb4   :  { %4682 = vmatmul.mubr.msk.f32.gmra.mrb[26].mxu1 %vm283_vm0, %v916_v14  ;;  %1548 = vrot.lane.b32.xlu1 %v5415_v43, %s4941_s0 }
  0xb5   :  { %1546 = vrot.lane.b32.xlu0 %v5466_v40, %s4941_s0  ;;  %4684 = vmatprep.mubr.msk.f32.mxu1 %vm283_vm0, %v918_v60 }
  0xb6   :  { %v924_v57 = vpop.permute.xlu1 %923 }
  0xb7   :  { %v922_v1 = vpop.permute.xlu0 %921 }
  0xb8   :  { %4685 = vmatmul.mubr.msk.f32.gmra.mrb[28].mxu1 %vm283_vm0, %v920_v3  ;;  %1552 = vrot.lane.b32.xlu1 %v5485_v33, %s4941_s0 }
  0xb9   :  { %1550 = vrot.lane.b32.xlu0 %v5491_v55, %s4941_s0  ;;  %4687 = vmatprep.mubr.msk.f32.mxu1 %vm283_vm0, %v922_v1 }
  0xba   :  { %v928_v14 = vpop.permute.xlu1 %927 }
  0xbb   :  { %v926_v42 = vpop.permute.xlu0 %925 }
  0xbc   :  { %4688 = vmatmul.mubr.msk.f32.gmra.mrb[30].mxu1 %vm283_vm0, %v924_v57  ;;  %1556 = vrot.lane.b32.xlu1 %v5507_v4, %s4941_s0 }
  0xbd   :  { %1554 = vrot.lane.b32.xlu0 %v5513_v53, %s4941_s0  ;;  %4690 = vmatprep.mubr.msk.f32.mxu1 %vm283_vm0, %v926_v42 }
  0xbe   :  { %v932_v3 = vpop.permute.xlu1 %931 }
  0xbf   :  { %v930_v60 = vpop.permute.xlu0 %929 }
  0xc0   :  { %4691 = vmatmul.mubr.msk.f32.gmra.mrb[32].mxu1 %vm283_vm0, %v928_v14  ;;  %1560 = vrot.lane.b32.xlu1 %v5523_v9, %s4941_s0 }
  0xc1   :  { %1558 = vrot.lane.b32.xlu0 %v5528_v34, %s4941_s0  ;;  %4693 = vmatprep.mubr.msk.f32.mxu1 %vm283_vm0, %v930_v60 }
  0xc2   :  { %v936_v57 = vpop.permute.xlu1 %935 }
  0xc3   :  { %v934_v1 = vpop.permute.xlu0 %933 }
  0xc4   :  { %4694 = vmatmul.mubr.msk.f32.gmra.mrb[34].mxu1 %vm283_vm0, %v932_v3  ;;  %1564 = vrot.lane.b32.xlu1 %v5537_v35, %s4941_s0 }
  0xc5   :  { %1562 = vrot.lane.b32.xlu0 %v5541_v54, %s4941_s0  ;;  %4696 = vmatprep.mubr.msk.f32.mxu1 %vm283_vm0, %v934_v1 }
  0xc6   :  { %v940_v14 = vpop.permute.xlu1 %939 }
  0xc7   :  { %v938_v42 = vpop.permute.xlu0 %937 }
  0xc8   :  { %4697 = vmatmul.mubr.msk.f32.gmra.mrb[36].mxu1 %vm283_vm0, %v936_v57  ;;  %1568 = vrot.lane.b32.xlu1 %v5550_v2, %s4941_s0 }
  0xc9   :  { %1566 = vrot.lane.b32.xlu0 %v5555_v23, %s4941_s0  ;;  %4699 = vmatprep.mubr.msk.f32.mxu1 %vm283_vm0, %v938_v42 }
  0xca   :  { %v944_v3 = vpop.permute.xlu1 %943 }
  0xcb   :  { %v942_v60 = vpop.permute.xlu0 %941 }
  0xcc   :  { %4700 = vmatmul.mubr.msk.f32.gmra.mrb[38].mxu1 %vm283_vm0, %v940_v14  ;;  %1572 = vrot.lane.b32.xlu1 %v5564_v0, %s4941_s0 }
  0xcd   :  { %1570 = vrot.lane.b32.xlu0 %v5569_v31, %s4941_s0  ;;  %4702 = vmatprep.mubr.msk.f32.mxu1 %vm283_vm0, %v942_v60 }
  0xce   :  { %v948_v57 = vpop.permute.xlu1 %947 }
  0xcf   :  { %v946_v1 = vpop.permute.xlu0 %945 }
  0xd0   :  { %4703 = vmatmul.mubr.msk.f32.gmra.mrb[40].mxu1 %vm283_vm0, %v944_v3  ;;  %1576 = vrot.lane.b32.xlu1 %v5578_v37, %s4941_s0 }
  0xd1   :  { %1574 = vrot.lane.b32.xlu0 %v5583_v38, %s4941_s0  ;;  %4705 = vmatprep.mubr.msk.f32.mxu1 %vm283_vm0, %v946_v1 }
  0xd2   :  { %v952_v14 = vpop.permute.xlu1 %951 }
  0xd3   :  { %v950_v42 = vpop.permute.xlu0 %949 }
  0xd4   :  { %4706 = vmatmul.mubr.msk.f32.gmra.mrb[42].mxu1 %vm283_vm0, %v948_v57  ;;  %1580 = vrot.lane.b32.xlu1 %v5592_v39, %s4941_s0 }
  0xd5   :  { %1578 = vrot.lane.b32.xlu0 %v5597_v44, %s4941_s0  ;;  %4708 = vmatprep.mubr.msk.f32.mxu1 %vm283_vm0, %v950_v42 }
  0xd6   :  { %v956_v3 = vpop.permute.xlu1 %955 }
  0xd7   :  { %v954_v60 = vpop.permute.xlu0 %953 }
  0xd8   :  { %4709 = vmatmul.mubr.msk.f32.gmra.mrb[44].mxu1 %vm283_vm0, %v952_v14  ;;  %1584 = vrot.lane.b32.xlu1 %v5606_v46, %s4941_s0 }
  0xd9   :  { %1582 = vrot.lane.b32.xlu0 %v5611_v47, %s4941_s0  ;;  %4711 = vmatprep.mubr.msk.f32.mxu1 %vm283_vm0, %v954_v60 }
  0xda   :  { %v960_v57 = vpop.permute.xlu1 %959 }
  0xdb   :  { %v958_v1 = vpop.permute.xlu0 %957 }
  0xdc   :  { %4712 = vmatmul.mubr.msk.f32.gmra.mrb[46].mxu1 %vm283_vm0, %v956_v3  ;;  %1588 = vrot.lane.b32.xlu1 %v5620_v56, %s4941_s0 }
  0xdd   :  { %1586 = vrot.lane.b32.xlu0 %v5625_v12, %s4941_s0  ;;  %4714 = vmatprep.mubr.msk.f32.mxu1 %vm283_vm0, %v958_v1 }
  0xde   :  { %v964_v14 = vpop.permute.xlu1 %963 }
  0xdf   :  { %v962_v42 = vpop.permute.xlu0 %961 }
  0xe0   :  { %4715 = vmatmul.mubr.msk.f32.gmra.mrb[48].mxu1 %vm283_vm0, %v960_v57  ;;  %1592 = vrot.lane.b32.xlu1 %v5634_v17, %s4941_s0 }
  0xe1   :  { %1590 = vrot.lane.b32.xlu0 %v5639_v18, %s4941_s0  ;;  %4717 = vmatprep.mubr.msk.f32.mxu1 %vm283_vm0, %v962_v42 }
  0xe2   :  { %v968_v3 = vpop.permute.xlu1 %967 }
  0xe3   :  { %v966_v60 = vpop.permute.xlu0 %965 }
  0xe4   :  { %4718 = vmatmul.mubr.msk.f32.gmra.mrb[50].mxu1 %vm283_vm0, %v964_v14  ;;  %1596 = vrot.lane.b32.xlu1 %v5648_v20, %s4941_s0 }
  0xe5   :  { %1594 = vrot.lane.b32.xlu0 %v5653_v28, %s4941_s0  ;;  %4720 = vmatprep.mubr.msk.f32.mxu1 %vm283_vm0, %v966_v60 }
  0xe6   :  { %v972_v57 = vpop.permute.xlu1 %971 }
  0xe7   :  { %v970_v1 = vpop.permute.xlu0 %969 }
  0xe8   :  { %4721 = vmatmul.mubr.msk.f32.gmra.mrb[52].mxu1 %vm283_vm0, %v968_v3  ;;  %1600 = vrot.lane.b32.xlu1 %v5662_v29, %s4941_s0 }
  0xe9   :  { %1598 = vrot.lane.b32.xlu0 %v5667_v32, %s4941_s0  ;;  %4723 = vmatprep.mubr.msk.f32.mxu1 %vm283_vm0, %v970_v1 }
  0xea   :  { %v976_v14 = vpop.permute.xlu1 %975 }
  0xeb   :  { %v974_v42 = vpop.permute.xlu0 %973 }
  0xec   :  { %4724 = vmatmul.mubr.msk.f32.gmra.mrb[54].mxu1 %vm283_vm0, %v972_v57  ;;  %1604 = vrot.lane.b32.xlu1 %v5676_v48, %s4941_s0 }
  0xed   :  { %1602 = vrot.lane.b32.xlu0 %v5681_v63, %s4941_s0  ;;  %4726 = vmatprep.mubr.msk.f32.mxu1 %vm283_vm0, %v974_v42 }
  0xee   :  { %v980_v3 = vpop.permute.xlu1 %979 }
  0xef   :  { %v978_v60 = vpop.permute.xlu0 %977 }
  0xf0   :  { %4727 = vmatmul.mubr.msk.f32.gmra.mrb[56].mxu1 %vm283_vm0, %v976_v14  ;;  %1608 = vrot.lane.b32.xlu1 %v5690_v16, %s4941_s0 }
  0xf1   :  { %1606 = vrot.lane.b32.xlu0 %v5695_v24, %s4941_s0  ;;  %4729 = vmatprep.mubr.msk.f32.mxu1 %vm283_vm0, %v978_v60 }
  0xf2   :  { %v984_v57 = vpop.permute.xlu1 %983 }
  0xf3   :  { %v982_v1 = vpop.permute.xlu0 %981 }
  0xf4   :  { %4730 = vmatmul.mubr.msk.f32.gmra.mrb[58].mxu1 %vm283_vm0, %v980_v3  ;;  %1612 = vrot.lane.b32.xlu1 %v5704_v26, %s4941_s0 }
  0xf5   :  { %1610 = vrot.lane.b32.xlu0 %v5709_v36, %s4941_s0  ;;  %4732 = vmatprep.mubr.msk.f32.mxu1 %vm283_vm0, %v982_v1 }
  0xf6   :  { %v988_v14 = vpop.permute.xlu1 %987 }
  0xf7   :  { %v986_v42 = vpop.permute.xlu0 %985 }
  0xf8   :  { %4733 = vmatmul.mubr.msk.f32.gmra.mrb[60].mxu1 %vm283_vm0, %v984_v57  ;;  %1616 = vrot.lane.b32.xlu1 %v5718_v49, %s4941_s0 }
  0xf9   :  { %1614 = vrot.lane.b32.xlu0 %v5723_v50, %s4941_s0  ;;  %4735 = vmatprep.mubr.msk.f32.mxu1 %vm283_vm0, %v986_v42 }
  0xfa   :  { %v1505_v3 = vpop.permute.xlu1 %1504 }
  0xfb   :  { %v1503_v60 = vpop.permute.xlu0 %1502 }
  0xfc   :  { %4736 = vmatmul.mubr.msk.f32.gmra.mrb[62].mxu1 %vm283_vm0, %v988_v14  ;;  %4740 = vmatprep.mubr.msk.f32.mxu0 %vm283_vm0, %v1503_v60 }
  0xfd   :  { %1620 = vrot.lane.b32.xlu1 %v5732_v6, %s4941_s0  ;;  %1618 = vrot.lane.b32.xlu0 %v5737_v13, %s4941_s0 }
  0xfe   :  { %4741 = vmatmul.mubr.msk.f32.vlgmr.msra.gmra.mrb[64].mxu0 %vm283_vm0, %v1505_v3  ;;  %v1509_v57 = vpop.permute.xlu1 %1508 }
  0xff   :  { %v1507_v1 = vpop.permute.xlu0 %1506 }
 0x100   :  { %4743 = vmatprep.mubr.msk.f32.mxu0 %vm283_vm0, %v1507_v1 }
 0x101   :  { %1624 = vrot.lane.b32.xlu1 %v5747_v58, %s4941_s0  ;;  %1622 = vrot.lane.b32.xlu0 %v5752_v61, %s4941_s0 }
 0x102   :  { %4744 = vmatmul.mubr.msk.f32.gmra.mrb[66].mxu0 %vm283_vm0, %v1509_v57  ;;  %v1513_v14 = vpop.permute.xlu1 %1512 }
 0x103   :  { %v1511_v42 = vpop.permute.xlu0 %1510 }
 0x104   :  { %4746 = vmatprep.mubr.msk.f32.mxu0 %vm283_vm0, %v1511_v42 }
 0x105   :  { %1628 = vrot.lane.b32.xlu1 %v5762_v10, %s4941_s0  ;;  %1626 = vrot.lane.b32.xlu0 %v5768_v45, %s4941_s0 }
 0x106   :  { %4747 = vmatmul.mubr.msk.f32.gmra.mrb[68].mxu0 %vm283_vm0, %v1513_v14  ;;  %v1517_v3 = vpop.permute.xlu1 %1516 }
 0x107   :  { %v1515_v60 = vpop.permute.xlu0 %1514 }
 0x108   :  { %4749 = vmatprep.mubr.msk.f32.mxu0 %vm283_vm0, %v1515_v60 }
 0x109   :  { %2145 = vrot.lane.b32.xlu1 %v5027_v25, %s4942_s8  ;;  %2143 = vrot.lane.b32.xlu0 %v5017_v21, %s4942_s8  ;;  %v6005_v25 = vpop.f32.mrb[0].mxu0  ;;  %v7779_v21 = vld [vmem:[#allocation2_spill] sm:$0xff] }
 0x10a   :  { %4750 = vmatmul.mubr.msk.f32.gmra.mrb[70].mxu0 %vm283_vm0, %v1517_v3  ;;  %v1521_v57 = vpop.permute.xlu1 %1520  ;;  %7778 = vst [vmem:[#allocation6_spill] sm:$0xff] %v6005_v25  ;;  %v7780_v3 = vld [vmem:[#allocation3_spill] sm:$0xff]  ;;  %v6012_v60 = vpop.f32.mrb[1].mxu0 }
 0x10b   :  { %v1519_v1 = vpop.permute.xlu0 %1518  ;;  %7781 = vst [vmem:[#allocation7_spill] sm:$0xff] %v6012_v60 }
 0x10c   :  { %4752 = vmatprep.mubr.msk.f32.mxu0 %vm283_vm0, %v1519_v1  ;;  %v6014_v1 = vpop.f32.mrb[2].mxu0 }
 0x10d   :  { %2149 = vrot.lane.b32.xlu1 %v5021_v22, %s4942_s8  ;;  %2147 = vrot.lane.b32.xlu0 %v5012_v19, %s4942_s8 }
 0x10e   :  { %4753 = vmatmul.mubr.msk.f32.gmra.mrb[72].mxu0 %vm283_vm0, %v1521_v57  ;;  %v1525_v14 = vpop.permute.xlu1 %1524  ;;  %v6017_v57 = vpop.f32.mrb[3].mxu0 }
 0x10f   :  { %v1523_v42 = vpop.permute.xlu0 %1522  ;;  %v6023_v25 = vpop.f32.mrb[4].mxu0 }
 0x110   :  { %4755 = vmatprep.mubr.msk.f32.mxu0 %vm283_vm0, %v1523_v42  ;;  %v7782_v42 = vld [vmem:[#allocation4_spill] sm:$0xff]  ;;  %7784 = vst [vmem:[#allocation10_spill] sm:$0xff] %v6023_v25 }
 0x111   :  { %2153 = vrot.lane.b32.xlu1 %v7779_v21, %s4942_s8  ;;  %2151 = vrot.lane.b32.xlu0 %v7780_v3, %s4942_s8  ;;  %v7783_v21 = vld [vmem:[#allocation5_spill] sm:$0xff]  ;;  %v6026_v3 = vpop.f32.mrb[5].mxu0 }
 0x112   :  { %4756 = vmatmul.mubr.msk.f32.gmra.mrb[74].mxu0 %vm283_vm0, %v1525_v14  ;;  %v1529_v22 = vpop.permute.xlu1 %1528  ;;  %7785 = vst [vmem:[#allocation11_spill] sm:$0xff] %v6026_v3  ;;  %v6028_v45 = vpop.f32.mrb[6].mxu0 }
 0x113   :  { %v1527_v19 = vpop.permute.xlu0 %1526  ;;  %7786 = vst [vmem:[#allocation2_spill] sm:$0xff] %v6028_v45 }
 0x114   :  { %4758 = vmatprep.mubr.msk.f32.mxu0 %vm283_vm0, %v1527_v19  ;;  %v6031_v19 = vpop.f32.mrb[7].mxu0 }
 0x115   :  { %2157 = vrot.lane.b32.xlu1 %v7782_v42, %s4942_s8  ;;  %2155 = vrot.lane.b32.xlu0 %v7783_v21, %s4942_s8  ;;  %7787 = vst [vmem:[#allocation3_spill] sm:$0xff] %v6031_v19  ;;  %v6037_v42 = vpop.f32.mrb[8].mxu0  ;;  %v7790_v19 = vld [vmem:[#allocation8_spill] sm:$0xff] }
 0x116   :  { %4759 = vmatmul.mubr.msk.f32.gmra.mrb[76].mxu0 %vm283_vm0, %v1529_v22  ;;  %v1533_v14 = vpop.permute.xlu1 %1532  ;;  %7788 = vst [vmem:[#allocation4_spill] sm:$0xff] %v6037_v42  ;;  %v6040_v21 = vpop.f32.mrb[9].mxu0 }
 0x117   :  { %v1531_v60 = vpop.permute.xlu0 %1530  ;;  %7789 = vst [vmem:[#allocation5_spill] sm:$0xff] %v6040_v21  ;;  %v6042_v25 = vpop.f32.mrb[10].mxu0 }
 0x118   :  { %4761 = vmatprep.mubr.msk.f32.mxu0 %vm283_vm0, %v1531_v60  ;;  %v6045_v60 = vpop.f32.mrb[11].mxu0 }
 0x119   :  { %2161 = vrot.lane.b32.xlu1 %v7773_v52, %s4942_s8  ;;  %2159 = vrot.lane.b32.xlu0 %v7774_v51, %s4942_s8  ;;  %v7791_v52 = vld [vmem:[#allocation9_spill] sm:$0xff]  ;;  %v6051_v51 = vpop.f32.mrb[12].mxu0 }
 0x11a   :  { %4762 = vmatmul.mubr.msk.f32.gmra.mrb[78].mxu0 %vm283_vm0, %v1533_v14  ;;  %v1537_v22 = vpop.permute.xlu1 %1536  ;;  %7792 = vst [vmem:[#allocation8_spill] sm:$0xff] %v6051_v51  ;;  %v6054_v42 = vpop.f32.mrb[13].mxu0 }
 0x11b   :  { %v1535_v3 = vpop.permute.xlu0 %1534  ;;  %7793 = vst [vmem:[#allocation9_spill] sm:$0xff] %v6054_v42  ;;  %v6056_v45 = vpop.f32.mrb[14].mxu0 }
 0x11c   :  { %4764 = vmatprep.mubr.msk.f32.mxu0 %vm283_vm0, %v1535_v3  ;;  %7794 = vst [vmem:[#allocation13_spill] sm:$0xff] %v6056_v45  ;;  %v6059_v3 = vpop.f32.mrb[15].mxu0 }
 0x11d   :  { %2165 = vrot.lane.b32.xlu1 %v7790_v19, %s4942_s8  ;;  %2163 = vrot.lane.b32.xlu0 %v7791_v52, %s4942_s8  ;;  %7795 = vst [vmem:[#allocation14_spill] sm:$0xff] %v6059_v3  ;;  %v6065_v19 = vpop.f32.mrb[16].mxu0 }
 0x11e   :  { %4765 = vmatmul.mubr.msk.f32.gmra.mrb[80].mxu0 %vm283_vm0, %v1537_v22  ;;  %v1541_v14 = vpop.permute.xlu1 %1540  ;;  %7796 = vst [vmem:[#allocation15_spill] sm:$0xff] %v6065_v19  ;;  %v6068_v52 = vpop.f32.mrb[17].mxu0 }
 0x11f   :  { %v1539_v21 = vpop.permute.xlu0 %1538  ;;  %7797 = vst [vmem:[#allocation16_spill] sm:$0xff] %v6068_v52  ;;  %v6070_v51 = vpop.f32.mrb[18].mxu0 }
 0x120   :  { %4767 = vmatprep.mubr.msk.f32.mxu0 %vm283_vm0, %v1539_v21  ;;  %7798 = vst [vmem:[#allocation17_spill] sm:$0xff] %v6070_v51  ;;  %v6073_v21 = vpop.f32.mrb[19].mxu0 }
 0x121   :  { %2169 = vrot.lane.b32.xlu1 %v5139_v8, %s4942_s8  ;;  %2167 = vrot.lane.b32.xlu0 %v5154_v15, %s4942_s8  ;;  %7799 = vst [vmem:[#allocation18_spill] sm:$0xff] %v6073_v21  ;;  %v6079_v8 = vpop.f32.mrb[20].mxu0 }
 0x122   :  { %4768 = vmatmul.mubr.msk.f32.gmra.mrb[82].mxu0 %vm283_vm0, %v1541_v14  ;;  %v1545_v22 = vpop.permute.xlu1 %1544  ;;  %7800 = vst [vmem:[#allocation19_spill] sm:$0xff] %v6079_v8  ;;  %v6082_v14 = vpop.f32.mrb[21].mxu0 }
 0x123   :  { %v1543_v42 = vpop.permute.xlu0 %1542  ;;  %7801 = vst [vmem:[#allocation20_spill] sm:$0xff] %v6082_v14  ;;  %v6084_v19 = vpop.f32.mrb[22].mxu0 }
 0x124   :  { %4770 = vmatprep.mubr.msk.f32.mxu0 %vm283_vm0, %v1543_v42  ;;  %7802 = vst [vmem:[#allocation21_spill] sm:$0xff] %v6084_v19  ;;  %v6087_v42 = vpop.f32.mrb[23].mxu0 }
 0x125   :  { %2173 = vrot.lane.b32.xlu1 %v7776_v11, %s4942_s8  ;;  %2171 = vrot.lane.b32.xlu0 %v7777_v30, %s4942_s8  ;;  %7803 = vst [vmem:[#allocation22_spill] sm:$0xff] %v6087_v42  ;;  %v6093_v11 = vpop.f32.mrb[24].mxu0 }
 0x126   :  { %4771 = vmatmul.mubr.msk.f32.gmra.mrb[84].mxu0 %vm283_vm0, %v1545_v22  ;;  %v1549_v15 = vpop.permute.xlu1 %1548  ;;  %7804 = vst [vmem:[#allocation23_spill] sm:$0xff] %v6093_v11  ;;  %v6096_v22 = vpop.f32.mrb[25].mxu0 }
 0x127   :  { %v1547_v52 = vpop.permute.xlu0 %1546  ;;  %7805 = vst [vmem:[#allocation24_spill] sm:$0xff] %v6096_v22  ;;  %v6098_v8 = vpop.f32.mrb[26].mxu0 }
 0x128   :  { %4773 = vmatprep.mubr.msk.f32.mxu0 %vm283_vm0, %v1547_v52  ;;  %7806 = vst [vmem:[#allocation25_spill] sm:$0xff] %v6098_v8  ;;  %v6101_v52 = vpop.f32.mrb[27].mxu0 }
 0x129   :  { %2177 = vrot.lane.b32.xlu1 %v5287_v27, %s4942_s8  ;;  %2175 = vrot.lane.b32.xlu0 %v5309_v41, %s4942_s8  ;;  %7807 = vst [vmem:[#allocation26_spill] sm:$0xff] %v6101_v52  ;;  %v6107_v27 = vpop.f32.mrb[28].mxu0 }
 0x12a   :  { %4774 = vmatmul.mubr.msk.f32.gmra.mrb[86].mxu0 %vm283_vm0, %v1549_v15  ;;  %v1553_v30 = vpop.permute.xlu1 %1552  ;;  %7808 = vst [vmem:[#allocation27_spill] sm:$0xff] %v6107_v27  ;;  %v6110_v15 = vpop.f32.mrb[29].mxu0 }
 0x12b   :  { %v1551_v14 = vpop.permute.xlu0 %1550  ;;  %7809 = vst [vmem:[#allocation28_spill] sm:$0xff] %v6110_v15  ;;  %v6112_v11 = vpop.f32.mrb[30].mxu0 }
 0x12c   :  { %4776 = vmatprep.mubr.msk.f32.mxu0 %vm283_vm0, %v1551_v14  ;;  %7810 = vst [vmem:[#allocation29_spill] sm:$0xff] %v6112_v11  ;;  %v6115_v14 = vpop.f32.mrb[31].mxu0 }
 0x12d   :  { %2181 = vrot.lane.b32.xlu1 %v5325_v59, %s4942_s8  ;;  %2179 = vrot.lane.b32.xlu0 %v5335_v5, %s4942_s8  ;;  %7811 = vst [vmem:[#allocation30_spill] sm:$0xff] %v6115_v14  ;;  %v6121_v59 = vpop.f32.mrb[32].mxu0 }
 0x12e   :  { %4777 = vmatmul.mubr.msk.f32.gmra.mrb[88].mxu0 %vm283_vm0, %v1553_v30  ;;  %v1557_v41 = vpop.permute.xlu1 %1556  ;;  %7812 = vst [vmem:[#allocation31_spill] sm:$0xff] %v6121_v59  ;;  %v6124_v30 = vpop.f32.mrb[33].mxu0 }
 0x12f   :  { %v1555_v22 = vpop.permute.xlu0 %1554  ;;  %7813 = vst [vmem:[#allocation32_spill] sm:$0xff] %v6124_v30  ;;  %v6126_v15 = vpop.f32.mrb[34].mxu0 }
 0x130   :  { %4779 = vmatprep.mubr.msk.f32.mxu0 %vm283_vm0, %v1555_v22  ;;  %7814 = vst [vmem:[#allocation33_spill] sm:$0xff] %v6126_v15  ;;  %v6129_v22 = vpop.f32.mrb[35].mxu0 }
 0x131   :  { %2185 = vrot.lane.b32.xlu1 %v5394_v7, %s4942_s8  ;;  %2183 = vrot.lane.b32.xlu0 %v5396_v62, %s4942_s8  ;;  %7815 = vst [vmem:[#allocation34_spill] sm:$0xff] %v6129_v22  ;;  %v6135_v7 = vpop.f32.mrb[36].mxu0 }
 0x132   :  { %4780 = vmatmul.mubr.msk.f32.gmra.mrb[90].mxu0 %vm283_vm0, %v1557_v41  ;;  %v1561_v5 = vpop.permute.xlu1 %1560  ;;  %7816 = vst [vmem:[#allocation35_spill] sm:$0xff] %v6135_v7  ;;  %v6138_v41 = vpop.f32.mrb[37].mxu0 }
 0x133   :  { %v1559_v27 = vpop.permute.xlu0 %1558  ;;  %7817 = vst [vmem:[#allocation36_spill] sm:$0xff] %v6138_v41 }
 0x134   :  { %4782 = vmatprep.mubr.msk.f32.mxu0 %vm283_vm0, %v1559_v27 }
 0x135   :  { %2189 = vrot.lane.b32.xlu1 %v5415_v43, %s4942_s8  ;;  %2187 = vrot.lane.b32.xlu0 %v5466_v40, %s4942_s8  ;;  %v6145_v43 = vpop.f32.mrb[38].mxu0 }
 0x136   :  { %4783 = vmatmul.mubr.msk.f32.gmra.mrb[92].mxu0 %vm283_vm0, %v1561_v5  ;;  %v1565_v62 = vpop.permute.xlu1 %1564  ;;  %7818 = vst [vmem:[#allocation37_spill] sm:$0xff] %v6145_v43  ;;  %v6148_v27 = vpop.f32.mrb[39].mxu0 }
 0x137   :  { %v1563_v59 = vpop.permute.xlu0 %1562  ;;  %7819 = vst [vmem:[#allocation38_spill] sm:$0xff] %v6148_v27 }
 0x138   :  { %4785 = vmatprep.mubr.msk.f32.mxu0 %vm283_vm0, %v1563_v59 }
 0x139   :  { %2193 = vrot.lane.b32.xlu1 %v5485_v33, %s4942_s8  ;;  %2191 = vrot.lane.b32.xlu0 %v5491_v55, %s4942_s8  ;;  %v6155_v33 = vpop.f32.mrb[40].mxu0 }
 0x13a   :  { %4786 = vmatmul.mubr.msk.f32.gmra.mrb[94].mxu0 %vm283_vm0, %v1565_v62  ;;  %v1569_v40 = vpop.permute.xlu1 %1568  ;;  %7820 = vst [vmem:[#allocation39_spill] sm:$0xff] %v6155_v33  ;;  %v6158_v59 = vpop.f32.mrb[41].mxu0 }
 0x13b   :  { %v1567_v5 = vpop.permute.xlu0 %1566  ;;  %7821 = vst [vmem:[#allocation40_spill] sm:$0xff] %v6158_v59 }
 0x13c   :  { %4788 = vmatprep.mubr.msk.f32.mxu0 %vm283_vm0, %v1567_v5 }
 0x13d   :  { %2197 = vrot.lane.b32.xlu1 %v5507_v4, %s4942_s8  ;;  %2195 = vrot.lane.b32.xlu0 %v5513_v53, %s4942_s8  ;;  %v6165_v4 = vpop.f32.mrb[42].mxu0 }
 0x13e   :  { %4789 = vmatmul.mubr.msk.f32.gmra.mrb[96].mxu0 %vm283_vm0, %v1569_v40  ;;  %v1573_v55 = vpop.permute.xlu1 %1572  ;;  %7822 = vst [vmem:[#allocation41_spill] sm:$0xff] %v6165_v4  ;;  %v6168_v5 = vpop.f32.mrb[43].mxu0 }
 0x13f   :  { %v1571_v62 = vpop.permute.xlu0 %1570  ;;  %7823 = vst [vmem:[#allocation42_spill] sm:$0xff] %v6168_v5 }
 0x140   :  { %4791 = vmatprep.mubr.msk.f32.mxu0 %vm283_vm0, %v1571_v62 }
 0x141   :  { %2201 = vrot.lane.b32.xlu1 %v5523_v9, %s4942_s8  ;;  %2199 = vrot.lane.b32.xlu0 %v5528_v34, %s4942_s8  ;;  %v6175_v9 = vpop.f32.mrb[44].mxu0 }
 0x142   :  { %4792 = vmatmul.mubr.msk.f32.gmra.mrb[98].mxu0 %vm283_vm0, %v1573_v55  ;;  %v1577_v53 = vpop.permute.xlu1 %1576  ;;  %7824 = vst [vmem:[#allocation43_spill] sm:$0xff] %v6175_v9  ;;  %v6178_v62 = vpop.f32.mrb[45].mxu0 }
 0x143   :  { %v1575_v40 = vpop.permute.xlu0 %1574  ;;  %7825 = vst [vmem:[#allocation44_spill] sm:$0xff] %v6178_v62 }
 0x144   :  { %4794 = vmatprep.mubr.msk.f32.mxu0 %vm283_vm0, %v1575_v40 }
 0x145   :  { %2205 = vrot.lane.b32.xlu1 %v5537_v35, %s4942_s8  ;;  %2203 = vrot.lane.b32.xlu0 %v5541_v54, %s4942_s8  ;;  %v6185_v35 = vpop.f32.mrb[46].mxu0 }
 0x146   :  { %4795 = vmatmul.mubr.msk.f32.gmra.mrb[100].mxu0 %vm283_vm0, %v1577_v53  ;;  %v1581_v34 = vpop.permute.xlu1 %1580  ;;  %7826 = vst [vmem:[#allocation45_spill] sm:$0xff] %v6185_v35  ;;  %v6188_v40 = vpop.f32.mrb[47].mxu0 }
 0x147   :  { %v1579_v55 = vpop.permute.xlu0 %1578  ;;  %7827 = vst [vmem:[#allocation46_spill] sm:$0xff] %v6188_v40 }
 0x148   :  { %4797 = vmatprep.mubr.msk.f32.mxu0 %vm283_vm0, %v1579_v55 }
 0x149   :  { %2209 = vrot.lane.b32.xlu1 %v5550_v2, %s4942_s8  ;;  %2207 = vrot.lane.b32.xlu0 %v5555_v23, %s4942_s8  ;;  %v6195_v2 = vpop.f32.mrb[48].mxu0 }
 0x14a   :  { %4798 = vmatmul.mubr.msk.f32.gmra.mrb[102].mxu0 %vm283_vm0, %v1581_v34  ;;  %v1585_v54 = vpop.permute.xlu1 %1584  ;;  %7828 = vst [vmem:[#allocation47_spill] sm:$0xff] %v6195_v2  ;;  %v6198_v55 = vpop.f32.mrb[49].mxu0 }
 0x14b   :  { %v1583_v53 = vpop.permute.xlu0 %1582  ;;  %7829 = vst [vmem:[#allocation48_spill] sm:$0xff] %v6198_v55 }
 0x14c   :  { %4800 = vmatprep.mubr.msk.f32.mxu0 %vm283_vm0, %v1583_v53 }
 0x14d   :  { %2213 = vrot.lane.b32.xlu1 %v5564_v0, %s4942_s8  ;;  %2211 = vrot.lane.b32.xlu0 %v5569_v31, %s4942_s8  ;;  %v6205_v0 = vpop.f32.mrb[50].mxu0 }
 0x14e   :  { %4801 = vmatmul.mubr.msk.f32.gmra.mrb[104].mxu0 %vm283_vm0, %v1585_v54  ;;  %v1589_v23 = vpop.permute.xlu1 %1588  ;;  %7830 = vst [vmem:[#allocation49_spill] sm:$0xff] %v6205_v0  ;;  %v6208_v53 = vpop.f32.mrb[51].mxu0 }
 0x14f   :  { %v1587_v34 = vpop.permute.xlu0 %1586  ;;  %7831 = vst [vmem:[#allocation50_spill] sm:$0xff] %v6208_v53 }
 0x150   :  { %4803 = vmatprep.mubr.msk.f32.mxu0 %vm283_vm0, %v1587_v34 }
 0x151   :  { %2217 = vrot.lane.b32.xlu1 %v5578_v37, %s4942_s8  ;;  %2215 = vrot.lane.b32.xlu0 %v5583_v38, %s4942_s8  ;;  %v6219_v37 = vpop.f32.mrb[52].mxu0 }
 0x152   :  { %4804 = vmatmul.mubr.msk.f32.gmra.mrb[106].mxu0 %vm283_vm0, %v1589_v23  ;;  %v1593_v31 = vpop.permute.xlu1 %1592  ;;  %7832 = vst [vmem:[#allocation51_spill] sm:$0xff] %v6219_v37  ;;  %v6222_v23 = vpop.f32.mrb[53].mxu0 }
 0x153   :  { %v6210_v54 = vpop.f32.mrb[0].mxu1  ;;  %v1591_v2 = vpop.permute.xlu0 %1590  ;;  %7833 = vst [vmem:[#allocation52_spill] sm:$0xff] %v6222_v23 }
 0x154   :  { %v6212_v55 = vpop.f32.mrb[1].mxu1  ;;  %4806 = vmatprep.mubr.msk.f32.mxu0 %vm283_vm0, %v1591_v2 }
 0x155   :  { %2221 = vrot.lane.b32.xlu1 %v5592_v39, %s4942_s8  ;;  %2219 = vrot.lane.b32.xlu0 %v5597_v44, %s4942_s8  ;;  %v6233_v39 = vpop.f32.mrb[54].mxu0 }
 0x156   :  { %4807 = vmatmul.mubr.msk.f32.gmra.mrb[108].mxu0 %vm283_vm0, %v1593_v31  ;;  %v1597_v38 = vpop.permute.xlu1 %1596  ;;  %7834 = vst [vmem:[#allocation53_spill] sm:$0xff] %v6233_v39  ;;  %v6236_v2 = vpop.f32.mrb[55].mxu0 }
 0x157   :  { %v6224_v34 = vpop.f32.mrb[2].mxu1  ;;  %v1595_v0 = vpop.permute.xlu0 %1594  ;;  %7835 = vst [vmem:[#allocation54_spill] sm:$0xff] %v6236_v2 }
 0x158   :  { %v6226_v53 = vpop.f32.mrb[3].mxu1  ;;  %4809 = vmatprep.mubr.msk.f32.mxu0 %vm283_vm0, %v1595_v0 }
 0x159   :  { %2225 = vrot.lane.b32.xlu1 %v5606_v46, %s4942_s8  ;;  %2223 = vrot.lane.b32.xlu0 %v5611_v47, %s4942_s8  ;;  %v6247_v46 = vpop.f32.mrb[56].mxu0 }
 0x15a   :  { %4810 = vmatmul.mubr.msk.f32.gmra.mrb[110].mxu0 %vm283_vm0, %v1597_v38  ;;  %v1601_v44 = vpop.permute.xlu1 %1600  ;;  %7836 = vst [vmem:[#allocation55_spill] sm:$0xff] %v6247_v46  ;;  %v6250_v0 = vpop.f32.mrb[57].mxu0 }
 0x15b   :  { %v6238_v31 = vpop.f32.mrb[4].mxu1  ;;  %v1599_v37 = vpop.permute.xlu0 %1598  ;;  %7837 = vst [vmem:[#allocation56_spill] sm:$0xff] %v6250_v0 }
 0x15c   :  { %v6240_v23 = vpop.f32.mrb[5].mxu1  ;;  %4812 = vmatprep.mubr.msk.f32.mxu0 %vm283_vm0, %v1599_v37 }
 0x15d   :  { %2229 = vrot.lane.b32.xlu1 %v5620_v56, %s4942_s8  ;;  %2227 = vrot.lane.b32.xlu0 %v5625_v12, %s4942_s8  ;;  %v6261_v56 = vpop.f32.mrb[58].mxu0 }
 0x15e   :  { %4813 = vmatmul.mubr.msk.f32.gmra.mrb[112].mxu0 %vm283_vm0, %v1601_v44  ;;  %v1605_v47 = vpop.permute.xlu1 %1604  ;;  %7838 = vst [vmem:[#allocation57_spill] sm:$0xff] %v6261_v56  ;;  %v6264_v37 = vpop.f32.mrb[59].mxu0 }
 0x15f   :  { %v6252_v38 = vpop.f32.mrb[6].mxu1  ;;  %v1603_v39 = vpop.permute.xlu0 %1602  ;;  %7839 = vst [vmem:[#allocation58_spill] sm:$0xff] %v6264_v37 }
 0x160   :  { %v6254_v2 = vpop.f32.mrb[7].mxu1  ;;  %4815 = vmatprep.mubr.msk.f32.mxu0 %vm283_vm0, %v1603_v39 }
 0x161   :  { %2233 = vrot.lane.b32.xlu1 %v5634_v17, %s4942_s8  ;;  %2231 = vrot.lane.b32.xlu0 %v5639_v18, %s4942_s8  ;;  %v6275_v17 = vpop.f32.mrb[60].mxu0 }
 0x162   :  { %4816 = vmatmul.mubr.msk.f32.gmra.mrb[114].mxu0 %vm283_vm0, %v1605_v47  ;;  %v1609_v12 = vpop.permute.xlu1 %1608  ;;  %7840 = vst [vmem:[#allocation59_spill] sm:$0xff] %v6275_v17  ;;  %v6278_v39 = vpop.f32.mrb[61].mxu0 }
 0x163   :  { %v6266_v44 = vpop.f32.mrb[8].mxu1  ;;  %v1607_v46 = vpop.permute.xlu0 %1606  ;;  %7841 = vst [vmem:[#allocation60_spill] sm:$0xff] %v6278_v39 }
 0x164   :  { %v6268_v0 = vpop.f32.mrb[9].mxu1  ;;  %4818 = vmatprep.mubr.msk.f32.mxu0 %vm283_vm0, %v1607_v46 }
 0x165   :  { %2237 = vrot.lane.b32.xlu1 %v5648_v20, %s4942_s8  ;;  %2235 = vrot.lane.b32.xlu0 %v5653_v28, %s4942_s8  ;;  %v6289_v20 = vpop.f32.mrb[62].mxu0 }
 0x166   :  { %4819 = vmatmul.mubr.msk.f32.gmra.mrb[116].mxu0 %vm283_vm0, %v1609_v12  ;;  %v1613_v18 = vpop.permute.xlu1 %1612  ;;  %7842 = vst [vmem:[#allocation61_spill] sm:$0xff] %v6289_v20  ;;  %v6292_v46 = vpop.f32.mrb[63].mxu0 }
 0x167   :  { %v6280_v47 = vpop.f32.mrb[10].mxu1  ;;  %v1611_v56 = vpop.permute.xlu0 %1610  ;;  %7843 = vst [vmem:[#allocation62_spill] sm:$0xff] %v6292_v46 }
 0x168   :  { %v6282_v37 = vpop.f32.mrb[11].mxu1  ;;  %4821 = vmatprep.mubr.msk.f32.mxu0 %vm283_vm0, %v1611_v56 }
 0x169   :  { %2241 = vrot.lane.b32.xlu1 %v5662_v29, %s4942_s8  ;;  %2239 = vrot.lane.b32.xlu0 %v5667_v32, %s4942_s8 }
 0x16a   :  { %4822 = vmatmul.mubr.msk.f32.gmra.mrb[118].mxu0 %vm283_vm0, %v1613_v18  ;;  %v1617_v28 = vpop.permute.xlu1 %1616 }
 0x16b   :  { %v6294_v12 = vpop.f32.mrb[12].mxu1  ;;  %v1615_v17 = vpop.permute.xlu0 %1614 }
 0x16c   :  { %v6296_v39 = vpop.f32.mrb[13].mxu1  ;;  %4824 = vmatprep.mubr.msk.f32.mxu0 %vm283_vm0, %v1615_v17 }
 0x16d   :  { %2245 = vrot.lane.b32.xlu1 %v5676_v48, %s4942_s8  ;;  %2243 = vrot.lane.b32.xlu0 %v5681_v63, %s4942_s8 }
 0x16e   :  { %4825 = vmatmul.mubr.msk.f32.gmra.mrb[120].mxu0 %vm283_vm0, %v1617_v28 }
 0x16f   :  { %v1621_v29 = vpop.permute.xlu1 %1620  ;;  %v6304_v32 = vpop.f32.mrb[14].mxu1 }
 0x170   :  { %v1619_v56 = vpop.permute.xlu0 %1618  ;;  %v6306_v18 = vpop.f32.mrb[15].mxu1 }
 0x171   :  { %4827 = vmatprep.mubr.msk.f32.mxu0 %vm283_vm0, %v1619_v56  ;;  %2249 = vrot.lane.b32.xlu1 %v5690_v16, %s4942_s8 }
 0x172   :  { %2247 = vrot.lane.b32.xlu0 %v5695_v24, %s4942_s8  ;;  %4828 = vmatmul.mubr.msk.f32.gmra.mrb[122].mxu0 %vm283_vm0, %v1621_v29 }
 0x173   :  { %v1625_v48 = vpop.permute.xlu1 %1624  ;;  %v6314_v63 = vpop.f32.mrb[16].mxu1 }
 0x174   :  { %v1623_v17 = vpop.permute.xlu0 %1622  ;;  %v6316_v28 = vpop.f32.mrb[17].mxu1 }
 0x175   :  { %4830 = vmatprep.mubr.msk.f32.mxu0 %vm283_vm0, %v1623_v17  ;;  %2253 = vrot.lane.b32.xlu1 %v5704_v26, %s4942_s8 }
 0x176   :  { %2251 = vrot.lane.b32.xlu0 %v5709_v36, %s4942_s8  ;;  %4831 = vmatmul.mubr.msk.f32.gmra.mrb[124].mxu0 %vm283_vm0, %v1625_v48 }
 0x177   :  { %v1629_v16 = vpop.permute.xlu1 %1628  ;;  %v6324_v24 = vpop.f32.mrb[18].mxu1 }
 0x178   :  { %v1627_v29 = vpop.permute.xlu0 %1626  ;;  %v6326_v56 = vpop.f32.mrb[19].mxu1 }
 0x179   :  { %4833 = vmatprep.mubr.msk.f32.mxu0 %vm283_vm0, %v1627_v29  ;;  %2257 = vrot.lane.b32.xlu1 %v5718_v49, %s4942_s8 }
 0x17a   :  { %2255 = vrot.lane.b32.xlu0 %v5723_v50, %s4942_s8  ;;  %4834 = vmatmul.mubr.msk.f32.gmra.mrb[126].mxu0 %vm283_vm0, %v1629_v16 }
 0x17b   :  { %v2146_v26 = vpop.permute.xlu1 %2145  ;;  %v6334_v36 = vpop.f32.mrb[20].mxu1 }
 0x17c   :  { %v2144_v48 = vpop.permute.xlu0 %2143  ;;  %v6336_v17 = vpop.f32.mrb[21].mxu1 }
 0x17d   :  { %4838 = vmatprep.mubr.msk.f32.mxu1 %vm283_vm0, %v2144_v48  ;;  %2261 = vrot.lane.b32.xlu1 %v5732_v6, %s4942_s8 }
 0x17e   :  { %2259 = vrot.lane.b32.xlu0 %v5737_v13, %s4942_s8  ;;  %4839 = vmatmul.mubr.msk.f32.vlgmr.msra.gmra.mrb[64].mxu1 %vm283_vm0, %v2146_v26 }
 0x17f   :  { %v2150_v49 = vpop.permute.xlu1 %2149  ;;  %v6344_v50 = vpop.f32.mrb[22].mxu1 }
 0x180   :  { %v2148_v16 = vpop.permute.xlu0 %2147  ;;  %v6346_v29 = vpop.f32.mrb[23].mxu1 }
 0x181   :  { %4841 = vmatprep.mubr.msk.f32.mxu1 %vm283_vm0, %v2148_v16  ;;  %2265 = vrot.lane.b32.xlu1 %v5747_v58, %s4942_s8  ;;  %v7844_v16 = vld [vmem:[#allocation12_spill] sm:$0xff] }
 0x182   :  { %2263 = vrot.lane.b32.xlu0 %v5752_v61, %s4942_s8  ;;  %4842 = vmatmul.mubr.msk.f32.gmra.mrb[66].mxu1 %vm283_vm0, %v2150_v49 }
 0x183   :  { %v2154_v6 = vpop.permute.xlu1 %2153  ;;  %v6354_v13 = vpop.f32.mrb[24].mxu1 }
 0x184   :  { %v2152_v26 = vpop.permute.xlu0 %2151  ;;  %v6356_v48 = vpop.f32.mrb[25].mxu1 }
 0x185   :  { %4844 = vmatprep.mubr.msk.f32.mxu1 %vm283_vm0, %v2152_v26  ;;  %2269 = vrot.lane.b32.xlu1 %v5762_v10, %s4942_s8 }
 0x186   :  { %2267 = vrot.lane.b32.xlu0 %v7844_v16, %s4942_s8  ;;  %4845 = vmatmul.mubr.msk.f32.gmra.mrb[68].mxu1 %vm283_vm0, %v2154_v6 }
 0x187   :  { %v2158_v58 = vpop.permute.xlu1 %2157  ;;  %v6364_v61 = vpop.f32.mrb[26].mxu1 }
 0x188   :  { %v2156_v49 = vpop.permute.xlu0 %2155  ;;  %v6366_v20 = vpop.f32.mrb[27].mxu1 }
 0x189   :  { %4847 = vmatprep.mubr.msk.f32.mxu1 %vm283_vm0, %v2156_v49  ;;  %2850 = vrot.lane.b32.xlu1 %v6210_v54, %s4943_s15 }
 0x18a   :  { %2848 = vrot.lane.b32.xlu0 %v6212_v55, %s4943_s15  ;;  %4848 = vmatmul.mubr.msk.f32.gmra.mrb[70].mxu1 %vm283_vm0, %v2158_v58 }
 0x18b   :  { %v2162_v10 = vpop.permute.xlu1 %2161  ;;  %v6374_v26 = vpop.f32.mrb[28].mxu1 }
 0x18c   :  { %v2160_v6 = vpop.permute.xlu0 %2159  ;;  %v6376_v16 = vpop.f32.mrb[29].mxu1 }
 0x18d   :  { %4850 = vmatprep.mubr.msk.f32.mxu1 %vm283_vm0, %v2160_v6  ;;  %2854 = vrot.lane.b32.xlu1 %v6224_v34, %s4943_s15 }
 0x18e   :  { %2852 = vrot.lane.b32.xlu0 %v6226_v53, %s4943_s15  ;;  %4851 = vmatmul.mubr.msk.f32.gmra.mrb[72].mxu1 %vm283_vm0, %v2162_v10 }
 0x18f   :  { %v2166_v54 = vpop.permute.xlu1 %2165  ;;  %v6384_v55 = vpop.f32.mrb[30].mxu1 }
 0x190   :  { %v2164_v58 = vpop.permute.xlu0 %2163  ;;  %v6386_v49 = vpop.f32.mrb[31].mxu1 }
 0x191   :  { %4853 = vmatprep.mubr.msk.f32.mxu1 %vm283_vm0, %v2164_v58  ;;  %2858 = vrot.lane.b32.xlu1 %v6238_v31, %s4943_s15 }
 0x192   :  { %2856 = vrot.lane.b32.xlu0 %v6240_v23, %s4943_s15  ;;  %4854 = vmatmul.mubr.msk.f32.gmra.mrb[74].mxu1 %vm283_vm0, %v2166_v54 }
 0x193   :  { %v2170_v34 = vpop.permute.xlu1 %2169  ;;  %v6394_v53 = vpop.f32.mrb[32].mxu1 }
 0x194   :  { %v2168_v10 = vpop.permute.xlu0 %2167  ;;  %v6396_v6 = vpop.f32.mrb[33].mxu1 }
 0x195   :  { %4856 = vmatprep.mubr.msk.f32.mxu1 %vm283_vm0, %v2168_v10  ;;  %2862 = vrot.lane.b32.xlu1 %v6252_v38, %s4943_s15 }
 0x196   :  { %2860 = vrot.lane.b32.xlu0 %v6254_v2, %s4943_s15  ;;  %4857 = vmatmul.mubr.msk.f32.gmra.mrb[76].mxu1 %vm283_vm0, %v2170_v34 }
 0x197   :  { %v2174_v31 = vpop.permute.xlu1 %2173  ;;  %v6404_v23 = vpop.f32.mrb[34].mxu1 }
 0x198   :  { %v2172_v54 = vpop.permute.xlu0 %2171  ;;  %v6406_v58 = vpop.f32.mrb[35].mxu1 }
 0x199   :  { %4859 = vmatprep.mubr.msk.f32.mxu1 %vm283_vm0, %v2172_v54  ;;  %2866 = vrot.lane.b32.xlu1 %v6266_v44, %s4943_s15 }
 0x19a   :  { %2864 = vrot.lane.b32.xlu0 %v6268_v0, %s4943_s15  ;;  %4860 = vmatmul.mubr.msk.f32.gmra.mrb[78].mxu1 %vm283_vm0, %v2174_v31 }
 0x19b   :  { %v2178_v38 = vpop.permute.xlu1 %2177  ;;  %v6414_v2 = vpop.f32.mrb[36].mxu1 }
 0x19c   :  { %v2176_v34 = vpop.permute.xlu0 %2175  ;;  %v6416_v10 = vpop.f32.mrb[37].mxu1 }
 0x19d   :  { %4862 = vmatprep.mubr.msk.f32.mxu1 %vm283_vm0, %v2176_v34  ;;  %2870 = vrot.lane.b32.xlu1 %v6280_v47, %s4943_s15 }
 0x19e   :  { %2868 = vrot.lane.b32.xlu0 %v6282_v37, %s4943_s15  ;;  %4863 = vmatmul.mubr.msk.f32.gmra.mrb[80].mxu1 %vm283_vm0, %v2178_v38 }
 0x19f   :  { %v2182_v44 = vpop.permute.xlu1 %2181  ;;  %v6424_v0 = vpop.f32.mrb[38].mxu1 }
 0x1a0   :  { %v2180_v31 = vpop.permute.xlu0 %2179  ;;  %v6426_v54 = vpop.f32.mrb[39].mxu1 }
 0x1a1   :  { %4865 = vmatprep.mubr.msk.f32.mxu1 %vm283_vm0, %v2180_v31  ;;  %2874 = vrot.lane.b32.xlu1 %v6294_v12, %s4943_s15 }
 0x1a2   :  { %2872 = vrot.lane.b32.xlu0 %v6296_v39, %s4943_s15  ;;  %4866 = vmatmul.mubr.msk.f32.gmra.mrb[82].mxu1 %vm283_vm0, %v2182_v44 }
 0x1a3   :  { %v2186_v47 = vpop.permute.xlu1 %2185  ;;  %v6434_v37 = vpop.f32.mrb[40].mxu1 }
 0x1a4   :  { %v2184_v38 = vpop.permute.xlu0 %2183  ;;  %v6436_v34 = vpop.f32.mrb[41].mxu1 }
 0x1a5   :  { %4868 = vmatprep.mubr.msk.f32.mxu1 %vm283_vm0, %v2184_v38  ;;  %2878 = vrot.lane.b32.xlu1 %v6304_v32, %s4943_s15 }
 0x1a6   :  { %2876 = vrot.lane.b32.xlu0 %v6306_v18, %s4943_s15  ;;  %4869 = vmatmul.mubr.msk.f32.gmra.mrb[84].mxu1 %vm283_vm0, %v2186_v47 }
 0x1a7   :  { %v2190_v12 = vpop.permute.xlu1 %2189  ;;  %v6444_v39 = vpop.f32.mrb[42].mxu1 }
 0x1a8   :  { %v2188_v44 = vpop.permute.xlu0 %2187  ;;  %v6446_v31 = vpop.f32.mrb[43].mxu1 }
 0x1a9   :  { %4871 = vmatprep.mubr.msk.f32.mxu1 %vm283_vm0, %v2188_v44  ;;  %2882 = vrot.lane.b32.xlu1 %v6314_v63, %s4943_s15 }
 0x1aa   :  { %2880 = vrot.lane.b32.xlu0 %v6316_v28, %s4943_s15  ;;  %4872 = vmatmul.mubr.msk.f32.gmra.mrb[86].mxu1 %vm283_vm0, %v2190_v12 }
 0x1ab   :  { %v2194_v32 = vpop.permute.xlu1 %2193  ;;  %v6454_v18 = vpop.f32.mrb[44].mxu1 }
 0x1ac   :  { %v2192_v47 = vpop.permute.xlu0 %2191  ;;  %v6456_v38 = vpop.f32.mrb[45].mxu1 }
 0x1ad   :  { %4874 = vmatprep.mubr.msk.f32.mxu1 %vm283_vm0, %v2192_v47  ;;  %2886 = vrot.lane.b32.xlu1 %v6324_v24, %s4943_s15 }
 0x1ae   :  { %2884 = vrot.lane.b32.xlu0 %v6326_v56, %s4943_s15  ;;  %4875 = vmatmul.mubr.msk.f32.gmra.mrb[88].mxu1 %vm283_vm0, %v2194_v32 }
 0x1af   :  { %v2198_v63 = vpop.permute.xlu1 %2197  ;;  %v6464_v28 = vpop.f32.mrb[46].mxu1 }
 0x1b0   :  { %v2196_v12 = vpop.permute.xlu0 %2195  ;;  %v6466_v44 = vpop.f32.mrb[47].mxu1 }
 0x1b1   :  { %4877 = vmatprep.mubr.msk.f32.mxu1 %vm283_vm0, %v2196_v12  ;;  %2890 = vrot.lane.b32.xlu1 %v6334_v36, %s4943_s15 }
 0x1b2   :  { %2888 = vrot.lane.b32.xlu0 %v6336_v17, %s4943_s15  ;;  %4878 = vmatmul.mubr.msk.f32.gmra.mrb[90].mxu1 %vm283_vm0, %v2198_v63 }
 0x1b3   :  { %v2202_v24 = vpop.permute.xlu1 %2201  ;;  %v6474_v56 = vpop.f32.mrb[48].mxu1 }
 0x1b4   :  { %v2200_v32 = vpop.permute.xlu0 %2199  ;;  %v6476_v47 = vpop.f32.mrb[49].mxu1 }
 0x1b5   :  { %4880 = vmatprep.mubr.msk.f32.mxu1 %vm283_vm0, %v2200_v32  ;;  %2894 = vrot.lane.b32.xlu1 %v6344_v50, %s4943_s15 }
 0x1b6   :  { %2892 = vrot.lane.b32.xlu0 %v6346_v29, %s4943_s15  ;;  %4881 = vmatmul.mubr.msk.f32.gmra.mrb[92].mxu1 %vm283_vm0, %v2202_v24 }
 0x1b7   :  { %v2206_v36 = vpop.permute.xlu1 %2205  ;;  %v6484_v17 = vpop.f32.mrb[50].mxu1 }
 0x1b8   :  { %v2204_v63 = vpop.permute.xlu0 %2203  ;;  %v6486_v12 = vpop.f32.mrb[51].mxu1 }
 0x1b9   :  { %2898 = vrot.lane.b32.xlu1 %v6354_v13, %s4943_s15  ;;  %4883 = vmatprep.mubr.msk.f32.mxu1 %vm283_vm0, %v2204_v63 }
 0x1ba   :  { %2896 = vrot.lane.b32.xlu0 %v6356_v48, %s4943_s15  ;;  %4884 = vmatmul.mubr.msk.f32.gmra.mrb[94].mxu1 %vm283_vm0, %v2206_v36 }
 0x1bb   :  { %v2210_v50 = vpop.permute.xlu1 %2209  ;;  %v6494_v29 = vpop.f32.mrb[52].mxu1 }
 0x1bc   :  { %v2208_v24 = vpop.permute.xlu0 %2207  ;;  %v6496_v32 = vpop.f32.mrb[53].mxu1 }
 0x1bd   :  { %2902 = vrot.lane.b32.xlu1 %v6364_v61, %s4943_s15  ;;  %4886 = vmatprep.mubr.msk.f32.mxu1 %vm283_vm0, %v2208_v24 }
 0x1be   :  { %2900 = vrot.lane.b32.xlu0 %v6366_v20, %s4943_s15  ;;  %4887 = vmatmul.mubr.msk.f32.gmra.mrb[96].mxu1 %vm283_vm0, %v2210_v50 }
 0x1bf   :  { %v2214_v13 = vpop.permute.xlu1 %2213  ;;  %v6504_v48 = vpop.f32.mrb[54].mxu1 }
 0x1c0   :  { %v2212_v36 = vpop.permute.xlu0 %2211  ;;  %v6506_v63 = vpop.f32.mrb[55].mxu1 }
 0x1c1   :  { %2906 = vrot.lane.b32.xlu1 %v6374_v26, %s4943_s15  ;;  %4889 = vmatprep.mubr.msk.f32.mxu1 %vm283_vm0, %v2212_v36 }
 0x1c2   :  { %2904 = vrot.lane.b32.xlu0 %v6376_v16, %s4943_s15  ;;  %4890 = vmatmul.mubr.msk.f32.gmra.mrb[98].mxu1 %vm283_vm0, %v2214_v13 }
 0x1c3   :  { %v2218_v61 = vpop.permute.xlu1 %2217  ;;  %v6514_v20 = vpop.f32.mrb[56].mxu1 }
 0x1c4   :  { %v2216_v50 = vpop.permute.xlu0 %2215  ;;  %v6516_v24 = vpop.f32.mrb[57].mxu1 }
 0x1c5   :  { %2910 = vrot.lane.b32.xlu1 %v6384_v55, %s4943_s15  ;;  %4892 = vmatprep.mubr.msk.f32.mxu1 %vm283_vm0, %v2216_v50 }
 0x1c6   :  { %2908 = vrot.lane.b32.xlu0 %v6386_v49, %s4943_s15  ;;  %4893 = vmatmul.mubr.msk.f32.gmra.mrb[100].mxu1 %vm283_vm0, %v2218_v61 }
 0x1c7   :  { %v2222_v26 = vpop.permute.xlu1 %2221  ;;  %v6524_v16 = vpop.f32.mrb[58].mxu1 }
 0x1c8   :  { %v2220_v13 = vpop.permute.xlu0 %2219  ;;  %v6526_v36 = vpop.f32.mrb[59].mxu1 }
 0x1c9   :  { %2914 = vrot.lane.b32.xlu1 %v6394_v53, %s4943_s15  ;;  %4895 = vmatprep.mubr.msk.f32.mxu1 %vm283_vm0, %v2220_v13 }
 0x1ca   :  { %2912 = vrot.lane.b32.xlu0 %v6396_v6, %s4943_s15  ;;  %4896 = vmatmul.mubr.msk.f32.gmra.mrb[102].mxu1 %vm283_vm0, %v2222_v26 }
 0x1cb   :  { %v2226_v55 = vpop.permute.xlu1 %2225  ;;  %v6534_v49 = vpop.f32.mrb[60].mxu1 }
 0x1cc   :  { %v2224_v61 = vpop.permute.xlu0 %2223  ;;  %v6536_v50 = vpop.f32.mrb[61].mxu1 }
 0x1cd   :  { %2918 = vrot.lane.b32.xlu1 %v6404_v23, %s4943_s15  ;;  %4898 = vmatprep.mubr.msk.f32.mxu1 %vm283_vm0, %v2224_v61 }
 0x1ce   :  { %2916 = vrot.lane.b32.xlu0 %v6406_v58, %s4943_s15  ;;  %4899 = vmatmul.mubr.msk.f32.gmra.mrb[104].mxu1 %vm283_vm0, %v2226_v55 }
 0x1cf   :  { %v2230_v53 = vpop.permute.xlu1 %2229  ;;  %v6544_v6 = vpop.f32.mrb[62].mxu1 }
 0x1d0   :  { %v2228_v26 = vpop.permute.xlu0 %2227  ;;  %v6546_v13 = vpop.f32.mrb[63].mxu1 }
 0x1d1   :  { %v6548_v46 = vpop.f32.mrb[64].mxu0  ;;  %2922 = vrot.lane.b32.xlu1 %v6414_v2, %s4943_s15  ;;  %4901 = vmatprep.mubr.msk.f32.mxu1 %vm283_vm0, %v2228_v26 }
 0x1d2   :  { %2920 = vrot.lane.b32.xlu0 %v6416_v10, %s4943_s15  ;;  %v6555_v23 = vpop.f32.mrb[65].mxu0  ;;  %4902 = vmatmul.mubr.msk.f32.gmra.mrb[106].mxu1 %vm283_vm0, %v2230_v53 }
 0x1d3   :  { %v2234_v58 = vpop.permute.xlu1 %2233 }
 0x1d4   :  { %v2232_v55 = vpop.permute.xlu0 %2231 }
 0x1d5   :  { %v6558_v61 = vpop.f32.mrb[66].mxu0  ;;  %2926 = vrot.lane.b32.xlu1 %v6424_v0, %s4943_s15  ;;  %4904 = vmatprep.mubr.msk.f32.mxu1 %vm283_vm0, %v2232_v55 }
 0x1d6   :  { %2924 = vrot.lane.b32.xlu0 %v6426_v54, %s4943_s15  ;;  %v6565_v2 = vpop.f32.mrb[67].mxu0  ;;  %4905 = vmatmul.mubr.msk.f32.gmra.mrb[108].mxu1 %vm283_vm0, %v2234_v58 }
 0x1d7   :  { %v2238_v10 = vpop.permute.xlu1 %2237 }
 0x1d8   :  { %v2236_v26 = vpop.permute.xlu0 %2235 }
 0x1d9   :  { %v6568_v35 = vpop.f32.mrb[68].mxu0  ;;  %2930 = vrot.lane.b32.xlu1 %v6434_v37, %s4943_s15  ;;  %4907 = vmatprep.mubr.msk.f32.mxu1 %vm283_vm0, %v2236_v26 }
 0x1da   :  { %2928 = vrot.lane.b32.xlu0 %v6436_v34, %s4943_s15  ;;  %v6575_v0 = vpop.f32.mrb[69].mxu0  ;;  %4908 = vmatmul.mubr.msk.f32.gmra.mrb[110].mxu1 %vm283_vm0, %v2238_v10 }
 0x1db   :  { %v2242_v54 = vpop.permute.xlu1 %2241 }
 0x1dc   :  { %v2240_v53 = vpop.permute.xlu0 %2239 }
 0x1dd   :  { %v6578_v55 = vpop.f32.mrb[70].mxu0  ;;  %2934 = vrot.lane.b32.xlu1 %v6444_v39, %s4943_s15  ;;  %4910 = vmatprep.mubr.msk.f32.mxu1 %vm283_vm0, %v2240_v53 }
 0x1de   :  { %2932 = vrot.lane.b32.xlu0 %v6446_v31, %s4943_s15  ;;  %v6585_v37 = vpop.f32.mrb[71].mxu0  ;;  %4911 = vmatmul.mubr.msk.f32.gmra.mrb[112].mxu1 %vm283_vm0, %v2242_v54 }
 0x1df   :  { %v2246_v34 = vpop.permute.xlu1 %2245 }
 0x1e0   :  { %v2244_v58 = vpop.permute.xlu0 %2243 }
 0x1e1   :  { %v6588_v26 = vpop.f32.mrb[72].mxu0  ;;  %2938 = vrot.lane.b32.xlu1 %v6454_v18, %s4943_s15  ;;  %4913 = vmatprep.mubr.msk.f32.mxu1 %vm283_vm0, %v2244_v58 }
 0x1e2   :  { %2936 = vrot.lane.b32.xlu0 %v6456_v38, %s4943_s15  ;;  %v6595_v39 = vpop.f32.mrb[73].mxu0  ;;  %4914 = vmatmul.mubr.msk.f32.gmra.mrb[114].mxu1 %vm283_vm0, %v2246_v34 }
 0x1e3   :  { %v2250_v31 = vpop.permute.xlu1 %2249 }
 0x1e4   :  { %v2248_v10 = vpop.permute.xlu0 %2247 }
 0x1e5   :  { %v6598_v53 = vpop.f32.mrb[74].mxu0  ;;  %2942 = vrot.lane.b32.xlu1 %v6464_v28, %s4943_s15  ;;  %4916 = vmatprep.mubr.msk.f32.mxu1 %vm283_vm0, %v2248_v10 }
 0x1e6   :  { %2940 = vrot.lane.b32.xlu0 %v6466_v44, %s4943_s15  ;;  %v6605_v18 = vpop.f32.mrb[75].mxu0  ;;  %4917 = vmatmul.mubr.msk.f32.gmra.mrb[116].mxu1 %vm283_vm0, %v2250_v31 }
 0x1e7   :  { %v2254_v38 = vpop.permute.xlu1 %2253 }
 0x1e8   :  { %v2252_v54 = vpop.permute.xlu0 %2251 }
 0x1e9   :  { %v6608_v58 = vpop.f32.mrb[76].mxu0  ;;  %2946 = vrot.lane.b32.xlu1 %v6474_v56, %s4943_s15  ;;  %4919 = vmatprep.mubr.msk.f32.mxu1 %vm283_vm0, %v2252_v54 }
 0x1ea   :  { %2944 = vrot.lane.b32.xlu0 %v6476_v47, %s4943_s15  ;;  %v6615_v28 = vpop.f32.mrb[77].mxu0  ;;  %4920 = vmatmul.mubr.msk.f32.gmra.mrb[118].mxu1 %vm283_vm0, %v2254_v38 }
 0x1eb   :  { %v2258_v44 = vpop.permute.xlu1 %2257 }
 0x1ec   :  { %v2256_v34 = vpop.permute.xlu0 %2255 }
 0x1ed   :  { %v6618_v10 = vpop.f32.mrb[78].mxu0  ;;  %2950 = vrot.lane.b32.xlu1 %v6484_v17, %s4943_s15  ;;  %4922 = vmatprep.mubr.msk.f32.mxu1 %vm283_vm0, %v2256_v34 }
 0x1ee   :  { %2948 = vrot.lane.b32.xlu0 %v6486_v12, %s4943_s15  ;;  %v6625_v56 = vpop.f32.mrb[79].mxu0  ;;  %4923 = vmatmul.mubr.msk.f32.gmra.mrb[120].mxu1 %vm283_vm0, %v2258_v44 }
 0x1ef   :  { %v2262_v47 = vpop.permute.xlu1 %2261 }
 0x1f0   :  { %v2260_v31 = vpop.permute.xlu0 %2259 }
 0x1f1   :  { %v6628_v54 = vpop.f32.mrb[80].mxu0  ;;  %2954 = vrot.lane.b32.xlu1 %v6494_v29, %s4943_s15  ;;  %4925 = vmatprep.mubr.msk.f32.mxu1 %vm283_vm0, %v2260_v31 }
 0x1f2   :  { %2952 = vrot.lane.b32.xlu0 %v6496_v32, %s4943_s15  ;;  %v6635_v17 = vpop.f32.mrb[81].mxu0  ;;  %4926 = vmatmul.mubr.msk.f32.gmra.mrb[122].mxu1 %vm283_vm0, %v2262_v47 }
 0x1f3   :  { %v2266_v12 = vpop.permute.xlu1 %2265 }
 0x1f4   :  { %v2264_v38 = vpop.permute.xlu0 %2263 }
 0x1f5   :  { %v6638_v34 = vpop.f32.mrb[82].mxu0  ;;  %2958 = vrot.lane.b32.xlu1 %v6504_v48, %s4943_s15  ;;  %4928 = vmatprep.mubr.msk.f32.mxu1 %vm283_vm0, %v2264_v38 }
 0x1f6   :  { %2956 = vrot.lane.b32.xlu0 %v6506_v63, %s4943_s15  ;;  %v6645_v29 = vpop.f32.mrb[83].mxu0  ;;  %4929 = vmatmul.mubr.msk.f32.gmra.mrb[124].mxu1 %vm283_vm0, %v2266_v12 }
 0x1f7   :  { %v2270_v32 = vpop.permute.xlu1 %2269 }
 0x1f8   :  { %v2268_v44 = vpop.permute.xlu0 %2267 }
 0x1f9   :  { %v6648_v31 = vpop.f32.mrb[84].mxu0  ;;  %2962 = vrot.lane.b32.xlu1 %v6514_v20, %s4943_s15  ;;  %4931 = vmatprep.mubr.msk.f32.mxu1 %vm283_vm0, %v2268_v44 }
 0x1fa   :  { %2960 = vrot.lane.b32.xlu0 %v6516_v24, %s4943_s15  ;;  %v6655_v48 = vpop.f32.mrb[85].mxu0  ;;  %4932 = vmatmul.mubr.msk.f32.gmra.mrb[126].mxu1 %vm283_vm0, %v2270_v32 }
 0x1fb   :  { %v6658_v63 = vpop.permute.xlu1 %2850 }
 0x1fc   :  { %v6660_v47 = vpop.permute.xlu0 %2848 }
 0x1fd   :  { %v6662_v12 = vpop.f32.mrb[86].mxu0  ;;  %2966 = vrot.lane.b32.xlu1 %v6524_v16, %s4943_s15 }
 0x1fe   :  { %2964 = vrot.lane.b32.xlu0 %v6526_v36, %s4943_s15  ;;  %v6668_v20 = vpop.f32.mrb[87].mxu0 }
 0x1ff   :  { %v6670_v38 = vpop.permute.xlu1 %2854 }
 0x200   :  { %v6672_v24 = vpop.permute.xlu0 %2852 }
 0x201   :  { %v6674_v44 = vpop.f32.mrb[88].mxu0  ;;  %2970 = vrot.lane.b32.xlu1 %v6534_v49, %s4943_s15 }
 0x202   :  { %2968 = vrot.lane.b32.xlu0 %v6536_v50, %s4943_s15  ;;  %v6680_v32 = vpop.f32.mrb[89].mxu0 }
 0x203   :  { %v6682_v16 = vpop.permute.xlu1 %2858 }
 0x204   :  { %v6684_v40 = vpop.permute.xlu0 %2856 }
 0x205   :  { %v6686_v36 = vpop.f32.mrb[90].mxu0  ;;  %2974 = vrot.lane.b32.xlu1 %v6544_v6, %s4943_s15 }
 0x206   :  { %2972 = vrot.lane.b32.xlu0 %v6546_v13, %s4943_s15  ;;  %v6692_v9 = vpop.f32.mrb[91].mxu0 }
 0x207   :  { %v6694_v49 = vpop.permute.xlu1 %2862 }
 0x208   :  { %v6696_v62 = vpop.permute.xlu0 %2860 }
 0x209   :  { %v6698_v50 = vpop.f32.mrb[92].mxu0  ;;  %3106 = vrot.lane.b32.xlu1 %v6548_v46, %s4944_s16 }
 0x20a   :  { %3104 = vrot.lane.b32.xlu0 %v6555_v23, %s4944_s16  ;;  %v6704_v4 = vpop.f32.mrb[93].mxu0 }
 0x20b   :  { %v6706_v6 = vpop.permute.xlu1 %2866 }
 0x20c   :  { %v6708_v13 = vpop.permute.xlu0 %2864 }
 0x20d   :  { %v6710_v5 = vpop.f32.mrb[94].mxu0  ;;  %3110 = vrot.lane.b32.xlu1 %v6558_v61, %s4944_s16 }
 0x20e   :  { %3108 = vrot.lane.b32.xlu0 %v6565_v2, %s4944_s16  ;;  %v6716_v33 = vpop.f32.mrb[95].mxu0 }
 0x20f   :  { %v6718_v46 = vpop.permute.xlu1 %2870 }
 0x210   :  { %v6720_v59 = vpop.permute.xlu0 %2868 }
 0x211   :  { %v6722_v23 = vpop.f32.mrb[96].mxu0  ;;  %3114 = vrot.lane.b32.xlu1 %v6568_v35, %s4944_s16 }
 0x212   :  { %3112 = vrot.lane.b32.xlu0 %v6575_v0, %s4944_s16  ;;  %v6728_v43 = vpop.f32.mrb[97].mxu0 }
 0x213   :  { %v6730_v61 = vpop.permute.xlu1 %2874 }
 0x214   :  { %v6732_v27 = vpop.permute.xlu0 %2872 }
 0x215   :  { %v6734_v2 = vpop.f32.mrb[98].mxu0  ;;  %3118 = vrot.lane.b32.xlu1 %v6578_v55, %s4944_s16 }
 0x216   :  { %3116 = vrot.lane.b32.xlu0 %v6585_v37, %s4944_s16  ;;  %v6740_v7 = vpop.f32.mrb[99].mxu0 }
 0x217   :  { %v6742_v35 = vpop.permute.xlu1 %2878 }
 0x218   :  { %v6744_v41 = vpop.permute.xlu0 %2876 }
 0x219   :  { %7845 = vst [vmem:[#allocation12_spill] sm:$0xff] %v6744_v41  ;;  %v6746_v0 = vpop.f32.mrb[100].mxu0  ;;  %3122 = vrot.lane.b32.xlu1 %v6588_v26, %s4944_s16 }
 0x21a   :  { %3120 = vrot.lane.b32.xlu0 %v6595_v39, %s4944_s16  ;;  %v6752_v15 = vpop.f32.mrb[101].mxu0 }
 0x21b   :  { %v6754_v55 = vpop.permute.xlu1 %2882 }
 0x21c   :  { %7846 = vst [vmem:[#allocation63_spill] sm:$0xff] %v6754_v55  ;;  %v6756_v22 = vpop.permute.xlu0 %2880 }
 0x21d   :  { %7847 = vst [vmem:[#allocation64_spill] sm:$0xff] %v6756_v22  ;;  %v6758_v37 = vpop.f32.mrb[102].mxu0  ;;  %3126 = vrot.lane.b32.xlu1 %v6598_v53, %s4944_s16 }
 0x21e   :  { %3124 = vrot.lane.b32.xlu0 %v6605_v18, %s4944_s16  ;;  %v6764_v30 = vpop.f32.mrb[103].mxu0 }
 0x21f   :  { %v6766_v26 = vpop.permute.xlu1 %2886 }
 0x220   :  { %7848 = vst [vmem:[#allocation65_spill] sm:$0xff] %v6766_v26  ;;  %v6768_v11 = vpop.permute.xlu0 %2884 }
 0x221   :  { %7849 = vst [vmem:[#allocation66_spill] sm:$0xff] %v6768_v11  ;;  %v6770_v39 = vpop.f32.mrb[104].mxu0  ;;  %3130 = vrot.lane.b32.xlu1 %v6608_v58, %s4944_s16 }
 0x222   :  { %3128 = vrot.lane.b32.xlu0 %v6615_v28, %s4944_s16  ;;  %v6776_v14 = vpop.f32.mrb[105].mxu0 }
 0x223   :  { %v6778_v53 = vpop.permute.xlu1 %2890 }
 0x224   :  { %7850 = vst [vmem:[#allocation67_spill] sm:$0xff] %v6778_v53  ;;  %v6780_v52 = vpop.permute.xlu0 %2888 }
 0x225   :  { %7851 = vst [vmem:[#allocation68_spill] sm:$0xff] %v6780_v52  ;;  %v6782_v18 = vpop.f32.mrb[106].mxu0  ;;  %3134 = vrot.lane.b32.xlu1 %v6618_v10, %s4944_s16 }
 0x226   :  { %3132 = vrot.lane.b32.xlu0 %v6625_v56, %s4944_s16  ;;  %v6788_v8 = vpop.f32.mrb[107].mxu0 }
 0x227   :  { %v6790_v58 = vpop.permute.xlu1 %2894 }
 0x228   :  { %7852 = vst [vmem:[#allocation69_spill] sm:$0xff] %v6790_v58  ;;  %v6792_v42 = vpop.permute.xlu0 %2892 }
 0x229   :  { %7853 = vst [vmem:[#allocation70_spill] sm:$0xff] %v6792_v42  ;;  %v6794_v28 = vpop.f32.mrb[108].mxu0  ;;  %3138 = vrot.lane.b32.xlu1 %v6628_v54, %s4944_s16 }
 0x22a   :  { %3136 = vrot.lane.b32.xlu0 %v6635_v17, %s4944_s16  ;;  %v6800_v19 = vpop.f32.mrb[109].mxu0 }
 0x22b   :  { %v6802_v10 = vpop.permute.xlu1 %2898 }
 0x22c   :  { %7854 = vst [vmem:[#allocation71_spill] sm:$0xff] %v6802_v10  ;;  %v6804_v52 = vpop.permute.xlu0 %2896 }
 0x22d   :  { %7855 = vst [vmem:[#allocation72_spill] sm:$0xff] %v6804_v52  ;;  %v6806_v56 = vpop.f32.mrb[110].mxu0  ;;  %3142 = vrot.lane.b32.xlu1 %v6638_v34, %s4944_s16 }
 0x22e   :  { %3140 = vrot.lane.b32.xlu0 %v6645_v29, %s4944_s16  ;;  %v6812_v42 = vpop.f32.mrb[111].mxu0 }
 0x22f   :  { %v6814_v54 = vpop.permute.xlu1 %2902 }
 0x230   :  { %7856 = vst [vmem:[#allocation73_spill] sm:$0xff] %v6814_v54  ;;  %v6816_v58 = vpop.permute.xlu0 %2900 }
 0x231   :  { %7857 = vst [vmem:[#allocation74_spill] sm:$0xff] %v6816_v58  ;;  %v6818_v17 = vpop.f32.mrb[112].mxu0  ;;  %3146 = vrot.lane.b32.xlu1 %v6648_v31, %s4944_s16 }
 0x232   :  { %7858 = vst [vmem:[#allocation75_spill] sm:$0xff] %v6818_v17  ;;  %3144 = vrot.lane.b32.xlu0 %v6655_v48, %s4944_s16  ;;  %v6824_v52 = vpop.f32.mrb[113].mxu0 }
 0x233   :  { %v6826_v34 = vpop.permute.xlu1 %2906 }
 0x234   :  { %7859 = vst [vmem:[#allocation76_spill] sm:$0xff] %v6826_v34  ;;  %v6828_v10 = vpop.permute.xlu0 %2904 }
 0x235   :  { %7860 = vst [vmem:[#allocation77_spill] sm:$0xff] %v6828_v10  ;;  %v6830_v29 = vpop.f32.mrb[114].mxu0  ;;  %3150 = vrot.lane.b32.xlu1 %v6662_v12, %s4944_s16 }
 0x236   :  { %7861 = vst [vmem:[#allocation78_spill] sm:$0xff] %v6830_v29  ;;  %3148 = vrot.lane.b32.xlu0 %v6668_v20, %s4944_s16  ;;  %v6836_v58 = vpop.f32.mrb[115].mxu0 }
 0x237   :  { %7862 = vst [vmem:[#allocation79_spill] sm:$0xff] %v6836_v58  ;;  %v6838_v31 = vpop.permute.xlu1 %2910 }
 0x238   :  { %7863 = vst [vmem:[#allocation80_spill] sm:$0xff] %v6838_v31  ;;  %v6840_v54 = vpop.permute.xlu0 %2908 }
 0x239   :  { %7864 = vst [vmem:[#allocation81_spill] sm:$0xff] %v6840_v54  ;;  %v6842_v48 = vpop.f32.mrb[116].mxu0  ;;  %3154 = vrot.lane.b32.xlu1 %v6674_v44, %s4944_s16 }
 0x23a   :  { %7865 = vst [vmem:[#allocation82_spill] sm:$0xff] %v6842_v48  ;;  %3152 = vrot.lane.b32.xlu0 %v6680_v32, %s4944_s16  ;;  %v6848_v34 = vpop.f32.mrb[117].mxu0 }
 0x23b   :  { %7866 = vst [vmem:[#allocation83_spill] sm:$0xff] %v6848_v34  ;;  %v6850_v12 = vpop.permute.xlu1 %2914 }
 0x23c   :  { %7867 = vst [vmem:[#allocation84_spill] sm:$0xff] %v6850_v12  ;;  %v6852_v10 = vpop.permute.xlu0 %2912 }
 0x23d   :  { %7868 = vst [vmem:[#allocation85_spill] sm:$0xff] %v6852_v10  ;;  %v6854_v20 = vpop.f32.mrb[118].mxu0  ;;  %3158 = vrot.lane.b32.xlu1 %v6686_v36, %s4944_s16 }
 0x23e   :  { %7869 = vst [vmem:[#allocation86_spill] sm:$0xff] %v6854_v20  ;;  %3156 = vrot.lane.b32.xlu0 %v6692_v9, %s4944_s16  ;;  %v6860_v31 = vpop.f32.mrb[119].mxu0 }
 0x23f   :  { %7870 = vst [vmem:[#allocation87_spill] sm:$0xff] %v6860_v31  ;;  %v6862_v44 = vpop.permute.xlu1 %2918 }
 0x240   :  { %7871 = vst [vmem:[#allocation88_spill] sm:$0xff] %v6862_v44  ;;  %v6864_v54 = vpop.permute.xlu0 %2916 }
 0x241   :  { %7872 = vst [vmem:[#allocation89_spill] sm:$0xff] %v6864_v54  ;;  %v6866_v32 = vpop.f32.mrb[120].mxu0 }
 0x242   :  { %7873 = vst [vmem:[#allocation90_spill] sm:$0xff] %v6866_v32  ;;  %v6868_v48 = vpop.f32.mrb[121].mxu0 }
 0x243   :  { %7874 = vst [vmem:[#allocation91_spill] sm:$0xff] %v6868_v48  ;;  %v6870_v12 = vpop.permute.xlu1 %2922 }
 0x244   :  { %7875 = vst [vmem:[#allocation92_spill] sm:$0xff] %v6870_v12  ;;  %v6872_v10 = vpop.permute.xlu0 %2920 }
 0x245   :  { %7876 = vst [vmem:[#allocation93_spill] sm:$0xff] %v6872_v10  ;;  %v6874_v20 = vpop.f32.mrb[122].mxu0 }
 0x246   :  { %7877 = vst [vmem:[#allocation94_spill] sm:$0xff] %v6874_v20  ;;  %v6876_v36 = vpop.f32.mrb[123].mxu0 }
 0x247   :  { %7878 = vst [vmem:[#allocation95_spill] sm:$0xff] %v6876_v36  ;;  %v6878_v34 = vpop.permute.xlu1 %2926 }
 0x248   :  { %7879 = vst [vmem:[#allocation96_spill] sm:$0xff] %v6878_v34  ;;  %v6880_v9 = vpop.permute.xlu0 %2924 }
 0x249   :  { %7880 = vst [vmem:[#allocation97_spill] sm:$0xff] %v6880_v9  ;;  %v6882_v31 = vpop.f32.mrb[124].mxu0 }
 0x24a   :  { %7881 = vst [vmem:[#allocation98_spill] sm:$0xff] %v6882_v31  ;;  %v6884_v44 = vpop.f32.mrb[125].mxu0 }
 0x24b   :  { %7882 = vst [vmem:[#allocation99_spill] sm:$0xff] %v6884_v44  ;;  %v6886_v54 = vpop.permute.xlu1 %2930 }
 0x24c   :  { %7883 = vst [vmem:[#allocation100_spill] sm:$0xff] %v6886_v54  ;;  %v6888_v32 = vpop.permute.xlu0 %2928 }
 0x24d   :  { %7884 = vst [vmem:[#allocation101_spill] sm:$0xff] %v6888_v32  ;;  %v6890_v48 = vpop.f32.mrb[126].mxu0 }
 0x24e   :  { %7885 = vst [vmem:[#allocation102_spill] sm:$0xff] %v6890_v48  ;;  %v6892_v12 = vpop.f32.mrb[127].mxu0 }
 0x24f   :  { %7886 = vst [vmem:[#allocation103_spill] sm:$0xff] %v6892_v12  ;;  %v6894_v10 = vpop.permute.xlu1 %2934 }
 0x250   :  { %7887 = vst [vmem:[#allocation104_spill] sm:$0xff] %v6894_v10  ;;  %v6896_v20 = vpop.permute.xlu0 %2932 }
 0x251   :  { %7888 = vst [vmem:[#allocation105_spill] sm:$0xff] %v6896_v20  ;;  %v4840_v36 = vpop.f32.mrb[64].mxu1 }
 0x252   :  { %v2465_v34 = vpop.f32.mrb[65].mxu1  ;;  %3362 = vrot.lane.b32.xlu1 %v4840_v36, %s4945_s17 }
 0x253   :  { %3360 = vrot.lane.b32.xlu0 %v2465_v34, %s4945_s17  ;;  %v6900_v9 = vpop.permute.xlu1 %2938 }
 0x254   :  { %7889 = vst [vmem:[#allocation106_spill] sm:$0xff] %v6900_v9  ;;  %v6902_v54 = vpop.permute.xlu0 %2936 }
 0x255   :  { %7890 = vst [vmem:[#allocation107_spill] sm:$0xff] %v6902_v54  ;;  %v4843_v32 = vpop.f32.mrb[66].mxu1 }
 0x256   :  { %v2475_v31 = vpop.f32.mrb[67].mxu1  ;;  %3366 = vrot.lane.b32.xlu1 %v4843_v32, %s4945_s17 }
 0x257   :  { %3364 = vrot.lane.b32.xlu0 %v2475_v31, %s4945_s17  ;;  %v6906_v10 = vpop.permute.xlu1 %2942 }
 0x258   :  { %7891 = vst [vmem:[#allocation108_spill] sm:$0xff] %v6906_v10  ;;  %v6908_v20 = vpop.permute.xlu0 %2940 }
 0x259   :  { %7892 = vst [vmem:[#allocation109_spill] sm:$0xff] %v6908_v20  ;;  %v4846_v48 = vpop.f32.mrb[68].mxu1 }
 0x25a   :  { %v2485_v12 = vpop.f32.mrb[69].mxu1  ;;  %3370 = vrot.lane.b32.xlu1 %v4846_v48, %s4945_s17 }
 0x25b   :  { %3368 = vrot.lane.b32.xlu0 %v2485_v12, %s4945_s17  ;;  %v6912_v34 = vpop.permute.xlu1 %2946 }
 0x25c   :  { %7893 = vst [vmem:[#allocation110_spill] sm:$0xff] %v6912_v34  ;;  %v6914_v36 = vpop.permute.xlu0 %2944 }
 0x25d   :  { %7894 = vst [vmem:[#allocation111_spill] sm:$0xff] %v6914_v36  ;;  %v4849_v9 = vpop.f32.mrb[70].mxu1 }
 0x25e   :  { %v2495_v54 = vpop.f32.mrb[71].mxu1  ;;  %3374 = vrot.lane.b32.xlu1 %v4849_v9, %s4945_s17 }
 0x25f   :  { %3372 = vrot.lane.b32.xlu0 %v2495_v54, %s4945_s17  ;;  %v6918_v31 = vpop.permute.xlu1 %2950 }
 0x260   :  { %7895 = vst [vmem:[#allocation112_spill] sm:$0xff] %v6918_v31  ;;  %v6920_v32 = vpop.permute.xlu0 %2948 }
 0x261   :  { %7896 = vst [vmem:[#allocation113_spill] sm:$0xff] %v6920_v32  ;;  %v4852_v10 = vpop.f32.mrb[72].mxu1 }
 0x262   :  { %v2505_v20 = vpop.f32.mrb[73].mxu1  ;;  %3378 = vrot.lane.b32.xlu1 %v4852_v10, %s4945_s17 }
 0x263   :  { %3376 = vrot.lane.b32.xlu0 %v2505_v20, %s4945_s17  ;;  %v6924_v48 = vpop.permute.xlu1 %2954 }
 0x264   :  { %7897 = vst [vmem:[#allocation114_spill] sm:$0xff] %v6924_v48  ;;  %v6926_v12 = vpop.permute.xlu0 %2952 }
 0x265   :  { %7898 = vst [vmem:[#allocation115_spill] sm:$0xff] %v6926_v12  ;;  %v4855_v34 = vpop.f32.mrb[74].mxu1 }
 0x266   :  { %v2515_v36 = vpop.f32.mrb[75].mxu1  ;;  %3382 = vrot.lane.b32.xlu1 %v4855_v34, %s4945_s17 }
 0x267   :  { %3380 = vrot.lane.b32.xlu0 %v2515_v36, %s4945_s17  ;;  %v6930_v54 = vpop.permute.xlu1 %2958 }
 0x268   :  { %7899 = vst [vmem:[#allocation116_spill] sm:$0xff] %v6930_v54  ;;  %v6932_v9 = vpop.permute.xlu0 %2956 }
 0x269   :  { %7900 = vst [vmem:[#allocation117_spill] sm:$0xff] %v6932_v9  ;;  %v4858_v31 = vpop.f32.mrb[76].mxu1 }
 0x26a   :  { %v2525_v32 = vpop.f32.mrb[77].mxu1  ;;  %3386 = vrot.lane.b32.xlu1 %v4858_v31, %s4945_s17 }
 0x26b   :  { %3384 = vrot.lane.b32.xlu0 %v2525_v32, %s4945_s17  ;;  %v6936_v10 = vpop.permute.xlu1 %2962 }
 0x26c   :  { %7901 = vst [vmem:[#allocation118_spill] sm:$0xff] %v6936_v10  ;;  %v6938_v20 = vpop.permute.xlu0 %2960 }
 0x26d   :  { %7902 = vst [vmem:[#allocation119_spill] sm:$0xff] %v6938_v20  ;;  %v4861_v48 = vpop.f32.mrb[78].mxu1 }
 0x26e   :  { %v2535_v12 = vpop.f32.mrb[79].mxu1  ;;  %3390 = vrot.lane.b32.xlu1 %v4861_v48, %s4945_s17 }
 0x26f   :  { %3388 = vrot.lane.b32.xlu0 %v2535_v12, %s4945_s17  ;;  %v6942_v34 = vpop.permute.xlu1 %2966 }
 0x270   :  { %7903 = vst [vmem:[#allocation120_spill] sm:$0xff] %v6942_v34  ;;  %v6944_v36 = vpop.permute.xlu0 %2964 }
 0x271   :  { %7904 = vst [vmem:[#allocation121_spill] sm:$0xff] %v6944_v36  ;;  %v4864_v54 = vpop.f32.mrb[80].mxu1 }
 0x272   :  { %v2545_v9 = vpop.f32.mrb[81].mxu1  ;;  %3394 = vrot.lane.b32.xlu1 %v4864_v54, %s4945_s17 }
 0x273   :  { %3392 = vrot.lane.b32.xlu0 %v2545_v9, %s4945_s17  ;;  %v6948_v31 = vpop.permute.xlu1 %2970 }
 0x274   :  { %7905 = vst [vmem:[#allocation122_spill] sm:$0xff] %v6948_v31  ;;  %v6950_v32 = vpop.permute.xlu0 %2968 }
 0x275   :  { %7906 = vst [vmem:[#allocation123_spill] sm:$0xff] %v6950_v32  ;;  %v4867_v10 = vpop.f32.mrb[82].mxu1 }
 0x276   :  { %v2555_v20 = vpop.f32.mrb[83].mxu1  ;;  %3398 = vrot.lane.b32.xlu1 %v4867_v10, %s4945_s17 }
 0x277   :  { %3396 = vrot.lane.b32.xlu0 %v2555_v20, %s4945_s17  ;;  %v6954_v48 = vpop.permute.xlu1 %2974 }
 0x278   :  { %7907 = vst [vmem:[#allocation124_spill] sm:$0xff] %v6954_v48  ;;  %v6956_v12 = vpop.permute.xlu0 %2972 }
 0x279   :  { %7908 = vst [vmem:[#allocation125_spill] sm:$0xff] %v6956_v12  ;;  %v4870_v34 = vpop.f32.mrb[84].mxu1 }
 0x27a   :  { %v2565_v36 = vpop.f32.mrb[85].mxu1  ;;  %3402 = vrot.lane.b32.xlu1 %v4870_v34, %s4945_s17 }
 0x27b   :  { %3400 = vrot.lane.b32.xlu0 %v2565_v36, %s4945_s17  ;;  %v6960_v54 = vpop.permute.xlu1 %3106 }
 0x27c   :  { %v6962_v9 = vpop.permute.xlu0 %3104 }
 0x27d   :  { %v4873_v31 = vpop.f32.mrb[86].mxu1 }
 0x27e   :  { %v2575_v32 = vpop.f32.mrb[87].mxu1  ;;  %3406 = vrot.lane.b32.xlu1 %v4873_v31, %s4945_s17 }
 0x27f   :  { %3404 = vrot.lane.b32.xlu0 %v2575_v32, %s4945_s17  ;;  %v6966_v10 = vpop.permute.xlu1 %3110 }
 0x280   :  { %v6968_v20 = vpop.permute.xlu0 %3108 }
 0x281   :  { %v4876_v48 = vpop.f32.mrb[88].mxu1 }
 0x282   :  { %v2585_v12 = vpop.f32.mrb[89].mxu1  ;;  %3410 = vrot.lane.b32.xlu1 %v4876_v48, %s4945_s17 }
 0x283   :  { %3408 = vrot.lane.b32.xlu0 %v2585_v12, %s4945_s17  ;;  %v6972_v34 = vpop.permute.xlu1 %3114 }
 0x284   :  { %v6974_v36 = vpop.permute.xlu0 %3112 }
 0x285   :  { %v4879_v44 = vpop.f32.mrb[90].mxu1 }
 0x286   :  { %v2595_v53 = vpop.f32.mrb[91].mxu1  ;;  %3414 = vrot.lane.b32.xlu1 %v4879_v44, %s4945_s17 }
 0x287   :  { %3412 = vrot.lane.b32.xlu0 %v2595_v53, %s4945_s17  ;;  %v6978_v31 = vpop.permute.xlu1 %3118 }
 0x288   :  { %v6980_v32 = vpop.permute.xlu0 %3116 }
 0x289   :  { %v4882_v29 = vpop.f32.mrb[92].mxu1 }
 0x28a   :  { %v2605_v21 = vpop.f32.mrb[93].mxu1 }
 0x28b   :  { %3416 = vrot.lane.b32.xlu1 %v2605_v21, %s4945_s17  ;;  %3160 = vrot.lane.b32.xlu0 %v6704_v4, %s4944_s16  ;;  %v6985_v48 = vpop.permute.xlu1 %3122 }
 0x28c   :  { %v6987_v12 = vpop.permute.xlu0 %3120 }
 0x28d   :  { %v4885_v11 = vpop.f32.mrb[94].mxu1 }
 0x28e   :  { %v2615_v51 = vpop.f32.mrb[95].mxu1 }
 0x28f   :  { %3418 = vrot.lane.b32.xlu1 %v4882_v29, %s4945_s17  ;;  %3162 = vrot.lane.b32.xlu0 %v6698_v50, %s4944_s16  ;;  %v6992_v53 = vpop.permute.xlu1 %3126 }
 0x290   :  { %v6994_v44 = vpop.permute.xlu0 %3124 }
 0x291   :  { %v4888_v26 = vpop.f32.mrb[96].mxu1 }
 0x292   :  { %v2625_v21 = vpop.f32.mrb[97].mxu1 }
 0x293   :  { %3420 = vrot.lane.b32.xlu1 %v2615_v51, %s4945_s17  ;;  %3164 = vrot.lane.b32.xlu0 %v6716_v33, %s4944_s16  ;;  %v6999_v58 = vpop.permute.xlu1 %3130 }
 0x294   :  { %v7001_v55 = vpop.permute.xlu0 %3128 }
 0x295   :  { %v4891_v4 = vpop.f32.mrb[98].mxu1 }
 0x296   :  { %v2635_v22 = vpop.f32.mrb[99].mxu1 }
 0x297   :  { %3422 = vrot.lane.b32.xlu1 %v4885_v11, %s4945_s17  ;;  %3166 = vrot.lane.b32.xlu0 %v6710_v5, %s4944_s16  ;;  %v7009_v51 = vpop.permute.xlu1 %3134 }
 0x298   :  { %v7011_v33 = vpop.permute.xlu0 %3132 }
 0x299   :  { %v4894_v50 = vpop.f32.mrb[100].mxu1  ;;  %7909 = vst [vmem:[#allocation126_spill] sm:$0xff] %v7011_v33 }
 0x29a   :  { %v2645_v29 = vpop.f32.mrb[101].mxu1 }
 0x29b   :  { %3424 = vrot.lane.b32.xlu1 %v2625_v21, %s4945_s17  ;;  %3168 = vrot.lane.b32.xlu0 %v6728_v43, %s4944_s16  ;;  %v7016_v5 = vpop.permute.xlu1 %3138 }
 0x29c   :  { %7910 = vst [vmem:[#allocation127_spill] sm:$0xff] %v7016_v5  ;;  %v7018_v45 = vpop.permute.xlu0 %3136 }
 0x29d   :  { %v4897_v17 = vpop.f32.mrb[102].mxu1 }
 0x29e   :  { %v2655_v3 = vpop.f32.mrb[103].mxu1 }
 0x29f   :  { %3426 = vrot.lane.b32.xlu1 %v4888_v26, %s4945_s17  ;;  %3170 = vrot.lane.b32.xlu0 %v6722_v23, %s4944_s16  ;;  %v7026_v26 = vpop.permute.xlu1 %3142 }
 0x2a0   :  { %7911 = vst [vmem:[#allocation128_spill] sm:$0xff] %v7026_v26  ;;  %v7028_v23 = vpop.permute.xlu0 %3140 }
 0x2a1   :  { %v4900_v11 = vpop.f32.mrb[104].mxu1  ;;  %7912 = vst [vmem:[#allocation129_spill] sm:$0xff] %v7028_v23 }
 0x2a2   :  { %v2665_v41 = vpop.f32.mrb[105].mxu1 }
 0x2a3   :  { %3428 = vrot.lane.b32.xlu1 %v2635_v22, %s4945_s17  ;;  %3172 = vrot.lane.b32.xlu0 %v6740_v7, %s4944_s16  ;;  %v7039_v7 = vpop.permute.xlu1 %3146 }
 0x2a4   :  { %7913 = vst [vmem:[#allocation130_spill] sm:$0xff] %v7039_v7 }
 0x2a5   :  { %v4903_v43 = vpop.f32.mrb[106].mxu1 }
 0x2a6   :  { %v2675_v21 = vpop.f32.mrb[107].mxu1 }
 0x2a7   :  { %3430 = vrot.lane.b32.xlu1 %v4891_v4, %s4945_s17  ;;  %3174 = vrot.lane.b32.xlu0 %v6734_v2, %s4944_s16  ;;  %v7043_v2 = vpop.permute.xlu0 %3144 }
 0x2a8   :  { %7914 = vst [vmem:[#allocation131_spill] sm:$0xff] %v7043_v2 }
 0x2a9   :  { %v7030_v5 = vpop.f32.mrb[108].mxu1 }
 0x2aa   :  { %v7032_v33 = vpop.f32.mrb[109].mxu1 }
 0x2ab   :  { %3432 = vrot.lane.b32.xlu1 %v2645_v29, %s4945_s17  ;;  %3176 = vrot.lane.b32.xlu0 %v6752_v15, %s4944_s16  ;;  %v7055_v15 = vpop.permute.xlu1 %3150  ;;  %v7057_v29 = vpop.permute.xlu0 %3148 }
 0x2ac   :  { %7915 = vst [vmem:[#allocation132_spill] sm:$0xff] %v7055_v15  ;;  %7916 = vst [vmem:[#allocation133_spill] sm:$0xff] %v7057_v29 }
 0x2ad   :  { %v7037_v22 = vpop.f32.mrb[110].mxu1 }
 0x2ae   :  { %v7041_v4 = vpop.f32.mrb[111].mxu1 }
 0x2af   :  { %3434 = vrot.lane.b32.xlu1 %v4894_v50, %s4945_s17  ;;  %3178 = vrot.lane.b32.xlu0 %v6746_v0, %s4944_s16  ;;  %v7068_v50 = vpop.permute.xlu1 %3154 }
 0x2b0   :  { %7917 = vst [vmem:[#allocation134_spill] sm:$0xff] %v7068_v50 }
 0x2b1   :  { %v7048_v23 = vpop.f32.mrb[112].mxu1 }
 0x2b2   :  { %v7050_v26 = vpop.f32.mrb[113].mxu1 }
 0x2b3   :  { %3436 = vrot.lane.b32.xlu1 %v2655_v3, %s4945_s17  ;;  %3180 = vrot.lane.b32.xlu0 %v6764_v30, %s4944_s16  ;;  %v7072_v30 = vpop.permute.xlu0 %3152 }
 0x2b4   :  { %7918 = vst [vmem:[#allocation135_spill] sm:$0xff] %v7072_v30 }
 0x2b5   :  { %v7059_v7 = vpop.f32.mrb[114].mxu1 }
 0x2b6   :  { %v7061_v2 = vpop.f32.mrb[115].mxu1 }
 0x2b7   :  { %3438 = vrot.lane.b32.xlu1 %v4897_v17, %s4945_s17  ;;  %3182 = vrot.lane.b32.xlu0 %v6758_v37, %s4944_s16  ;;  %v7084_v37 = vpop.permute.xlu1 %3158  ;;  %v7086_v17 = vpop.permute.xlu0 %3156 }
 0x2b8   :  { %7920 = vst [vmem:[#allocation137_spill] sm:$0xff] %v7084_v37  ;;  %7921 = vst [vmem:[#allocation138_spill] sm:$0xff] %v7086_v17 }
 0x2b9   :  { %v7066_v0 = vpop.f32.mrb[116].mxu1 }
 0x2ba   :  { %v7070_v3 = vpop.f32.mrb[117].mxu1 }
 0x2bb   :  { %3440 = vrot.lane.b32.xlu1 %v2665_v41, %s4945_s17  ;;  %3184 = vrot.lane.b32.xlu0 %v6776_v14, %s4944_s16  ;;  %v7924_v14 = vld [vmem:[#allocation6_spill] sm:$0xff] }
 0x2bd   :  { %v7077_v29 = vpop.f32.mrb[118].mxu1 }
 0x2be   :  { %7919 = vst [vmem:[#allocation136_spill] sm:$0xff] %v7077_v29  ;;  %v7079_v15 = vpop.f32.mrb[119].mxu1  ;;  %v3554_v29 = vsel %vm3552_vm1, %v7924_v14, %v6658_v63 }
 0x2bf   :  { %3442 = vrot.lane.b32.xlu1 %v4900_v11, %s4945_s17  ;;  %3186 = vrot.lane.b32.xlu0 %v6770_v39, %s4944_s16  ;;  %v7925_v39 = vld [vmem:[#allocation7_spill] sm:$0xff]  ;;  %v3619_v17 = vsel %vm3617_vm2, %v3554_v29, %v6960_v54  ;;  %v3556_v54 = vsel %vm3552_vm1, %v6014_v1, %v6670_v38 }
 0x2c0   :  { %v3553_v11 = vsel %vm3552_vm1, %v7925_v39, %v6660_v47 }
 0x2c1   :  { %v7088_v30 = vpop.f32.mrb[120].mxu1 }
 0x2c2   :  { %7922 = vst [vmem:[#allocation139_spill] sm:$0xff] %v7088_v30  ;;  %v7090_v41 = vpop.f32.mrb[121].mxu1 }
 0x2c3   :  { %7923 = vst [vmem:[#allocation140_spill] sm:$0xff] %v7090_v41  ;;  %3444 = vrot.lane.b32.xlu1 %v2675_v21, %s4945_s17  ;;  %3188 = vrot.lane.b32.xlu0 %v6788_v8, %s4944_s16  ;;  %v3618_v41 = vsel %vm3617_vm2, %v3553_v11, %v6962_v9 }
 0x2c4   :  { %v3363_v30 = vpop.permute.xlu1 %3362 }
 0x2c5   :  { %v3684_v37 = vsel %vm3682_vm3, %v3619_v17, %v3363_v30  ;;  %v3361_v50 = vpop.permute.xlu0 %3360  ;;  %v7106_v63 = vpop.f32.mrb[122].mxu1  ;;  %v3621_v30 = vsel %vm3617_vm2, %v3556_v54, %v6966_v10  ;;  %v7927_v10 = vld [vmem:[#allocation11_spill] sm:$0xff] }
 0x2c6   :  { %3748 = vst [vmem:[%s7736_s3 + $0x8] sm:$0xff] %v3684_v37  ;;  %v3881_v8 = vmul.f32 %v3684_v37, %v3684_v37  ;;  %v3683_v21 = vsel %vm3682_vm3, %v3618_v41, %v3361_v50  ;;  %v7112_v47 = vpop.f32.mrb[123].mxu1  ;;  %v3555_v50 = vsel %vm3552_vm1, %v6017_v57, %v6672_v24 }
 0x2c7   :  { %3747 = vst [vmem:[%s7736_s3] sm:$0xff] %v3683_v21  ;;  %v3811_v9 = vadd.f32 %v3684_v37, %v3683_v21  ;;  %v3880_v29 = vmul.f32 %v3683_v21, %v3683_v21  ;;  %3446 = vrot.lane.b32.xlu1 %v4903_v43, %s4945_s17  ;;  %3190 = vrot.lane.b32.xlu0 %v6782_v18, %s4944_s16  ;;  %v7926_v43 = vld [vmem:[#allocation10_spill] sm:$0xff] }
 0x2c8   :  { %v3367_v17 = vpop.permute.xlu1 %3366  ;;  %v3620_v1 = vsel %vm3617_vm2, %v3555_v50, %v6968_v20  ;;  %v3558_v18 = vsel %vm3552_vm1, %v7926_v43, %v6682_v16  ;;  %v3557_v20 = vsel %vm3552_vm1, %v7927_v10, %v6684_v40 }
 0x2c9   :  { %v3944_v38 = vadd.f32 %v3881_v8, %v3880_v29  ;;  %v3686_v37 = vsel %vm3682_vm3, %v3621_v30, %v3367_v17  ;;  %v3365_v41 = vpop.permute.xlu0 %3364  ;;  %v7131_v14 = vpop.f32.mrb[124].mxu1  ;;  %v3623_v16 = vsel %vm3617_vm2, %v3558_v18, %v6972_v34  ;;  %v3622_v8 = vsel %vm3617_vm2, %v3557_v20, %v6974_v36 }
 0x2ca   :  { %3750 = vst [vmem:[%s7736_s3 + $0x18] sm:$0xff] %v3686_v37  ;;  %v3685_v57 = vsel %vm3682_vm3, %v3620_v1, %v3365_v41  ;;  %v7140_v24 = vpop.f32.mrb[125].mxu1  ;;  %v3883_v40 = vmul.f32 %v3686_v37, %v3686_v37 }
 0x2cb   :  { %3749 = vst [vmem:[%s7736_s3 + $0x10] sm:$0xff] %v3685_v57  ;;  %v3812_v39 = vadd.f32 %v3811_v9, %v3685_v57  ;;  %v3882_v11 = vmul.f32 %v3685_v57, %v3685_v57  ;;  %3448 = vrot.lane.b32.xlu1 %v7032_v33, %s4945_s17  ;;  %3192 = vrot.lane.b32.xlu0 %v6800_v19, %s4944_s16  ;;  %v7928_v33 = vld [vmem:[#allocation2_spill] sm:$0xff]  ;;  %v7929_v19 = vld [vmem:[#allocation3_spill] sm:$0xff] }
 0x2cc   :  { %v3371_v21 = vpop.permute.xlu1 %3370  ;;  %v3560_v17 = vsel %vm3552_vm1, %v7928_v33, %v6694_v49  ;;  %v3559_v34 = vsel %vm3552_vm1, %v7929_v19, %v6696_v62 }
 0x2cd   :  { %v3945_v54 = vadd.f32 %v3944_v38, %v3882_v11  ;;  %v3688_v29 = vsel %vm3682_vm3, %v3623_v16, %v3371_v21  ;;  %v3813_v50 = vadd.f32 %v3812_v39, %v3686_v37  ;;  %v3369_v9 = vpop.permute.xlu0 %3368  ;;  %v7157_v30 = vpop.f32.mrb[126].mxu1  ;;  %v3625_v62 = vsel %vm3617_vm2, %v3560_v17, %v6978_v31  ;;  %v7930_v11 = vld [vmem:[#allocation4_spill] sm:$0xff]  ;;  %v7931_v16 = vld [vmem:[#allocation5_spill] sm:$0xff] }
 0x2ce   :  { %3752 = vst [vmem:[%s7736_s3 + $0x28] sm:$0xff] %v3688_v29  ;;  %v3687_v36 = vsel %vm3682_vm3, %v3622_v8, %v3369_v9  ;;  %v7169_v1 = vpop.f32.mrb[127].mxu1  ;;  %v3624_v49 = vsel %vm3617_vm2, %v3559_v34, %v6980_v32  ;;  %v3885_v18 = vmul.f32 %v3688_v29, %v3688_v29 }
 0x2cf   :  { %v3946_v38 = vadd.f32 %v3945_v54, %v3883_v40  ;;  %3751 = vst [vmem:[%s7736_s3 + $0x20] sm:$0xff] %v3687_v36  ;;  %v3814_v37 = vadd.f32 %v3813_v50, %v3687_v36  ;;  %v3884_v41 = vmul.f32 %v3687_v36, %v3687_v36  ;;  %3450 = vrot.lane.b32.xlu1 %v7030_v5, %s4945_s17 }
 0x2d0   :  { %3194 = vrot.lane.b32.xlu0 %v6794_v28, %s4944_s16  ;;  %v3375_v43 = vpop.permute.xlu1 %3374  ;;  %v3562_v5 = vsel %vm3552_vm1, %v7930_v11, %v6706_v6  ;;  %v3561_v28 = vsel %vm3552_vm1, %v7931_v16, %v6708_v13  ;;  %v7935_v16 = vld [vmem:[#allocation12_spill] sm:$0xff] }
 0x2d1   :  { %v3947_v57 = vadd.f32 %v3946_v38, %v3884_v41  ;;  %v3690_v10 = vsel %vm3682_vm3, %v3625_v62, %v3375_v43  ;;  %v3815_v20 = vadd.f32 %v3814_v37, %v3688_v29  ;;  %v3373_v39 = vpop.permute.xlu0 %3372  ;;  %v3627_v6 = vsel %vm3617_vm2, %v3562_v5, %v6985_v48  ;;  %v7932_v41 = vld [vmem:[#allocation8_spill] sm:$0xff]  ;;  %v7933_v62 = vld [vmem:[#allocation9_spill] sm:$0xff] }
 0x2d2   :  { %3754 = vst [vmem:[%s7736_s3 + $0x38] sm:$0xff] %v3690_v10  ;;  %v3689_v31 = vsel %vm3682_vm3, %v3624_v49, %v3373_v39  ;;  %v3626_v13 = vsel %vm3617_vm2, %v3561_v28, %v6987_v12  ;;  %v3887_v54 = vmul.f32 %v3690_v10, %v3690_v10  ;;  %v7934_v5 = vld [vmem:[#allocation13_spill] sm:$0xff]  ;;  %v7936_v28 = vld [vmem:[#allocation14_spill] sm:$0xff] }
 0x2d3   :  { %v3948_v32 = vadd.f32 %v3947_v57, %v3885_v18  ;;  %3753 = vst [vmem:[%s7736_s3 + $0x30] sm:$0xff] %v3689_v31  ;;  %v3816_v8 = vadd.f32 %v3815_v20, %v3689_v31  ;;  %v3886_v21 = vmul.f32 %v3689_v31, %v3689_v31  ;;  %3452 = vrot.lane.b32.xlu1 %v7041_v4, %s4945_s17 }
 0x2d4   :  { %3196 = vrot.lane.b32.xlu0 %v6812_v42, %s4944_s16  ;;  %v3379_v40 = vpop.permute.xlu1 %3378  ;;  %v3564_v4 = vsel %vm3552_vm1, %v6042_v25, %v6718_v46  ;;  %v3563_v42 = vsel %vm3552_vm1, %v6045_v60, %v6720_v59 }
 0x2d5   :  { %v3949_v29 = vadd.f32 %v3948_v32, %v3886_v21  ;;  %v3692_v50 = vsel %vm3682_vm3, %v3627_v6, %v3379_v40  ;;  %v3817_v9 = vadd.f32 %v3816_v8, %v3690_v10  ;;  %v3377_v33 = vpop.permute.xlu0 %3376  ;;  %v3629_v25 = vsel %vm3617_vm2, %v3564_v4, %v6992_v53  ;;  %v7938_v21 = vld [vmem:[#allocation126_spill] sm:$0xff]  ;;  %v7940_v4 = vld [vmem:[#allocation15_spill] sm:$0xff] }
 0x2d6   :  { %3756 = vst [vmem:[%s7736_s3 + $0x48] sm:$0xff] %v3692_v50  ;;  %v3691_v48 = vsel %vm3682_vm3, %v3626_v13, %v3377_v33  ;;  %v3628_v60 = vsel %vm3617_vm2, %v3563_v42, %v6994_v44  ;;  %v3889_v46 = vmul.f32 %v3692_v50, %v3692_v50  ;;  %v7939_v33 = vld [vmem:[#allocation63_spill] sm:$0xff]  ;;  %v7941_v42 = vld [vmem:[#allocation64_spill] sm:$0xff] }
 0x2d7   :  { %v3950_v12 = vadd.f32 %v3949_v29, %v3887_v54  ;;  %3755 = vst [vmem:[%s7736_s3 + $0x40] sm:$0xff] %v3691_v48  ;;  %v3818_v17 = vadd.f32 %v3817_v9, %v3691_v48  ;;  %v3888_v19 = vmul.f32 %v3691_v48, %v3691_v48  ;;  %3454 = vrot.lane.b32.xlu1 %v7037_v22, %s4945_s17  ;;  %v7942_v48 = vld [vmem:[#allocation16_spill] sm:$0xff] }
 0x2d8   :  { %3198 = vrot.lane.b32.xlu0 %v6806_v56, %s4944_s16  ;;  %v3383_v59 = vpop.permute.xlu1 %3382  ;;  %v3566_v22 = vsel %vm3552_vm1, %v7932_v41, %v6730_v61  ;;  %v3565_v56 = vsel %vm3552_vm1, %v7933_v62, %v6732_v27 }
 0x2d9   :  { %v3951_v34 = vadd.f32 %v3950_v12, %v3888_v19  ;;  %v3694_v36 = vsel %vm3682_vm3, %v3629_v25, %v3383_v59  ;;  %v3819_v38 = vadd.f32 %v3818_v17, %v3692_v50  ;;  %v3381_v37 = vpop.permute.xlu0 %3380  ;;  %v3631_v27 = vsel %vm3617_vm2, %v3566_v22, %v6999_v58  ;;  %v7944_v59 = vld [vmem:[#allocation127_spill] sm:$0xff] }
 0x2da   :  { %3758 = vst [vmem:[%s7736_s3 + $0x58] sm:$0xff] %v3694_v36  ;;  %v3693_v53 = vsel %vm3682_vm3, %v3628_v60, %v3381_v37  ;;  %v3630_v61 = vsel %vm3617_vm2, %v3565_v56, %v7001_v55  ;;  %v3891_v57 = vmul.f32 %v3694_v36, %v3694_v36  ;;  %v3569_v12 = vsel %vm3552_vm1, %v7942_v48, %v7941_v42  ;;  %v7943_v60 = vld [vmem:[#allocation79_spill] sm:$0xff]  ;;  %v7945_v56 = vld [vmem:[#allocation65_spill] sm:$0xff] }
 0x2db   :  { %v3952_v44 = vadd.f32 %v3951_v34, %v3889_v46  ;;  %3757 = vst [vmem:[%s7736_s3 + $0x50] sm:$0xff] %v3693_v53  ;;  %v3820_v49 = vadd.f32 %v3819_v38, %v3693_v53  ;;  %v3890_v43 = vmul.f32 %v3693_v53, %v3693_v53  ;;  %3456 = vrot.lane.b32.xlu1 %v7050_v26, %s4945_s17  ;;  %v7946_v53 = vld [vmem:[#allocation17_spill] sm:$0xff] }
 0x2dc   :  { %3200 = vrot.lane.b32.xlu0 %v6824_v52, %s4944_s16  ;;  %v3387_v18 = vpop.permute.xlu1 %3386  ;;  %v3568_v26 = vsel %vm3552_vm1, %v7934_v5, %v6742_v35  ;;  %v3567_v52 = vsel %vm3552_vm1, %v7936_v28, %v7935_v16  ;;  %v7937_v35 = vld [vmem:[#allocation75_spill] sm:$0xff]  ;;  %v3634_v34 = vsel %vm3617_vm2, %v3569_v12, %v7018_v45 }
 0x2dd   :  { %v3953_v10 = vadd.f32 %v3952_v44, %v3890_v43  ;;  %v3696_v20 = vsel %vm3682_vm3, %v3631_v27, %v3387_v18  ;;  %v3821_v39 = vadd.f32 %v3820_v49, %v3694_v36  ;;  %v3385_v11 = vpop.permute.xlu0 %3384  ;;  %v3633_v8 = vsel %vm3617_vm2, %v3568_v26, %v7009_v51  ;;  %v7947_v44 = vld [vmem:[#allocation66_spill] sm:$0xff] }
 0x2de   :  { %3760 = vst [vmem:[%s7736_s3 + $0x68] sm:$0xff] %v3696_v20  ;;  %v3695_v55 = vsel %vm3682_vm3, %v3630_v61, %v3385_v11  ;;  %v3632_v6 = vsel %vm3617_vm2, %v3567_v52, %v7938_v21  ;;  %v3893_v40 = vmul.f32 %v3696_v20, %v3696_v20  ;;  %v7948_v49 = vld [vmem:[#allocation18_spill] sm:$0xff] }
 0x2df   :  { %v3954_v58 = vadd.f32 %v3953_v10, %v3891_v57  ;;  %3759 = vst [vmem:[%s7736_s3 + $0x60] sm:$0xff] %v3695_v55  ;;  %v3822_v31 = vadd.f32 %v3821_v39, %v3695_v55  ;;  %v3892_v32 = vmul.f32 %v3695_v55, %v3695_v55  ;;  %3458 = vrot.lane.b32.xlu1 %v7048_v23, %s4945_s17  ;;  %v7949_v57 = vld [vmem:[#allocation78_spill] sm:$0xff]  ;;  %v7950_v10 = vld [vmem:[#allocation128_spill] sm:$0xff]  ;;  %v7951_v39 = vld [vmem:[#allocation129_spill] sm:$0xff] }
 0x2e0   :  { %3202 = vrot.lane.b32.xlu0 %v7937_v35, %s4944_s16  ;;  %v3391_v13 = vpop.permute.xlu1 %3390  ;;  %v3570_v23 = vsel %vm3552_vm1, %v7940_v4, %v7939_v33  ;;  %v3571_v43 = vsel %vm3552_vm1, %v7948_v49, %v7947_v44  ;;  %v7955_v35 = vld [vmem:[#allocation20_spill] sm:$0xff] }
 0x2e1   :  { %v3955_v54 = vadd.f32 %v3954_v58, %v3892_v32  ;;  %v3698_v29 = vsel %vm3682_vm3, %v3633_v8, %v3391_v13  ;;  %v3823_v50 = vadd.f32 %v3822_v31, %v3696_v20  ;;  %v3389_v9 = vpop.permute.xlu0 %3388  ;;  %v3635_v46 = vsel %vm3617_vm2, %v3570_v23, %v7944_v59  ;;  %v7952_v58 = vld [vmem:[#allocation67_spill] sm:$0xff]  ;;  %v7954_v32 = vld [vmem:[#allocation68_spill] sm:$0xff] }
 0x2e2   :  { %3762 = vst [vmem:[%s7736_s3 + $0x78] sm:$0xff] %v3698_v29  ;;  %v3697_v51 = vsel %vm3682_vm3, %v3632_v6, %v3389_v9  ;;  %v3895_v38 = vmul.f32 %v3698_v29, %v3698_v29  ;;  %v3636_v11 = vsel %vm3617_vm2, %v3571_v43, %v7951_v39  ;;  %v7953_v31 = vld [vmem:[#allocation19_spill] sm:$0xff]  ;;  %v3573_v8 = vsel %vm3552_vm1, %v7955_v35, %v7954_v32 }
 0x2e3   :  { %v3956_v17 = vadd.f32 %v3955_v54, %v3893_v40  ;;  %3761 = vst [vmem:[%s7736_s3 + $0x70] sm:$0xff] %v3697_v51  ;;  %v3824_v19 = vadd.f32 %v3823_v50, %v3697_v51  ;;  %v3894_v25 = vmul.f32 %v3697_v51, %v3697_v51  ;;  %3460 = vrot.lane.b32.xlu1 %v7061_v2, %s4945_s17  ;;  %v7956_v54 = vld [vmem:[#allocation83_spill] sm:$0xff] }
 0x2e4   :  { %3204 = vrot.lane.b32.xlu0 %v7943_v60, %s4944_s16  ;;  %v3395_v36 = vpop.permute.xlu1 %3394  ;;  %v3572_v2 = vsel %vm3552_vm1, %v7946_v53, %v7945_v56  ;;  %v7958_v9 = vld [vmem:[#allocation131_spill] sm:$0xff]  ;;  %v7962_v60 = vld [vmem:[#allocation22_spill] sm:$0xff] }
 0x2e5   :  { %v3957_v37 = vadd.f32 %v3956_v17, %v3894_v25  ;;  %v3700_v41 = vsel %vm3682_vm3, %v3635_v46, %v3395_v36  ;;  %v3825_v22 = vadd.f32 %v3824_v19, %v3698_v29  ;;  %v3393_v62 = vpop.permute.xlu0 %3392  ;;  %v3637_v20 = vsel %vm3617_vm2, %v3572_v2, %v7950_v10  ;;  %v7957_v29 = vld [vmem:[#allocation130_spill] sm:$0xff]  ;;  %v7959_v17 = vld [vmem:[#allocation69_spill] sm:$0xff] }
 0x2e6   :  { %3764 = vst [vmem:[%s7736_s3 + $0x88] sm:$0xff] %v3700_v41  ;;  %v3699_v45 = vsel %vm3682_vm3, %v3634_v34, %v3393_v62  ;;  %v3897_v26 = vmul.f32 %v3700_v41, %v3700_v41  ;;  %v3638_v33 = vsel %vm3617_vm2, %v3573_v8, %v7958_v9  ;;  %v7960_v19 = vld [vmem:[#allocation21_spill] sm:$0xff]  ;;  %v7961_v25 = vld [vmem:[#allocation70_spill] sm:$0xff] }
 0x2e7   :  { %v3958_v27 = vadd.f32 %v3957_v37, %v3895_v38  ;;  %3763 = vst [vmem:[%s7736_s3 + $0x80] sm:$0xff] %v3699_v45  ;;  %v3826_v61 = vadd.f32 %v3825_v22, %v3699_v45  ;;  %v3896_v18 = vmul.f32 %v3699_v45, %v3699_v45  ;;  %3462 = vrot.lane.b32.xlu1 %v7059_v7, %s4945_s17  ;;  %v7963_v37 = vld [vmem:[#allocation82_spill] sm:$0xff]  ;;  %v7965_v62 = vld [vmem:[#allocation133_spill] sm:$0xff] }
 0x2e8   :  { %3206 = vrot.lane.b32.xlu0 %v7949_v57, %s4944_s16  ;;  %v3399_v5 = vpop.permute.xlu1 %3398  ;;  %v3574_v7 = vsel %vm3552_vm1, %v7953_v31, %v7952_v58  ;;  %v3575_v59 = vsel %vm3552_vm1, %v7962_v60, %v7961_v25  ;;  %v7969_v57 = vld [vmem:[#allocation24_spill] sm:$0xff] }
 0x2e9   :  { %v3959_v16 = vadd.f32 %v3958_v27, %v3896_v18  ;;  %v3702_v28 = vsel %vm3682_vm3, %v3637_v20, %v3399_v5  ;;  %v3827_v52 = vadd.f32 %v3826_v61, %v3700_v41  ;;  %v3397_v55 = vpop.permute.xlu0 %3396  ;;  %v3639_v50 = vsel %vm3617_vm2, %v3574_v7, %v7957_v29  ;;  %v7964_v41 = vld [vmem:[#allocation132_spill] sm:$0xff]  ;;  %v7966_v27 = vld [vmem:[#allocation71_spill] sm:$0xff] }
 0x2ea   :  { %3766 = vst [vmem:[%s7736_s3 + $0x98] sm:$0xff] %v3702_v28  ;;  %v3701_v21 = vsel %vm3682_vm3, %v3636_v11, %v3397_v55  ;;  %v3899_v23 = vmul.f32 %v3702_v28, %v3702_v28  ;;  %v3640_v56 = vsel %vm3617_vm2, %v3575_v59, %v7965_v62  ;;  %v7967_v61 = vld [vmem:[#allocation23_spill] sm:$0xff]  ;;  %v7968_v18 = vld [vmem:[#allocation72_spill] sm:$0xff] }
 0x2eb   :  { %v3960_v6 = vadd.f32 %v3959_v16, %v3897_v26  ;;  %3765 = vst [vmem:[%s7736_s3 + $0x90] sm:$0xff] %v3701_v21  ;;  %v3828_v13 = vadd.f32 %v3827_v52, %v3701_v21  ;;  %v3898_v40 = vmul.f32 %v3701_v21, %v3701_v21  ;;  %3464 = vrot.lane.b32.xlu1 %v7070_v3, %s4945_s17  ;;  %v7970_v26 = vld [vmem:[#allocation87_spill] sm:$0xff]  ;;  %v7971_v16 = vld [vmem:[#allocation134_spill] sm:$0xff]  ;;  %v7973_v21 = vld [vmem:[#allocation73_spill] sm:$0xff] }
 0x2ec   :  { %3208 = vrot.lane.b32.xlu0 %v7956_v54, %s4944_s16  ;;  %v3403_v4 = vpop.permute.xlu1 %3402  ;;  %v3576_v3 = vsel %vm3552_vm1, %v7960_v19, %v7959_v17  ;;  %v3577_v10 = vsel %vm3552_vm1, %v7969_v57, %v7968_v18  ;;  %v7972_v52 = vld [vmem:[#allocation135_spill] sm:$0xff]  ;;  %v7984_v62 = vld [vmem:[#allocation28_spill] sm:$0xff]  ;;  %v7986_v18 = vld [vmem:[#allocation90_spill] sm:$0xff] }
 0x2ed   :  { %v3961_v42 = vadd.f32 %v3960_v6, %v3898_v40  ;;  %v3704_v48 = vsel %vm3682_vm3, %v3639_v50, %v3403_v4  ;;  %v3829_v12 = vadd.f32 %v3828_v13, %v3702_v28  ;;  %v3401_v51 = vpop.permute.xlu0 %3400  ;;  %v3641_v22 = vsel %vm3617_vm2, %v3576_v3, %v7964_v41  ;;  %v7974_v6 = vld [vmem:[#allocation25_spill] sm:$0xff]  ;;  %v7975_v13 = vld [vmem:[#allocation74_spill] sm:$0xff]  ;;  %v7977_v4 = vld [vmem:[#allocation136_spill] sm:$0xff] }
 0x2ee   :  { %3768 = vst [vmem:[%s7736_s3 + $0xa8] sm:$0xff] %v3704_v48  ;;  %v3703_v46 = vsel %vm3682_vm3, %v3638_v33, %v3401_v51  ;;  %v3901_v2 = vmul.f32 %v3704_v48, %v3704_v48  ;;  %v3642_v55 = vsel %vm3617_vm2, %v3577_v10, %v7972_v52  ;;  %v7976_v40 = vld [vmem:[#allocation26_spill] sm:$0xff]  ;;  %v7982_v41 = vld [vmem:[#allocation91_spill] sm:$0xff] }
 0x2ef   :  { %v3962_v34 = vadd.f32 %v3961_v42, %v3899_v23  ;;  %3767 = vst [vmem:[%s7736_s3 + $0xa0] sm:$0xff] %v3703_v46  ;;  %v3830_v36 = vadd.f32 %v3829_v12, %v3703_v46  ;;  %v3900_v38 = vmul.f32 %v3703_v46, %v3703_v46  ;;  %3466 = vrot.lane.b32.xlu1 %v7066_v0, %s4945_s17  ;;  %v7978_v23 = vld [vmem:[#allocation86_spill] sm:$0xff]  ;;  %v7979_v42 = vld [vmem:[#allocation137_spill] sm:$0xff] }
 0x2f0   :  { %3210 = vrot.lane.b32.xlu0 %v7963_v37, %s4944_s16  ;;  %v3407_v53 = vpop.permute.xlu1 %3406  ;;  %v3578_v0 = vsel %vm3552_vm1, %v7967_v61, %v7966_v27  ;;  %v3579_v54 = vsel %vm3552_vm1, %v7976_v40, %v7975_v13  ;;  %v7980_v12 = vld [vmem:[#allocation138_spill] sm:$0xff]  ;;  %v7981_v37 = vld [vmem:[#allocation140_spill] sm:$0xff] }
 0x2f1   :  { %v3963_v44 = vadd.f32 %v3962_v34, %v3900_v38  ;;  %v3706_v49 = vsel %vm3682_vm3, %v3641_v22, %v3407_v53  ;;  %v3831_v43 = vadd.f32 %v3830_v36, %v3704_v48  ;;  %v3405_v45 = vpop.permute.xlu0 %3404  ;;  %v3643_v28 = vsel %vm3617_vm2, %v3578_v0, %v7971_v16  ;;  %v7983_v22 = vld [vmem:[#allocation77_spill] sm:$0xff]  ;;  %v7985_v0 = vld [vmem:[#allocation139_spill] sm:$0xff]  ;;  %v7992_v13 = vld [vmem:[#allocation94_spill] sm:$0xff] }
 0x2f2   :  { %3770 = vst [vmem:[%s7736_s3 + $0xb8] sm:$0xff] %v3706_v49  ;;  %v3705_v20 = vsel %vm3682_vm3, %v3640_v56, %v3405_v45  ;;  %v3903_v31 = vmul.f32 %v3706_v49, %v3706_v49  ;;  %v3644_v51 = vsel %vm3617_vm2, %v3579_v54, %v7980_v12  ;;  %v3581_v56 = vsel %vm3552_vm1, %v7984_v62, %v7983_v22 }
 0x2f3   :  { %v3964_v39 = vadd.f32 %v3963_v44, %v3901_v2  ;;  %3769 = vst [vmem:[%s7736_s3 + $0xb0] sm:$0xff] %v3705_v20  ;;  %v3832_v11 = vadd.f32 %v3831_v43, %v3705_v20  ;;  %v3902_v5 = vmul.f32 %v3705_v20, %v3705_v20  ;;  %3468 = vrot.lane.b32.xlu1 %v7079_v15, %s4945_s17  ;;  %v7987_v20 = vld [vmem:[#allocation76_spill] sm:$0xff] }
 0x2f4   :  { %3212 = vrot.lane.b32.xlu0 %v7970_v26, %s4944_s16  ;;  %v3411_v58 = vpop.permute.xlu1 %3410  ;;  %v3580_v15 = vsel %vm3552_vm1, %v7974_v6, %v7973_v21 }
 0x2f5   :  { %v3965_v7 = vadd.f32 %v3964_v39, %v3902_v5  ;;  %v3708_v32 = vsel %vm3682_vm3, %v3643_v28, %v3411_v58  ;;  %v3833_v35 = vadd.f32 %v3832_v11, %v3706_v49  ;;  %v3409_v8 = vpop.permute.xlu0 %3408  ;;  %v3645_v48 = vsel %vm3617_vm2, %v3580_v15, %v7979_v42  ;;  %v7988_v39 = vld [vmem:[#allocation27_spill] sm:$0xff] }
 0x2f6   :  { %3772 = vst [vmem:[%s7736_s3 + $0xc8] sm:$0xff] %v3708_v32  ;;  %v3707_v29 = vsel %vm3682_vm3, %v3642_v55, %v3409_v8  ;;  %v3905_v19 = vmul.f32 %v3708_v32, %v3708_v32  ;;  %v3582_v11 = vsel %vm3552_vm1, %v7988_v39, %v7987_v20  ;;  %v7989_v55 = vld [vmem:[#allocation95_spill] sm:$0xff]  ;;  %v8004_v20 = vld [vmem:[#allocation102_spill] sm:$0xff] }
 0x2f7   :  { %v3966_v50 = vadd.f32 %v3965_v7, %v3903_v31  ;;  %3771 = vst [vmem:[%s7736_s3 + $0xc0] sm:$0xff] %v3707_v29  ;;  %v3834_v9 = vadd.f32 %v3833_v35, %v3707_v29  ;;  %v3904_v33 = vmul.f32 %v3707_v29, %v3707_v29  ;;  %3470 = vrot.lane.b32.xlu1 %v7977_v4, %s4945_s17  ;;  %v7990_v7 = vld [vmem:[#allocation81_spill] sm:$0xff]  ;;  %v7993_v29 = vld [vmem:[#allocation80_spill] sm:$0xff] }
 0x2f8   :  { %3214 = vrot.lane.b32.xlu0 %v7978_v23, %s4944_s16  ;;  %v3415_v17 = vpop.permute.xlu1 %3414 }
 0x2f9   :  { %v3967_v3 = vadd.f32 %v3966_v50, %v3904_v33  ;;  %v3710_v25 = vsel %vm3682_vm3, %v3645_v48, %v3415_v17  ;;  %v3835_v60 = vadd.f32 %v3834_v9, %v3708_v32  ;;  %v3413_v59 = vpop.permute.xlu0 %3412  ;;  %v7991_v32 = vld [vmem:[#allocation30_spill] sm:$0xff]  ;;  %v7994_v50 = vld [vmem:[#allocation29_spill] sm:$0xff]  ;;  %v7995_v48 = vld [vmem:[#allocation99_spill] sm:$0xff] }
 0x2fa   :  { %3774 = vst [vmem:[%s7736_s3 + $0xd8] sm:$0xff] %v3710_v25  ;;  %v3709_v46 = vsel %vm3682_vm3, %v3644_v51, %v3413_v59  ;;  %v3907_v53 = vmul.f32 %v3710_v25, %v3710_v25  ;;  %v3583_v35 = vsel %vm3552_vm1, %v7991_v32, %v7990_v7  ;;  %v3584_v9 = vsel %vm3552_vm1, %v7994_v50, %v7993_v29  ;;  %v7996_v17 = vld [vmem:[#allocation85_spill] sm:$0xff]  ;;  %v8009_v29 = vld [vmem:[#allocation92_spill] sm:$0xff]  ;;  %v8010_v50 = vld [vmem:[#allocation35_spill] sm:$0xff] }
 0x2fb   :  { %v3968_v34 = vadd.f32 %v3967_v3, %v3905_v19  ;;  %3773 = vst [vmem:[%s7736_s3 + $0xd0] sm:$0xff] %v3709_v46  ;;  %v3836_v36 = vadd.f32 %v3835_v60, %v3709_v46  ;;  %v3906_v38 = vmul.f32 %v3709_v46, %v3709_v46  ;;  %3472 = vrot.lane.b32.xlu1 %v7981_v37, %s4945_s17  ;;  %v7997_v19 = vld [vmem:[#allocation32_spill] sm:$0xff]  ;;  %v8007_v32 = vld [vmem:[#allocation93_spill] sm:$0xff] }
 0x2fc   :  { %3216 = vrot.lane.b32.xlu0 %v7982_v41, %s4944_s16  ;;  %v3585_v3 = vsel %vm3552_vm1, %v7997_v19, %v7996_v17  ;;  %v7999_v37 = vld [vmem:[#allocation84_spill] sm:$0xff]  ;;  %v8000_v41 = vld [vmem:[#allocation31_spill] sm:$0xff]  ;;  %v8012_v17 = vld [vmem:[#allocation38_spill] sm:$0xff] }
 0x2fd   :  { %v3837_v2 = vadd.f32 %v3836_v36, %v3710_v25  ;;  %v3969_v44 = vadd.f32 %v3968_v34, %v3906_v38  ;;  %v3417_v49 = vpop.permute.xlu1 %3416  ;;  %v3161_v43 = vpop.permute.xlu0 %3160  ;;  %v7998_v34 = vld [vmem:[#allocation98_spill] sm:$0xff]  ;;  %v3586_v22 = vsel %vm3552_vm1, %v8000_v41, %v7999_v37 }
 0x2fe   :  { %v3646_v45 = vsel %vm3617_vm2, %v3581_v56, %v3161_v43 }
 0x2ff   :  { %v3970_v27 = vadd.f32 %v3969_v44, %v3907_v53  ;;  %v3711_v61 = vsel %vm3682_vm3, %v3646_v45, %v3417_v49  ;;  %3474 = vrot.lane.b32.xlu1 %v7985_v0, %s4945_s17  ;;  %v8001_v44 = vld [vmem:[#allocation103_spill] sm:$0xff]  ;;  %v8002_v45 = vld [vmem:[#allocation89_spill] sm:$0xff] }
 0x300   :  { %3218 = vrot.lane.b32.xlu0 %v7986_v18, %s4944_s16  ;;  %3775 = vst [vmem:[%s7736_s3 + $0xe0] sm:$0xff] %v3711_v61  ;;  %v3838_v57 = vadd.f32 %v3837_v2, %v3711_v61  ;;  %v3908_v10 = vmul.f32 %v3711_v61, %v3711_v61 }
 0x301   :  { %v3419_v5 = vpop.permute.xlu1 %3418  ;;  %v3163_v26 = vpop.permute.xlu0 %3162 }
 0x302   :  { %v3971_v16 = vadd.f32 %v3970_v27, %v3908_v10  ;;  %v3647_v28 = vsel %vm3617_vm2, %v3582_v11, %v3163_v26  ;;  %v8003_v27 = vld [vmem:[#allocation34_spill] sm:$0xff]  ;;  %v8006_v26 = vld [vmem:[#allocation33_spill] sm:$0xff] }
 0x303   :  { %v3712_v52 = vsel %vm3682_vm3, %v3647_v28, %v3419_v5  ;;  %3476 = vrot.lane.b32.xlu1 %v7112_v47, %s4945_s17  ;;  %v3587_v61 = vsel %vm3552_vm1, %v8003_v27, %v8002_v45  ;;  %v8005_v5 = vld [vmem:[#allocation88_spill] sm:$0xff] }
 0x304   :  { %3220 = vrot.lane.b32.xlu0 %v7989_v55, %s4944_s16  ;;  %3776 = vst [vmem:[%s7736_s3 + $0xe8] sm:$0xff] %v3712_v52  ;;  %v3839_v58 = vadd.f32 %v3838_v57, %v3712_v52  ;;  %v3909_v31 = vmul.f32 %v3712_v52, %v3712_v52 }
 0x305   :  { %v3421_v8 = vpop.permute.xlu1 %3420  ;;  %v3165_v21 = vpop.permute.xlu0 %3164 }
 0x306   :  { %v3972_v6 = vadd.f32 %v3971_v16, %v3909_v31  ;;  %v3648_v15 = vsel %vm3617_vm2, %v3583_v35, %v3165_v21  ;;  %v3588_v16 = vsel %vm3552_vm1, %v8006_v26, %v8005_v5  ;;  %v8008_v35 = vld [vmem:[#allocation36_spill] sm:$0xff] }
 0x307   :  { %v3713_v47 = vsel %vm3682_vm3, %v3648_v15, %v3421_v8  ;;  %3478 = vrot.lane.b32.xlu1 %v7106_v63, %s4945_s17  ;;  %v3589_v8 = vsel %vm3552_vm1, %v8008_v35, %v8007_v32 }
 0x308   :  { %3222 = vrot.lane.b32.xlu0 %v7992_v13, %s4944_s16  ;;  %3777 = vst [vmem:[%s7736_s3 + $0xf0] sm:$0xff] %v3713_v47  ;;  %v3840_v40 = vadd.f32 %v3839_v58, %v3713_v47  ;;  %v3910_v54 = vmul.f32 %v3713_v47, %v3713_v47 }
 0x309   :  { %v3423_v33 = vpop.permute.xlu1 %3422  ;;  %v3167_v4 = vpop.permute.xlu0 %3166 }
 0x30a   :  { %v3973_v23 = vadd.f32 %v3972_v6, %v3910_v54  ;;  %v3649_v42 = vsel %vm3617_vm2, %v3584_v9, %v3167_v4  ;;  %v3590_v9 = vsel %vm3552_vm1, %v8010_v50, %v8009_v29 }
 0x30b   :  { %v3714_v63 = vsel %vm3682_vm3, %v3649_v42, %v3423_v33  ;;  %3480 = vrot.lane.b32.xlu1 %v7140_v24, %s4945_s17 }
 0x30c   :  { %3224 = vrot.lane.b32.xlu0 %v7995_v48, %s4944_s16  ;;  %3778 = vst [vmem:[%s7736_s3 + $0xf8] sm:$0xff] %v3714_v63  ;;  %v3841_v12 = vadd.f32 %v3840_v40, %v3714_v63  ;;  %v3911_v51 = vmul.f32 %v3714_v63, %v3714_v63 }
 0x30d   :  { %v3425_v25 = vpop.permute.xlu1 %3424  ;;  %v3169_v60 = vpop.permute.xlu0 %3168 }
 0x30e   :  { %v3974_v59 = vadd.f32 %v3973_v23, %v3911_v51  ;;  %v3650_v46 = vsel %vm3617_vm2, %v3585_v3, %v3169_v60  ;;  %v8011_v51 = vld [vmem:[#allocation97_spill] sm:$0xff] }
 0x30f   :  { %v3715_v24 = vsel %vm3682_vm3, %v3650_v46, %v3425_v25  ;;  %3482 = vrot.lane.b32.xlu1 %v7131_v14, %s4945_s17  ;;  %v3591_v19 = vsel %vm3552_vm1, %v8012_v17, %v8011_v51 }
 0x310   :  { %3226 = vrot.lane.b32.xlu0 %v7998_v34, %s4944_s16  ;;  %3779 = vst [vmem:[%s7736_s3 + $0x100] sm:$0xff] %v3715_v24  ;;  %v3842_v36 = vadd.f32 %v3841_v12, %v3715_v24  ;;  %v3912_v38 = vmul.f32 %v3715_v24, %v3715_v24 }
 0x311   :  { %v3427_v62 = vpop.permute.xlu1 %3426  ;;  %v3171_v56 = vpop.permute.xlu0 %3170 }
 0x312   :  { %v3975_v53 = vadd.f32 %v3974_v59, %v3912_v38  ;;  %v3651_v2 = vsel %vm3617_vm2, %v3586_v22, %v3171_v56  ;;  %v8014_v38 = vld [vmem:[#allocation37_spill] sm:$0xff] }
 0x313   :  { %v3716_v14 = vsel %vm3682_vm3, %v3651_v2, %v3427_v62  ;;  %3484 = vrot.lane.b32.xlu1 %v7169_v1, %s4945_s17 }
 0x314   :  { %3228 = vrot.lane.b32.xlu0 %v8001_v44, %s4944_s16  ;;  %3780 = vst [vmem:[%s7736_s3 + $0x108] sm:$0xff] %v3716_v14  ;;  %v3843_v49 = vadd.f32 %v3842_v36, %v3716_v14  ;;  %v3913_v43 = vmul.f32 %v3716_v14, %v3716_v14  ;;  %v8013_v36 = vld [vmem:[#allocation96_spill] sm:$0xff]  ;;  %v8015_v44 = vld [vmem:[#allocation101_spill] sm:$0xff] }
 0x315   :  { %v3429_v0 = vpop.permute.xlu1 %3428  ;;  %v3173_v18 = vpop.permute.xlu0 %3172  ;;  %v3592_v37 = vsel %vm3552_vm1, %v8014_v38, %v8013_v36 }
 0x316   :  { %v3976_v57 = vadd.f32 %v3975_v53, %v3913_v43  ;;  %v3652_v10 = vsel %vm3617_vm2, %v3587_v61, %v3173_v18 }
 0x317   :  { %v3717_v1 = vsel %vm3682_vm3, %v3652_v10, %v3429_v0  ;;  %3486 = vrot.lane.b32.xlu1 %v7157_v30, %s4945_s17 }
 0x318   :  { %3230 = vrot.lane.b32.xlu0 %v8004_v20, %s4944_s16  ;;  %3781 = vst [vmem:[%s7736_s3 + $0x110] sm:$0xff] %v3717_v1  ;;  %v3844_v39 = vadd.f32 %v3843_v49, %v3717_v1  ;;  %v3914_v11 = vmul.f32 %v3717_v1, %v3717_v1  ;;  %v8016_v49 = vld [vmem:[#allocation40_spill] sm:$0xff]  ;;  %v8018_v20 = vld [vmem:[#allocation39_spill] sm:$0xff] }
 0x319   :  { %v3431_v28 = vpop.permute.xlu1 %3430  ;;  %v3175_v52 = vpop.permute.xlu0 %3174  ;;  %v3593_v43 = vsel %vm3552_vm1, %v8016_v49, %v8015_v44  ;;  %v8017_v1 = vld [vmem:[#allocation100_spill] sm:$0xff] }
 0x31a   :  { %v3977_v55 = vadd.f32 %v3976_v57, %v3914_v11  ;;  %v3653_v58 = vsel %vm3617_vm2, %v3588_v16, %v3175_v52 }
 0x31b   :  { %v3718_v30 = vsel %vm3682_vm3, %v3653_v58, %v3431_v28  ;;  %v8019_v58 = vld [vmem:[#allocation105_spill] sm:$0xff] }
 0x31c   :  { %3782 = vst [vmem:[%s7736_s3 + $0x118] sm:$0xff] %v3718_v30  ;;  %v3845_v31 = vadd.f32 %v3844_v39, %v3718_v30  ;;  %v3915_v7 = vmul.f32 %v3718_v30, %v3718_v30  ;;  %v3594_v39 = vsel %vm3552_vm1, %v8018_v20, %v8017_v1  ;;  %v8020_v30 = vld [vmem:[#allocation42_spill] sm:$0xff] }
 0x31d   :  { %v3433_v21 = vpop.permute.xlu1 %3432  ;;  %v3177_v6 = vpop.permute.xlu0 %3176 }
 0x31e   :  { %v3978_v15 = vadd.f32 %v3977_v55, %v3915_v7  ;;  %v3654_v47 = vsel %vm3617_vm2, %v3589_v8, %v3177_v6 }
 0x31f   :  { %v3719_v13 = vsel %vm3682_vm3, %v3654_v47, %v3433_v21  ;;  %v8021_v47 = vld [vmem:[#allocation104_spill] sm:$0xff] }
 0x320   :  { %3783 = vst [vmem:[%s7736_s3 + $0x120] sm:$0xff] %v3719_v13  ;;  %v3846_v40 = vadd.f32 %v3845_v31, %v3719_v13  ;;  %v3916_v54 = vmul.f32 %v3719_v13, %v3719_v13  ;;  %v3595_v31 = vsel %vm3552_vm1, %v8020_v30, %v8019_v58  ;;  %v8022_v13 = vld [vmem:[#allocation41_spill] sm:$0xff] }
 0x321   :  { %v3435_v33 = vpop.permute.xlu1 %3434  ;;  %v3179_v4 = vpop.permute.xlu0 %3178 }
 0x322   :  { %v3979_v23 = vadd.f32 %v3978_v15, %v3916_v54  ;;  %v3655_v42 = vsel %vm3617_vm2, %v3590_v9, %v3179_v4 }
 0x323   :  { %v3720_v63 = vsel %vm3682_vm3, %v3655_v42, %v3435_v33  ;;  %v8023_v42 = vld [vmem:[#allocation107_spill] sm:$0xff] }
 0x324   :  { %3784 = vst [vmem:[%s7736_s3 + $0x128] sm:$0xff] %v3720_v63  ;;  %v3847_v48 = vadd.f32 %v3846_v40, %v3720_v63  ;;  %v3917_v12 = vmul.f32 %v3720_v63, %v3720_v63  ;;  %v3596_v40 = vsel %vm3552_vm1, %v8022_v13, %v8021_v47  ;;  %v8024_v63 = vld [vmem:[#allocation44_spill] sm:$0xff] }
 0x325   :  { %v3437_v3 = vpop.permute.xlu1 %3436  ;;  %v3181_v25 = vpop.permute.xlu0 %3180 }
 0x326   :  { %v3980_v60 = vadd.f32 %v3979_v23, %v3917_v12  ;;  %v3656_v59 = vsel %vm3617_vm2, %v3591_v19, %v3181_v25 }
 0x327   :  { %v3721_v46 = vsel %vm3682_vm3, %v3656_v59, %v3437_v3  ;;  %v8025_v59 = vld [vmem:[#allocation106_spill] sm:$0xff] }
 0x328   :  { %3785 = vst [vmem:[%s7736_s3 + $0x130] sm:$0xff] %v3721_v46  ;;  %v3848_v24 = vadd.f32 %v3847_v48, %v3721_v46  ;;  %v3918_v34 = vmul.f32 %v3721_v46, %v3721_v46  ;;  %v3597_v48 = vsel %vm3552_vm1, %v8024_v63, %v8023_v42  ;;  %v8026_v46 = vld [vmem:[#allocation43_spill] sm:$0xff] }
 0x329   :  { %v3439_v41 = vpop.permute.xlu1 %3438  ;;  %v3183_v22 = vpop.permute.xlu0 %3182 }
 0x32a   :  { %v3981_v62 = vadd.f32 %v3980_v60, %v3918_v34  ;;  %v3657_v56 = vsel %vm3617_vm2, %v3592_v37, %v3183_v22 }
 0x32b   :  { %v3722_v53 = vsel %vm3682_vm3, %v3657_v56, %v3439_v41  ;;  %v8027_v56 = vld [vmem:[#allocation109_spill] sm:$0xff] }
 0x32c   :  { %3786 = vst [vmem:[%s7736_s3 + $0x138] sm:$0xff] %v3722_v53  ;;  %v3849_v2 = vadd.f32 %v3848_v24, %v3722_v53  ;;  %v3919_v14 = vmul.f32 %v3722_v53, %v3722_v53  ;;  %v3598_v24 = vsel %vm3552_vm1, %v8026_v46, %v8025_v59  ;;  %v8028_v53 = vld [vmem:[#allocation46_spill] sm:$0xff] }
 0x32d   :  { %v3441_v45 = vpop.permute.xlu1 %3440  ;;  %v3185_v27 = vpop.permute.xlu0 %3184 }
 0x32e   :  { %v3982_v61 = vadd.f32 %v3981_v62, %v3919_v14  ;;  %v3658_v0 = vsel %vm3617_vm2, %v3593_v43, %v3185_v27 }
 0x32f   :  { %v3723_v18 = vsel %vm3682_vm3, %v3658_v0, %v3441_v45  ;;  %v8029_v0 = vld [vmem:[#allocation108_spill] sm:$0xff] }
 0x330   :  { %3787 = vst [vmem:[%s7736_s3 + $0x140] sm:$0xff] %v3723_v18  ;;  %v3850_v57 = vadd.f32 %v3849_v2, %v3723_v18  ;;  %v3920_v10 = vmul.f32 %v3723_v18, %v3723_v18  ;;  %v3599_v2 = vsel %vm3552_vm1, %v8028_v53, %v8027_v56  ;;  %v8030_v18 = vld [vmem:[#allocation45_spill] sm:$0xff] }
 0x331   :  { %v3443_v11 = vpop.permute.xlu1 %3442  ;;  %v3187_v5 = vpop.permute.xlu0 %3186 }
 0x332   :  { %v3983_v26 = vadd.f32 %v3982_v61, %v3920_v10  ;;  %v3659_v16 = vsel %vm3617_vm2, %v3594_v39, %v3187_v5 }
 0x333   :  { %v3724_v28 = vsel %vm3682_vm3, %v3659_v16, %v3443_v11  ;;  %v8031_v16 = vld [vmem:[#allocation111_spill] sm:$0xff] }
 0x334   :  { %3788 = vst [vmem:[%s7736_s3 + $0x148] sm:$0xff] %v3724_v28  ;;  %v3851_v52 = vadd.f32 %v3850_v57, %v3724_v28  ;;  %v3921_v55 = vmul.f32 %v3724_v28, %v3724_v28  ;;  %v3600_v57 = vsel %vm3552_vm1, %v8030_v18, %v8029_v0  ;;  %v8032_v28 = vld [vmem:[#allocation48_spill] sm:$0xff] }
 0x335   :  { %v3445_v7 = vpop.permute.xlu1 %3444  ;;  %v3189_v32 = vpop.permute.xlu0 %3188 }
 0x336   :  { %v3984_v35 = vadd.f32 %v3983_v26, %v3921_v55  ;;  %v3660_v8 = vsel %vm3617_vm2, %v3595_v31, %v3189_v32 }
 0x337   :  { %v3725_v21 = vsel %vm3682_vm3, %v3660_v8, %v3445_v7  ;;  %v8033_v8 = vld [vmem:[#allocation110_spill] sm:$0xff] }
 0x338   :  { %3789 = vst [vmem:[%s7736_s3 + $0x150] sm:$0xff] %v3725_v21  ;;  %v3852_v6 = vadd.f32 %v3851_v52, %v3725_v21  ;;  %v3922_v15 = vmul.f32 %v3725_v21, %v3725_v21  ;;  %v3601_v52 = vsel %vm3552_vm1, %v8032_v28, %v8031_v16  ;;  %v8034_v21 = vld [vmem:[#allocation47_spill] sm:$0xff] }
 0x339   :  { %v3447_v54 = vpop.permute.xlu1 %3446  ;;  %v3191_v29 = vpop.permute.xlu0 %3190 }
 0x33a   :  { %v3985_v50 = vadd.f32 %v3984_v35, %v3922_v15  ;;  %v3661_v9 = vsel %vm3617_vm2, %v3596_v40, %v3191_v29 }
 0x33b   :  { %v3726_v33 = vsel %vm3682_vm3, %v3661_v9, %v3447_v54  ;;  %v8035_v9 = vld [vmem:[#allocation113_spill] sm:$0xff] }
 0x33c   :  { %3790 = vst [vmem:[%s7736_s3 + $0x158] sm:$0xff] %v3726_v33  ;;  %v3853_v4 = vadd.f32 %v3852_v6, %v3726_v33  ;;  %v3923_v23 = vmul.f32 %v3726_v33, %v3726_v33  ;;  %v3602_v6 = vsel %vm3552_vm1, %v8034_v21, %v8033_v8  ;;  %v8036_v33 = vld [vmem:[#allocation50_spill] sm:$0xff] }
 0x33d   :  { %v3449_v12 = vpop.permute.xlu1 %3448  ;;  %v3193_v51 = vpop.permute.xlu0 %3192 }
 0x33e   :  { %v3986_v17 = vadd.f32 %v3985_v50, %v3923_v23  ;;  %v3662_v19 = vsel %vm3617_vm2, %v3597_v48, %v3193_v51 }
 0x33f   :  { %v3727_v3 = vsel %vm3682_vm3, %v3662_v19, %v3449_v12  ;;  %v8037_v19 = vld [vmem:[#allocation112_spill] sm:$0xff] }
 0x340   :  { %3791 = vst [vmem:[%s7736_s3 + $0x160] sm:$0xff] %v3727_v3  ;;  %v3854_v25 = vadd.f32 %v3853_v4, %v3727_v3  ;;  %v3924_v60 = vmul.f32 %v3727_v3, %v3727_v3  ;;  %v3603_v4 = vsel %vm3552_vm1, %v8036_v33, %v8035_v9  ;;  %v8038_v3 = vld [vmem:[#allocation49_spill] sm:$0xff] }
 0x341   :  { %v3451_v34 = vpop.permute.xlu1 %3450 }
 0x342   :  { %v3195_v36 = vpop.permute.xlu0 %3194  ;;  %v3987_v38 = vadd.f32 %v3986_v17, %v3924_v60 }
 0x343   :  { %v3663_v37 = vsel %vm3617_vm2, %v3598_v24, %v3195_v36 }
 0x344   :  { %v3728_v41 = vsel %vm3682_vm3, %v3663_v37, %v3451_v34  ;;  %v8039_v37 = vld [vmem:[#allocation115_spill] sm:$0xff] }
 0x345   :  { %3792 = vst [vmem:[%s7736_s3 + $0x168] sm:$0xff] %v3728_v41  ;;  %v3855_v22 = vadd.f32 %v3854_v25, %v3728_v41  ;;  %v3925_v62 = vmul.f32 %v3728_v41, %v3728_v41  ;;  %v3453_v14 = vpop.permute.xlu1 %3452  ;;  %v3604_v25 = vsel %vm3552_vm1, %v8038_v3, %v8037_v19  ;;  %v8040_v41 = vld [vmem:[#allocation52_spill] sm:$0xff] }
 0x346   :  { %v3197_v44 = vpop.permute.xlu0 %3196 }
 0x347   :  { %v3988_v49 = vadd.f32 %v3987_v38, %v3925_v62  ;;  %v3664_v43 = vsel %vm3617_vm2, %v3599_v2, %v3197_v44 }
 0x348   :  { %v3729_v45 = vsel %vm3682_vm3, %v3664_v43, %v3453_v14  ;;  %v8041_v43 = vld [vmem:[#allocation114_spill] sm:$0xff] }
 0x349   :  { %3793 = vst [vmem:[%s7736_s3 + $0x170] sm:$0xff] %v3729_v45  ;;  %v3856_v27 = vadd.f32 %v3855_v22, %v3729_v45  ;;  %v3926_v61 = vmul.f32 %v3729_v45, %v3729_v45  ;;  %v3455_v10 = vpop.permute.xlu1 %3454  ;;  %v3605_v22 = vsel %vm3552_vm1, %v8040_v41, %v8039_v37  ;;  %v8042_v45 = vld [vmem:[#allocation51_spill] sm:$0xff] }
 0x34a   :  { %v3199_v1 = vpop.permute.xlu0 %3198 }
 0x34b   :  { %v3989_v20 = vadd.f32 %v3988_v49, %v3926_v61  ;;  %v3665_v39 = vsel %vm3617_vm2, %v3600_v57, %v3199_v1 }
 0x34c   :  { %v3730_v11 = vsel %vm3682_vm3, %v3665_v39, %v3455_v10  ;;  %v8043_v39 = vld [vmem:[#allocation117_spill] sm:$0xff] }
 0x34d   :  { %3794 = vst [vmem:[%s7736_s3 + $0x178] sm:$0xff] %v3730_v11  ;;  %v3857_v5 = vadd.f32 %v3856_v27, %v3730_v11  ;;  %v3927_v26 = vmul.f32 %v3730_v11, %v3730_v11  ;;  %v3457_v55 = vpop.permute.xlu1 %3456  ;;  %v3606_v27 = vsel %vm3552_vm1, %v8042_v45, %v8041_v43  ;;  %v8044_v11 = vld [vmem:[#allocation54_spill] sm:$0xff] }
 0x34e   :  { %v3201_v58 = vpop.permute.xlu0 %3200 }
 0x34f   :  { %v3990_v30 = vadd.f32 %v3989_v20, %v3927_v26  ;;  %v3666_v31 = vsel %vm3617_vm2, %v3601_v52, %v3201_v58 }
 0x350   :  { %v3731_v7 = vsel %vm3682_vm3, %v3666_v31, %v3457_v55  ;;  %v8045_v31 = vld [vmem:[#allocation116_spill] sm:$0xff] }
 0x351   :  { %3795 = vst [vmem:[%s7736_s3 + $0x180] sm:$0xff] %v3731_v7  ;;  %v3858_v32 = vadd.f32 %v3857_v5, %v3731_v7  ;;  %v3928_v35 = vmul.f32 %v3731_v7, %v3731_v7  ;;  %v3459_v15 = vpop.permute.xlu1 %3458  ;;  %v3607_v5 = vsel %vm3552_vm1, %v8044_v11, %v8043_v39  ;;  %v8046_v7 = vld [vmem:[#allocation53_spill] sm:$0xff] }
 0x352   :  { %v3203_v47 = vpop.permute.xlu0 %3202 }
 0x353   :  { %v3991_v13 = vadd.f32 %v3990_v30, %v3928_v35  ;;  %v3667_v40 = vsel %vm3617_vm2, %v3602_v6, %v3203_v47 }
 0x354   :  { %v3732_v54 = vsel %vm3682_vm3, %v3667_v40, %v3459_v15  ;;  %v8047_v40 = vld [vmem:[#allocation119_spill] sm:$0xff] }
 0x355   :  { %3796 = vst [vmem:[%s7736_s3 + $0x188] sm:$0xff] %v3732_v54  ;;  %v3859_v29 = vadd.f32 %v3858_v32, %v3732_v54  ;;  %v3929_v50 = vmul.f32 %v3732_v54, %v3732_v54  ;;  %v3461_v23 = vpop.permute.xlu1 %3460  ;;  %v3608_v32 = vsel %vm3552_vm1, %v8046_v7, %v8045_v31  ;;  %v8048_v54 = vld [vmem:[#allocation56_spill] sm:$0xff] }
 0x356   :  { %v3205_v42 = vpop.permute.xlu0 %3204 }
 0x357   :  { %v3992_v63 = vadd.f32 %v3991_v13, %v3929_v50  ;;  %v3668_v48 = vsel %vm3617_vm2, %v3603_v4, %v3205_v42 }
 0x358   :  { %v3733_v12 = vsel %vm3682_vm3, %v3668_v48, %v3461_v23  ;;  %v8049_v48 = vld [vmem:[#allocation118_spill] sm:$0xff] }
 0x359   :  { %3797 = vst [vmem:[%s7736_s3 + $0x190] sm:$0xff] %v3733_v12  ;;  %v3860_v51 = vadd.f32 %v3859_v29, %v3733_v12  ;;  %v3930_v17 = vmul.f32 %v3733_v12, %v3733_v12  ;;  %v3463_v60 = vpop.permute.xlu1 %3462  ;;  %v3609_v29 = vsel %vm3552_vm1, %v8048_v54, %v8047_v40  ;;  %v8050_v12 = vld [vmem:[#allocation55_spill] sm:$0xff] }
 0x35a   :  { %v3207_v59 = vpop.permute.xlu0 %3206 }
 0x35b   :  { %v3993_v46 = vadd.f32 %v3992_v63, %v3930_v17  ;;  %v3669_v24 = vsel %vm3617_vm2, %v3604_v25, %v3207_v59 }
 0x35c   :  { %v3734_v34 = vsel %vm3682_vm3, %v3669_v24, %v3463_v60  ;;  %v8051_v24 = vld [vmem:[#allocation121_spill] sm:$0xff] }
 0x35d   :  { %3798 = vst [vmem:[%s7736_s3 + $0x198] sm:$0xff] %v3734_v34  ;;  %v3861_v36 = vadd.f32 %v3860_v51, %v3734_v34  ;;  %v3931_v38 = vmul.f32 %v3734_v34, %v3734_v34  ;;  %v3465_v62 = vpop.permute.xlu1 %3464  ;;  %v3610_v51 = vsel %vm3552_vm1, %v8050_v12, %v8049_v48  ;;  %v8052_v34 = vld [vmem:[#allocation58_spill] sm:$0xff] }
 0x35e   :  { %v3209_v56 = vpop.permute.xlu0 %3208 }
 0x35f   :  { %v3994_v53 = vadd.f32 %v3993_v46, %v3931_v38  ;;  %v3670_v2 = vsel %vm3617_vm2, %v3605_v22, %v3209_v56 }
 0x360   :  { %v3735_v14 = vsel %vm3682_vm3, %v3670_v2, %v3465_v62  ;;  %v8053_v2 = vld [vmem:[#allocation120_spill] sm:$0xff] }
 0x361   :  { %3799 = vst [vmem:[%s7736_s3 + $0x1a0] sm:$0xff] %v3735_v14  ;;  %v3862_v44 = vadd.f32 %v3861_v36, %v3735_v14  ;;  %v3932_v49 = vmul.f32 %v3735_v14, %v3735_v14  ;;  %v3467_v61 = vpop.permute.xlu1 %3466  ;;  %v3611_v36 = vsel %vm3552_vm1, %v8052_v34, %v8051_v24  ;;  %v8054_v14 = vld [vmem:[#allocation57_spill] sm:$0xff] }
 0x362   :  { %v3211_v0 = vpop.permute.xlu0 %3210 }
 0x363   :  { %v3995_v18 = vadd.f32 %v3994_v53, %v3932_v49  ;;  %v3671_v57 = vsel %vm3617_vm2, %v3606_v27, %v3211_v0 }
 0x364   :  { %v3736_v10 = vsel %vm3682_vm3, %v3671_v57, %v3467_v61  ;;  %v8055_v57 = vld [vmem:[#allocation123_spill] sm:$0xff] }
 0x365   :  { %3800 = vst [vmem:[%s7736_s3 + $0x1a8] sm:$0xff] %v3736_v10  ;;  %v3863_v1 = vadd.f32 %v3862_v44, %v3736_v10  ;;  %v3933_v20 = vmul.f32 %v3736_v10, %v3736_v10  ;;  %v3469_v26 = vpop.permute.xlu1 %3468  ;;  %v3612_v44 = vsel %vm3552_vm1, %v8054_v14, %v8053_v2  ;;  %v8056_v10 = vld [vmem:[#allocation60_spill] sm:$0xff] }
 0x366   :  { %v3213_v16 = vpop.permute.xlu0 %3212 }
 0x367   :  { %v3996_v28 = vadd.f32 %v3995_v18, %v3933_v20  ;;  %v3672_v52 = vsel %vm3617_vm2, %v3607_v5, %v3213_v16 }
 0x368   :  { %v3737_v55 = vsel %vm3682_vm3, %v3672_v52, %v3469_v26  ;;  %v8057_v52 = vld [vmem:[#allocation122_spill] sm:$0xff] }
 0x369   :  { %3801 = vst [vmem:[%s7736_s3 + $0x1b0] sm:$0xff] %v3737_v55  ;;  %v3864_v58 = vadd.f32 %v3863_v1, %v3737_v55  ;;  %v3934_v30 = vmul.f32 %v3737_v55, %v3737_v55  ;;  %v3471_v35 = vpop.permute.xlu1 %3470  ;;  %v3613_v1 = vsel %vm3552_vm1, %v8056_v10, %v8055_v57  ;;  %v8058_v55 = vld [vmem:[#allocation59_spill] sm:$0xff] }
 0x36a   :  { %v3215_v8 = vpop.permute.xlu0 %3214 }
 0x36b   :  { %v3997_v21 = vadd.f32 %v3996_v28, %v3934_v30  ;;  %v3673_v6 = vsel %vm3617_vm2, %v3608_v32, %v3215_v8 }
 0x36c   :  { %v3738_v15 = vsel %vm3682_vm3, %v3673_v6, %v3471_v35  ;;  %v8059_v6 = vld [vmem:[#allocation125_spill] sm:$0xff] }
 0x36d   :  { %3802 = vst [vmem:[%s7736_s3 + $0x1b8] sm:$0xff] %v3738_v15  ;;  %v3865_v47 = vadd.f32 %v3864_v58, %v3738_v15  ;;  %v3935_v13 = vmul.f32 %v3738_v15, %v3738_v15  ;;  %v3473_v50 = vpop.permute.xlu1 %3472  ;;  %v3614_v58 = vsel %vm3552_vm1, %v8058_v55, %v8057_v52  ;;  %v8060_v15 = vld [vmem:[#allocation62_spill] sm:$0xff] }
 0x36e   :  { %v3217_v9 = vpop.permute.xlu0 %3216 }
 0x36f   :  { %v3998_v33 = vadd.f32 %v3997_v21, %v3935_v13  ;;  %v3674_v4 = vsel %vm3617_vm2, %v3609_v29, %v3217_v9 }
 0x370   :  { %v3739_v23 = vsel %vm3682_vm3, %v3674_v4, %v3473_v50  ;;  %v8061_v4 = vld [vmem:[#allocation124_spill] sm:$0xff] }
 0x371   :  { %3803 = vst [vmem:[%s7736_s3 + $0x1c0] sm:$0xff] %v3739_v23  ;;  %v3866_v42 = vadd.f32 %v3865_v47, %v3739_v23  ;;  %v3936_v63 = vmul.f32 %v3739_v23, %v3739_v23  ;;  %v3475_v17 = vpop.permute.xlu1 %3474  ;;  %v3615_v47 = vsel %vm3552_vm1, %v8060_v15, %v8059_v6  ;;  %v8062_v23 = vld [vmem:[#allocation61_spill] sm:$0xff] }
 0x372   :  { %v3219_v19 = vpop.permute.xlu0 %3218 }
 0x373   :  { %v3999_v3 = vadd.f32 %v3998_v33, %v3936_v63  ;;  %v3675_v25 = vsel %vm3617_vm2, %v3610_v51, %v3219_v19 }
 0x374   :  { %v3740_v60 = vsel %vm3682_vm3, %v3675_v25, %v3475_v17 }
 0x375   :  { %3804 = vst [vmem:[%s7736_s3 + $0x1c8] sm:$0xff] %v3740_v60  ;;  %v3867_v59 = vadd.f32 %v3866_v42, %v3740_v60  ;;  %v3937_v46 = vmul.f32 %v3740_v60, %v3740_v60  ;;  %v3477_v38 = vpop.permute.xlu1 %3476  ;;  %v3616_v42 = vsel %vm3552_vm1, %v8062_v23, %v8061_v4 }
 0x376   :  { %v3221_v37 = vpop.permute.xlu0 %3220 }
 0x377   :  { %v4000_v41 = vadd.f32 %v3999_v3, %v3937_v46  ;;  %v3676_v22 = vsel %vm3617_vm2, %v3611_v36, %v3221_v37 }
 0x378   :  { %v3741_v62 = vsel %vm3682_vm3, %v3676_v22, %v3477_v38 }
 0x379   :  { %3805 = vst [vmem:[%s7736_s3 + $0x1d0] sm:$0xff] %v3741_v62  ;;  %v3868_v56 = vadd.f32 %v3867_v59, %v3741_v62  ;;  %v3938_v53 = vmul.f32 %v3741_v62, %v3741_v62  ;;  %v3479_v49 = vpop.permute.xlu1 %3478 }
 0x37a   :  { %v3223_v43 = vpop.permute.xlu0 %3222 }
 0x37b   :  { %v4001_v45 = vadd.f32 %v4000_v41, %v3938_v53  ;;  %v3677_v27 = vsel %vm3617_vm2, %v3612_v44, %v3223_v43 }
 0x37c   :  { %v3742_v61 = vsel %vm3682_vm3, %v3677_v27, %v3479_v49 }
 0x37d   :  { %3806 = vst [vmem:[%s7736_s3 + $0x1d8] sm:$0xff] %v3742_v61  ;;  %v3869_v0 = vadd.f32 %v3868_v56, %v3742_v61  ;;  %v3939_v18 = vmul.f32 %v3742_v61, %v3742_v61  ;;  %v3481_v20 = vpop.permute.xlu1 %3480 }
 0x37e   :  { %v3225_v39 = vpop.permute.xlu0 %3224 }
 0x37f   :  { %v4002_v11 = vadd.f32 %v4001_v45, %v3939_v18  ;;  %v3678_v5 = vsel %vm3617_vm2, %v3613_v1, %v3225_v39 }
 0x380   :  { %v3743_v26 = vsel %vm3682_vm3, %v3678_v5, %v3481_v20 }
 0x381   :  { %3807 = vst [vmem:[%s7736_s3 + $0x1e0] sm:$0xff] %v3743_v26  ;;  %v3870_v16 = vadd.f32 %v3869_v0, %v3743_v26  ;;  %v3940_v28 = vmul.f32 %v3743_v26, %v3743_v26  ;;  %v3483_v30 = vpop.permute.xlu1 %3482 }
 0x382   :  { %v3227_v31 = vpop.permute.xlu0 %3226 }
 0x383   :  { %v4003_v7 = vadd.f32 %v4002_v11, %v3940_v28  ;;  %v3679_v32 = vsel %vm3617_vm2, %v3614_v58, %v3227_v31 }
 0x384   :  { %v3744_v35 = vsel %vm3682_vm3, %v3679_v32, %v3483_v30 }
 0x385   :  { %3808 = vst [vmem:[%s7736_s3 + $0x1e8] sm:$0xff] %v3744_v35  ;;  %v3871_v8 = vadd.f32 %v3870_v16, %v3744_v35  ;;  %v3941_v21 = vmul.f32 %v3744_v35, %v3744_v35  ;;  %v3485_v13 = vpop.permute.xlu1 %3484 }
 0x386   :  { %v3229_v40 = vpop.permute.xlu0 %3228 }
 0x387   :  { %v4004_v54 = vadd.f32 %v4003_v7, %v3941_v21  ;;  %v3680_v29 = vsel %vm3617_vm2, %v3615_v47, %v3229_v40 }
 0x388   :  { %v3745_v50 = vsel %vm3682_vm3, %v3680_v29, %v3485_v13 }
 0x389   :  { %3809 = vst [vmem:[%s7736_s3 + $0x1f0] sm:$0xff] %v3745_v50  ;;  %v3872_v9 = vadd.f32 %v3871_v8, %v3745_v50  ;;  %v3942_v33 = vmul.f32 %v3745_v50, %v3745_v50  ;;  %v3487_v63 = vpop.permute.xlu1 %3486 }
 0x38a   :  { %v3231_v48 = vpop.permute.xlu0 %3230 }
 0x38b   :  { %v4005_v12 = vadd.f32 %v4004_v54, %v3942_v33  ;;  %v3681_v51 = vsel %vm3617_vm2, %v3616_v42, %v3231_v48 }
 0x38c   :  { %v3746_v17 = vsel %vm3682_vm3, %v3681_v51, %v3487_v63 }
 0x38d   :  { %3810 = vst [vmem:[%s7736_s3 + $0x1f8] sm:$0xff] %v3746_v17  ;;  %v3873_v19 = vadd.f32 %v3872_v9, %v3746_v17  ;;  %v3943_v3 = vmul.f32 %v3746_v17, %v3746_v17 }
 0x38f   :  { %v3874_v25 = vrot.slane %v3873_v19, 4  ;;  %v4006_v60 = vadd.f32 %v4005_v12, %v3943_v3 }
 0x391   :  { %v3875_v59 = vadd.f32 %v3874_v25, %v3873_v19  ;;  %v4007_v46 = vrot.slane %v4006_v60, 4 }
 0x393   :  { %v3876_v24 = vrot.slane %v3875_v59, 2  ;;  %v4008_v34 = vadd.f32 %v4007_v46, %v4006_v60 }
 0x395   :  { %v3877_v36 = vadd.f32 %v3876_v24, %v3875_v59  ;;  %v4009_v38 = vrot.slane %v4008_v34, 2 }
 0x397   :  { %v3878_v37 = vrot.slane %v3877_v36, 1  ;;  %v4010_v41 = vadd.f32 %v4009_v38, %v4008_v34 }
 0x399   :  { %v4011_v22 = vrot.slane %v4010_v41, 1  ;;  %v3879_v62 = vadd.f32 %v3878_v37, %v3877_v36 }
 0x39b   :  { %v4012_v56 = vadd.f32 %v4011_v22, %v4010_v41 }
 0x39d   :  { %v4014_v53 = vsel %vm4013_vm4, %v3879_v62, %v4012_v56 }
 0x39e   :  { %4015 = vst [vmem:[%s7737_s4] sm:$0x3] %v4014_v53 }

// kernel: decoder_block.5
= control target key start
LH: loop header
LB: loop body
LE: loop exit
PB: predicated region body
PF: predicated region fallthrough
CT: control target
= control target key end

     0   :  { %v7348_v0 = vmov 1   ;;  %v7346_v1 = vmov 0   ;;  %vm332_vm0 = vcmask 64512   ;;  %s4258_s20 = smov 127   ;;  %s4259_s27 = smov 8   ;;  %vm2836_vm1 = vcmask 130048   ;;  %s7299_s2 = inlined_call_operand.vmem [shape: f32[512,2], index: 2, kind: input, shape index: {}]   ;;  %s7300_s3 = inlined_call_operand.vmem [shape: f32[2,8], index: 3, kind: input, shape index: {}]   ;;  %s7301_s0 = inlined_call_operand.vmem [shape: f32[512,8], index: 0, kind: input, shape index: {}, may-alias: {0,1}]   ;;  %s7302_s1 = inlined_call_operand.vmem [shape: f32[512,8], index: 1, kind: input, shape index: {}, may-alias: {0,1}]   ;;  %s7303_s4 = inlined_call_operand.vmem [shape: f32[32,32], index: 4, kind: input, shape index: {}]   ;;  %s7304_s5 = inlined_call_operand.vmem [shape: f32[512,32], index: 5, kind: output, shape index: {0}]   ;;  %s7305_s6 = inlined_call_operand.vmem [shape: f32[1,2,32], index: 6, kind: output, shape index: {1}]  }
   0x1   :  { %4213 = vset.pattern.permute.xlu0 %v7348_v0  ;;  %4212 = vset.pattern.permute.xlu1 %v7346_v1  ;;  %v4302_v2 = vld [vmem:[%s7299_s2 + $0x10] sm:$0xff]  ;;  %v4307_v3 = vld [vmem:[%s7299_s2] sm:$0xff]  ;;  %v403_v4 = vld [vmem:[%s7299_s2 + $0x18] sm:$0xff]  ;;  %s4260_s7 = smov 16   ;;  %vm2901_vm2 = vcmask 195584   ;;  %vm2966_vm3 = vcmask 261120  }
   0x2   :  { %540 = vperm.xlu1 %4212, %v4302_v2   ;;  %977 = vperm.xlu0 %4213, %v4307_v3   ;;  %v405_v5 = vld [vmem:[%s7299_s2 + $0x28] sm:$0xff]  ;;  %v407_v6 = vld [vmem:[%s7299_s2 + $0x38] sm:$0xff]  ;;  %v4323_v7 = vld [vmem:[%s7300_s3] ss:$0 sm:$0xff]  ;;  %vm3938_vm4 = vcmask 1040384   ;;  %vm3940_vm5 = vcmask 254976  }
   0x3   :  { %v4328_v8 = vld [vmem:[%s7300_s3 + $0x1] ss:$0 sm:$0xff]  ;;  %v58_v9 = vld [vmem:[%s7301_s0 + $0x10] sm:$0xff]  ;;  %v59_v10 = vld [vmem:[%s7301_s0 + $0x18] sm:$0xff] }
   0x4   :  { %v126_v11 = vmul.f32 %v4323_v7, %v58_v9  ;;  %v60_v12 = vld [vmem:[%s7301_s0 + $0x20] sm:$0xff]  ;;  %v127_v13 = vmul.f32 %v4323_v7, %v59_v10  ;;  %v61_v15 = vld [vmem:[%s7301_s0 + $0x28] sm:$0xff]  ;;  %v62_v16 = vld [vmem:[%s7301_s0 + $0x30] sm:$0xff] }
   0x5   :  { %v128_v14 = vmul.f32 %v4323_v7, %v60_v12  ;;  %v63_v17 = vld [vmem:[%s7301_s0 + $0x38] sm:$0xff]  ;;  %v409_v18 = vld [vmem:[%s7299_s2 + $0x48] sm:$0xff]  ;;  %v129_v20 = vmul.f32 %v4323_v7, %v61_v15  ;;  %v130_v21 = vmul.f32 %v4323_v7, %v62_v16  ;;  %v64_v23 = vld [vmem:[%s7301_s0 + $0x40] sm:$0xff] }
   0x6   :  { %545 = vperm.xlu1 %4212, %v403_v4   ;;  %989 = vperm.xlu0 %4213, %v403_v4   ;;  %v4355_v19 = vadd.f32 %v4328_v8, %v126_v11  ;;  %v131_v22 = vmul.f32 %v4323_v7, %v63_v17  ;;  %v65_v24 = vld [vmem:[%s7301_s0 + $0x48] sm:$0xff]  ;;  %v4367_v25 = vadd.f32 %v4328_v8, %v127_v13  ;;  %v66_v29 = vld [vmem:[%s7301_s0 + $0x50] sm:$0xff]  ;;  %v67_v34 = vld [vmem:[%s7301_s0 + $0x58] sm:$0xff] }
   0x7   :  { %v4370_v26 = vadd.f32 %v4328_v8, %v128_v14  ;;  %v132_v27 = vmul.f32 %v4323_v7, %v64_v23  ;;  %v133_v28 = vmul.f32 %v4323_v7, %v65_v24  ;;  %v4379_v31 = vadd.f32 %v4328_v8, %v129_v20  ;;  %v68_v35 = vld [vmem:[%s7301_s0 + $0x60] sm:$0xff]  ;;  %v69_v40 = vld [vmem:[%s7301_s0 + $0x68] sm:$0xff]  ;;  %v70_v41 = vld [vmem:[%s7301_s0 + $0x70] sm:$0xff] }
   0x8   :  { %7442 = vst [vmem:[#allocation3_spill] sm:$0xff] %v4355_v19  ;;  %7443 = vst [vmem:[#allocation4_spill] sm:$0xff] %v4367_v25  ;;  %v7343_v30 = vmax.f32 %v4355_v19, 0.0  ;;  %v4382_v32 = vadd.f32 %v4328_v8, %v130_v21  ;;  %v4385_v33 = vadd.f32 %v4328_v8, %v131_v22  ;;  %v7342_v36 = vmax.f32 %v4367_v25, 0.0  ;;  %v71_v42 = vld [vmem:[%s7301_s0 + $0x78] sm:$0xff]  ;;  %v72_v48 = vld [vmem:[%s7301_s0 + $0x80] sm:$0xff] }
   0x9   :  { %7444 = vst [vmem:[#allocation5_spill] sm:$0xff] %v4370_v26  ;;  %7445 = vst [vmem:[#allocation6_spill] sm:$0xff] %v4379_v31  ;;  %v7341_v37 = vmax.f32 %v4370_v26, 0.0  ;;  %v4396_v38 = vadd.f32 %v4328_v8, %v132_v27  ;;  %v4399_v39 = vadd.f32 %v4328_v8, %v133_v28  ;;  %v411_v43 = vld [vmem:[%s7299_s2 + $0x58] sm:$0xff]  ;;  %v7338_v44 = vmax.f32 %v4379_v31, 0.0  ;;  %v73_v57 = vld [vmem:[%s7301_s0 + $0x88] sm:$0xff] }
   0xa   :  { %555 = vperm.xlu1 %4212, %v405_v5   ;;  %997 = vperm.xlu0 %4213, %v405_v5   ;;  %7446 = vst [vmem:[#allocation7_spill] sm:$0xff] %v4382_v32  ;;  %7447 = vst [vmem:[#allocation8_spill] sm:$0xff] %v4385_v33  ;;  %v7337_v45 = vmax.f32 %v4382_v32, 0.0  ;;  %v7336_v46 = vmax.f32 %v4385_v33, 0.0  ;;  %v134_v47 = vmul.f32 %v4323_v7, %v66_v29  ;;  %v74_v61 = vld [vmem:[%s7301_s0 + $0x90] sm:$0xff]  ;;  %v413_v62 = vld [vmem:[%s7299_s2 + $0x68] sm:$0xff] }
   0xb   :  { %7448 = vst [vmem:[#allocation9_spill] sm:$0xff] %v4396_v38  ;;  %7449 = vst [vmem:[#allocation10_spill] sm:$0xff] %v4399_v39  ;;  %v7333_v49 = vmax.f32 %v4396_v38, 0.0  ;;  %v7332_v50 = vmax.f32 %v4399_v39, 0.0  ;;  %v135_v51 = vmul.f32 %v4323_v7, %v67_v34  ;;  %v136_v52 = vmul.f32 %v4323_v7, %v68_v35  ;;  %v75_v9 = vld [vmem:[%s7301_s0 + $0x98] sm:$0xff]  ;;  %v76_v10 = vld [vmem:[%s7301_s0 + $0xa0] sm:$0xff] }
   0xc   :  { %335 = vst.msk [vmem:[#allocation2 + $0x10] sm:$0xff] %vm332_vm0, %v7343_v30  ;;  %336 = vst.msk [vmem:[#allocation2 + $0x18] sm:$0xff] %vm332_vm0, %v7342_v36  ;;  %v4443_v53 = vadd.f32 %v4328_v8, %v134_v47  ;;  %v137_v54 = vmul.f32 %v4323_v7, %v69_v40  ;;  %v138_v55 = vmul.f32 %v4323_v7, %v70_v41  ;;  %v77_v15 = vld [vmem:[%s7301_s0 + $0xa8] sm:$0xff]  ;;  %v415_v27 = vld [vmem:[%s7299_s2 + $0x78] sm:$0xff] }
   0xd   :  { %337 = vst.msk [vmem:[#allocation2 + $0x20] sm:$0xff] %vm332_vm0, %v7341_v37  ;;  %338 = vst.msk [vmem:[#allocation2 + $0x28] sm:$0xff] %vm332_vm0, %v7338_v44  ;;  %v139_v56 = vmul.f32 %v4323_v7, %v71_v42  ;;  %v4458_v58 = vadd.f32 %v4328_v8, %v135_v51  ;;  %v4461_v59 = vadd.f32 %v4328_v8, %v136_v52  ;;  %v78_v34 = vld [vmem:[%s7301_s0 + $0xb0] sm:$0xff]  ;;  %v5336_v39 = vld [vmem:[%s7299_s2 + $0xa0] sm:$0xff] }
   0xe   :  { %565 = vperm.xlu1 %4212, %v407_v6   ;;  %1005 = vperm.xlu0 %4213, %v407_v6   ;;  %339 = vst.msk [vmem:[#allocation2 + $0x30] sm:$0xff] %vm332_vm0, %v7337_v45  ;;  %340 = vst.msk [vmem:[#allocation2 + $0x38] sm:$0xff] %vm332_vm0, %v7336_v46  ;;  %v140_v60 = vmul.f32 %v4323_v7, %v72_v48  ;;  %v7331_v63 = vmax.f32 %v4443_v53, 0.0  ;;  %v4472_v4 = vadd.f32 %v4328_v8, %v137_v54  ;;  %v79_v48 = vld [vmem:[%s7301_s0 + $0xb8] sm:$0xff]  ;;  %v5347_v32 = vld [vmem:[%s7299_s2 + $0xb0] sm:$0xff] }
   0xf   :  { %7450 = vst [vmem:[#allocation11_spill] sm:$0xff] %v4443_v53  ;;  %341 = vst.msk [vmem:[#allocation2 + $0x40] sm:$0xff] %vm332_vm0, %v7333_v49  ;;  %v4475_v5 = vadd.f32 %v4328_v8, %v138_v55  ;;  %v4478_v6 = vadd.f32 %v4328_v8, %v139_v56  ;;  %v7328_v11 = vmax.f32 %v4458_v58, 0.0  ;;  %v7327_v12 = vmax.f32 %v4461_v59, 0.0  ;;  %v4563_v56 = vld [vmem:[%s7299_s2 + $0x88] sm:$0xff]  ;;  %v5358_v25 = vld [vmem:[%s7299_s2 + $0xc0] sm:$0xff] }
  0x10   :  { %342 = vst.msk [vmem:[#allocation2 + $0x48] sm:$0xff] %vm332_vm0, %v7332_v50  ;;  %7451 = vst [vmem:[#allocation12_spill] sm:$0xff] %v4458_v58  ;;  %v4489_v13 = vadd.f32 %v4328_v8, %v140_v60  ;;  %v141_v14 = vmul.f32 %v4323_v7, %v73_v57  ;;  %v7326_v16 = vmax.f32 %v4472_v4, 0.0  ;;  %v142_v20 = vmul.f32 %v4323_v7, %v74_v61  ;;  %v80_v60 = vld [vmem:[%s7301_s0 + $0xc0] sm:$0xff]  ;;  %v81_v61 = vld [vmem:[%s7301_s0 + $0xc8] sm:$0xff] }
  0x11   :  { %7452 = vst [vmem:[#allocation13_spill] sm:$0xff] %v4461_v59  ;;  %7453 = vst [vmem:[#allocation14_spill] sm:$0xff] %v4472_v4  ;;  %v7323_v17 = vmax.f32 %v4475_v5, 0.0  ;;  %v143_v23 = vmul.f32 %v4323_v7, %v75_v9  ;;  %v144_v24 = vmul.f32 %v4323_v7, %v76_v10  ;;  %v145_v29 = vmul.f32 %v4323_v7, %v77_v15  ;;  %v5325_v59 = vld [vmem:[%s7299_s2 + $0x90] sm:$0xff] }
  0x12   :  { %575 = vperm.xlu1 %4212, %v409_v18   ;;  %1013 = vperm.xlu0 %4213, %v409_v18   ;;  %7454 = vst [vmem:[#allocation15_spill] sm:$0xff] %v4475_v5  ;;  %7455 = vst [vmem:[#allocation16_spill] sm:$0xff] %v4478_v6  ;;  %v7322_v18 = vmax.f32 %v4478_v6, 0.0  ;;  %v7321_v21 = vmax.f32 %v4489_v13, 0.0  ;;  %v4510_v22 = vadd.f32 %v4328_v8, %v141_v14  ;;  %v5314_v6 = vld [vmem:[%s7299_s2 + $0x80] sm:$0xff] }
  0x13   :  { %7456 = vst [vmem:[#allocation17_spill] sm:$0xff] %v4489_v13  ;;  %343 = vst.msk [vmem:[#allocation2 + $0x50] sm:$0xff] %vm332_vm0, %v7331_v63  ;;  %v4527_v28 = vadd.f32 %v4328_v8, %v142_v20  ;;  %v4538_v40 = vadd.f32 %v4328_v8, %v143_v23  ;;  %v4541_v41 = vadd.f32 %v4328_v8, %v144_v24  ;;  %v4605_v24 = vld [vmem:[%s7299_s2 + $0x98] sm:$0xff] }
  0x14   :  { %344 = vst.msk [vmem:[#allocation2 + $0x58] sm:$0xff] %vm332_vm0, %v7328_v11  ;;  %345 = vst.msk [vmem:[#allocation2 + $0x60] sm:$0xff] %vm332_vm0, %v7327_v12  ;;  %v7318_v35 = vmax.f32 %v4510_v22, 0.0  ;;  %v146_v42 = vmul.f32 %v4323_v7, %v78_v34  ;;  %v4546_v47 = vadd.f32 %v4328_v8, %v145_v29  ;;  %v147_v55 = vmul.f32 %v4323_v7, %v79_v48  ;;  %v83_v48 = vld [vmem:[%s7301_s0 + $0xd8] sm:$0xff] }
  0x15   :  { %7457 = vst [vmem:[#allocation18_spill] sm:$0xff] %v4510_v22  ;;  %346 = vst.msk [vmem:[#allocation2 + $0x68] sm:$0xff] %vm332_vm0, %v7326_v16  ;;  %v7315_v51 = vmax.f32 %v4538_v40, 0.0  ;;  %v7312_v52 = vmax.f32 %v4541_v41, 0.0  ;;  %v148_v10 = vmul.f32 %v4323_v7, %v80_v60  ;;  %v149_v14 = vmul.f32 %v4323_v7, %v81_v61  ;;  %v4634_v61 = vld [vmem:[%s7299_s2 + $0xa8] sm:$0xff] }
  0x16   :  { %585 = vperm.xlu1 %4212, %v411_v43   ;;  %1021 = vperm.xlu0 %4213, %v411_v43   ;;  %347 = vst.msk [vmem:[#allocation2 + $0x70] sm:$0xff] %vm332_vm0, %v7323_v17  ;;  %348 = vst.msk [vmem:[#allocation2 + $0x78] sm:$0xff] %vm332_vm0, %v7322_v18  ;;  %v7316_v43 = vmax.f32 %v4527_v28, 0.0  ;;  %v4557_v54 = vadd.f32 %v4328_v8, %v146_v42  ;;  %v7311_v57 = vmax.f32 %v4546_v47, 0.0 }
  0x17   :  { %7458 = vst [vmem:[#allocation19_spill] sm:$0xff] %v4527_v28  ;;  %349 = vst.msk [vmem:[#allocation2 + $0x80] sm:$0xff] %vm332_vm0, %v7321_v21  ;;  %v4583_v9 = vadd.f32 %v4328_v8, %v147_v55  ;;  %v4597_v20 = vadd.f32 %v4328_v8, %v148_v10  ;;  %v4600_v23 = vadd.f32 %v4328_v8, %v149_v14  ;;  %v84_v14 = vld [vmem:[%s7301_s0 + $0xe0] sm:$0xff]  ;;  %v5303_v28 = vld [vmem:[%s7299_s2 + $0x70] sm:$0xff] }
  0x18   :  { %7459 = vst [vmem:[#allocation20_spill] sm:$0xff] %v4538_v40  ;;  %7460 = vst [vmem:[#allocation21_spill] sm:$0xff] %v4541_v41  ;;  %v151_v55 = vmul.f32 %v4323_v7, %v83_v48  ;;  %v152_v48 = vmul.f32 %v4323_v7, %v84_v14  ;;  %v4660_v14 = vld [vmem:[%s7299_s2 + $0xb8] sm:$0xff] }
  0x19   :  { %7461 = vst [vmem:[#allocation22_spill] sm:$0xff] %v4546_v47  ;;  %350 = vst.msk [vmem:[#allocation2 + $0x88] sm:$0xff] %vm332_vm0, %v7318_v35  ;;  %v7308_v15 = vmax.f32 %v4583_v9, 0.0  ;;  %v7307_v29 = vmax.f32 %v4597_v20, 0.0  ;;  %v7306_v34 = vmax.f32 %v4600_v23, 0.0  ;;  %v5292_v47 = vld [vmem:[%s7299_s2 + $0x60] sm:$0xff] }
  0x1a   :  { %595 = vperm.xlu1 %4212, %v413_v62   ;;  %1029 = vperm.xlu0 %4213, %v413_v62   ;;  %7462 = vst [vmem:[#allocation23_spill] sm:$0xff] %v4557_v54  ;;  %351 = vst.msk [vmem:[#allocation2 + $0x90] sm:$0xff] %vm332_vm0, %v7316_v43  ;;  %v7310_v62 = vmax.f32 %v4557_v54, 0.0  ;;  %v4637_v10 = vadd.f32 %v4328_v8, %v151_v55  ;;  %v4655_v55 = vadd.f32 %v4328_v8, %v152_v48  ;;  %v87_v48 = vld [vmem:[%s7301_s0 + $0xf8] sm:$0xff] }
  0x1b   :  { %352 = vst.msk [vmem:[#allocation2 + $0x98] sm:$0xff] %vm332_vm0, %v7315_v51  ;;  %353 = vst.msk [vmem:[#allocation2 + $0xa0] sm:$0xff] %vm332_vm0, %v7312_v52 }
  0x1c   :  { %7463 = vst [vmem:[#allocation24_spill] sm:$0xff] %v4583_v9  ;;  %354 = vst.msk [vmem:[#allocation2 + $0xa8] sm:$0xff] %vm332_vm0, %v7311_v57  ;;  %v155_v57 = vmul.f32 %v4323_v7, %v87_v48  ;;  %v88_v48 = vld [vmem:[%s7301_s0 + $0x100] sm:$0xff] }
  0x1d   :  { %355 = vst.msk [vmem:[#allocation2 + $0xb0] sm:$0xff] %vm332_vm0, %v7310_v62  ;;  %7464 = vst [vmem:[#allocation25_spill] sm:$0xff] %v4597_v20  ;;  %v156_v51 = vmul.f32 %v4323_v7, %v88_v48  ;;  %v4724_v48 = vld [vmem:[%s7299_s2 + $0xd8] sm:$0xff]  ;;  %v5281_v20 = vld [vmem:[%s7299_s2 + $0x50] sm:$0xff] }
  0x1e   :  { %605 = vperm.xlu1 %4212, %v415_v27   ;;  %1037 = vperm.xlu0 %4213, %v415_v27   ;;  %7465 = vst [vmem:[#allocation26_spill] sm:$0xff] %v4600_v23  ;;  %v82_v27 = vld [vmem:[%s7301_s0 + $0xd0] sm:$0xff]  ;;  %356 = vst.msk [vmem:[#allocation2 + $0xb8] sm:$0xff] %vm332_vm0, %v7308_v15 }
  0x1f   :  { %v150_v42 = vmul.f32 %v4323_v7, %v82_v27  ;;  %357 = vst.msk [vmem:[#allocation2 + $0xc0] sm:$0xff] %vm332_vm0, %v7307_v29  ;;  %358 = vst.msk [vmem:[#allocation2 + $0xc8] sm:$0xff] %vm332_vm0, %v7306_v34  ;;  %v7313_v34 = vmax.f32 %v4637_v10, 0.0  ;;  %v86_v15 = vld [vmem:[%s7301_s0 + $0xf0] sm:$0xff] }
  0x20   :  { %7467 = vst [vmem:[#allocation28_spill] sm:$0xff] %v4637_v10  ;;  %7468 = vst [vmem:[#allocation29_spill] sm:$0xff] %v4655_v55  ;;  %v154_v62 = vmul.f32 %v4323_v7, %v86_v15  ;;  %v4692_v15 = vld [vmem:[%s7299_s2 + $0xc8] sm:$0xff]  ;;  %v5270_v10 = vld [vmem:[%s7299_s2 + $0x40] sm:$0xff] }
  0x21   :  { %v4629_v60 = vadd.f32 %v4328_v8, %v150_v42  ;;  %v85_v42 = vld [vmem:[%s7301_s0 + $0xe8] sm:$0xff]  ;;  %360 = vst.msk [vmem:[#allocation2 + $0xd8] sm:$0xff] %vm332_vm0, %v7313_v34  ;;  %v4687_v34 = vadd.f32 %v4328_v8, %v155_v57  ;;  %7517 = vst [vmem:[#allocation76_spill] sm:$0xff] %v5270_v10 }
  0x22   :  { %615 = vperm.xlu1 %4212, %v4563_v56   ;;  %1045 = vperm.xlu0 %4213, %v4563_v56   ;;  %v153_v29 = vmul.f32 %v4323_v7, %v85_v42  ;;  %7520 = vst [vmem:[#allocation79_spill] sm:$0xff] %v5281_v20  ;;  %7523 = vst [vmem:[#allocation82_spill] sm:$0xff] %v5292_v47 }
  0x23   :  { %7466 = vst [vmem:[#allocation27_spill] sm:$0xff] %v4629_v60  ;;  %v7309_v27 = vmax.f32 %v4629_v60, 0.0  ;;  %7471 = vst [vmem:[#allocation32_spill] sm:$0xff] %v4687_v34 }
  0x24   :  { %v4666_v42 = vadd.f32 %v4328_v8, %v153_v29  ;;  %v4684_v29 = vadd.f32 %v4328_v8, %v154_v62  ;;  %v89_v62 = vld [vmem:[%s7301_s0 + $0x108] sm:$0xff] }
  0x25   :  { %359 = vst.msk [vmem:[#allocation2 + $0xd0] sm:$0xff] %vm332_vm0, %v7309_v27  ;;  %v7314_v27 = vmax.f32 %v4655_v55, 0.0  ;;  %v157_v43 = vmul.f32 %v4323_v7, %v89_v62  ;;  %v90_v62 = vld [vmem:[%s7301_s0 + $0x110] sm:$0xff] }
  0x26   :  { %625 = vperm.xlu1 %4212, %v4605_v24   ;;  %1053 = vperm.xlu0 %4213, %v4605_v24   ;;  %7469 = vst [vmem:[#allocation30_spill] sm:$0xff] %v4666_v42  ;;  %v7317_v52 = vmax.f32 %v4666_v42, 0.0  ;;  %7470 = vst [vmem:[#allocation31_spill] sm:$0xff] %v4684_v29  ;;  %v7319_v57 = vmax.f32 %v4684_v29, 0.0 }
  0x27   :  { %361 = vst.msk [vmem:[#allocation2 + $0xe0] sm:$0xff] %vm332_vm0, %v7314_v27  ;;  %v7320_v27 = vmax.f32 %v4687_v34, 0.0  ;;  %v4719_v35 = vadd.f32 %v4328_v8, %v157_v43  ;;  %v158_v43 = vmul.f32 %v4323_v7, %v90_v62  ;;  %v92_v62 = vld [vmem:[%s7301_s0 + $0x120] sm:$0xff] }
  0x28   :  { %362 = vst.msk [vmem:[#allocation2 + $0xe8] sm:$0xff] %vm332_vm0, %v7317_v52  ;;  %363 = vst.msk [vmem:[#allocation2 + $0xf0] sm:$0xff] %vm332_vm0, %v7319_v57  ;;  %v4716_v52 = vadd.f32 %v4328_v8, %v156_v51  ;;  %v91_v57 = vld [vmem:[%s7301_s0 + $0x118] sm:$0xff] }
  0x29   :  { %364 = vst.msk [vmem:[#allocation2 + $0xf8] sm:$0xff] %vm332_vm0, %v7320_v27  ;;  %7473 = vst [vmem:[#allocation34_spill] sm:$0xff] %v4719_v35  ;;  %v7325_v51 = vmax.f32 %v4719_v35, 0.0  ;;  %v159_v21 = vmul.f32 %v4323_v7, %v91_v57  ;;  %v4745_v18 = vadd.f32 %v4328_v8, %v158_v43  ;;  %v4753_v57 = vld [vmem:[%s7299_s2 + $0xe8] sm:$0xff] }
  0x2a   :  { %635 = vperm.xlu1 %4212, %v4634_v61   ;;  %1061 = vperm.xlu0 %4213, %v4634_v61   ;;  %7472 = vst [vmem:[#allocation33_spill] sm:$0xff] %v4716_v52  ;;  %v7324_v27 = vmax.f32 %v4716_v52, 0.0 }
  0x2b   :  { %366 = vst.msk [vmem:[#allocation2 + $0x108] sm:$0xff] %vm332_vm0, %v7325_v51  ;;  %7474 = vst [vmem:[#allocation35_spill] sm:$0xff] %v4745_v18  ;;  %v4748_v17 = vadd.f32 %v4328_v8, %v159_v21  ;;  %v7329_v51 = vmax.f32 %v4745_v18, 0.0  ;;  %v160_v21 = vmul.f32 %v4323_v7, %v92_v62  ;;  %v94_v62 = vld [vmem:[%s7301_s0 + $0x130] sm:$0xff] }
  0x2c   :  { %365 = vst.msk [vmem:[#allocation2 + $0x100] sm:$0xff] %vm332_vm0, %v7324_v27  ;;  %v93_v27 = vld [vmem:[%s7301_s0 + $0x128] sm:$0xff] }
  0x2d   :  { %7475 = vst [vmem:[#allocation36_spill] sm:$0xff] %v4748_v17  ;;  %v7330_v43 = vmax.f32 %v4748_v17, 0.0  ;;  %v161_v16 = vmul.f32 %v4323_v7, %v93_v27  ;;  %367 = vst.msk [vmem:[#allocation2 + $0x110] sm:$0xff] %vm332_vm0, %v7329_v51  ;;  %v4774_v12 = vadd.f32 %v4328_v8, %v160_v21  ;;  %v4782_v27 = vld [vmem:[%s7299_s2 + $0xf8] sm:$0xff] }
  0x2e   :  { %645 = vperm.xlu1 %4212, %v4660_v14   ;;  %1069 = vperm.xlu0 %4213, %v4660_v14   ;;  %v95_v51 = vld [vmem:[%s7301_s0 + $0x138] sm:$0xff] }
  0x2f   :  { %368 = vst.msk [vmem:[#allocation2 + $0x118] sm:$0xff] %vm332_vm0, %v7330_v43  ;;  %7476 = vst [vmem:[#allocation37_spill] sm:$0xff] %v4774_v12  ;;  %v4777_v11 = vadd.f32 %v4328_v8, %v161_v16  ;;  %v7334_v43 = vmax.f32 %v4774_v12, 0.0  ;;  %v162_v16 = vmul.f32 %v4323_v7, %v94_v62  ;;  %v163_v63 = vmul.f32 %v4323_v7, %v95_v51  ;;  %v4811_v51 = vld [vmem:[%s7299_s2 + $0x108] sm:$0xff]  ;;  %v96_v62 = vld [vmem:[%s7301_s0 + $0x140] sm:$0xff] }
  0x31   :  { %7477 = vst [vmem:[#allocation38_spill] sm:$0xff] %v4777_v11  ;;  %v7335_v21 = vmax.f32 %v4777_v11, 0.0  ;;  %369 = vst.msk [vmem:[#allocation2 + $0x120] sm:$0xff] %vm332_vm0, %v7334_v43  ;;  %v4803_v50 = vadd.f32 %v4328_v8, %v162_v16  ;;  %v4806_v49 = vadd.f32 %v4328_v8, %v163_v63  ;;  %v97_v43 = vld [vmem:[%s7301_s0 + $0x148] sm:$0xff]  ;;  %v164_v63 = vmul.f32 %v4323_v7, %v96_v62  ;;  %v98_v62 = vld [vmem:[%s7301_s0 + $0x150] sm:$0xff] }
  0x32   :  { %655 = vperm.xlu1 %4212, %v4692_v15   ;;  %1077 = vperm.xlu0 %4213, %v4692_v15   ;;  %v165_v46 = vmul.f32 %v4323_v7, %v97_v43  ;;  %v4840_v43 = vld [vmem:[%s7299_s2 + $0x118] sm:$0xff] }
  0x33   :  { %370 = vst.msk [vmem:[#allocation2 + $0x128] sm:$0xff] %vm332_vm0, %v7335_v21  ;;  %7478 = vst [vmem:[#allocation39_spill] sm:$0xff] %v4803_v50  ;;  %v7339_v21 = vmax.f32 %v4803_v50, 0.0  ;;  %v7340_v16 = vmax.f32 %v4806_v49, 0.0  ;;  %v4832_v45 = vadd.f32 %v4328_v8, %v164_v63 }
  0x34   :  { %7479 = vst [vmem:[#allocation40_spill] sm:$0xff] %v4806_v49  ;;  %v4835_v44 = vadd.f32 %v4328_v8, %v165_v46  ;;  %v166_v46 = vmul.f32 %v4323_v7, %v98_v62  ;;  %v100_v62 = vld [vmem:[%s7301_s0 + $0x160] sm:$0xff] }
  0x35   :  { %371 = vst.msk [vmem:[#allocation2 + $0x130] sm:$0xff] %vm332_vm0, %v7339_v21  ;;  %372 = vst.msk [vmem:[#allocation2 + $0x138] sm:$0xff] %vm332_vm0, %v7340_v16  ;;  %v99_v21 = vld [vmem:[%s7301_s0 + $0x158] sm:$0xff]  ;;  %v7344_v16 = vmax.f32 %v4832_v45, 0.0 }
  0x36   :  { %665 = vperm.xlu1 %4212, %v4724_v48   ;;  %1085 = vperm.xlu0 %4213, %v4724_v48   ;;  %7480 = vst [vmem:[#allocation41_spill] sm:$0xff] %v4832_v45  ;;  %7481 = vst [vmem:[#allocation42_spill] sm:$0xff] %v4835_v44  ;;  %v7345_v63 = vmax.f32 %v4835_v44, 0.0  ;;  %v167_v37 = vmul.f32 %v4323_v7, %v99_v21  ;;  %v4861_v36 = vadd.f32 %v4328_v8, %v166_v46  ;;  %v4869_v21 = vld [vmem:[%s7299_s2 + $0x128] sm:$0xff] }
  0x37   :  { %373 = vst.msk [vmem:[#allocation2 + $0x140] sm:$0xff] %vm332_vm0, %v7344_v16  ;;  %v101_v16 = vld [vmem:[%s7301_s0 + $0x168] sm:$0xff] }
  0x38   :  { %374 = vst.msk [vmem:[#allocation2 + $0x148] sm:$0xff] %vm332_vm0, %v7345_v63  ;;  %7482 = vst [vmem:[#allocation43_spill] sm:$0xff] %v4861_v36  ;;  %v4864_v30 = vadd.f32 %v4328_v8, %v167_v37  ;;  %v7350_v63 = vmax.f32 %v4861_v36, 0.0  ;;  %v168_v37 = vmul.f32 %v4323_v7, %v100_v62  ;;  %v169_v1 = vmul.f32 %v4323_v7, %v101_v16  ;;  %v4898_v16 = vld [vmem:[%s7299_s2 + $0x138] sm:$0xff]  ;;  %v102_v62 = vld [vmem:[%s7301_s0 + $0x170] sm:$0xff] }
  0x3a   :  { %675 = vperm.xlu1 %4212, %v4753_v57   ;;  %1093 = vperm.xlu0 %4213, %v4753_v57   ;;  %7483 = vst [vmem:[#allocation44_spill] sm:$0xff] %v4864_v30  ;;  %v7351_v46 = vmax.f32 %v4864_v30, 0.0  ;;  %375 = vst.msk [vmem:[#allocation2 + $0x150] sm:$0xff] %vm332_vm0, %v7350_v63  ;;  %v4890_v0 = vadd.f32 %v4328_v8, %v168_v37  ;;  %v4893_v44 = vadd.f32 %v4328_v8, %v169_v1  ;;  %v103_v63 = vld [vmem:[%s7301_s0 + $0x178] sm:$0xff] }
  0x3b   :  { %v170_v1 = vmul.f32 %v4323_v7, %v102_v62  ;;  %v171_v30 = vmul.f32 %v4323_v7, %v103_v63  ;;  %v4927_v63 = vld [vmem:[%s7299_s2 + $0x148] sm:$0xff]  ;;  %v104_v62 = vld [vmem:[%s7301_s0 + $0x180] sm:$0xff] }
  0x3c   :  { %376 = vst.msk [vmem:[#allocation2 + $0x158] sm:$0xff] %vm332_vm0, %v7351_v46  ;;  %7484 = vst [vmem:[#allocation45_spill] sm:$0xff] %v4890_v0  ;;  %v7355_v46 = vmax.f32 %v4890_v0, 0.0  ;;  %v7356_v37 = vmax.f32 %v4893_v44, 0.0 }
  0x3d   :  { %7485 = vst [vmem:[#allocation46_spill] sm:$0xff] %v4893_v44  ;;  %v4919_v36 = vadd.f32 %v4328_v8, %v170_v1  ;;  %v4922_v45 = vadd.f32 %v4328_v8, %v171_v30  ;;  %v172_v30 = vmul.f32 %v4323_v7, %v104_v62  ;;  %v106_v62 = vld [vmem:[%s7301_s0 + $0x190] sm:$0xff] }
  0x3e   :  { %685 = vperm.xlu1 %4212, %v4782_v27   ;;  %1101 = vperm.xlu0 %4213, %v4782_v27   ;;  %377 = vst.msk [vmem:[#allocation2 + $0x160] sm:$0xff] %vm332_vm0, %v7355_v46  ;;  %378 = vst.msk [vmem:[#allocation2 + $0x168] sm:$0xff] %vm332_vm0, %v7356_v37  ;;  %v105_v46 = vld [vmem:[%s7301_s0 + $0x188] sm:$0xff] }
  0x3f   :  { %7486 = vst [vmem:[#allocation47_spill] sm:$0xff] %v4919_v36  ;;  %7487 = vst [vmem:[#allocation48_spill] sm:$0xff] %v4922_v45  ;;  %v7360_v37 = vmax.f32 %v4919_v36, 0.0  ;;  %v7361_v1 = vmax.f32 %v4922_v45, 0.0  ;;  %v173_v44 = vmul.f32 %v4323_v7, %v105_v46  ;;  %v4948_v0 = vadd.f32 %v4328_v8, %v172_v30  ;;  %v4956_v46 = vld [vmem:[%s7299_s2 + $0x158] sm:$0xff] }
  0x41   :  { %379 = vst.msk [vmem:[#allocation2 + $0x170] sm:$0xff] %vm332_vm0, %v7360_v37  ;;  %380 = vst.msk [vmem:[#allocation2 + $0x178] sm:$0xff] %vm332_vm0, %v7361_v1  ;;  %v4951_v49 = vadd.f32 %v4328_v8, %v173_v44  ;;  %v107_v37 = vld [vmem:[%s7301_s0 + $0x198] sm:$0xff]  ;;  %v7365_v1 = vmax.f32 %v4948_v0, 0.0  ;;  %v174_v44 = vmul.f32 %v4323_v7, %v106_v62  ;;  %v108_v62 = vld [vmem:[%s7301_s0 + $0x1a0] sm:$0xff] }
  0x42   :  { %695 = vperm.xlu1 %4212, %v4811_v51   ;;  %1109 = vperm.xlu0 %4213, %v4811_v51   ;;  %7488 = vst [vmem:[#allocation49_spill] sm:$0xff] %v4948_v0  ;;  %v175_v45 = vmul.f32 %v4323_v7, %v107_v37  ;;  %v4985_v37 = vld [vmem:[%s7299_s2 + $0x168] sm:$0xff] }
  0x43   :  { %7489 = vst [vmem:[#allocation50_spill] sm:$0xff] %v4951_v49  ;;  %v7366_v30 = vmax.f32 %v4951_v49, 0.0  ;;  %381 = vst.msk [vmem:[#allocation2 + $0x180] sm:$0xff] %vm332_vm0, %v7365_v1  ;;  %v4977_v36 = vadd.f32 %v4328_v8, %v174_v44  ;;  %v109_v1 = vld [vmem:[%s7301_s0 + $0x1a8] sm:$0xff] }
  0x44   :  { %v4980_v50 = vadd.f32 %v4328_v8, %v175_v45  ;;  %v176_v45 = vmul.f32 %v4323_v7, %v108_v62  ;;  %v177_v49 = vmul.f32 %v4323_v7, %v109_v1  ;;  %v5014_v1 = vld [vmem:[%s7299_s2 + $0x178] sm:$0xff]  ;;  %v110_v62 = vld [vmem:[%s7301_s0 + $0x1b0] sm:$0xff] }
  0x45   :  { %382 = vst.msk [vmem:[#allocation2 + $0x188] sm:$0xff] %vm332_vm0, %v7366_v30  ;;  %7490 = vst [vmem:[#allocation51_spill] sm:$0xff] %v4977_v36  ;;  %v7370_v30 = vmax.f32 %v4977_v36, 0.0 }
  0x46   :  { %705 = vperm.xlu1 %4212, %v4840_v43   ;;  %1117 = vperm.xlu0 %4213, %v4840_v43   ;;  %7491 = vst [vmem:[#allocation52_spill] sm:$0xff] %v4980_v50  ;;  %v7371_v44 = vmax.f32 %v4980_v50, 0.0  ;;  %v5006_v0 = vadd.f32 %v4328_v8, %v176_v45  ;;  %v5009_v11 = vadd.f32 %v4328_v8, %v177_v49 }
  0x47   :  { %383 = vst.msk [vmem:[#allocation2 + $0x190] sm:$0xff] %vm332_vm0, %v7370_v30  ;;  %v111_v30 = vld [vmem:[%s7301_s0 + $0x1b8] sm:$0xff]  ;;  %v178_v49 = vmul.f32 %v4323_v7, %v110_v62  ;;  %v112_v62 = vld [vmem:[%s7301_s0 + $0x1c0] sm:$0xff] }
  0x48   :  { %384 = vst.msk [vmem:[#allocation2 + $0x198] sm:$0xff] %vm332_vm0, %v7371_v44  ;;  %7492 = vst [vmem:[#allocation53_spill] sm:$0xff] %v5006_v0  ;;  %v7375_v44 = vmax.f32 %v5006_v0, 0.0  ;;  %v7376_v45 = vmax.f32 %v5009_v11, 0.0  ;;  %v179_v50 = vmul.f32 %v4323_v7, %v111_v30  ;;  %v5043_v30 = vld [vmem:[%s7299_s2 + $0x188] sm:$0xff] }
  0x49   :  { %7493 = vst [vmem:[#allocation54_spill] sm:$0xff] %v5009_v11  ;;  %v5035_v36 = vadd.f32 %v4328_v8, %v178_v49 }
  0x4a   :  { %715 = vperm.xlu1 %4212, %v4869_v21   ;;  %1125 = vperm.xlu0 %4213, %v4869_v21   ;;  %385 = vst.msk [vmem:[#allocation2 + $0x1a0] sm:$0xff] %vm332_vm0, %v7375_v44  ;;  %386 = vst.msk [vmem:[#allocation2 + $0x1a8] sm:$0xff] %vm332_vm0, %v7376_v45  ;;  %v5038_v12 = vadd.f32 %v4328_v8, %v179_v50  ;;  %v113_v44 = vld [vmem:[%s7301_s0 + $0x1c8] sm:$0xff]  ;;  %v180_v50 = vmul.f32 %v4323_v7, %v112_v62  ;;  %v114_v62 = vld [vmem:[%s7301_s0 + $0x1d0] sm:$0xff] }
  0x4b   :  { %7494 = vst [vmem:[#allocation55_spill] sm:$0xff] %v5035_v36  ;;  %v7380_v45 = vmax.f32 %v5035_v36, 0.0  ;;  %v181_v11 = vmul.f32 %v4323_v7, %v113_v44  ;;  %v5072_v44 = vld [vmem:[%s7299_s2 + $0x198] sm:$0xff] }
  0x4c   :  { %7495 = vst [vmem:[#allocation56_spill] sm:$0xff] %v5038_v12  ;;  %v7381_v49 = vmax.f32 %v5038_v12, 0.0  ;;  %v5064_v0 = vadd.f32 %v4328_v8, %v180_v50 }
  0x4d   :  { %387 = vst.msk [vmem:[#allocation2 + $0x1b0] sm:$0xff] %vm332_vm0, %v7380_v45  ;;  %v5067_v17 = vadd.f32 %v4328_v8, %v181_v11  ;;  %v115_v45 = vld [vmem:[%s7301_s0 + $0x1d8] sm:$0xff]  ;;  %v182_v11 = vmul.f32 %v4323_v7, %v114_v62  ;;  %v116_v62 = vld [vmem:[%s7301_s0 + $0x1e0] sm:$0xff] }
  0x4e   :  { %725 = vperm.xlu1 %4212, %v4898_v16   ;;  %1133 = vperm.xlu0 %4213, %v4898_v16   ;;  %388 = vst.msk [vmem:[#allocation2 + $0x1b8] sm:$0xff] %vm332_vm0, %v7381_v49  ;;  %7496 = vst [vmem:[#allocation57_spill] sm:$0xff] %v5064_v0  ;;  %v7385_v49 = vmax.f32 %v5064_v0, 0.0  ;;  %v183_v12 = vmul.f32 %v4323_v7, %v115_v45  ;;  %v5101_v45 = vld [vmem:[%s7299_s2 + $0x1a8] sm:$0xff] }
  0x4f   :  { %7497 = vst [vmem:[#allocation58_spill] sm:$0xff] %v5067_v17  ;;  %v7386_v50 = vmax.f32 %v5067_v17, 0.0  ;;  %v5093_v36 = vadd.f32 %v4328_v8, %v182_v11 }
  0x50   :  { %389 = vst.msk [vmem:[#allocation2 + $0x1c0] sm:$0xff] %vm332_vm0, %v7385_v49  ;;  %v5096_v18 = vadd.f32 %v4328_v8, %v183_v12  ;;  %v117_v49 = vld [vmem:[%s7301_s0 + $0x1e8] sm:$0xff]  ;;  %v184_v12 = vmul.f32 %v4323_v7, %v116_v62  ;;  %v118_v62 = vld [vmem:[%s7301_s0 + $0x1f0] sm:$0xff] }
  0x51   :  { %390 = vst.msk [vmem:[#allocation2 + $0x1c8] sm:$0xff] %vm332_vm0, %v7386_v50  ;;  %7498 = vst [vmem:[#allocation59_spill] sm:$0xff] %v5093_v36  ;;  %v7390_v50 = vmax.f32 %v5093_v36, 0.0  ;;  %v185_v17 = vmul.f32 %v4323_v7, %v117_v49  ;;  %v5130_v49 = vld [vmem:[%s7299_s2 + $0x1b8] sm:$0xff] }
  0x52   :  { %735 = vperm.xlu1 %4212, %v4927_v63   ;;  %1141 = vperm.xlu0 %4213, %v4927_v63   ;;  %7499 = vst [vmem:[#allocation60_spill] sm:$0xff] %v5096_v18  ;;  %v7391_v11 = vmax.f32 %v5096_v18, 0.0  ;;  %v5122_v0 = vadd.f32 %v4328_v8, %v184_v12 }
  0x53   :  { %391 = vst.msk [vmem:[#allocation2 + $0x1d0] sm:$0xff] %vm332_vm0, %v7390_v50  ;;  %v5125_v35 = vadd.f32 %v4328_v8, %v185_v17  ;;  %v119_v50 = vld [vmem:[%s7301_s0 + $0x1f8] sm:$0xff]  ;;  %v186_v17 = vmul.f32 %v4323_v7, %v118_v62  ;;  %v320_v62 = vld [vmem:[%s7302_s1] sm:$0xff] }
  0x54   :  { %392 = vst.msk [vmem:[#allocation2 + $0x1d8] sm:$0xff] %vm332_vm0, %v7391_v11  ;;  %7500 = vst [vmem:[#allocation61_spill] sm:$0xff] %v5122_v0  ;;  %v7395_v11 = vmax.f32 %v5122_v0, 0.0  ;;  %v187_v18 = vmul.f32 %v4323_v7, %v119_v50  ;;  %v5159_v50 = vld [vmem:[%s7299_s2 + $0x1c8] sm:$0xff] }
  0x55   :  { %7501 = vst [vmem:[#allocation62_spill] sm:$0xff] %v5125_v35  ;;  %v7396_v12 = vmax.f32 %v5125_v35, 0.0  ;;  %v5151_v36 = vadd.f32 %v4328_v8, %v186_v17 }
  0x56   :  { %745 = vperm.xlu1 %4212, %v4956_v46   ;;  %1149 = vperm.xlu0 %4213, %v4956_v46   ;;  %393 = vst.msk [vmem:[#allocation2 + $0x1e0] sm:$0xff] %vm332_vm0, %v7395_v11  ;;  %v5154_v52 = vadd.f32 %v4328_v8, %v187_v18  ;;  %v321_v11 = vld [vmem:[%s7302_s1 + $0x8] sm:$0xff]  ;;  %v323_v18 = vmul.f32 %v4323_v7, %v320_v62 }
  0x57   :  { %394 = vst.msk [vmem:[#allocation2 + $0x1e8] sm:$0xff] %vm332_vm0, %v7396_v12  ;;  %7502 = vst [vmem:[#allocation63_spill] sm:$0xff] %v5151_v36  ;;  %v7402_v12 = vmax.f32 %v5151_v36, 0.0  ;;  %v324_v35 = vmul.f32 %v4323_v7, %v321_v11  ;;  %v5184_v11 = vld [vmem:[%s7299_s2 + $0x1d8] sm:$0xff]  ;;  %v56_v36 = vld [vmem:[%s7301_s0] sm:$0xff] }
  0x58   :  { %7503 = vst [vmem:[#allocation64_spill] sm:$0xff] %v5154_v52  ;;  %v7403_v17 = vmax.f32 %v5154_v52, 0.0  ;;  %v326_v0 = vadd.f32 %v4328_v8, %v323_v18  ;;  %v5248_v52 = vld [vmem:[%s7299_s2 + $0x20] sm:$0xff] }
  0x59   :  { %395 = vst.msk [vmem:[#allocation2 + $0x1f0] sm:$0xff] %vm332_vm0, %v7402_v12  ;;  %v327_v34 = vadd.f32 %v4328_v8, %v324_v35  ;;  %v57_v12 = vld [vmem:[%s7301_s0 + $0x8] sm:$0xff] }
  0x5a   :  { %755 = vperm.xlu1 %4212, %v4985_v37   ;;  %1157 = vperm.xlu0 %4213, %v4985_v37   ;;  %396 = vst.msk [vmem:[#allocation2 + $0x1f8] sm:$0xff] %vm332_vm0, %v7403_v17  ;;  %v329_v62 = vmax.f32 %v326_v0, 0.0  ;;  %v124_v17 = vmul.f32 %v4323_v7, %v56_v36  ;;  %v125_v18 = vmul.f32 %v4323_v7, %v57_v12  ;;  %v5201_v0 = vld [vmem:[%s7299_s2 + $0x1e8] sm:$0xff] }
  0x5b   :  { %v330_v29 = vmax.f32 %v327_v34, 0.0 }
  0x5c   :  { %397 = vst.msk [vmem:[#allocation2 + $0x200] sm:$0xff] %vm332_vm0, %v329_v62  ;;  %v5204_v35 = vadd.f32 %v4328_v8, %v124_v17  ;;  %v5207_v36 = vadd.f32 %v4328_v8, %v125_v18  ;;  %v5229_v8 = vld [vmem:[%s7299_s2 + $0x8] sm:$0xff]  ;;  %v7508_v62 = vmov 1   ;;  %v7509_v18 = vmov 0  }
  0x5d   :  { %398 = vst.msk [vmem:[#allocation2 + $0x208] sm:$0xff] %vm332_vm0, %v330_v29  ;;  %v5216_v29 = vld [vmem:[%s7299_s2 + $0x1f8] sm:$0xff] }
  0x5e   :  { %765 = vperm.xlu1 %4212, %v5014_v1   ;;  %1165 = vperm.xlu0 %4213, %v5014_v1   ;;  %7504 = vst [vmem:[#allocation65_spill] sm:$0xff] %v5204_v35  ;;  %7505 = vst [vmem:[#allocation66_spill] sm:$0xff] %v5207_v36  ;;  %v7405_v7 = vmax.f32 %v5204_v35, 0.0  ;;  %v7404_v34 = vmax.f32 %v5207_v36, 0.0 }
  0x60   :  { %333 = vst.msk [vmem:[#allocation2] sm:$0xff] %vm332_vm0, %v7405_v7  ;;  %334 = vst.msk [vmem:[#allocation2 + $0x8] sm:$0xff] %vm332_vm0, %v7404_v34 }
  0x62   :  { %775 = vperm.xlu1 %4212, %v5043_v30   ;;  %1173 = vperm.xlu0 %4213, %v5043_v30  }
  0x66   :  { %785 = vperm.xlu1 %4212, %v5072_v44   ;;  %1181 = vperm.xlu0 %4213, %v5072_v44  }
  0x6a   :  { %795 = vperm.xlu1 %4212, %v5101_v45   ;;  %1189 = vperm.xlu0 %4213, %v5101_v45  }
  0x6e   :  { %805 = vperm.xlu1 %4212, %v5130_v49   ;;  %1197 = vperm.xlu0 %4213, %v5130_v49  }
  0x72   :  { %815 = vperm.xlu1 %4212, %v5159_v50   ;;  %1205 = vperm.xlu0 %4213, %v5159_v50  }
  0x76   :  { %825 = vperm.xlu1 %4212, %v5184_v11   ;;  %1213 = vperm.xlu0 %4213, %v5184_v11  }
  0x7a   :  { %835 = vperm.xlu1 %4212, %v5201_v0   ;;  %1221 = vperm.xlu0 %4213, %v5201_v0  }
  0x7e   :  { %845 = vperm.xlu1 %4212, %v5216_v29   ;;  %1229 = vperm.xlu0 %4213, %v5216_v29  }
  0x81   :  { %v5231_v12 = vpop.permute.xlu1 %540  ;;  %v5233_v17 = vpop.permute.xlu0 %977 }
  0x82   :  { %7506 = vst [vmem:[#allocation67_spill] sm:$0xff] %v5231_v12  ;;  %7507 = vst [vmem:[#allocation68_spill] sm:$0xff] %v5233_v17  ;;  %4214 = vset.pattern.permute.xlu1 %v7508_v62  ;;  %4215 = vset.pattern.permute.xlu0 %v7509_v18  ;;  %v5603_v12 = vld [vmem:[%s7299_s2 + $0x18] sm:$0xff] }
  0x83   :  { %981 = vperm.xlu1 %4214, %v5229_v8   ;;  %530 = vperm.xlu0 %4215, %v4307_v3   ;;  %v5259_v3 = vld [vmem:[%s7299_s2 + $0x30] sm:$0xff] }
  0x84   :  { %7514 = vst [vmem:[#allocation73_spill] sm:$0xff] %v5259_v3 }
  0x85   :  { %v5239_v34 = vpop.permute.xlu1 %545  ;;  %v5241_v7 = vpop.permute.xlu0 %989 }
  0x86   :  { %7510 = vst [vmem:[#allocation69_spill] sm:$0xff] %v5239_v34  ;;  %7511 = vst [vmem:[#allocation70_spill] sm:$0xff] %v5241_v7  ;;  %v5582_v7 = vld [vmem:[%s7299_s2] sm:$0xff]  ;;  %v5596_v34 = vld [vmem:[%s7299_s2 + $0x10] sm:$0xff] }
  0x87   :  { %985 = vperm.xlu1 %4214, %v4302_v2   ;;  %535 = vperm.xlu0 %4215, %v5229_v8  }
  0x89   :  { %v5250_v62 = vpop.permute.xlu1 %555  ;;  %v5252_v42 = vpop.permute.xlu0 %997 }
  0x8a   :  { %7512 = vst [vmem:[#allocation71_spill] sm:$0xff] %v5250_v62  ;;  %7513 = vst [vmem:[#allocation72_spill] sm:$0xff] %v5252_v42 }
  0x8b   :  { %993 = vperm.xlu1 %4214, %v5248_v52   ;;  %550 = vperm.xlu0 %4215, %v5248_v52  }
  0x8d   :  { %v5261_v2 = vpop.permute.xlu1 %565  ;;  %v5263_v55 = vpop.permute.xlu0 %1005 }
  0x8e   :  { %7515 = vst [vmem:[#allocation74_spill] sm:$0xff] %v5261_v2  ;;  %7516 = vst [vmem:[#allocation75_spill] sm:$0xff] %v5263_v55 }
  0x8f   :  { %1001 = vperm.xlu1 %4214, %v5259_v3   ;;  %560 = vperm.xlu0 %4215, %v5259_v3  }
  0x91   :  { %v5272_v60 = vpop.permute.xlu1 %575  ;;  %v5274_v23 = vpop.permute.xlu0 %1013 }
  0x92   :  { %7518 = vst [vmem:[#allocation77_spill] sm:$0xff] %v5272_v60  ;;  %7519 = vst [vmem:[#allocation78_spill] sm:$0xff] %v5274_v23 }
  0x93   :  { %1009 = vperm.xlu1 %4214, %v5270_v10   ;;  %570 = vperm.xlu0 %4215, %v5270_v10  }
  0x95   :  { %v5283_v9 = vpop.permute.xlu1 %585  ;;  %v5285_v54 = vpop.permute.xlu0 %1021 }
  0x96   :  { %7521 = vst [vmem:[#allocation80_spill] sm:$0xff] %v5283_v9  ;;  %7522 = vst [vmem:[#allocation81_spill] sm:$0xff] %v5285_v54 }
  0x97   :  { %1017 = vperm.xlu1 %4214, %v5281_v20   ;;  %580 = vperm.xlu0 %4215, %v5281_v20  }
  0x99   :  { %v5294_v41 = vpop.permute.xlu1 %595  ;;  %v5296_v40 = vpop.permute.xlu0 %1029 }
  0x9a   :  { %7524 = vst [vmem:[#allocation83_spill] sm:$0xff] %v5294_v41  ;;  %7525 = vst [vmem:[#allocation84_spill] sm:$0xff] %v5296_v40 }
  0x9b   :  { %1025 = vperm.xlu1 %4214, %v5292_v47   ;;  %590 = vperm.xlu0 %4215, %v5292_v47  }
  0x9d   :  { %v5305_v22 = vpop.permute.xlu1 %605  ;;  %v5307_v13 = vpop.permute.xlu0 %1037 }
  0x9e   :  { %7526 = vst [vmem:[#allocation85_spill] sm:$0xff] %v5305_v22  ;;  %7527 = vst [vmem:[#allocation86_spill] sm:$0xff] %v5307_v13 }
  0x9f   :  { %1033 = vperm.xlu1 %4214, %v5303_v28   ;;  %600 = vperm.xlu0 %4215, %v5303_v28  }
  0xa1   :  { %v5316_v5 = vpop.permute.xlu1 %615  ;;  %v5318_v4 = vpop.permute.xlu0 %1045 }
  0xa2   :  { %7528 = vst [vmem:[#allocation87_spill] sm:$0xff] %v5316_v5  ;;  %7529 = vst [vmem:[#allocation88_spill] sm:$0xff] %v5318_v4 }
  0xa3   :  { %1041 = vperm.xlu1 %4214, %v5314_v6   ;;  %610 = vperm.xlu0 %4215, %v5314_v6  }
  0xa5   :  { %v5327_v58 = vpop.permute.xlu1 %625  ;;  %v5329_v53 = vpop.permute.xlu0 %1053 }
  0xa6   :  { %7530 = vst [vmem:[#allocation89_spill] sm:$0xff] %v5327_v58  ;;  %7531 = vst [vmem:[#allocation90_spill] sm:$0xff] %v5329_v53 }
  0xa7   :  { %1049 = vperm.xlu1 %4214, %v5325_v59   ;;  %620 = vperm.xlu0 %4215, %v5325_v59  }
  0xa9   :  { %v5338_v38 = vpop.permute.xlu1 %635  ;;  %v5340_v33 = vpop.permute.xlu0 %1061 }
  0xaa   :  { %7532 = vst [vmem:[#allocation91_spill] sm:$0xff] %v5338_v38  ;;  %7533 = vst [vmem:[#allocation92_spill] sm:$0xff] %v5340_v33 }
  0xab   :  { %1057 = vperm.xlu1 %4214, %v5336_v39   ;;  %630 = vperm.xlu0 %4215, %v5336_v39  }
  0xad   :  { %v5349_v31 = vpop.permute.xlu1 %645  ;;  %v5351_v26 = vpop.permute.xlu0 %1069 }
  0xae   :  { %7534 = vst [vmem:[#allocation93_spill] sm:$0xff] %v5349_v31  ;;  %7535 = vst [vmem:[#allocation94_spill] sm:$0xff] %v5351_v26  ;;  %v5369_v26 = vld [vmem:[%s7299_s2 + $0xd0] sm:$0xff] }
  0xaf   :  { %1065 = vperm.xlu1 %4214, %v5347_v32   ;;  %640 = vperm.xlu0 %4215, %v5347_v32  }
  0xb1   :  { %v5360_v19 = vpop.permute.xlu1 %655  ;;  %v5362_v36 = vpop.permute.xlu0 %1077 }
  0xb2   :  { %7536 = vst [vmem:[#allocation95_spill] sm:$0xff] %v5360_v19  ;;  %7537 = vst [vmem:[#allocation96_spill] sm:$0xff] %v5362_v36  ;;  %v5380_v36 = vld [vmem:[%s7299_s2 + $0xe0] sm:$0xff] }
  0xb3   :  { %1073 = vperm.xlu1 %4214, %v5358_v25   ;;  %650 = vperm.xlu0 %4215, %v5358_v25  }
  0xb5   :  { %v5371_v31 = vpop.permute.xlu1 %665  ;;  %v5373_v35 = vpop.permute.xlu0 %1085 }
  0xb6   :  { %7538 = vst [vmem:[#allocation97_spill] sm:$0xff] %v5371_v31  ;;  %7539 = vst [vmem:[#allocation98_spill] sm:$0xff] %v5373_v35  ;;  %v5391_v35 = vld [vmem:[%s7299_s2 + $0xf0] sm:$0xff] }
  0xb7   :  { %1081 = vperm.xlu1 %4214, %v5369_v26   ;;  %660 = vperm.xlu0 %4215, %v5369_v26  }
  0xb9   :  { %v5382_v19 = vpop.permute.xlu1 %675  ;;  %v5384_v33 = vpop.permute.xlu0 %1093 }
  0xba   :  { %7540 = vst [vmem:[#allocation99_spill] sm:$0xff] %v5382_v19  ;;  %7541 = vst [vmem:[#allocation100_spill] sm:$0xff] %v5384_v33  ;;  %v5402_v33 = vld [vmem:[%s7299_s2 + $0x100] sm:$0xff] }
  0xbb   :  { %1089 = vperm.xlu1 %4214, %v5380_v36   ;;  %670 = vperm.xlu0 %4215, %v5380_v36  }
  0xbd   :  { %v5393_v31 = vpop.permute.xlu1 %685  ;;  %v5395_v38 = vpop.permute.xlu0 %1101 }
  0xbe   :  { %7542 = vst [vmem:[#allocation101_spill] sm:$0xff] %v5393_v31  ;;  %7543 = vst [vmem:[#allocation102_spill] sm:$0xff] %v5395_v38  ;;  %v5413_v38 = vld [vmem:[%s7299_s2 + $0x110] sm:$0xff] }
  0xbf   :  { %1097 = vperm.xlu1 %4214, %v5391_v35   ;;  %680 = vperm.xlu0 %4215, %v5391_v35  }
  0xc1   :  { %v5404_v19 = vpop.permute.xlu1 %695  ;;  %v5406_v53 = vpop.permute.xlu0 %1109 }
  0xc2   :  { %7544 = vst [vmem:[#allocation103_spill] sm:$0xff] %v5404_v19  ;;  %7545 = vst [vmem:[#allocation104_spill] sm:$0xff] %v5406_v53  ;;  %v5424_v53 = vld [vmem:[%s7299_s2 + $0x120] sm:$0xff] }
  0xc3   :  { %1105 = vperm.xlu1 %4214, %v5402_v33   ;;  %690 = vperm.xlu0 %4215, %v5402_v33  }
  0xc5   :  { %v5415_v31 = vpop.permute.xlu1 %705  ;;  %v5417_v58 = vpop.permute.xlu0 %1117 }
  0xc6   :  { %7546 = vst [vmem:[#allocation105_spill] sm:$0xff] %v5415_v31  ;;  %7547 = vst [vmem:[#allocation106_spill] sm:$0xff] %v5417_v58  ;;  %v5435_v58 = vld [vmem:[%s7299_s2 + $0x130] sm:$0xff] }
  0xc7   :  { %1113 = vperm.xlu1 %4214, %v5413_v38   ;;  %700 = vperm.xlu0 %4215, %v5413_v38  }
  0xc9   :  { %v5426_v19 = vpop.permute.xlu1 %715  ;;  %v5428_v4 = vpop.permute.xlu0 %1125 }
  0xca   :  { %7548 = vst [vmem:[#allocation107_spill] sm:$0xff] %v5426_v19  ;;  %7549 = vst [vmem:[#allocation108_spill] sm:$0xff] %v5428_v4  ;;  %v5446_v4 = vld [vmem:[%s7299_s2 + $0x140] sm:$0xff] }
  0xcb   :  { %1121 = vperm.xlu1 %4214, %v5424_v53   ;;  %710 = vperm.xlu0 %4215, %v5424_v53  }
  0xcd   :  { %v5437_v31 = vpop.permute.xlu1 %725  ;;  %v5439_v5 = vpop.permute.xlu0 %1133 }
  0xce   :  { %7550 = vst [vmem:[#allocation109_spill] sm:$0xff] %v5437_v31  ;;  %7551 = vst [vmem:[#allocation110_spill] sm:$0xff] %v5439_v5  ;;  %v5457_v5 = vld [vmem:[%s7299_s2 + $0x150] sm:$0xff] }
  0xcf   :  { %1129 = vperm.xlu1 %4214, %v5435_v58   ;;  %720 = vperm.xlu0 %4215, %v5435_v58  }
  0xd1   :  { %v5448_v19 = vpop.permute.xlu1 %735  ;;  %v5450_v13 = vpop.permute.xlu0 %1141 }
  0xd2   :  { %7552 = vst [vmem:[#allocation111_spill] sm:$0xff] %v5448_v19  ;;  %7553 = vst [vmem:[#allocation112_spill] sm:$0xff] %v5450_v13  ;;  %v5468_v13 = vld [vmem:[%s7299_s2 + $0x160] sm:$0xff] }
  0xd3   :  { %1137 = vperm.xlu1 %4214, %v5446_v4   ;;  %730 = vperm.xlu0 %4215, %v5446_v4  }
  0xd5   :  { %v5459_v31 = vpop.permute.xlu1 %745  ;;  %v5461_v22 = vpop.permute.xlu0 %1149 }
  0xd6   :  { %7554 = vst [vmem:[#allocation113_spill] sm:$0xff] %v5459_v31  ;;  %7555 = vst [vmem:[#allocation114_spill] sm:$0xff] %v5461_v22  ;;  %v5479_v22 = vld [vmem:[%s7299_s2 + $0x170] sm:$0xff] }
  0xd7   :  { %1145 = vperm.xlu1 %4214, %v5457_v5   ;;  %740 = vperm.xlu0 %4215, %v5457_v5  }
  0xd9   :  { %v5470_v19 = vpop.permute.xlu1 %755  ;;  %v5472_v40 = vpop.permute.xlu0 %1157 }
  0xda   :  { %7556 = vst [vmem:[#allocation115_spill] sm:$0xff] %v5470_v19  ;;  %7557 = vst [vmem:[#allocation116_spill] sm:$0xff] %v5472_v40  ;;  %v5490_v40 = vld [vmem:[%s7299_s2 + $0x180] sm:$0xff] }
  0xdb   :  { %1153 = vperm.xlu1 %4214, %v5468_v13   ;;  %750 = vperm.xlu0 %4215, %v5468_v13  }
  0xdd   :  { %v5481_v31 = vpop.permute.xlu1 %765  ;;  %v5483_v41 = vpop.permute.xlu0 %1165 }
  0xde   :  { %7558 = vst [vmem:[#allocation117_spill] sm:$0xff] %v5481_v31  ;;  %7559 = vst [vmem:[#allocation118_spill] sm:$0xff] %v5483_v41  ;;  %v5501_v41 = vld [vmem:[%s7299_s2 + $0x190] sm:$0xff] }
  0xdf   :  { %1161 = vperm.xlu1 %4214, %v5479_v22   ;;  %760 = vperm.xlu0 %4215, %v5479_v22  }
  0xe1   :  { %v5492_v19 = vpop.permute.xlu1 %775  ;;  %v5494_v54 = vpop.permute.xlu0 %1173 }
  0xe2   :  { %7560 = vst [vmem:[#allocation119_spill] sm:$0xff] %v5492_v19  ;;  %7561 = vst [vmem:[#allocation120_spill] sm:$0xff] %v5494_v54  ;;  %v5512_v54 = vld [vmem:[%s7299_s2 + $0x1a0] sm:$0xff] }
  0xe3   :  { %1169 = vperm.xlu1 %4214, %v5490_v40   ;;  %770 = vperm.xlu0 %4215, %v5490_v40  }
  0xe5   :  { %v5503_v31 = vpop.permute.xlu1 %785  ;;  %v5505_v9 = vpop.permute.xlu0 %1181 }
  0xe6   :  { %7562 = vst [vmem:[#allocation121_spill] sm:$0xff] %v5503_v31  ;;  %7563 = vst [vmem:[#allocation122_spill] sm:$0xff] %v5505_v9  ;;  %v5523_v9 = vld [vmem:[%s7299_s2 + $0x1b0] sm:$0xff] }
  0xe7   :  { %1177 = vperm.xlu1 %4214, %v5501_v41   ;;  %780 = vperm.xlu0 %4215, %v5501_v41  }
  0xe9   :  { %v5514_v19 = vpop.permute.xlu1 %795  ;;  %v5516_v23 = vpop.permute.xlu0 %1189 }
  0xea   :  { %7564 = vst [vmem:[#allocation123_spill] sm:$0xff] %v5514_v19  ;;  %7565 = vst [vmem:[#allocation124_spill] sm:$0xff] %v5516_v23  ;;  %v5534_v23 = vld [vmem:[%s7299_s2 + $0x1c0] sm:$0xff] }
  0xeb   :  { %1185 = vperm.xlu1 %4214, %v5512_v54   ;;  %790 = vperm.xlu0 %4215, %v5512_v54  }
  0xed   :  { %v5525_v31 = vpop.permute.xlu1 %805  ;;  %v5527_v60 = vpop.permute.xlu0 %1197 }
  0xee   :  { %7566 = vst [vmem:[#allocation125_spill] sm:$0xff] %v5525_v31  ;;  %7567 = vst [vmem:[#allocation126_spill] sm:$0xff] %v5527_v60  ;;  %v5545_v60 = vld [vmem:[%s7299_s2 + $0x1d0] sm:$0xff] }
  0xef   :  { %1193 = vperm.xlu1 %4214, %v5523_v9   ;;  %800 = vperm.xlu0 %4215, %v5523_v9  }
  0xf1   :  { %v5536_v19 = vpop.permute.xlu1 %815  ;;  %v5538_v55 = vpop.permute.xlu0 %1205 }
  0xf2   :  { %7568 = vst [vmem:[#allocation127_spill] sm:$0xff] %v5536_v19  ;;  %7569 = vst [vmem:[#allocation128_spill] sm:$0xff] %v5538_v55  ;;  %v5556_v55 = vld [vmem:[%s7299_s2 + $0x1e0] sm:$0xff] }
  0xf3   :  { %1201 = vperm.xlu1 %4214, %v5534_v23   ;;  %810 = vperm.xlu0 %4215, %v5534_v23  }
  0xf5   :  { %v5547_v31 = vpop.permute.xlu1 %825  ;;  %v5549_v2 = vpop.permute.xlu0 %1213 }
  0xf6   :  { %7570 = vst [vmem:[#allocation129_spill] sm:$0xff] %v5547_v31  ;;  %7571 = vst [vmem:[#allocation130_spill] sm:$0xff] %v5549_v2  ;;  %v5567_v2 = vld [vmem:[%s7299_s2 + $0x1f0] sm:$0xff] }
  0xf7   :  { %1209 = vperm.xlu1 %4214, %v5545_v60   ;;  %820 = vperm.xlu0 %4215, %v5545_v60  }
  0xf9   :  { %v5558_v19 = vpop.permute.xlu1 %835  ;;  %v5560_v42 = vpop.permute.xlu0 %1221 }
  0xfa   :  { %7572 = vst [vmem:[#allocation131_spill] sm:$0xff] %v5558_v19  ;;  %7573 = vst [vmem:[#allocation132_spill] sm:$0xff] %v5560_v42 }
  0xfb   :  { %1217 = vperm.xlu1 %4214, %v5556_v55   ;;  %830 = vperm.xlu0 %4215, %v5556_v55  }
  0xfd   :  { %v5569_v31 = vpop.permute.xlu1 %845  ;;  %v5571_v62 = vpop.permute.xlu0 %1229 }
  0xfe   :  { %7574 = vst [vmem:[#allocation133_spill] sm:$0xff] %v5569_v31  ;;  %7575 = vst [vmem:[#allocation134_spill] sm:$0xff] %v5571_v62 }
  0xff   :  { %1225 = vperm.xlu1 %4214, %v5567_v2   ;;  %840 = vperm.xlu0 %4215, %v5567_v2  }
 0x102   :  { %v5575_v19 = vpop.permute.xlu1 %981  ;;  %v5577_v42 = vpop.permute.xlu0 %530 }
 0x103   :  { %7576 = vst [vmem:[#allocation135_spill] sm:$0xff] %v5575_v19  ;;  %7577 = vst [vmem:[#allocation136_spill] sm:$0xff] %v5577_v42  ;;  %1360 = vrot.lane.b32.xlu1 %v5582_v7, %s4258_s20  ;;  %1362 = vrot.lane.b32.xlu0 %v5229_v8, %s4258_s20  ;;  %v5616_v19 = vld [vmem:[%s7299_s2 + $0x28] sm:$0xff] }
 0x104   :  { %4216 = vset.pattern.permute.xlu1 %v7509_v18 }
 0x106   :  { %v5589_v62 = vpop.permute.xlu1 %985  ;;  %v5591_v31 = vpop.permute.xlu0 %535 }
 0x107   :  { %7578 = vst [vmem:[#allocation137_spill] sm:$0xff] %v5589_v62  ;;  %7579 = vst [vmem:[#allocation138_spill] sm:$0xff] %v5591_v31  ;;  %1364 = vrot.lane.b32.xlu1 %v5596_v34, %s4258_s20  ;;  %1366 = vrot.lane.b32.xlu0 %v5603_v12, %s4258_s20 }
 0x10a   :  { %v5607_v18 = vpop.permute.xlu1 %993  ;;  %v5609_v62 = vpop.permute.xlu0 %550 }
 0x10b   :  { %7580 = vst [vmem:[#allocation139_spill] sm:$0xff] %v5607_v18  ;;  %7581 = vst [vmem:[#allocation140_spill] sm:$0xff] %v5609_v62  ;;  %1368 = vrot.lane.b32.xlu1 %v5248_v52, %s4258_s20  ;;  %1370 = vrot.lane.b32.xlu0 %v5616_v19, %s4258_s20  ;;  %v5629_v18 = vld [vmem:[%s7299_s2 + $0x38] sm:$0xff] }
 0x10e   :  { %v5620_v31 = vpop.permute.xlu1 %1001  ;;  %v5622_v17 = vpop.permute.xlu0 %560 }
 0x10f   :  { %7582 = vst [vmem:[#allocation141_spill] sm:$0xff] %v5620_v31  ;;  %7583 = vst [vmem:[#allocation142_spill] sm:$0xff] %v5622_v17  ;;  %1372 = vrot.lane.b32.xlu1 %v5259_v3, %s4258_s20  ;;  %1374 = vrot.lane.b32.xlu0 %v5629_v18, %s4258_s20  ;;  %v5642_v31 = vld [vmem:[%s7299_s2 + $0x48] sm:$0xff] }
 0x112   :  { %v5633_v62 = vpop.permute.xlu1 %1009  ;;  %v5635_v42 = vpop.permute.xlu0 %570 }
 0x113   :  { %7584 = vst [vmem:[#allocation143_spill] sm:$0xff] %v5633_v62  ;;  %7585 = vst [vmem:[#allocation144_spill] sm:$0xff] %v5635_v42  ;;  %1376 = vrot.lane.b32.xlu1 %v5270_v10, %s4258_s20  ;;  %1378 = vrot.lane.b32.xlu0 %v5642_v31, %s4258_s20  ;;  %v5655_v62 = vld [vmem:[%s7299_s2 + $0x58] sm:$0xff] }
 0x116   :  { %v5646_v17 = vpop.permute.xlu1 %1017  ;;  %v5648_v3 = vpop.permute.xlu0 %580 }
 0x117   :  { %7586 = vst [vmem:[#allocation145_spill] sm:$0xff] %v5646_v17  ;;  %7587 = vst [vmem:[#allocation146_spill] sm:$0xff] %v5648_v3  ;;  %1380 = vrot.lane.b32.xlu1 %v5281_v20, %s4258_s20  ;;  %1382 = vrot.lane.b32.xlu0 %v5655_v62, %s4258_s20  ;;  %v5668_v17 = vld [vmem:[%s7299_s2 + $0x68] sm:$0xff] }
 0x11a   :  { %v5659_v42 = vpop.permute.xlu1 %1025  ;;  %v5661_v10 = vpop.permute.xlu0 %590 }
 0x11b   :  { %7588 = vst [vmem:[#allocation147_spill] sm:$0xff] %v5659_v42  ;;  %7589 = vst [vmem:[#allocation148_spill] sm:$0xff] %v5661_v10  ;;  %1384 = vrot.lane.b32.xlu1 %v5292_v47, %s4258_s20  ;;  %1386 = vrot.lane.b32.xlu0 %v5668_v17, %s4258_s20  ;;  %v5681_v42 = vld [vmem:[%s7299_s2 + $0x78] sm:$0xff] }
 0x11c   :  { %7592 = vst [vmem:[#allocation151_spill] sm:$0xff] %v5681_v42 }
 0x11e   :  { %v5672_v3 = vpop.permute.xlu1 %1033  ;;  %v5674_v20 = vpop.permute.xlu0 %600 }
 0x11f   :  { %7590 = vst [vmem:[#allocation149_spill] sm:$0xff] %v5672_v3  ;;  %7591 = vst [vmem:[#allocation150_spill] sm:$0xff] %v5674_v20  ;;  %1388 = vrot.lane.b32.xlu1 %v5303_v28, %s4258_s20  ;;  %1390 = vrot.lane.b32.xlu0 %v5681_v42, %s4258_s20 }
 0x122   :  { %v5685_v10 = vpop.permute.xlu1 %1041  ;;  %v5687_v47 = vpop.permute.xlu0 %610 }
 0x123   :  { %7593 = vst [vmem:[#allocation152_spill] sm:$0xff] %v5685_v10  ;;  %1392 = vrot.lane.b32.xlu1 %v5314_v6, %s4258_s20  ;;  %1394 = vrot.lane.b32.xlu0 %v4563_v56, %s4258_s20 }
 0x126   :  { %v5693_v3 = vpop.permute.xlu1 %1049  ;;  %v5695_v20 = vpop.permute.xlu0 %620 }
 0x127   :  { %7594 = vst [vmem:[#allocation153_spill] sm:$0xff] %v5693_v3  ;;  %1396 = vrot.lane.b32.xlu1 %v5325_v59, %s4258_s20  ;;  %1398 = vrot.lane.b32.xlu0 %v4605_v24, %s4258_s20 }
 0x12a   :  { %v5701_v42 = vpop.permute.xlu1 %1057  ;;  %v5703_v10 = vpop.permute.xlu0 %630 }
 0x12b   :  { %7595 = vst [vmem:[#allocation154_spill] sm:$0xff] %v5701_v42  ;;  %1400 = vrot.lane.b32.xlu1 %v5336_v39, %s4258_s20  ;;  %1402 = vrot.lane.b32.xlu0 %v4634_v61, %s4258_s20 }
 0x12e   :  { %v5709_v56 = vpop.permute.xlu1 %1065  ;;  %v5711_v3 = vpop.permute.xlu0 %640 }
 0x12f   :  { %7596 = vst [vmem:[#allocation155_spill] sm:$0xff] %v5709_v56  ;;  %1404 = vrot.lane.b32.xlu1 %v5347_v32, %s4258_s20  ;;  %1406 = vrot.lane.b32.xlu0 %v4660_v14, %s4258_s20 }
 0x132   :  { %v5717_v24 = vpop.permute.xlu1 %1073  ;;  %v5719_v42 = vpop.permute.xlu0 %650 }
 0x133   :  { %7597 = vst [vmem:[#allocation156_spill] sm:$0xff] %v5717_v24  ;;  %1408 = vrot.lane.b32.xlu1 %v5358_v25, %s4258_s20  ;;  %1410 = vrot.lane.b32.xlu0 %v4692_v15, %s4258_s20 }
 0x136   :  { %v5725_v61 = vpop.permute.xlu1 %1081  ;;  %v5727_v56 = vpop.permute.xlu0 %660 }
 0x137   :  { %7598 = vst [vmem:[#allocation157_spill] sm:$0xff] %v5725_v61  ;;  %1412 = vrot.lane.b32.xlu1 %v5369_v26, %s4258_s20  ;;  %1414 = vrot.lane.b32.xlu0 %v4724_v48, %s4258_s20 }
 0x13a   :  { %v5733_v14 = vpop.permute.xlu1 %1089  ;;  %v5735_v24 = vpop.permute.xlu0 %670 }
 0x13b   :  { %7599 = vst [vmem:[#allocation158_spill] sm:$0xff] %v5733_v14  ;;  %1416 = vrot.lane.b32.xlu1 %v5380_v36, %s4258_s20  ;;  %1418 = vrot.lane.b32.xlu0 %v4753_v57, %s4258_s20 }
 0x13e   :  { %v5741_v15 = vpop.permute.xlu1 %1097  ;;  %v5743_v61 = vpop.permute.xlu0 %680 }
 0x13f   :  { %7600 = vst [vmem:[#allocation159_spill] sm:$0xff] %v5741_v15  ;;  %1420 = vrot.lane.b32.xlu1 %v5391_v35, %s4258_s20  ;;  %1422 = vrot.lane.b32.xlu0 %v4782_v27, %s4258_s20 }
 0x142   :  { %v5749_v48 = vpop.permute.xlu1 %1105  ;;  %v5751_v14 = vpop.permute.xlu0 %690 }
 0x143   :  { %7601 = vst [vmem:[#allocation160_spill] sm:$0xff] %v5749_v48  ;;  %1424 = vrot.lane.b32.xlu1 %v5402_v33, %s4258_s20  ;;  %1426 = vrot.lane.b32.xlu0 %v4811_v51, %s4258_s20 }
 0x146   :  { %v5757_v57 = vpop.permute.xlu1 %1113  ;;  %v5759_v15 = vpop.permute.xlu0 %700 }
 0x147   :  { %7602 = vst [vmem:[#allocation161_spill] sm:$0xff] %v5757_v57  ;;  %1428 = vrot.lane.b32.xlu1 %v5413_v38, %s4258_s20  ;;  %1430 = vrot.lane.b32.xlu0 %v4840_v43, %s4258_s20 }
 0x14a   :  { %v5765_v27 = vpop.permute.xlu1 %1121  ;;  %v5767_v48 = vpop.permute.xlu0 %710 }
 0x14b   :  { %7603 = vst [vmem:[#allocation162_spill] sm:$0xff] %v5765_v27  ;;  %1432 = vrot.lane.b32.xlu1 %v5424_v53, %s4258_s20  ;;  %1434 = vrot.lane.b32.xlu0 %v4869_v21, %s4258_s20 }
 0x14e   :  { %v5773_v51 = vpop.permute.xlu1 %1129  ;;  %v5775_v57 = vpop.permute.xlu0 %720 }
 0x14f   :  { %7604 = vst [vmem:[#allocation163_spill] sm:$0xff] %v5773_v51  ;;  %1436 = vrot.lane.b32.xlu1 %v5435_v58, %s4258_s20  ;;  %1438 = vrot.lane.b32.xlu0 %v4898_v16, %s4258_s20 }
 0x152   :  { %v5781_v43 = vpop.permute.xlu1 %1137  ;;  %v5783_v27 = vpop.permute.xlu0 %730 }
 0x153   :  { %7605 = vst [vmem:[#allocation164_spill] sm:$0xff] %v5781_v43  ;;  %1440 = vrot.lane.b32.xlu1 %v5446_v4, %s4258_s20  ;;  %1442 = vrot.lane.b32.xlu0 %v4927_v63, %s4258_s20 }
 0x156   :  { %v5789_v21 = vpop.permute.xlu1 %1145  ;;  %v5791_v51 = vpop.permute.xlu0 %740 }
 0x157   :  { %7606 = vst [vmem:[#allocation165_spill] sm:$0xff] %v5789_v21  ;;  %1444 = vrot.lane.b32.xlu1 %v5457_v5, %s4258_s20  ;;  %1446 = vrot.lane.b32.xlu0 %v4956_v46, %s4258_s20 }
 0x15a   :  { %v5797_v16 = vpop.permute.xlu1 %1153  ;;  %v5799_v43 = vpop.permute.xlu0 %750 }
 0x15b   :  { %7607 = vst [vmem:[#allocation166_spill] sm:$0xff] %v5797_v16  ;;  %7608 = vst [vmem:[#allocation167_spill] sm:$0xff] %v5799_v43  ;;  %1448 = vrot.lane.b32.xlu1 %v5468_v13, %s4258_s20  ;;  %1450 = vrot.lane.b32.xlu0 %v4985_v37, %s4258_s20 }
 0x15e   :  { %v5805_v63 = vpop.permute.xlu1 %1161  ;;  %v5807_v21 = vpop.permute.xlu0 %760 }
 0x15f   :  { %7609 = vst [vmem:[#allocation168_spill] sm:$0xff] %v5805_v63  ;;  %7610 = vst [vmem:[#allocation169_spill] sm:$0xff] %v5807_v21  ;;  %1452 = vrot.lane.b32.xlu1 %v5479_v22, %s4258_s20  ;;  %1454 = vrot.lane.b32.xlu0 %v5014_v1, %s4258_s20  ;;  %v928_v21 = vld [vmem:[#allocation2 + $0x90] sm:$0xff] }
 0x162   :  { %v5813_v46 = vpop.permute.xlu1 %1169  ;;  %v5815_v16 = vpop.permute.xlu0 %770 }
 0x163   :  { %7611 = vst [vmem:[#allocation170_spill] sm:$0xff] %v5813_v46  ;;  %7612 = vst [vmem:[#allocation171_spill] sm:$0xff] %v5815_v16  ;;  %1456 = vrot.lane.b32.xlu1 %v5490_v40, %s4258_s20  ;;  %1458 = vrot.lane.b32.xlu0 %v5043_v30, %s4258_s20  ;;  %v1311_v16 = vld [vmem:[#allocation2 + $0x89] sm:$0xff] }
 0x166   :  { %v5821_v37 = vpop.permute.xlu1 %1177  ;;  %v5823_v63 = vpop.permute.xlu0 %780 }
 0x167   :  { %7613 = vst [vmem:[#allocation172_spill] sm:$0xff] %v5821_v37  ;;  %7614 = vst [vmem:[#allocation173_spill] sm:$0xff] %v5823_v63  ;;  %1460 = vrot.lane.b32.xlu1 %v5501_v41, %s4258_s20  ;;  %1462 = vrot.lane.b32.xlu0 %v5072_v44, %s4258_s20 }
 0x16a   :  { %v5829_v1 = vpop.permute.xlu1 %1185  ;;  %v5831_v46 = vpop.permute.xlu0 %790 }
 0x16b   :  { %7615 = vst [vmem:[#allocation174_spill] sm:$0xff] %v5829_v1  ;;  %7616 = vst [vmem:[#allocation175_spill] sm:$0xff] %v5831_v46  ;;  %1464 = vrot.lane.b32.xlu1 %v5512_v54, %s4258_s20  ;;  %1466 = vrot.lane.b32.xlu0 %v5101_v45, %s4258_s20  ;;  %v926_v46 = vld [vmem:[#allocation2 + $0x80] sm:$0xff] }
 0x16e   :  { %v5837_v30 = vpop.permute.xlu1 %1193  ;;  %v5839_v37 = vpop.permute.xlu0 %800 }
 0x16f   :  { %7617 = vst [vmem:[#allocation176_spill] sm:$0xff] %v5837_v30  ;;  %7618 = vst [vmem:[#allocation177_spill] sm:$0xff] %v5839_v37  ;;  %1468 = vrot.lane.b32.xlu1 %v5523_v9, %s4258_s20  ;;  %1470 = vrot.lane.b32.xlu0 %v5130_v49, %s4258_s20  ;;  %v927_v37 = vld [vmem:[#allocation2 + $0x88] sm:$0xff] }
 0x172   :  { %v5845_v44 = vpop.permute.xlu1 %1201  ;;  %v5847_v1 = vpop.permute.xlu0 %810 }
 0x173   :  { %7619 = vst [vmem:[#allocation178_spill] sm:$0xff] %v5845_v44  ;;  %7620 = vst [vmem:[#allocation179_spill] sm:$0xff] %v5847_v1  ;;  %1472 = vrot.lane.b32.xlu1 %v5534_v23, %s4258_s20  ;;  %1474 = vrot.lane.b32.xlu0 %v5159_v50, %s4258_s20 }
 0x176   :  { %v5853_v45 = vpop.permute.xlu1 %1209  ;;  %v5855_v30 = vpop.permute.xlu0 %820 }
 0x177   :  { %7621 = vst [vmem:[#allocation180_spill] sm:$0xff] %v5853_v45  ;;  %7622 = vst [vmem:[#allocation181_spill] sm:$0xff] %v5855_v30  ;;  %1476 = vrot.lane.b32.xlu1 %v5545_v60, %s4258_s20  ;;  %1478 = vrot.lane.b32.xlu0 %v5184_v11, %s4258_s20 }
 0x17a   :  { %v5861_v49 = vpop.permute.xlu1 %1217  ;;  %v5863_v44 = vpop.permute.xlu0 %830 }
 0x17b   :  { %7623 = vst [vmem:[#allocation182_spill] sm:$0xff] %v5861_v49  ;;  %7624 = vst [vmem:[#allocation183_spill] sm:$0xff] %v5863_v44  ;;  %1480 = vrot.lane.b32.xlu1 %v5556_v55, %s4258_s20  ;;  %1482 = vrot.lane.b32.xlu0 %v5201_v0, %s4258_s20 }
 0x17e   :  { %v5869_v23 = vpop.permute.xlu1 %1225  ;;  %v5871_v50 = vpop.permute.xlu0 %840 }
 0x17f   :  { %7625 = vst [vmem:[#allocation184_spill] sm:$0xff] %v5869_v23  ;;  %7626 = vst [vmem:[#allocation185_spill] sm:$0xff] %v5871_v50  ;;  %1484 = vrot.lane.b32.xlu1 %v5567_v2, %s4258_s20  ;;  %1486 = vrot.lane.b32.xlu0 %v5216_v29, %s4258_s20 }
 0x182   :  { %v1361_v60 = vpop.permute.xlu1 %1360  ;;  %v1363_v11 = vpop.permute.xlu0 %1362 }
 0x183   :  { %v1552_v49 = vmul.f32 %v5582_v7, %v1361_v60  ;;  %v1553_v44 = vmul.f32 %v1363_v11, %v5229_v8  ;;  %v7627_v8 = vld [vmem:[#allocation73_spill] sm:$0xff] }
 0x185   :  { %1618 = vperm.xlu1 %4216, %v1552_v49   ;;  %1623 = vperm.xlu0 %4215, %v1553_v44  }
 0x186   :  { %v1365_v55 = vpop.permute.xlu1 %1364  ;;  %v1367_v0 = vpop.permute.xlu0 %1366 }
 0x187   :  { %v1554_v23 = vmul.f32 %v5596_v34, %v1365_v55  ;;  %v1555_v2 = vmul.f32 %v5603_v12, %v1367_v0 }
 0x189   :  { %1628 = vperm.xlu1 %4216, %v1554_v23   ;;  %v7628_v23 = vld [vmem:[#allocation76_spill] sm:$0xff] }
 0x18a   :  { %v1369_v50 = vpop.permute.xlu1 %1368  ;;  %v1371_v45 = vpop.permute.xlu0 %1370 }
 0x18b   :  { %v1556_v30 = vmul.f32 %v1369_v50, %v5248_v52  ;;  %v1557_v7 = vmul.f32 %v5616_v19, %v1371_v45  ;;  %v7629_v50 = vld [vmem:[#allocation79_spill] sm:$0xff] }
 0x18d   :  { %1638 = vperm.xlu0 %4215, %v1556_v30   ;;  %1633 = vperm.xlu1 %4216, %v1555_v2   ;;  %v7630_v2 = vld [vmem:[#allocation82_spill] sm:$0xff] }
 0x18e   :  { %v1373_v29 = vpop.permute.xlu1 %1372  ;;  %v1375_v1 = vpop.permute.xlu0 %1374 }
 0x18f   :  { %v1558_v49 = vmul.f32 %v1373_v29, %v7627_v8  ;;  %v1559_v34 = vmul.f32 %v5629_v18, %v1375_v1 }
 0x191   :  { %1648 = vperm.xlu0 %4215, %v1558_v49   ;;  %1643 = vperm.xlu1 %4216, %v1557_v7  }
 0x192   :  { %v1377_v44 = vpop.permute.xlu1 %1376  ;;  %v1379_v60 = vpop.permute.xlu0 %1378 }
 0x193   :  { %v1560_v11 = vmul.f32 %v1377_v44, %v7628_v23  ;;  %v1561_v30 = vmul.f32 %v5642_v31, %v1379_v60  ;;  %v7631_v44 = vld [vmem:[#allocation151_spill] sm:$0xff] }
 0x195   :  { %1658 = vperm.xlu0 %4215, %v1560_v11   ;;  %1653 = vperm.xlu1 %4216, %v1559_v34   ;;  %v4226_v11 = vld [vmem:[%s7299_s2 + $0x88] sm:$0xff] }
 0x196   :  { %v1381_v12 = vpop.permute.xlu1 %1380  ;;  %v1383_v52 = vpop.permute.xlu0 %1382 }
 0x197   :  { %v1562_v55 = vmul.f32 %v1381_v12, %v7629_v50  ;;  %v1563_v0 = vmul.f32 %v5655_v62, %v1383_v52 }
 0x199   :  { %1668 = vperm.xlu0 %4215, %v1562_v55   ;;  %1663 = vperm.xlu1 %4216, %v1561_v30   ;;  %v4227_v30 = vld [vmem:[%s7299_s2 + $0x98] sm:$0xff] }
 0x19a   :  { %v1385_v19 = vpop.permute.xlu1 %1384  ;;  %v1387_v45 = vpop.permute.xlu0 %1386 }
 0x19b   :  { %v1564_v29 = vmul.f32 %v1385_v19, %v7630_v2  ;;  %v1565_v7 = vmul.f32 %v5668_v17, %v1387_v45  ;;  %v4228_v45 = vld [vmem:[%s7299_s2 + $0xa8] sm:$0xff] }
 0x19d   :  { %1678 = vperm.xlu0 %4215, %v1564_v29   ;;  %1673 = vperm.xlu1 %4216, %v1563_v0  }
 0x19e   :  { %v1389_v18 = vpop.permute.xlu1 %1388  ;;  %v1391_v1 = vpop.permute.xlu0 %1390 }
 0x19f   :  { %v1566_v8 = vmul.f32 %v1389_v18, %v5303_v28  ;;  %v1567_v60 = vmul.f32 %v7631_v44, %v1391_v1  ;;  %v4229_v18 = vld [vmem:[%s7299_s2 + $0xb8] sm:$0xff] }
 0x1a1   :  { %1688 = vperm.xlu0 %4215, %v1566_v8   ;;  %1683 = vperm.xlu1 %4216, %v1565_v7  }
 0x1a2   :  { %v1393_v31 = vpop.permute.xlu1 %1392  ;;  %v1395_v49 = vpop.permute.xlu0 %1394 }
 0x1a3   :  { %v1568_v34 = vmul.f32 %v1393_v31, %v5314_v6  ;;  %v1569_v12 = vmul.f32 %v4226_v11, %v1395_v49  ;;  %v4230_v31 = vld [vmem:[%s7299_s2 + $0xc8] sm:$0xff] }
 0x1a5   :  { %1698 = vperm.xlu0 %4215, %v1568_v34   ;;  %1693 = vperm.xlu1 %4216, %v1567_v60   ;;  %v4231_v34 = vld [vmem:[%s7299_s2 + $0xd8] sm:$0xff] }
 0x1a6   :  { %v1397_v62 = vpop.permute.xlu1 %1396  ;;  %v1399_v23 = vpop.permute.xlu0 %1398 }
 0x1a7   :  { %v1570_v17 = vmul.f32 %v1397_v62, %v5325_v59  ;;  %v1571_v6 = vmul.f32 %v4227_v30, %v1399_v23  ;;  %v4233_v30 = vld [vmem:[%s7299_s2 + $0xf8] sm:$0xff] }
 0x1a9   :  { %1708 = vperm.xlu0 %4215, %v1570_v17   ;;  %1703 = vperm.xlu1 %4216, %v1569_v12   ;;  %v4232_v12 = vld [vmem:[%s7299_s2 + $0xe8] sm:$0xff] }
 0x1aa   :  { %v1401_v28 = vpop.permute.xlu1 %1400  ;;  %v1403_v52 = vpop.permute.xlu0 %1402 }
 0x1ab   :  { %v1572_v50 = vmul.f32 %v1401_v28, %v5336_v39  ;;  %v1573_v59 = vmul.f32 %v4228_v45, %v1403_v52 }
 0x1ad   :  { %1718 = vperm.xlu0 %4215, %v1572_v50   ;;  %1713 = vperm.xlu1 %4216, %v1571_v6  }
 0x1ae   :  { %v1405_v55 = vpop.permute.xlu1 %1404  ;;  %v1407_v19 = vpop.permute.xlu0 %1406 }
 0x1af   :  { %v1574_v0 = vmul.f32 %v1405_v55, %v5347_v32  ;;  %v1575_v39 = vmul.f32 %v4229_v18, %v1407_v19  ;;  %v4234_v19 = vld [vmem:[%s7299_s2 + $0x108] sm:$0xff] }
 0x1b1   :  { %1728 = vperm.xlu0 %4215, %v1574_v0   ;;  %1723 = vperm.xlu1 %4216, %v1573_v59  }
 0x1b2   :  { %v1409_v2 = vpop.permute.xlu1 %1408  ;;  %v1411_v29 = vpop.permute.xlu0 %1410 }
 0x1b3   :  { %v1576_v1 = vmul.f32 %v1409_v2, %v5358_v25  ;;  %v1577_v32 = vmul.f32 %v4230_v31, %v1411_v29  ;;  %v4235_v2 = vld [vmem:[%s7299_s2 + $0x118] sm:$0xff] }
 0x1b5   :  { %1738 = vperm.xlu0 %4215, %v1576_v1   ;;  %1733 = vperm.xlu1 %4216, %v1575_v39   ;;  %v4236_v1 = vld [vmem:[%s7299_s2 + $0x128] sm:$0xff] }
 0x1b6   :  { %v1413_v7 = vpop.permute.xlu1 %1412  ;;  %v1415_v8 = vpop.permute.xlu0 %1414 }
 0x1b7   :  { %v1578_v49 = vmul.f32 %v1413_v7, %v5369_v26  ;;  %v1579_v25 = vmul.f32 %v4231_v34, %v1415_v8  ;;  %v4238_v34 = vld [vmem:[%s7299_s2 + $0x148] sm:$0xff] }
 0x1b9   :  { %1748 = vperm.xlu0 %4215, %v1578_v49   ;;  %1743 = vperm.xlu1 %4216, %v1577_v32   ;;  %v4237_v32 = vld [vmem:[%s7299_s2 + $0x138] sm:$0xff] }
 0x1ba   :  { %v1417_v44 = vpop.permute.xlu1 %1416  ;;  %v1419_v60 = vpop.permute.xlu0 %1418 }
 0x1bb   :  { %v1580_v62 = vmul.f32 %v1417_v44, %v5380_v36  ;;  %v1581_v26 = vmul.f32 %v4232_v12, %v1419_v60 }
 0x1bd   :  { %1758 = vperm.xlu0 %4215, %v1580_v62   ;;  %1753 = vperm.xlu1 %4216, %v1579_v25  }
 0x1be   :  { %v1421_v23 = vpop.permute.xlu1 %1420  ;;  %v1423_v11 = vpop.permute.xlu0 %1422 }
 0x1bf   :  { %v1582_v17 = vmul.f32 %v1421_v23, %v5391_v35  ;;  %v1583_v36 = vmul.f32 %v4233_v30, %v1423_v11  ;;  %v4239_v11 = vld [vmem:[%s7299_s2 + $0x158] sm:$0xff] }
 0x1c1   :  { %1768 = vperm.xlu0 %4215, %v1582_v17   ;;  %1763 = vperm.xlu1 %4216, %v1581_v26  }
 0x1c2   :  { %v1425_v28 = vpop.permute.xlu1 %1424  ;;  %v1427_v52 = vpop.permute.xlu0 %1426 }
 0x1c3   :  { %v1584_v6 = vmul.f32 %v1425_v28, %v5402_v33  ;;  %v1585_v35 = vmul.f32 %v4234_v19, %v1427_v52  ;;  %v4240_v28 = vld [vmem:[%s7299_s2 + $0x168] sm:$0xff] }
 0x1c5   :  { %1778 = vperm.xlu0 %4215, %v1584_v6   ;;  %1773 = vperm.xlu1 %4216, %v1583_v36   ;;  %v4241_v6 = vld [vmem:[%s7299_s2 + $0x178] sm:$0xff] }
 0x1c6   :  { %v1429_v50 = vpop.permute.xlu1 %1428  ;;  %v1431_v55 = vpop.permute.xlu0 %1430 }
 0x1c7   :  { %v1586_v45 = vmul.f32 %v1429_v50, %v5413_v38  ;;  %v1587_v33 = vmul.f32 %v4235_v2, %v1431_v55  ;;  %v4243_v2 = vld [vmem:[%s7299_s2 + $0x198] sm:$0xff] }
 0x1c9   :  { %1788 = vperm.xlu0 %4215, %v1586_v45   ;;  %1783 = vperm.xlu1 %4216, %v1585_v35   ;;  %v4242_v35 = vld [vmem:[%s7299_s2 + $0x188] sm:$0xff] }
 0x1ca   :  { %v1433_v59 = vpop.permute.xlu1 %1432  ;;  %v1435_v0 = vpop.permute.xlu0 %1434 }
 0x1cb   :  { %v1588_v29 = vmul.f32 %v1433_v59, %v5424_v53  ;;  %v1589_v38 = vmul.f32 %v4236_v1, %v1435_v0 }
 0x1cd   :  { %1798 = vperm.xlu0 %4215, %v1588_v29   ;;  %1793 = vperm.xlu1 %4216, %v1587_v33  }
 0x1ce   :  { %v1437_v18 = vpop.permute.xlu1 %1436  ;;  %v1439_v39 = vpop.permute.xlu0 %1438 }
 0x1cf   :  { %v1590_v7 = vmul.f32 %v1437_v18, %v5435_v58  ;;  %v1591_v53 = vmul.f32 %v4237_v32, %v1439_v39  ;;  %v4244_v39 = vld [vmem:[%s7299_s2 + $0x1a8] sm:$0xff]  ;;  %v4245_v32 = vld [vmem:[%s7299_s2 + $0x1b8] sm:$0xff] }
 0x1d1   :  { %1808 = vperm.xlu0 %4215, %v1590_v7   ;;  %1803 = vperm.xlu1 %4216, %v1589_v38   ;;  %v464_v38 = vld [vmem:[#allocation2 + $0x1] sm:$0xff] }
 0x1d2   :  { %v1441_v8 = vpop.permute.xlu1 %1440  ;;  %v1443_v31 = vpop.permute.xlu0 %1442 }
 0x1d3   :  { %v1592_v49 = vmul.f32 %v1441_v8, %v5446_v4  ;;  %v1593_v58 = vmul.f32 %v4238_v34, %v1443_v31  ;;  %v7632_v31 = vld [vmem:[#allocation136_spill] sm:$0xff] }
 0x1d4   :  { %v7633_v34 = vld [vmem:[#allocation68_spill] sm:$0xff] }
 0x1d5   :  { %1818 = vperm.xlu0 %4215, %v1592_v49   ;;  %1813 = vperm.xlu1 %4216, %v1591_v53   ;;  %v912_v49 = vld [vmem:[#allocation2 + $0x10] sm:$0xff] }
 0x1d6   :  { %v1445_v44 = vpop.permute.xlu1 %1444  ;;  %v1447_v60 = vpop.permute.xlu0 %1446 }
 0x1d7   :  { %v1594_v25 = vmul.f32 %v1445_v44, %v5457_v5  ;;  %v1595_v4 = vmul.f32 %v4239_v11, %v1447_v60  ;;  %v465_v44 = vld [vmem:[#allocation2 + $0x9] sm:$0xff] }
 0x1d8   :  { %v2001_v11 = vld [vmem:[%s7303_s4 + $0x8] sm:$0xff] }
 0x1d9   :  { %1828 = vperm.xlu0 %4215, %v1594_v25   ;;  %1823 = vperm.xlu1 %4216, %v1593_v58   ;;  %v1232_v58 = vmul.f32 %v7633_v34, %v912_v49  ;;  %v7634_v25 = vld [vmem:[#allocation138_spill] sm:$0xff] }
 0x1da   :  { %v1449_v62 = vpop.permute.xlu1 %1448  ;;  %v1451_v23 = vpop.permute.xlu0 %1450  ;;  %v1299_v49 = vld [vmem:[#allocation2 + $0x29] sm:$0xff] }
 0x1db   :  { %v1596_v12 = vmul.f32 %v1449_v62, %v5468_v13  ;;  %v1597_v5 = vmul.f32 %v4240_v28, %v1451_v23  ;;  %v849_v62 = vmul.f32 %v7634_v25, %v465_v44  ;;  %v2000_v23 = vld [vmem:[%s7303_s4] sm:$0xff]  ;;  %v7635_v28 = vld [vmem:[#allocation135_spill] sm:$0xff] }
 0x1dc   :  { %v468_v44 = vld [vmem:[#allocation2 + $0x21] sm:$0xff] }
 0x1dd   :  { %1838 = vperm.xlu0 %4215, %v1596_v12   ;;  %1833 = vperm.xlu1 %4216, %v1595_v4   ;;  %v913_v4 = vld [vmem:[#allocation2 + $0x18] sm:$0xff]  ;;  %v4194_v12 = vpack.c.bf16 %v2001_v11, %v2000_v23  ;;  %v469_v23 = vld [vmem:[#allocation2 + $0x29] sm:$0xff] }
 0x1de   :  { %v1453_v26 = vpop.permute.xlu1 %1452  ;;  %v1455_v17 = vpop.permute.xlu0 %1454 }
 0x1df   :  { %v1598_v52 = vmul.f32 %v1453_v26, %v5479_v22  ;;  %v1599_v13 = vmul.f32 %v4241_v6, %v1455_v17  ;;  %4195 = vmatprep.subr.bf16.mxu0 %v4194_v12  ;;  %4202 = vmatprep.subr.bf16.mxu1 %v4194_v12 }
 0x1e0   :  { %4197 = vmatpush3.bf16.msra.mxu0 %v4194_v12  ;;  %4204 = vmatpush3.bf16.msra.mxu1 %v4194_v12  ;;  %v7640_v12 = vld [vmem:[#allocation71_spill] sm:$0xff] }
 0x1e1   :  { %1848 = vperm.xlu0 %4215, %v1598_v52   ;;  %1843 = vperm.xlu1 %4216, %v1597_v5   ;;  %v1233_v5 = vmul.f32 %v7635_v28, %v913_v4  ;;  %v2002_v52 = vld [vmem:[%s7303_s4 + $0x10] sm:$0xff]  ;;  %v853_v28 = vmul.f32 %v7640_v12, %v469_v23 }
 0x1e2   :  { %v1457_v30 = vpop.permute.xlu1 %1456  ;;  %v1459_v36 = vpop.permute.xlu0 %1458  ;;  %v1303_v12 = vld [vmem:[#allocation2 + $0x49] sm:$0xff] }
 0x1e3   :  { %v1600_v50 = vmul.f32 %v1457_v30, %v5490_v40  ;;  %v1601_v22 = vmul.f32 %v4242_v35, %v1459_v36  ;;  %v2003_v30 = vld [vmem:[%s7303_s4 + $0x18] sm:$0xff]  ;;  %s4261_s4 = smov 24  }
 0x1e4   :  { %v4198_v36 = vpack.c.bf16 %v2003_v30, %v2002_v52  ;;  %v917_v30 = vld [vmem:[#allocation2 + $0x38] sm:$0xff] }
 0x1e5   :  { %1858 = vperm.xlu0 %4215, %v1600_v50   ;;  %1853 = vperm.xlu1 %4216, %v1599_v13   ;;  %v1296_v50 = vld [vmem:[#allocation2 + $0x11] sm:$0xff] }
 0x1e6   :  { %v1461_v55 = vpop.permute.xlu1 %1460  ;;  %v1463_v19 = vpop.permute.xlu0 %1462  ;;  %4199 = vmatprep.subr.bf16.mxu0 %v4198_v36  ;;  %4203 = vmatprep.subr.bf16.mxu1 %v4198_v36 }
 0x1e7   :  { %v1602_v45 = vmul.f32 %v1461_v55, %v5501_v41  ;;  %v1603_v40 = vmul.f32 %v4243_v2, %v1463_v19  ;;  %4201 = vmatpush3.bf16.msra.mxu0 %v4198_v36  ;;  %4205 = vmatpush3.bf16.msra.mxu1 %v4198_v36  ;;  %v1297_v55 = vld [vmem:[#allocation2 + $0x19] sm:$0xff]  ;;  %v916_v36 = vld [vmem:[#allocation2 + $0x30] sm:$0xff] }
 0x1e9   :  { %1868 = vperm.xlu0 %4215, %v1602_v45   ;;  %1863 = vperm.xlu1 %4216, %v1601_v22  }
 0x1ea   :  { %v1465_v59 = vpop.permute.xlu1 %1464  ;;  %v1467_v0 = vpop.permute.xlu0 %1466 }
 0x1eb   :  { %v1604_v33 = vmul.f32 %v1465_v59, %v5512_v54  ;;  %v1605_v41 = vmul.f32 %v4244_v39, %v1467_v0  ;;  %v848_v54 = vmul.f32 %v7632_v31, %v464_v38  ;;  %v466_v59 = vld [vmem:[#allocation2 + $0x11] sm:$0xff]  ;;  %v467_v0 = vld [vmem:[#allocation2 + $0x19] sm:$0xff]  ;;  %v915_v39 = vld [vmem:[#allocation2 + $0x28] sm:$0xff] }
 0x1ec   :  { %v7638_v31 = vld [vmem:[#allocation70_spill] sm:$0xff] }
 0x1ed   :  { %1878 = vperm.xlu0 %4215, %v1604_v33   ;;  %1873 = vperm.xlu1 %4216, %v1603_v40   ;;  %v7636_v40 = vld [vmem:[#allocation67_spill] sm:$0xff] }
 0x1ee   :  { %v1469_v29 = vpop.permute.xlu1 %1468  ;;  %v1471_v18 = vpop.permute.xlu0 %1470  ;;  %v850_v33 = vmul.f32 %v7636_v40, %v466_v59  ;;  %v1301_v59 = vld [vmem:[#allocation2 + $0x39] sm:$0xff] }
 0x1ef   :  { %v1606_v1 = vmul.f32 %v1469_v29, %v5523_v9  ;;  %v1607_v53 = vmul.f32 %v4245_v32, %v1471_v18  ;;  %v7637_v29 = vld [vmem:[#allocation69_spill] sm:$0xff] }
 0x1f0   :  { %v851_v18 = vmul.f32 %v7637_v29, %v467_v0  ;;  %v7639_v32 = vld [vmem:[#allocation137_spill] sm:$0xff]  ;;  %v470_v0 = vld [vmem:[#allocation2 + $0x31] sm:$0xff] }
 0x1f1   :  { %1888 = vperm.xlu0 %4215, %v1606_v1   ;;  %1883 = vperm.xlu1 %4216, %v1605_v41   ;;  %v914_v41 = vld [vmem:[#allocation2 + $0x20] sm:$0xff] }
 0x1f2   :  { %v5970_v7 = vpop.permute.xlu1 %1472  ;;  %v5972_v8 = vpop.permute.xlu0 %1474 }
 0x1f5   :  { %1893 = vperm.xlu1 %4216, %v1607_v53   ;;  %2068 = vrot.lane.b32.xlu0 %v848_v54, %s4259_s27  ;;  %v1235_v54 = vmul.f32 %v7638_v31, %v915_v39  ;;  %v1234_v53 = vmul.f32 %v7639_v32, %v914_v41 }
 0x1f6   :  { %v5979_v9 = vpop.permute.xlu1 %1476  ;;  %v5981_v60 = vpop.permute.xlu0 %1478 }
 0x1f9   :  { %2070 = vrot.lane.b32.xlu1 %v849_v62, %s4259_s27  ;;  %2324 = vrot.lane.b32.xlu0 %v1232_v58, %s4260_s7 }
 0x1fa   :  { %v5993_v26 = vpop.permute.xlu1 %1480  ;;  %v5995_v17 = vpop.permute.xlu0 %1482 }
 0x1fd   :  { %2326 = vrot.lane.b32.xlu1 %v1233_v5, %s4260_s7  ;;  %v7641_v5 = vld [vmem:[#allocation140_spill] sm:$0xff] }
 0x1fe   :  { %v6005_v6 = vpop.permute.xlu1 %1484  ;;  %v6007_v13 = vpop.permute.xlu0 %1486  ;;  %v852_v52 = vmul.f32 %v7641_v5, %v468_v44 }
 0x204   :  { %v1619_v19 = vpop.permute.xlu1 %1618  ;;  %v1624_v35 = vpop.permute.xlu0 %1623 }
 0x205   :  { %v1936_v22 = vmul.f32 %v1619_v19, %v1296_v50  ;;  %v1937_v45 = vmul.f32 %v1624_v35, %v1297_v55  ;;  %v7642_v19 = vld [vmem:[#allocation72_spill] sm:$0xff] }
 0x206   :  { %v1237_v35 = vmul.f32 %v7642_v19, %v917_v30  ;;  %v473_v19 = vld [vmem:[#allocation2 + $0x49] sm:$0xff] }
 0x207   :  { %2582 = vrot.lane.b32.xlu1 %v1937_v45, %s4261_s4  ;;  %2580 = vrot.lane.b32.xlu0 %v1936_v22, %s4261_s4  ;;  %v7643_v22 = vld [vmem:[#allocation139_spill] sm:$0xff] }
 0x208   :  { %v1629_v2 = vpop.permute.xlu1 %1628  ;;  %v1236_v45 = vmul.f32 %v7643_v22, %v916_v36 }
 0x209   :  { %v1938_v25 = vmul.f32 %v1629_v2, %v468_v44 }
 0x20b   :  { %2074 = vrot.lane.b32.xlu1 %v851_v18, %s4259_s27  ;;  %2072 = vrot.lane.b32.xlu0 %v850_v33, %s4259_s27  ;;  %v471_v18 = vld [vmem:[#allocation2 + $0x39] sm:$0xff] }
 0x20c   :  { %v1634_v1 = vpop.permute.xlu1 %1633  ;;  %v1639_v38 = vpop.permute.xlu0 %1638 }
 0x20d   :  { %v1939_v62 = vmul.f32 %v1634_v1, %v1299_v49  ;;  %v1940_v33 = vmul.f32 %v1639_v38, %v470_v0  ;;  %v7644_v1 = vld [vmem:[#allocation74_spill] sm:$0xff]  ;;  %v918_v49 = vld [vmem:[#allocation2 + $0x40] sm:$0xff] }
 0x20e   :  { %v855_v31 = vmul.f32 %v7644_v1, %v471_v18  ;;  %v920_v18 = vld [vmem:[#allocation2 + $0x50] sm:$0xff] }
 0x20f   :  { %2330 = vrot.lane.b32.xlu1 %v1235_v54, %s4260_s7  ;;  %2328 = vrot.lane.b32.xlu0 %v1234_v53, %s4260_s7  ;;  %v7645_v54 = vld [vmem:[#allocation142_spill] sm:$0xff]  ;;  %v919_v53 = vld [vmem:[#allocation2 + $0x48] sm:$0xff] }
 0x210   :  { %v1644_v34 = vpop.permute.xlu1 %1643  ;;  %v1649_v58 = vpop.permute.xlu0 %1648  ;;  %v854_v32 = vmul.f32 %v7645_v54, %v470_v0  ;;  %v7649_v0 = vld [vmem:[#allocation144_spill] sm:$0xff]  ;;  %v7650_v1 = vld [vmem:[#allocation78_spill] sm:$0xff]  ;;  %v7651_v54 = vld [vmem:[#allocation143_spill] sm:$0xff] }
 0x211   :  { %v1941_v29 = vmul.f32 %v1644_v34, %v1301_v59  ;;  %v7646_v34 = vld [vmem:[#allocation75_spill] sm:$0xff] }
 0x213   :  { %2586 = vrot.lane.b32.xlu1 %v1939_v62, %s4261_s4  ;;  %2584 = vrot.lane.b32.xlu0 %v1938_v25, %s4261_s4  ;;  %v1239_v25 = vmul.f32 %v7646_v34, %v919_v53  ;;  %v7647_v62 = vld [vmem:[#allocation141_spill] sm:$0xff]  ;;  %v1305_v53 = vld [vmem:[#allocation2 + $0x59] sm:$0xff] }
 0x214   :  { %v1654_v11 = vpop.permute.xlu1 %1653  ;;  %v6021_v4 = vpop.permute.xlu0 %1658  ;;  %v1238_v23 = vmul.f32 %v7647_v62, %v918_v49  ;;  %v474_v49 = vld [vmem:[#allocation2 + $0x51] sm:$0xff] }
 0x215   :  { %v1943_v36 = vmul.f32 %v1654_v11, %v1303_v12  ;;  %v1944_v62 = vmul.f32 %v6021_v4, %v474_v49  ;;  %v475_v12 = vld [vmem:[#allocation2 + $0x59] sm:$0xff] }
 0x217   :  { %2078 = vrot.lane.b32.xlu1 %v853_v28, %s4259_s27  ;;  %2076 = vrot.lane.b32.xlu0 %v852_v52, %s4259_s27  ;;  %v472_v28 = vld [vmem:[#allocation2 + $0x41] sm:$0xff] }
 0x218   :  { %v1664_v50 = vpop.permute.xlu1 %1663  ;;  %v6027_v55 = vpop.permute.xlu0 %1668  ;;  %v1942_v30 = vmul.f32 %v1649_v58, %v472_v28 }
 0x21b   :  { %2334 = vrot.lane.b32.xlu1 %v1237_v35, %s4260_s7  ;;  %2332 = vrot.lane.b32.xlu0 %v1236_v45, %s4260_s7  ;;  %v7648_v45 = vld [vmem:[#allocation77_spill] sm:$0xff] }
 0x21c   :  { %v6033_v2 = vpop.permute.xlu1 %1673  ;;  %v6035_v40 = vpop.permute.xlu0 %1678  ;;  %v857_v59 = vmul.f32 %v7648_v45, %v473_v19  ;;  %v7653_v45 = vld [vmem:[#allocation146_spill] sm:$0xff] }
 0x21f   :  { %2590 = vrot.lane.b32.xlu1 %v1941_v29, %s4261_s4  ;;  %2588 = vrot.lane.b32.xlu0 %v1940_v33, %s4261_s4  ;;  %v856_v33 = vmul.f32 %v7649_v0, %v472_v28  ;;  %v921_v29 = vld [vmem:[#allocation2 + $0x58] sm:$0xff]  ;;  %v923_v0 = vld [vmem:[#allocation2 + $0x68] sm:$0xff] }
 0x220   :  { %v6039_v39 = vpop.permute.xlu1 %1683  ;;  %v6041_v41 = vpop.permute.xlu0 %1688 }
 0x223   :  { %2082 = vrot.lane.b32.xlu1 %v855_v31, %s4259_s27  ;;  %2080 = vrot.lane.b32.xlu0 %v854_v32, %s4259_s27  ;;  %v1241_v31 = vmul.f32 %v7650_v1, %v921_v29  ;;  %v1240_v32 = vmul.f32 %v7651_v54, %v920_v18  ;;  %v7654_v29 = vld [vmem:[#allocation81_spill] sm:$0xff] }
 0x224   :  { %v6047_v38 = vpop.permute.xlu1 %1693  ;;  %v6049_v44 = vpop.permute.xlu0 %1698  ;;  %v1243_v18 = vmul.f32 %v7654_v29, %v923_v0  ;;  %v7655_v1 = vld [vmem:[#allocation145_spill] sm:$0xff]  ;;  %v7657_v0 = vld [vmem:[#allocation148_spill] sm:$0xff]  ;;  %v925_v29 = vld [vmem:[#allocation2 + $0x78] sm:$0xff] }
 0x225   :  { %v1307_v54 = vld [vmem:[#allocation2 + $0x69] sm:$0xff] }
 0x227   :  { %2338 = vrot.lane.b32.xlu1 %v1239_v25, %s4260_s7  ;;  %2336 = vrot.lane.b32.xlu0 %v1238_v23, %s4260_s7  ;;  %v1945_v23 = vmul.f32 %v1664_v50, %v1305_v53 }
 0x228   :  { %v6055_v5 = vpop.permute.xlu1 %1703  ;;  %v6057_v52 = vpop.permute.xlu0 %1708 }
 0x22b   :  { %2594 = vrot.lane.b32.xlu1 %v1943_v36, %s4261_s4  ;;  %2592 = vrot.lane.b32.xlu0 %v1942_v30, %s4261_s4  ;;  %v7652_v36 = vld [vmem:[#allocation80_spill] sm:$0xff] }
 0x22c   :  { %v6061_v35 = vpop.permute.xlu1 %1713  ;;  %v6063_v22 = vpop.permute.xlu0 %1718  ;;  %v859_v19 = vmul.f32 %v7652_v36, %v475_v12  ;;  %v477_v12 = vld [vmem:[#allocation2 + $0x69] sm:$0xff] }
 0x22f   :  { %2086 = vrot.lane.b32.xlu1 %v857_v59, %s4259_s27  ;;  %2084 = vrot.lane.b32.xlu0 %v856_v33, %s4259_s27  ;;  %v858_v59 = vmul.f32 %v7653_v45, %v474_v49  ;;  %v922_v33 = vld [vmem:[#allocation2 + $0x60] sm:$0xff]  ;;  %v7656_v45 = vld [vmem:[#allocation83_spill] sm:$0xff] }
 0x230   :  { %v6069_v58 = vpop.permute.xlu1 %1723  ;;  %v6071_v11 = vpop.permute.xlu0 %1728 }
 0x233   :  { %2342 = vrot.lane.b32.xlu1 %v1241_v31, %s4260_s7  ;;  %2340 = vrot.lane.b32.xlu0 %v1240_v32, %s4260_s7  ;;  %v1242_v31 = vmul.f32 %v7655_v1, %v922_v33  ;;  %v476_v32 = vld [vmem:[#allocation2 + $0x61] sm:$0xff] }
 0x234   :  { %v6077_v34 = vpop.permute.xlu1 %1733  ;;  %v6079_v25 = vpop.permute.xlu0 %1738  ;;  %v860_v33 = vmul.f32 %v7657_v0, %v476_v32  ;;  %v7658_v1 = vld [vmem:[#allocation84_spill] sm:$0xff] }
 0x237   :  { %2598 = vrot.lane.b32.xlu1 %v1945_v23, %s4261_s4  ;;  %2596 = vrot.lane.b32.xlu0 %v1944_v62, %s4261_s4  ;;  %v1946_v62 = vmul.f32 %v6027_v55, %v476_v32  ;;  %v1947_v23 = vmul.f32 %v6033_v2, %v1307_v54  ;;  %v7659_v54 = vld [vmem:[#allocation147_spill] sm:$0xff] }
 0x238   :  { %v6084_v28 = vpop.permute.xlu1 %1743  ;;  %v6086_v30 = vpop.permute.xlu0 %1748  ;;  %v478_v32 = vld [vmem:[#allocation2 + $0x71] sm:$0xff] }
 0x23b   :  { %2090 = vrot.lane.b32.xlu1 %v859_v19, %s4259_s27  ;;  %2088 = vrot.lane.b32.xlu0 %v858_v59, %s4259_s27  ;;  %v861_v59 = vmul.f32 %v7656_v45, %v477_v12 }
 0x23c   :  { %v6092_v4 = vpop.permute.xlu1 %1753  ;;  %v6094_v50 = vpop.permute.xlu0 %1758 }
 0x23f   :  { %2346 = vrot.lane.b32.xlu1 %v1243_v18, %s4260_s7  ;;  %2344 = vrot.lane.b32.xlu0 %v1242_v31, %s4260_s7  ;;  %v924_v18 = vld [vmem:[#allocation2 + $0x70] sm:$0xff]  ;;  %v1245_v31 = vmul.f32 %v7658_v1, %v925_v29  ;;  %v7660_v1 = vld [vmem:[#allocation85_spill] sm:$0xff] }
 0x240   :  { %v6100_v53 = vpop.permute.xlu1 %1763  ;;  %v6102_v49 = vpop.permute.xlu0 %1768 }
 0x243   :  { %2602 = vrot.lane.b32.xlu1 %v1947_v23, %s4261_s4  ;;  %2600 = vrot.lane.b32.xlu0 %v1946_v62, %s4261_s4  ;;  %v1244_v62 = vmul.f32 %v7659_v54, %v924_v18  ;;  %v1309_v23 = vld [vmem:[#allocation2 + $0x79] sm:$0xff]  ;;  %v7661_v54 = vld [vmem:[#allocation150_spill] sm:$0xff] }
 0x244   :  { %v6108_v36 = vpop.permute.xlu1 %1773  ;;  %v6110_v19 = vpop.permute.xlu0 %1778  ;;  %v1949_v0 = vmul.f32 %v6039_v39, %v1309_v23  ;;  %v7662_v23 = vld [vmem:[#allocation86_spill] sm:$0xff] }
 0x247   :  { %2094 = vrot.lane.b32.xlu1 %v861_v59, %s4259_s27  ;;  %2092 = vrot.lane.b32.xlu0 %v860_v33, %s4259_s27  ;;  %v1948_v59 = vmul.f32 %v6035_v40, %v478_v32  ;;  %v479_v33 = vld [vmem:[#allocation2 + $0x79] sm:$0xff] }
 0x248   :  { %v6116_v55 = vpop.permute.xlu1 %1783  ;;  %v6118_v2 = vpop.permute.xlu0 %1788 }
 0x24b   :  { %2350 = vrot.lane.b32.xlu1 %v1245_v31, %s4260_s7  ;;  %2348 = vrot.lane.b32.xlu0 %v1244_v62, %s4260_s7  ;;  %v863_v31 = vmul.f32 %v7660_v1, %v479_v33  ;;  %v862_v62 = vmul.f32 %v7661_v54, %v478_v32  ;;  %v480_v32 = vld [vmem:[#allocation2 + $0x81] sm:$0xff]  ;;  %v1951_v54 = vmul.f32 %v6047_v38, %v1311_v16 }
 0x24c   :  { %v6124_v12 = vpop.permute.xlu1 %1793  ;;  %v6126_v45 = vpop.permute.xlu0 %1798  ;;  %v7666_v38 = vld [vmem:[#allocation88_spill] sm:$0xff] }
 0x24f   :  { %2606 = vrot.lane.b32.xlu1 %v1949_v0, %s4261_s4  ;;  %2604 = vrot.lane.b32.xlu0 %v1948_v59, %s4261_s4  ;;  %v1247_v59 = vmul.f32 %v7662_v23, %v927_v37  ;;  %v7663_v0 = vld [vmem:[#allocation149_spill] sm:$0xff]  ;;  %v7665_v23 = vld [vmem:[#allocation87_spill] sm:$0xff] }
 0x250   :  { %v6132_v29 = vpop.permute.xlu1 %1803  ;;  %v6134_v18 = vpop.permute.xlu0 %1808  ;;  %v1246_v63 = vmul.f32 %v7663_v0, %v926_v46  ;;  %v929_v0 = vld [vmem:[#allocation2 + $0x98] sm:$0xff] }
 0x253   :  { %2098 = vrot.lane.b32.xlu1 %v863_v31, %s4259_s27  ;;  %2096 = vrot.lane.b32.xlu0 %v862_v62, %s4259_s27  ;;  %v1950_v31 = vmul.f32 %v6041_v41, %v480_v32  ;;  %v481_v62 = vld [vmem:[#allocation2 + $0x89] sm:$0xff] }
 0x254   :  { %v6140_v40 = vpop.permute.xlu1 %1813  ;;  %v6142_v39 = vpop.permute.xlu0 %1818 }
 0x257   :  { %2354 = vrot.lane.b32.xlu1 %v1247_v59, %s4260_s7  ;;  %2352 = vrot.lane.b32.xlu0 %v1246_v63, %s4260_s7  ;;  %v865_v63 = vmul.f32 %v7665_v23, %v481_v62  ;;  %v864_v59 = vmul.f32 %v5687_v47, %v480_v32  ;;  %v482_v47 = vld [vmem:[#allocation2 + $0x91] sm:$0xff] }
 0x258   :  { %v6148_v33 = vpop.permute.xlu1 %1823  ;;  %v6150_v1 = vpop.permute.xlu0 %1828  ;;  %v1952_v23 = vmul.f32 %v6049_v44, %v482_v47 }
 0x25b   :  { %2610 = vrot.lane.b32.xlu1 %v1951_v54, %s4261_s4  ;;  %2608 = vrot.lane.b32.xlu0 %v1950_v31, %s4261_s4  ;;  %v1249_v31 = vmul.f32 %v7666_v38, %v929_v0  ;;  %v7667_v54 = vld [vmem:[#allocation152_spill] sm:$0xff]  ;;  %v7671_v38 = vld [vmem:[#allocation89_spill] sm:$0xff] }
 0x25c   :  { %v6156_v46 = vpop.permute.xlu1 %1833  ;;  %v6158_v37 = vpop.permute.xlu0 %1838  ;;  %v1248_v43 = vmul.f32 %v7667_v54, %v928_v21  ;;  %v931_v54 = vld [vmem:[#allocation2 + $0xa8] sm:$0xff] }
 0x25d   :  { %7664 = vst [vmem:[#allocation73_spill] sm:$0xff] %v6156_v46  ;;  %v1313_v46 = vld [vmem:[#allocation2 + $0x99] sm:$0xff] }
 0x25f   :  { %2102 = vrot.lane.b32.xlu1 %v865_v63, %s4259_s27  ;;  %2100 = vrot.lane.b32.xlu0 %v864_v59, %s4259_s27  ;;  %v1953_v63 = vmul.f32 %v6055_v5, %v1313_v46  ;;  %v483_v59 = vld [vmem:[#allocation2 + $0x99] sm:$0xff]  ;;  %v7674_v46 = vld [vmem:[#allocation90_spill] sm:$0xff] }
 0x260   :  { %v6164_v16 = vpop.permute.xlu1 %1843  ;;  %v6166_v41 = vpop.permute.xlu0 %1848 }
 0x263   :  { %2358 = vrot.lane.b32.xlu1 %v1249_v31, %s4260_s7  ;;  %2356 = vrot.lane.b32.xlu0 %v1248_v43, %s4260_s7  ;;  %v867_v43 = vmul.f32 %v7671_v38, %v483_v59  ;;  %v866_v31 = vmul.f32 %v5695_v20, %v482_v47  ;;  %v484_v20 = vld [vmem:[#allocation2 + $0xa1] sm:$0xff] }
 0x264   :  { %v6172_v32 = vpop.permute.xlu1 %1853  ;;  %v6174_v62 = vpop.permute.xlu0 %1858  ;;  %v1954_v38 = vmul.f32 %v6057_v52, %v484_v20 }
 0x265   :  { %7668 = vst [vmem:[#allocation76_spill] sm:$0xff] %v6172_v32  ;;  %7669 = vst [vmem:[#allocation79_spill] sm:$0xff] %v6174_v62  ;;  %v930_v32 = vld [vmem:[#allocation2 + $0xa0] sm:$0xff]  ;;  %v1315_v62 = vld [vmem:[#allocation2 + $0xa9] sm:$0xff] }
 0x267   :  { %2614 = vrot.lane.b32.xlu1 %v1953_v63, %s4261_s4  ;;  %2612 = vrot.lane.b32.xlu0 %v1952_v23, %s4261_s4  ;;  %v1251_v23 = vmul.f32 %v7674_v46, %v931_v54  ;;  %v7675_v63 = vld [vmem:[#allocation153_spill] sm:$0xff]  ;;  %v7679_v46 = vld [vmem:[#allocation91_spill] sm:$0xff] }
 0x268   :  { %v6180_v21 = vpop.permute.xlu1 %1863  ;;  %v6182_v0 = vpop.permute.xlu0 %1868 }
 0x269   :  { %7670 = vst [vmem:[#allocation82_spill] sm:$0xff] %v6180_v21  ;;  %v1250_v21 = vmul.f32 %v7675_v63, %v930_v32  ;;  %v933_v63 = vld [vmem:[#allocation2 + $0xb8] sm:$0xff] }
 0x26b   :  { %2106 = vrot.lane.b32.xlu1 %v867_v43, %s4259_s27  ;;  %2104 = vrot.lane.b32.xlu0 %v866_v31, %s4259_s27  ;;  %v1955_v43 = vmul.f32 %v6061_v35, %v1315_v62  ;;  %v485_v31 = vld [vmem:[#allocation2 + $0xa9] sm:$0xff]  ;;  %v7680_v62 = vld [vmem:[#allocation92_spill] sm:$0xff] }
 0x26c   :  { %v6188_v44 = vpop.permute.xlu1 %1873  ;;  %v6190_v5 = vpop.permute.xlu0 %1878 }
 0x26d   :  { %7672 = vst [vmem:[#allocation151_spill] sm:$0xff] %v6188_v44  ;;  %7673 = vst [vmem:[#allocation136_spill] sm:$0xff] %v6190_v5 }
 0x26f   :  { %2362 = vrot.lane.b32.xlu1 %v1251_v23, %s4260_s7  ;;  %2360 = vrot.lane.b32.xlu0 %v1250_v21, %s4260_s7  ;;  %v869_v23 = vmul.f32 %v7679_v46, %v485_v31  ;;  %v868_v21 = vmul.f32 %v5703_v10, %v484_v20  ;;  %v486_v10 = vld [vmem:[#allocation2 + $0xb1] sm:$0xff] }
 0x270   :  { %v6196_v47 = vpop.permute.xlu1 %1883  ;;  %v6198_v59 = vpop.permute.xlu0 %1888 }
 0x271   :  { %7676 = vst [vmem:[#allocation68_spill] sm:$0xff] %v6196_v47  ;;  %7677 = vst [vmem:[#allocation138_spill] sm:$0xff] %v6198_v59  ;;  %v932_v47 = vld [vmem:[#allocation2 + $0xb0] sm:$0xff]  ;;  %v1253_v59 = vmul.f32 %v7680_v62, %v933_v63  ;;  %v487_v62 = vld [vmem:[#allocation2 + $0xb9] sm:$0xff] }
 0x273   :  { %2618 = vrot.lane.b32.xlu1 %v1955_v43, %s4261_s4  ;;  %2616 = vrot.lane.b32.xlu0 %v1954_v38, %s4261_s4  ;;  %v7681_v43 = vld [vmem:[#allocation154_spill] sm:$0xff]  ;;  %v1317_v38 = vld [vmem:[#allocation2 + $0xb9] sm:$0xff] }
 0x274   :  { %v6204_v32 = vpop.permute.xlu1 %1893  ;;  %v2069_v54 = vpop.permute.xlu0 %2068  ;;  %v1252_v5 = vmul.f32 %v7681_v43, %v932_v47  ;;  %v1957_v47 = vmul.f32 %v6069_v58, %v1317_v38  ;;  %v870_v58 = vmul.f32 %v5711_v3, %v486_v10 }
 0x275   :  { %7678 = vst [vmem:[#allocation135_spill] sm:$0xff] %v6204_v32  ;;  %v7682_v32 = vld [vmem:[#allocation65_spill] sm:$0xff] }
 0x276   :  { %v7683_v44 = vmax.f32 %v7682_v32, 0.0 }
 0x277   :  { %2110 = vrot.lane.b32.xlu1 %v869_v23, %s4259_s27  ;;  %2108 = vrot.lane.b32.xlu0 %v868_v21, %s4259_s27  ;;  %v1956_v21 = vmul.f32 %v6063_v22, %v486_v10  ;;  %v7686_v22 = vld [vmem:[#allocation93_spill] sm:$0xff] }
 0x278   :  { %v2071_v52 = vpop.permute.xlu1 %2070  ;;  %v2325_v35 = vpop.permute.xlu0 %2324  ;;  %v2772_v31 = vsel %vm332_vm0, %v7683_v44, %v2069_v54  ;;  %v7684_v44 = vld [vmem:[#allocation66_spill] sm:$0xff]  ;;  %v871_v43 = vmul.f32 %v7686_v22, %v487_v62  ;;  %v488_v10 = vld [vmem:[#allocation2 + $0xc1] sm:$0xff] }
 0x279   :  { %v2837_v20 = vsel %vm2836_vm1, %v2772_v31, %v2325_v35  ;;  %v7685_v32 = vmax.f32 %v7684_v44, 0.0  ;;  %v935_v31 = vld [vmem:[#allocation2 + $0xc8] sm:$0xff]  ;;  %v7689_v44 = vld [vmem:[#allocation3_spill] sm:$0xff] }
 0x27a   :  { %v7690_v62 = vmax.f32 %v7689_v44, 0.0  ;;  %v489_v44 = vld [vmem:[#allocation2 + $0xc9] sm:$0xff] }
 0x27b   :  { %2366 = vrot.lane.b32.xlu1 %v1253_v59, %s4260_s7  ;;  %2364 = vrot.lane.b32.xlu0 %v1252_v5, %s4260_s7  ;;  %v2773_v59 = vsel %vm332_vm0, %v7685_v32, %v2071_v52 }
 0x27c   :  { %v2327_v46 = vpop.permute.xlu1 %2326  ;;  %v2581_v23 = vpop.permute.xlu0 %2580 }
 0x27d   :  { %v2902_v63 = vsel %vm2901_vm2, %v2837_v20, %v2581_v23  ;;  %v2838_v5 = vsel %vm2836_vm1, %v2773_v59, %v2327_v46  ;;  %v934_v20 = vld [vmem:[#allocation2 + $0xc0] sm:$0xff] }
 0x27e   :  { %4098 = vmatprep.mubr.msk.f32.mxu0 %vm2966_vm3, %v2902_v63 }
 0x27f   :  { %2622 = vrot.lane.b32.xlu1 %v1957_v47, %s4261_s4  ;;  %2620 = vrot.lane.b32.xlu0 %v1956_v21, %s4261_s4  ;;  %v7687_v21 = vld [vmem:[#allocation94_spill] sm:$0xff]  ;;  %v7688_v47 = vld [vmem:[#allocation155_spill] sm:$0xff] }
 0x280   :  { %v2583_v54 = vpop.permute.xlu1 %2582  ;;  %v2073_v35 = vpop.permute.xlu0 %2072  ;;  %v1255_v46 = vmul.f32 %v7687_v21, %v935_v31  ;;  %v1254_v63 = vmul.f32 %v7688_v47, %v934_v20 }
 0x281   :  { %v2903_v38 = vsel %vm2901_vm2, %v2838_v5, %v2583_v54  ;;  %v2774_v3 = vsel %vm332_vm0, %v7690_v62, %v2073_v35  ;;  %v4246_v54 = vld [vmem:[%s7299_s2 + $0x1c0] sm:$0xff]  ;;  %v1319_v35 = vld [vmem:[#allocation2 + $0xc9] sm:$0xff] }
 0x282   :  { %4099 = vmatmul.mubr.msk.f32.vlgmr.msra.gmra.mrb[0].mxu0 %vm2966_vm3, %v2903_v38  ;;  %v1608_v22 = vmul.f32 %v4246_v54, %v5970_v7  ;;  %v7691_v38 = vld [vmem:[#allocation4_spill] sm:$0xff]  ;;  %v4247_v7 = vld [vmem:[%s7299_s2 + $0x1c8] sm:$0xff]  ;;  %v1959_v47 = vmul.f32 %v6077_v34, %v1319_v35  ;;  %v936_v54 = vld [vmem:[#allocation2 + $0xd0] sm:$0xff] }
 0x283   :  { %2114 = vrot.lane.b32.xlu1 %v871_v43, %s4259_s27  ;;  %2112 = vrot.lane.b32.xlu0 %v870_v58, %s4259_s27  ;;  %v1958_v43 = vmul.f32 %v6071_v11, %v488_v10  ;;  %v7692_v31 = vmax.f32 %v7691_v38, 0.0  ;;  %v1609_v11 = vmul.f32 %v4247_v7, %v5972_v8  ;;  %v7696_v38 = vld [vmem:[#allocation96_spill] sm:$0xff]  ;;  %v490_v7 = vld [vmem:[#allocation2 + $0xd1] sm:$0xff] }
 0x284   :  { %v2075_v52 = vpop.permute.xlu1 %2074  ;;  %v2329_v23 = vpop.permute.xlu0 %2328 }
 0x285   :  { %v2839_v32 = vsel %vm2836_vm1, %v2774_v3, %v2329_v23  ;;  %v2775_v20 = vsel %vm332_vm0, %v7692_v31, %v2075_v52  ;;  %v7693_v3 = vld [vmem:[#allocation95_spill] sm:$0xff] }
 0x287   :  { %2370 = vrot.lane.b32.xlu1 %v1255_v46, %s4260_s7  ;;  %2368 = vrot.lane.b32.xlu0 %v1254_v63, %s4260_s7 }
 0x288   :  { %v2331_v59 = vpop.permute.xlu1 %2330  ;;  %v2585_v5 = vpop.permute.xlu0 %2584 }
 0x289   :  { %v2904_v58 = vsel %vm2901_vm2, %v2839_v32, %v2585_v5  ;;  %v2840_v23 = vsel %vm2836_vm1, %v2775_v20, %v2331_v59  ;;  %v873_v32 = vmul.f32 %v7693_v3, %v489_v44  ;;  %v872_v59 = vmul.f32 %v5719_v42, %v488_v10  ;;  %v937_v5 = vld [vmem:[#allocation2 + $0xd8] sm:$0xff]  ;;  %v7697_v20 = vld [vmem:[#allocation156_spill] sm:$0xff]  ;;  %v7698_v10 = vld [vmem:[#allocation6_spill] sm:$0xff] }
 0x28a   :  { %4101 = vmatprep.mubr.msk.f32.mxu0 %vm2966_vm3, %v2904_v58  ;;  %v1257_v31 = vmul.f32 %v7696_v38, %v937_v5  ;;  %v4248_v44 = vld [vmem:[%s7299_s2 + $0x1d0] sm:$0xff]  ;;  %v1960_v3 = vmul.f32 %v6079_v25, %v490_v7  ;;  %v7700_v25 = vld [vmem:[#allocation7_spill] sm:$0xff] }
 0x28b   :  { %1898 = vperm.xlu1 %4216, %v1608_v22   ;;  %2624 = vrot.lane.b32.xlu0 %v1958_v43, %s4261_s4  ;;  %v7694_v22 = vld [vmem:[#allocation5_spill] sm:$0xff] }
 0x28c   :  { %v2587_v21 = vpop.permute.xlu1 %2586  ;;  %v2077_v46 = vpop.permute.xlu0 %2076  ;;  %v7695_v8 = vmax.f32 %v7694_v22, 0.0 }
 0x28d   :  { %v2905_v63 = vsel %vm2901_vm2, %v2840_v23, %v2587_v21  ;;  %v1256_v23 = vmul.f32 %v7697_v20, %v936_v54  ;;  %v7699_v21 = vmax.f32 %v7698_v10, 0.0  ;;  %v4249_v54 = vld [vmem:[%s7299_s2 + $0x1d8] sm:$0xff]  ;;  %v7703_v10 = vld [vmem:[#allocation8_spill] sm:$0xff] }
 0x28e   :  { %4102 = vmatmul.mubr.msk.f32.gmra.mrb[2].mxu0 %vm2966_vm3, %v2905_v63  ;;  %v2776_v34 = vsel %vm332_vm0, %v7695_v8, %v2077_v46  ;;  %v1611_v22 = vmul.f32 %v4249_v54, %v5981_v60  ;;  %v491_v8 = vld [vmem:[#allocation2 + $0xd9] sm:$0xff] }
 0x28f   :  { %1903 = vperm.xlu1 %4216, %v1609_v11   ;;  %2626 = vrot.lane.b32.xlu0 %v1959_v47, %s4261_s4 }
 0x290   :  { %v2079_v52 = vpop.permute.xlu1 %2078  ;;  %v2333_v62 = vpop.permute.xlu0 %2332 }
 0x291   :  { %v2841_v43 = vsel %vm2836_vm1, %v2776_v34, %v2333_v62  ;;  %v2777_v46 = vsel %vm332_vm0, %v7699_v21, %v2079_v52  ;;  %v1610_v62 = vmul.f32 %v4248_v44, %v5979_v9  ;;  %v1321_v52 = vld [vmem:[#allocation2 + $0xd9] sm:$0xff]  ;;  %v7701_v34 = vmax.f32 %v7700_v25, 0.0  ;;  %v7705_v44 = vld [vmem:[#allocation98_spill] sm:$0xff] }
 0x292   :  { %v1961_v9 = vmul.f32 %v6084_v28, %v1321_v52  ;;  %v938_v28 = vld [vmem:[#allocation2 + $0xe0] sm:$0xff]  ;;  %v7704_v21 = vmax.f32 %v7703_v10, 0.0 }
 0x293   :  { %2118 = vrot.lane.b32.xlu1 %v873_v32, %s4259_s27  ;;  %2116 = vrot.lane.b32.xlu0 %v872_v59, %s4259_s27 }
 0x294   :  { %v2335_v58 = vpop.permute.xlu1 %2334  ;;  %v2589_v35 = vpop.permute.xlu0 %2588 }
 0x295   :  { %v2906_v42 = vsel %vm2901_vm2, %v2841_v43, %v2589_v35  ;;  %v2842_v11 = vsel %vm2836_vm1, %v2777_v46, %v2335_v58 }
 0x296   :  { %4104 = vmatprep.mubr.msk.f32.mxu0 %vm2966_vm3, %v2906_v42  ;;  %v939_v42 = vld [vmem:[#allocation2 + $0xe8] sm:$0xff] }
 0x297   :  { %2374 = vrot.lane.b32.xlu1 %v1257_v31, %s4260_s7  ;;  %2372 = vrot.lane.b32.xlu0 %v1256_v23, %s4260_s7  ;;  %v7702_v31 = vld [vmem:[#allocation97_spill] sm:$0xff]  ;;  %v874_v23 = vmul.f32 %v5727_v56, %v490_v7  ;;  %v1259_v56 = vmul.f32 %v7705_v44, %v939_v42 }
 0x298   :  { %v2591_v47 = vpop.permute.xlu1 %2590  ;;  %v2081_v63 = vpop.permute.xlu0 %2080  ;;  %v875_v20 = vmul.f32 %v7702_v31, %v491_v8  ;;  %v7706_v7 = vld [vmem:[#allocation157_spill] sm:$0xff] }
 0x299   :  { %v2907_v32 = vsel %vm2901_vm2, %v2842_v11, %v2591_v47  ;;  %v2778_v43 = vsel %vm332_vm0, %v7701_v34, %v2081_v63  ;;  %v7707_v8 = vld [vmem:[#allocation9_spill] sm:$0xff] }
 0x29a   :  { %4105 = vmatmul.mubr.msk.f32.gmra.mrb[4].mxu0 %vm2966_vm3, %v2907_v32  ;;  %v492_v32 = vld [vmem:[#allocation2 + $0xe1] sm:$0xff]  ;;  %v7708_v25 = vmax.f32 %v7707_v8, 0.0 }
 0x29b   :  { %1908 = vperm.xlu1 %4216, %v1610_v62   ;;  %2628 = vrot.lane.b32.xlu0 %v1960_v3, %s4261_s4  ;;  %v1258_v62 = vmul.f32 %v7706_v7, %v938_v28  ;;  %v940_v7 = vld [vmem:[#allocation2 + $0xf0] sm:$0xff] }
 0x29c   :  { %v2083_v59 = vpop.permute.xlu1 %2082  ;;  %v2337_v5 = vpop.permute.xlu0 %2336 }
 0x29d   :  { %v2843_v58 = vsel %vm2836_vm1, %v2778_v43, %v2337_v5  ;;  %v2779_v46 = vsel %vm332_vm0, %v7704_v21, %v2083_v59  ;;  %v4250_v5 = vld [vmem:[%s7299_s2 + $0x1e0] sm:$0xff] }
 0x29e   :  { %v1612_v54 = vmul.f32 %v4250_v5, %v5993_v26  ;;  %v7713_v5 = vld [vmem:[#allocation158_spill] sm:$0xff] }
 0x29f   :  { %1913 = vperm.xlu1 %4216, %v1611_v22   ;;  %2630 = vrot.lane.b32.xlu0 %v1961_v9, %s4261_s4  ;;  %v1962_v22 = vmul.f32 %v6086_v30, %v492_v32  ;;  %v1323_v9 = vld [vmem:[#allocation2 + $0xe9] sm:$0xff] }
 0x2a0   :  { %v2339_v35 = vpop.permute.xlu1 %2338  ;;  %v2593_v38 = vpop.permute.xlu0 %2592  ;;  %v1963_v30 = vmul.f32 %v6092_v4, %v1323_v9  ;;  %v7711_v4 = vld [vmem:[#allocation99_spill] sm:$0xff] }
 0x2a1   :  { %v2908_v60 = vsel %vm2901_vm2, %v2843_v58, %v2593_v38  ;;  %v2844_v11 = vsel %vm2836_vm1, %v2779_v46, %v2339_v35  ;;  %v4251_v38 = vld [vmem:[%s7299_s2 + $0x1e8] sm:$0xff]  ;;  %v7714_v9 = vld [vmem:[#allocation11_spill] sm:$0xff] }
 0x2a2   :  { %4107 = vmatprep.mubr.msk.f32.mxu0 %vm2966_vm3, %v2908_v60  ;;  %v1613_v26 = vmul.f32 %v4251_v38, %v5995_v17  ;;  %v322_v17 = vld [vmem:[%s7302_s1 + $0x10] sm:$0xff]  ;;  %v7715_v8 = vmax.f32 %v7714_v9, 0.0 }
 0x2a3   :  { %2122 = vrot.lane.b32.xlu1 %v875_v20, %s4259_s27  ;;  %2120 = vrot.lane.b32.xlu0 %v874_v23, %s4259_s27  ;;  %v493_v20 = vld [vmem:[#allocation2 + $0xe9] sm:$0xff] }
 0x2a4   :  { %v2595_v47 = vpop.permute.xlu1 %2594  ;;  %v2085_v63 = vpop.permute.xlu0 %2084  ;;  %v7709_v23 = vld [vmem:[#allocation10_spill] sm:$0xff]  ;;  %v877_v46 = vmul.f32 %v7711_v4, %v493_v20  ;;  %v1325_v20 = vld [vmem:[#allocation2 + $0xf9] sm:$0xff] }
 0x2a5   :  { %v2909_v3 = vsel %vm2901_vm2, %v2844_v11, %v2595_v47  ;;  %v2780_v34 = vsel %vm332_vm0, %v7708_v25, %v2085_v63  ;;  %v7710_v60 = vmax.f32 %v7709_v23, 0.0  ;;  %v876_v11 = vmul.f32 %v5735_v24, %v492_v32  ;;  %v4252_v63 = vld [vmem:[%s7300_s3] ss:$0 sm:$0xff]  ;;  %v4254_v38 = vld [vmem:[%s7299_s2 + $0x1f0] sm:$0xff] }
 0x2a6   :  { %4108 = vmatmul.mubr.msk.f32.gmra.mrb[6].mxu0 %vm2966_vm3, %v2909_v3  ;;  %v325_v44 = vmul.f32 %v4252_v63, %v322_v17  ;;  %v7716_v23 = vld [vmem:[#allocation12_spill] sm:$0xff]  ;;  %v1965_v17 = vmul.f32 %v6100_v53, %v1325_v20  ;;  %v7718_v63 = vld [vmem:[#allocation101_spill] sm:$0xff] }
 0x2a7   :  { %2378 = vrot.lane.b32.xlu1 %v1259_v56, %s4260_s7  ;;  %2376 = vrot.lane.b32.xlu0 %v1258_v62, %s4260_s7  ;;  %v941_v56 = vld [vmem:[#allocation2 + $0xf8] sm:$0xff]  ;;  %v4253_v62 = vld [vmem:[%s7300_s3 + $0x1] ss:$0 sm:$0xff]  ;;  %v1327_v9 = vld [vmem:[#allocation2 + $0x109] sm:$0xff] }
 0x2a8   :  { %v2087_v52 = vpop.permute.xlu1 %2086  ;;  %v2341_v59 = vpop.permute.xlu0 %2340  ;;  %v328_v24 = vadd.f32 %v4253_v62, %v325_v44  ;;  %v942_v62 = vld [vmem:[#allocation2 + $0x100] sm:$0xff]  ;;  %v497_v20 = vld [vmem:[#allocation2 + $0x109] sm:$0xff] }
 0x2a9   :  { %v2845_v43 = vsel %vm2836_vm1, %v2780_v34, %v2341_v59  ;;  %v2781_v42 = vsel %vm332_vm0, %v7710_v60, %v2087_v52  ;;  %v7712_v52 = vld [vmem:[#allocation100_spill] sm:$0xff]  ;;  %v494_v34 = vld [vmem:[#allocation2 + $0xf1] sm:$0xff]  ;;  %v7717_v60 = vmax.f32 %v7716_v23, 0.0 }
 0x2aa   :  { %v1261_v59 = vmul.f32 %v7712_v52, %v941_v56  ;;  %v878_v56 = vmul.f32 %v5743_v61, %v494_v34 }
 0x2ab   :  { %1918 = vperm.xlu1 %4216, %v1612_v54   ;;  %2632 = vrot.lane.b32.xlu0 %v1962_v22, %s4261_s4  ;;  %v1260_v54 = vmul.f32 %v7713_v5, %v940_v7  ;;  %v331_v22 = vmax.f32 %v328_v24, 0.0  ;;  %v943_v7 = vld [vmem:[#allocation2 + $0x108] sm:$0xff] }
 0x2ac   :  { %v2343_v58 = vpop.permute.xlu1 %2342  ;;  %v2597_v35 = vpop.permute.xlu0 %2596  ;;  %v7719_v24 = vld [vmem:[#allocation13_spill] sm:$0xff] }
 0x2ad   :  { %v2910_v31 = vsel %vm2901_vm2, %v2845_v43, %v2597_v35  ;;  %v2846_v28 = vsel %vm2836_vm1, %v2781_v42, %v2343_v58  ;;  %399 = vst.msk [vmem:[#allocation2 + $0x210] sm:$0xff] %vm332_vm0, %v331_v22 }
 0x2ae   :  { %4110 = vmatprep.mubr.msk.f32.mxu0 %vm2966_vm3, %v2910_v31 }
 0x2af   :  { %1923 = vperm.xlu1 %4216, %v1613_v26   ;;  %2634 = vrot.lane.b32.xlu0 %v1963_v30, %s4261_s4  ;;  %v1614_v26 = vmul.f32 %v4254_v38, %v6005_v6  ;;  %v1964_v30 = vmul.f32 %v6094_v50, %v494_v34  ;;  %v4255_v6 = vld [vmem:[%s7299_s2 + $0x1f8] sm:$0xff] }
 0x2b0   :  { %v2599_v10 = vpop.permute.xlu1 %2598  ;;  %v2089_v21 = vpop.permute.xlu0 %2088  ;;  %v1615_v50 = vmul.f32 %v4255_v6, %v6007_v13  ;;  %v7720_v13 = vmax.f32 %v7719_v24, 0.0  ;;  %v944_v6 = vld [vmem:[#allocation2 + $0x110] sm:$0xff] }
 0x2b1   :  { %v2911_v47 = vsel %vm2901_vm2, %v2846_v28, %v2599_v10  ;;  %v2782_v25 = vsel %vm332_vm0, %v7715_v8, %v2089_v21  ;;  %v7723_v8 = vld [vmem:[#allocation14_spill] sm:$0xff] }
 0x2b2   :  { %4111 = vmatmul.mubr.msk.f32.gmra.mrb[8].mxu0 %vm2966_vm3, %v2911_v47 }
 0x2b3   :  { %2126 = vrot.lane.b32.xlu1 %v877_v46, %s4259_s27  ;;  %2124 = vrot.lane.b32.xlu0 %v876_v11, %s4259_s27  ;;  %v495_v46 = vld [vmem:[#allocation2 + $0xf9] sm:$0xff] }
 0x2b4   :  { %v2091_v3 = vpop.permute.xlu1 %2090  ;;  %v2345_v32 = vpop.permute.xlu0 %2344  ;;  %v879_v44 = vmul.f32 %v7718_v63, %v495_v46  ;;  %v7729_v63 = vld [vmem:[#allocation160_spill] sm:$0xff] }
 0x2b5   :  { %v2847_v43 = vsel %vm2836_vm1, %v2782_v25, %v2345_v32  ;;  %v2783_v42 = vsel %vm332_vm0, %v7717_v60, %v2091_v3  ;;  %v7724_v25 = vmax.f32 %v7723_v8, 0.0 }
 0x2b7   :  { %2382 = vrot.lane.b32.xlu1 %v1261_v59, %s4260_s7  ;;  %2380 = vrot.lane.b32.xlu0 %v1260_v54, %s4260_s7  ;;  %v7721_v59 = vld [vmem:[#allocation102_spill] sm:$0xff]  ;;  %v7722_v54 = vld [vmem:[#allocation159_spill] sm:$0xff] }
 0x2b8   :  { %v2347_v58 = vpop.permute.xlu1 %2346  ;;  %v2601_v35 = vpop.permute.xlu0 %2600  ;;  %v1263_v5 = vmul.f32 %v7721_v59, %v943_v7  ;;  %v1262_v22 = vmul.f32 %v7722_v54, %v942_v62  ;;  %v7730_v7 = vld [vmem:[#allocation16_spill] sm:$0xff] }
 0x2b9   :  { %v2912_v31 = vsel %vm2901_vm2, %v2847_v43, %v2601_v35  ;;  %v2848_v28 = vsel %vm2836_vm1, %v2783_v42, %v2347_v58  ;;  %v496_v43 = vld [vmem:[#allocation2 + $0x101] sm:$0xff]  ;;  %v7725_v42 = vld [vmem:[#allocation103_spill] sm:$0xff]  ;;  %v7731_v62 = vmax.f32 %v7730_v7, 0.0  ;;  %v948_v7 = vld [vmem:[#allocation2 + $0x130] sm:$0xff] }
 0x2ba   :  { %4113 = vmatprep.mubr.msk.f32.mxu0 %vm2966_vm3, %v2912_v31  ;;  %v499_v54 = vld [vmem:[#allocation2 + $0x119] sm:$0xff] }
 0x2bb   :  { %1928 = vperm.xlu1 %4216, %v1614_v26   ;;  %2636 = vrot.lane.b32.xlu0 %v1964_v30, %s4261_s4  ;;  %v1966_v26 = vmul.f32 %v6102_v49, %v496_v43  ;;  %v1967_v30 = vmul.f32 %v6108_v36, %v1327_v9  ;;  %v7726_v49 = vld [vmem:[#allocation15_spill] sm:$0xff]  ;;  %v7732_v9 = vld [vmem:[#allocation105_spill] sm:$0xff] }
 0x2bc   :  { %v2603_v10 = vpop.permute.xlu1 %2602  ;;  %v2093_v21 = vpop.permute.xlu0 %2092  ;;  %v883_v8 = vmul.f32 %v7732_v9, %v499_v54  ;;  %v7744_v54 = vld [vmem:[#allocation20_spill] sm:$0xff]  ;;  %v502_v9 = vld [vmem:[#allocation2 + $0x131] sm:$0xff] }
 0x2bd   :  { %v2913_v4 = vsel %vm2901_vm2, %v2848_v28, %v2603_v10  ;;  %v2784_v53 = vsel %vm332_vm0, %v7720_v13, %v2093_v21  ;;  %v881_v28 = vmul.f32 %v7725_v42, %v497_v20  ;;  %v880_v10 = vmul.f32 %v5751_v14, %v496_v43  ;;  %v945_v21 = vld [vmem:[#allocation2 + $0x118] sm:$0xff]  ;;  %v946_v43 = vld [vmem:[#allocation2 + $0x120] sm:$0xff]  ;;  %v7736_v20 = vld [vmem:[#allocation161_spill] sm:$0xff] }
 0x2be   :  { %4114 = vmatmul.mubr.msk.f32.gmra.mrb[10].mxu0 %vm2966_vm3, %v2913_v4  ;;  %v498_v13 = vld [vmem:[#allocation2 + $0x111] sm:$0xff] }
 0x2bf   :  { %1933 = vperm.xlu1 %4216, %v1615_v50   ;;  %2638 = vrot.lane.b32.xlu0 %v1965_v17, %s4261_s4  ;;  %v7727_v50 = vmax.f32 %v7726_v49, 0.0  ;;  %v7737_v42 = vld [vmem:[#allocation18_spill] sm:$0xff] }
 0x2c0   :  { %v2095_v11 = vpop.permute.xlu1 %2094  ;;  %v2349_v47 = vpop.permute.xlu0 %2348 }
 0x2c1   :  { %v2849_v3 = vsel %vm2836_vm1, %v2784_v53, %v2349_v47  ;;  %v2785_v34 = vsel %vm332_vm0, %v7724_v25, %v2095_v11  ;;  %v7728_v11 = vld [vmem:[#allocation104_spill] sm:$0xff]  ;;  %v882_v25 = vmul.f32 %v5759_v15, %v498_v13 }
 0x2c2   :  { %v1265_v47 = vmul.f32 %v7728_v11, %v945_v21  ;;  %v500_v21 = vld [vmem:[#allocation2 + $0x121] sm:$0xff] }
 0x2c3   :  { %2130 = vrot.lane.b32.xlu1 %v879_v44, %s4259_s27  ;;  %2128 = vrot.lane.b32.xlu0 %v878_v56, %s4259_s27  ;;  %v1264_v44 = vmul.f32 %v7729_v63, %v944_v6  ;;  %v1329_v56 = vld [vmem:[#allocation2 + $0x119] sm:$0xff] }
 0x2c4   :  { %v2351_v32 = vpop.permute.xlu1 %2350  ;;  %v2605_v52 = vpop.permute.xlu0 %2604  ;;  %v1969_v59 = vmul.f32 %v6116_v55, %v1329_v56  ;;  %v7739_v63 = vld [vmem:[#allocation107_spill] sm:$0xff] }
 0x2c5   :  { %v2914_v61 = vsel %vm2901_vm2, %v2849_v3, %v2605_v52  ;;  %v2850_v58 = vsel %vm2836_vm1, %v2785_v34, %v2351_v32  ;;  %v1968_v52 = vmul.f32 %v6110_v19, %v498_v13  ;;  %v947_v34 = vld [vmem:[#allocation2 + $0x128] sm:$0xff]  ;;  %v949_v56 = vld [vmem:[#allocation2 + $0x138] sm:$0xff] }
 0x2c6   :  { %4116 = vmatprep.mubr.msk.f32.mxu0 %vm2966_vm3, %v2914_v61  ;;  %v7733_v19 = vld [vmem:[#allocation17_spill] sm:$0xff] }
 0x2c7   :  { %2386 = vrot.lane.b32.xlu1 %v1263_v5, %s4260_s7  ;;  %2384 = vrot.lane.b32.xlu0 %v1262_v22, %s4260_s7 }
 0x2c8   :  { %v2607_v35 = vpop.permute.xlu1 %2606  ;;  %v2097_v38 = vpop.permute.xlu0 %2096 }
 0x2c9   :  { %v2915_v31 = vsel %vm2901_vm2, %v2850_v58, %v2607_v35  ;;  %v2786_v36 = vsel %vm332_vm0, %v7727_v50, %v2097_v38  ;;  %v7734_v58 = vmax.f32 %v7733_v19, 0.0 }
 0x2ca   :  { %4117 = vmatmul.mubr.msk.f32.gmra.mrb[12].mxu0 %vm2966_vm3, %v2915_v31 }
 0x2cb   :  { %2642 = vrot.lane.b32.xlu1 %v1967_v30, %s4261_s4  ;;  %2640 = vrot.lane.b32.xlu0 %v1966_v26, %s4261_s4  ;;  %v7735_v30 = vld [vmem:[#allocation106_spill] sm:$0xff] }
 0x2cc   :  { %v2099_v23 = vpop.permute.xlu1 %2098  ;;  %v2353_v60 = vpop.permute.xlu0 %2352  ;;  %v1267_v31 = vmul.f32 %v7735_v30, %v947_v34 }
 0x2cd   :  { %v2851_v17 = vsel %vm2836_vm1, %v2786_v36, %v2353_v60  ;;  %v2787_v24 = vsel %vm332_vm0, %v7731_v62, %v2099_v23  ;;  %v1266_v23 = vmul.f32 %v7736_v20, %v946_v43  ;;  %v1331_v60 = vld [vmem:[#allocation2 + $0x129] sm:$0xff]  ;;  %v1970_v36 = vmul.f32 %v6118_v2, %v500_v21  ;;  %v7740_v2 = vld [vmem:[#allocation19_spill] sm:$0xff] }
 0x2ce   :  { %v7741_v62 = vmax.f32 %v7740_v2, 0.0  ;;  %v1972_v43 = vmul.f32 %v6126_v45, %v502_v9  ;;  %v951_v20 = vld [vmem:[#allocation2 + $0x148] sm:$0xff] }
 0x2cf   :  { %2134 = vrot.lane.b32.xlu1 %v881_v28, %s4259_s27  ;;  %2132 = vrot.lane.b32.xlu0 %v880_v10, %s4259_s27  ;;  %v7738_v28 = vmax.f32 %v7737_v42, 0.0  ;;  %v7747_v45 = vld [vmem:[#allocation21_spill] sm:$0xff] }
 0x2d0   :  { %v2355_v4 = vpop.permute.xlu1 %2354  ;;  %v2609_v46 = vpop.permute.xlu0 %2608 }
 0x2d1   :  { %v2916_v14 = vsel %vm2901_vm2, %v2851_v17, %v2609_v46  ;;  %v2852_v53 = vsel %vm2836_vm1, %v2787_v24, %v2355_v4  ;;  %v1971_v17 = vmul.f32 %v6124_v12, %v1331_v60  ;;  %v501_v46 = vld [vmem:[#allocation2 + $0x129] sm:$0xff] }
 0x2d2   :  { %4119 = vmatprep.mubr.msk.f32.mxu0 %vm2966_vm3, %v2916_v14  ;;  %v884_v14 = vmul.f32 %v5767_v48, %v500_v21 }
 0x2d3   :  { %2390 = vrot.lane.b32.xlu1 %v1265_v47, %s4260_s7  ;;  %2388 = vrot.lane.b32.xlu0 %v1264_v44, %s4260_s7  ;;  %v885_v44 = vmul.f32 %v7739_v63, %v501_v46  ;;  %v504_v46 = vld [vmem:[#allocation2 + $0x141] sm:$0xff] }
 0x2d4   :  { %v2611_v3 = vpop.permute.xlu1 %2610  ;;  %v2101_v32 = vpop.permute.xlu0 %2100 }
 0x2d5   :  { %v2917_v5 = vsel %vm2901_vm2, %v2852_v53, %v2611_v3  ;;  %v2788_v55 = vsel %vm332_vm0, %v7734_v58, %v2101_v32  ;;  %v7742_v3 = vld [vmem:[#allocation108_spill] sm:$0xff] }
 0x2d6   :  { %4120 = vmatmul.mubr.msk.f32.gmra.mrb[14].mxu0 %vm2966_vm3, %v2917_v5  ;;  %v1269_v32 = vmul.f32 %v7742_v3, %v949_v56  ;;  %v1333_v5 = vld [vmem:[#allocation2 + $0x139] sm:$0xff]  ;;  %v952_v3 = vld [vmem:[#allocation2 + $0x150] sm:$0xff] }
 0x2d7   :  { %2646 = vrot.lane.b32.xlu1 %v1969_v59, %s4261_s4  ;;  %2644 = vrot.lane.b32.xlu0 %v1968_v52, %s4261_s4  ;;  %v7743_v52 = vld [vmem:[#allocation162_spill] sm:$0xff]  ;;  %v1973_v19 = vmul.f32 %v6132_v29, %v1333_v5 }
 0x2d8   :  { %v2103_v22 = vpop.permute.xlu1 %2102  ;;  %v2357_v61 = vpop.permute.xlu0 %2356  ;;  %v1268_v59 = vmul.f32 %v7743_v52, %v948_v7  ;;  %v505_v7 = vld [vmem:[#allocation2 + $0x149] sm:$0xff] }
 0x2d9   :  { %v2853_v35 = vsel %vm2836_vm1, %v2788_v55, %v2357_v61  ;;  %v2789_v10 = vsel %vm332_vm0, %v7738_v28, %v2103_v22  ;;  %v7745_v22 = vmax.f32 %v7744_v54, 0.0  ;;  %v503_v55 = vld [vmem:[#allocation2 + $0x139] sm:$0xff] }
 0x2da   :  { %v7757_v54 = vld [vmem:[#allocation164_spill] sm:$0xff] }
 0x2db   :  { %2138 = vrot.lane.b32.xlu1 %v883_v8, %s4259_s27  ;;  %2136 = vrot.lane.b32.xlu0 %v882_v25, %s4259_s27 }
 0x2dc   :  { %v2359_v38 = vpop.permute.xlu1 %2358  ;;  %v2613_v26 = vpop.permute.xlu0 %2612 }
 0x2dd   :  { %v2918_v15 = vsel %vm2901_vm2, %v2853_v35, %v2613_v26  ;;  %v2854_v6 = vsel %vm2836_vm1, %v2789_v10, %v2359_v38  ;;  %v7746_v26 = vld [vmem:[#allocation109_spill] sm:$0xff]  ;;  %v7749_v10 = vld [vmem:[#allocation110_spill] sm:$0xff] }
 0x2de   :  { %4122 = vmatprep.mubr.msk.f32.mxu0 %vm2966_vm3, %v2918_v15  ;;  %v887_v30 = vmul.f32 %v7746_v26, %v503_v55  ;;  %v7748_v15 = vmax.f32 %v7747_v45, 0.0  ;;  %v1271_v21 = vmul.f32 %v7749_v10, %v951_v20  ;;  %v507_v26 = vld [vmem:[#allocation2 + $0x159] sm:$0xff]  ;;  %v955_v45 = vld [vmem:[#allocation2 + $0x168] sm:$0xff] }
 0x2df   :  { %2394 = vrot.lane.b32.xlu1 %v1267_v31, %s4260_s7  ;;  %2392 = vrot.lane.b32.xlu0 %v1266_v23, %s4260_s7  ;;  %v886_v31 = vmul.f32 %v5775_v57, %v502_v9  ;;  %v950_v23 = vld [vmem:[#allocation2 + $0x140] sm:$0xff]  ;;  %v1339_v10 = vld [vmem:[#allocation2 + $0x169] sm:$0xff] }
 0x2e0   :  { %v2615_v49 = vpop.permute.xlu1 %2614  ;;  %v2105_v50 = vpop.permute.xlu0 %2104  ;;  %v1337_v9 = vld [vmem:[#allocation2 + $0x159] sm:$0xff] }
 0x2e1   :  { %v2919_v4 = vsel %vm2901_vm2, %v2854_v6, %v2615_v49  ;;  %v2790_v12 = vsel %vm332_vm0, %v7741_v62, %v2105_v50  ;;  %v7750_v6 = vld [vmem:[#allocation163_spill] sm:$0xff]  ;;  %v1335_v50 = vld [vmem:[#allocation2 + $0x149] sm:$0xff] }
 0x2e2   :  { %4123 = vmatmul.mubr.msk.f32.gmra.mrb[16].mxu0 %vm2966_vm3, %v2919_v4  ;;  %v1270_v49 = vmul.f32 %v7750_v6, %v950_v23  ;;  %v7763_v6 = vld [vmem:[#allocation25_spill] sm:$0xff] }
 0x2e3   :  { %2650 = vrot.lane.b32.xlu1 %v1971_v17, %s4261_s4  ;;  %2648 = vrot.lane.b32.xlu0 %v1970_v36, %s4261_s4  ;;  %v7751_v36 = vld [vmem:[#allocation22_spill] sm:$0xff] }
 0x2e4   :  { %v2107_v11 = vpop.permute.xlu1 %2106  ;;  %v2361_v47 = vpop.permute.xlu0 %2360  ;;  %v7752_v17 = vmax.f32 %v7751_v36, 0.0 }
 0x2e5   :  { %v2855_v24 = vsel %vm2836_vm1, %v2790_v12, %v2361_v47  ;;  %v2791_v61 = vsel %vm332_vm0, %v7745_v22, %v2107_v11  ;;  %v7753_v12 = vld [vmem:[#allocation111_spill] sm:$0xff]  ;;  %v1272_v22 = vmul.f32 %v7757_v54, %v952_v3 }
 0x2e7   :  { %2142 = vrot.lane.b32.xlu1 %v885_v44, %s4259_s27  ;;  %2140 = vrot.lane.b32.xlu0 %v884_v14, %s4259_s27  ;;  %v1974_v44 = vmul.f32 %v6134_v18, %v504_v46  ;;  %v1975_v14 = vmul.f32 %v6140_v40, %v1335_v50  ;;  %v7754_v18 = vld [vmem:[#allocation23_spill] sm:$0xff] }
 0x2e8   :  { %v2363_v13 = vpop.permute.xlu1 %2362  ;;  %v2617_v53 = vpop.permute.xlu0 %2616 }
 0x2e9   :  { %v2920_v48 = vsel %vm2901_vm2, %v2855_v24, %v2617_v53  ;;  %v2856_v8 = vsel %vm2836_vm1, %v2791_v61, %v2363_v13  ;;  %v889_v24 = vmul.f32 %v7753_v12, %v505_v7  ;;  %v888_v13 = vmul.f32 %v5783_v27, %v504_v46  ;;  %v953_v53 = vld [vmem:[#allocation2 + $0x158] sm:$0xff]  ;;  %v956_v12 = vld [vmem:[#allocation2 + $0x170] sm:$0xff] }
 0x2ea   :  { %4125 = vmatprep.mubr.msk.f32.mxu0 %vm2966_vm3, %v2920_v48  ;;  %v7756_v48 = vld [vmem:[#allocation112_spill] sm:$0xff]  ;;  %v7767_v7 = vld [vmem:[#allocation167_spill] sm:$0xff] }
 0x2eb   :  { %2398 = vrot.lane.b32.xlu1 %v1269_v32, %s4260_s7  ;;  %2396 = vrot.lane.b32.xlu0 %v1268_v59, %s4260_s7  ;;  %v7755_v32 = vmax.f32 %v7754_v18, 0.0  ;;  %v1273_v5 = vmul.f32 %v7756_v48, %v953_v53 }
 0x2ec   :  { %v2619_v25 = vpop.permute.xlu1 %2618  ;;  %v2109_v34 = vpop.permute.xlu0 %2108 }
 0x2ed   :  { %v2921_v58 = vsel %vm2901_vm2, %v2856_v8, %v2619_v25  ;;  %v2792_v29 = vsel %vm332_vm0, %v7748_v15, %v2109_v34  ;;  %v7758_v8 = vld [vmem:[#allocation24_spill] sm:$0xff] }
 0x2ee   :  { %4126 = vmatmul.mubr.msk.f32.gmra.mrb[18].mxu0 %vm2966_vm3, %v2921_v58  ;;  %v7759_v25 = vmax.f32 %v7758_v8, 0.0  ;;  %v954_v15 = vld [vmem:[#allocation2 + $0x160] sm:$0xff] }
 0x2ef   :  { %2654 = vrot.lane.b32.xlu1 %v1973_v19, %s4261_s4  ;;  %2652 = vrot.lane.b32.xlu0 %v1972_v43, %s4261_s4  ;;  %v506_v43 = vld [vmem:[#allocation2 + $0x151] sm:$0xff]  ;;  %v511_v8 = vld [vmem:[#allocation2 + $0x179] sm:$0xff] }
 0x2f0   :  { %v2111_v35 = vpop.permute.xlu1 %2110  ;;  %v2365_v38 = vpop.permute.xlu0 %2364  ;;  %v1976_v55 = vmul.f32 %v6142_v39, %v506_v43  ;;  %v890_v23 = vmul.f32 %v5791_v51, %v506_v43 }
 0x2f1   :  { %v2857_v60 = vsel %vm2836_vm1, %v2792_v29, %v2365_v38  ;;  %v2793_v4 = vsel %vm332_vm0, %v7752_v17, %v2111_v35  ;;  %v1977_v35 = vmul.f32 %v6148_v33, %v1337_v9  ;;  %v7761_v33 = vld [vmem:[#allocation114_spill] sm:$0xff] }
 0x2f3   :  { %2146 = vrot.lane.b32.xlu1 %v887_v30, %s4259_s27  ;;  %2144 = vrot.lane.b32.xlu0 %v886_v31, %s4259_s27  ;;  %v7760_v31 = vld [vmem:[#allocation113_spill] sm:$0xff] }
 0x2f4   :  { %v2367_v42 = vpop.permute.xlu1 %2366  ;;  %v2621_v28 = vpop.permute.xlu0 %2620  ;;  %v891_v20 = vmul.f32 %v7760_v31, %v507_v26  ;;  %v7775_v26 = vld [vmem:[#allocation169_spill] sm:$0xff]  ;;  %v958_v31 = vld [vmem:[#allocation2 + $0x180] sm:$0xff] }
 0x2f5   :  { %v2922_v57 = vsel %vm2901_vm2, %v2857_v60, %v2621_v28  ;;  %v2858_v11 = vsel %vm2836_vm1, %v2793_v4, %v2367_v42  ;;  %v1275_v60 = vmul.f32 %v7761_v33, %v955_v45  ;;  %v7762_v42 = vld [vmem:[#allocation165_spill] sm:$0xff]  ;;  %v7776_v45 = vld [vmem:[#allocation118_spill] sm:$0xff] }
 0x2f6   :  { %4128 = vmatprep.mubr.msk.f32.mxu0 %vm2966_vm3, %v2922_v57  ;;  %v1274_v28 = vmul.f32 %v7762_v42, %v954_v15  ;;  %v508_v57 = vld [vmem:[#allocation2 + $0x161] sm:$0xff] }
 0x2f7   :  { %2402 = vrot.lane.b32.xlu1 %v1271_v21, %s4260_s7  ;;  %2400 = vrot.lane.b32.xlu0 %v1270_v49, %s4260_s7  ;;  %v7764_v49 = vmax.f32 %v7763_v6, 0.0  ;;  %v1978_v17 = vmul.f32 %v6150_v1, %v508_v57  ;;  %v7765_v4 = vld [vmem:[#allocation73_spill] sm:$0xff]  ;;  %v7768_v1 = vld [vmem:[#allocation26_spill] sm:$0xff]  ;;  %v7778_v42 = vld [vmem:[#allocation28_spill] sm:$0xff] }
 0x2f8   :  { %v2623_v47 = vpop.permute.xlu1 %2622  ;;  %v2113_v63 = vpop.permute.xlu0 %2112  ;;  %v1979_v46 = vmul.f32 %v7765_v4, %v1339_v10 }
 0x2f9   :  { %v2923_v56 = vsel %vm2901_vm2, %v2858_v11, %v2623_v47  ;;  %v2794_v40 = vsel %vm332_vm0, %v7755_v32, %v2113_v63  ;;  %v509_v47 = vld [vmem:[#allocation2 + $0x169] sm:$0xff] }
 0x2fa   :  { %4129 = vmatmul.mubr.msk.f32.gmra.mrb[20].mxu0 %vm2966_vm3, %v2923_v56 }
 0x2fb   :  { %2658 = vrot.lane.b32.xlu1 %v1975_v14, %s4261_s4  ;;  %2656 = vrot.lane.b32.xlu0 %v1974_v44, %s4261_s4  ;;  %v7766_v14 = vld [vmem:[#allocation115_spill] sm:$0xff] }
 0x2fc   :  { %v2115_v2 = vpop.permute.xlu1 %2114  ;;  %v2369_v62 = vpop.permute.xlu0 %2368  ;;  %v893_v56 = vmul.f32 %v7766_v14, %v509_v47  ;;  %v7782_v14 = vld [vmem:[#allocation171_spill] sm:$0xff] }
 0x2fd   :  { %v2859_v52 = vsel %vm2836_vm1, %v2794_v40, %v2369_v62  ;;  %v2795_v34 = vsel %vm332_vm0, %v7759_v25, %v2115_v2  ;;  %v892_v2 = vmul.f32 %v7767_v7, %v508_v57  ;;  %v957_v62 = vld [vmem:[#allocation2 + $0x178] sm:$0xff]  ;;  %v7770_v40 = vld [vmem:[#allocation116_spill] sm:$0xff] }
 0x2fe   :  { %v961_v7 = vld [vmem:[#allocation2 + $0x198] sm:$0xff] }
 0x2ff   :  { %2150 = vrot.lane.b32.xlu1 %v889_v24, %s4259_s27  ;;  %2148 = vrot.lane.b32.xlu0 %v888_v13, %s4259_s27  ;;  %v7769_v24 = vmax.f32 %v7768_v1, 0.0 }
 0x300   :  { %v2625_v59 = vpop.permute.xlu0 %2624  ;;  %v2371_v61 = vpop.permute.xlu1 %2370 }
 0x301   :  { %v2924_v27 = vsel %vm2901_vm2, %v2859_v52, %v2625_v59  ;;  %v2860_v19 = vsel %vm2836_vm1, %v2795_v34, %v2371_v61  ;;  %v1277_v52 = vmul.f32 %v7770_v40, %v957_v62  ;;  %v7771_v59 = vld [vmem:[#allocation166_spill] sm:$0xff]  ;;  %v7772_v34 = vld [vmem:[#allocation27_spill] sm:$0xff] }
 0x302   :  { %4131 = vmatprep.mubr.msk.f32.mxu0 %vm2966_vm3, %v2924_v27  ;;  %v1276_v48 = vmul.f32 %v7771_v59, %v956_v12  ;;  %v7773_v43 = vmax.f32 %v7772_v34, 0.0  ;;  %v7789_v34 = vld [vmem:[#allocation30_spill] sm:$0xff] }
 0x303   :  { %2406 = vrot.lane.b32.xlu1 %v1273_v5, %s4260_s7  ;;  %2404 = vrot.lane.b32.xlu0 %v1272_v22, %s4260_s7  ;;  %v1341_v5 = vld [vmem:[#allocation2 + $0x179] sm:$0xff]  ;;  %v510_v22 = vld [vmem:[#allocation2 + $0x171] sm:$0xff] }
 0x304   :  { %v2627_v58 = vpop.permute.xlu0 %2626  ;;  %v1980_v27 = vmul.f32 %v6158_v37, %v510_v22  ;;  %v1981_v9 = vmul.f32 %v6164_v16, %v1341_v5  ;;  %v894_v37 = vmul.f32 %v7775_v26, %v510_v22  ;;  %v7787_v22 = vld [vmem:[#allocation79_spill] sm:$0xff]  ;;  %v7791_v26 = vld [vmem:[#allocation121_spill] sm:$0xff] }
 0x305   :  { %v2925_v38 = vsel %vm2901_vm2, %v2860_v19, %v2627_v58 }
 0x306   :  { %4132 = vmatmul.mubr.msk.f32.gmra.mrb[22].mxu0 %vm2966_vm3, %v2925_v38 }
 0x307   :  { %2662 = vrot.lane.b32.xlu1 %v1977_v35, %s4261_s4  ;;  %2660 = vrot.lane.b32.xlu0 %v1976_v55, %s4261_s4  ;;  %v7774_v35 = vld [vmem:[#allocation117_spill] sm:$0xff] }
 0x308   :  { %v2117_v30 = vpop.permute.xlu0 %2116  ;;  %v895_v38 = vmul.f32 %v7774_v35, %v511_v8  ;;  %v515_v8 = vld [vmem:[#allocation2 + $0x199] sm:$0xff] }
 0x309   :  { %v2796_v51 = vsel %vm332_vm0, %v7764_v49, %v2117_v30  ;;  %v959_v30 = vld [vmem:[#allocation2 + $0x188] sm:$0xff] }
 0x30a   :  { %v6526_v29 = vpop.permute.xlu1 %1898  ;;  %v1279_v15 = vmul.f32 %v7776_v45, %v959_v30 }
 0x30b   :  { %2154 = vrot.lane.b32.xlu1 %v891_v20, %s4259_s27  ;;  %2152 = vrot.lane.b32.xlu0 %v890_v23, %s4259_s27 }
 0x30c   :  { %v2373_v39 = vpop.permute.xlu0 %2372 }
 0x30d   :  { %v2861_v50 = vsel %vm2836_vm1, %v2796_v51, %v2373_v39  ;;  %v7777_v39 = vld [vmem:[#allocation168_spill] sm:$0xff] }
 0x30e   :  { %v6532_v21 = vpop.permute.xlu1 %1903  ;;  %v1278_v33 = vmul.f32 %v7777_v39, %v958_v31  ;;  %v512_v51 = vld [vmem:[#allocation2 + $0x181] sm:$0xff] }
 0x30f   :  { %2410 = vrot.lane.b32.xlu1 %v1275_v60, %s4260_s7  ;;  %2408 = vrot.lane.b32.xlu0 %v1274_v28, %s4260_s7  ;;  %v1343_v60 = vld [vmem:[#allocation2 + $0x189] sm:$0xff]  ;;  %v7779_v28 = vmax.f32 %v7778_v42, 0.0 }
 0x310   :  { %v2629_v36 = vpop.permute.xlu0 %2628  ;;  %v963_v31 = vld [vmem:[#allocation2 + $0x1a8] sm:$0xff] }
 0x311   :  { %v2926_v11 = vsel %vm2901_vm2, %v2861_v50, %v2629_v36  ;;  %v1982_v36 = vmul.f32 %v6166_v41, %v512_v51  ;;  %v7783_v41 = vld [vmem:[#allocation29_spill] sm:$0xff] }
 0x312   :  { %v2119_v63 = vpop.permute.xlu1 %2118  ;;  %4134 = vmatprep.mubr.msk.f32.mxu0 %vm2966_vm3, %v2926_v11  ;;  %v7784_v12 = vmax.f32 %v7783_v41, 0.0  ;;  %v1347_v42 = vld [vmem:[#allocation2 + $0x1a9] sm:$0xff]  ;;  %v965_v41 = vld [vmem:[#allocation2 + $0x1b8] sm:$0xff] }
 0x313   :  { %2666 = vrot.lane.b32.xlu1 %v1979_v46, %s4261_s4  ;;  %2664 = vrot.lane.b32.xlu0 %v1978_v17, %s4261_s4  ;;  %v2797_v13 = vsel %vm332_vm0, %v7769_v24, %v2119_v63  ;;  %v7780_v17 = vld [vmem:[#allocation76_spill] sm:$0xff]  ;;  %v513_v46 = vld [vmem:[#allocation2 + $0x189] sm:$0xff]  ;;  %v7781_v63 = vld [vmem:[#allocation119_spill] sm:$0xff] }
 0x314   :  { %v2631_v44 = vpop.permute.xlu0 %2630  ;;  %v1983_v4 = vmul.f32 %v7780_v17, %v1343_v60  ;;  %v7797_v17 = vld [vmem:[#allocation151_spill] sm:$0xff] }
 0x316   :  { %v2375_v53 = vpop.permute.xlu1 %2374 }
 0x317   :  { %v2862_v3 = vsel %vm2836_vm1, %v2797_v13, %v2375_v53  ;;  %2158 = vrot.lane.b32.xlu1 %v893_v56, %s4259_s27  ;;  %2156 = vrot.lane.b32.xlu0 %v892_v2, %s4259_s27  ;;  %v896_v56 = vmul.f32 %v7782_v14, %v512_v51  ;;  %v960_v2 = vld [vmem:[#allocation2 + $0x190] sm:$0xff]  ;;  %v7785_v53 = vld [vmem:[#allocation120_spill] sm:$0xff]  ;;  %v7798_v14 = vld [vmem:[#allocation123_spill] sm:$0xff] }
 0x318   :  { %v2121_v18 = vpop.permute.xlu0 %2120  ;;  %v2927_v32 = vsel %vm2901_vm2, %v2862_v3, %v2631_v44  ;;  %v897_v44 = vmul.f32 %v7781_v63, %v513_v46  ;;  %v1281_v3 = vmul.f32 %v7785_v53, %v961_v7  ;;  %v516_v51 = vld [vmem:[#allocation2 + $0x1a1] sm:$0xff]  ;;  %v7799_v7 = vld [vmem:[#allocation175_spill] sm:$0xff]  ;;  %v7801_v53 = vld [vmem:[#allocation174_spill] sm:$0xff] }
 0x319   :  { %4135 = vmatmul.mubr.msk.f32.gmra.mrb[24].mxu0 %vm2966_vm3, %v2927_v32  ;;  %v2798_v19 = vsel %vm332_vm0, %v7773_v43, %v2121_v18  ;;  %v7786_v18 = vld [vmem:[#allocation170_spill] sm:$0xff]  ;;  %v7790_v43 = vmax.f32 %v7789_v34, 0.0 }
 0x31a   :  { %v6558_v54 = vpop.permute.xlu1 %1908  ;;  %v1280_v32 = vmul.f32 %v7786_v18, %v960_v2  ;;  %v900_v2 = vmul.f32 %v7799_v7, %v516_v51  ;;  %v7802_v18 = vld [vmem:[#allocation32_spill] sm:$0xff] }
 0x31b   :  { %2414 = vrot.lane.b32.xlu1 %v1277_v52, %s4260_s7  ;;  %2412 = vrot.lane.b32.xlu0 %v1276_v48, %s4260_s7  ;;  %v1345_v52 = vld [vmem:[#allocation2 + $0x199] sm:$0xff]  ;;  %v514_v48 = vld [vmem:[#allocation2 + $0x191] sm:$0xff] }
 0x31c   :  { %v2377_v61 = vpop.permute.xlu0 %2376 }
 0x31d   :  { %v2863_v58 = vsel %vm2836_vm1, %v2798_v19, %v2377_v61  ;;  %v1984_v61 = vmul.f32 %v7787_v22, %v514_v48 }
 0x31e   :  { %v6564_v25 = vpop.permute.xlu1 %1913 }
 0x31f   :  { %2670 = vrot.lane.b32.xlu1 %v1981_v9, %s4261_s4  ;;  %2668 = vrot.lane.b32.xlu0 %v1980_v27, %s4261_s4  ;;  %v7788_v27 = vld [vmem:[#allocation82_spill] sm:$0xff] }
 0x320   :  { %v2633_v55 = vpop.permute.xlu0 %2632  ;;  %v1985_v9 = vmul.f32 %v7788_v27, %v1345_v52  ;;  %v1349_v52 = vld [vmem:[#allocation2 + $0x1b9] sm:$0xff] }
 0x321   :  { %v2928_v16 = vsel %vm2901_vm2, %v2863_v58, %v2633_v55 }
 0x322   :  { %v2123_v20 = vpop.permute.xlu1 %2122  ;;  %4137 = vmatprep.mubr.msk.f32.mxu0 %vm2966_vm3, %v2928_v16  ;;  %v7792_v16 = vld [vmem:[#allocation173_spill] sm:$0xff] }
 0x323   :  { %2162 = vrot.lane.b32.xlu1 %v895_v38, %s4259_s27  ;;  %2160 = vrot.lane.b32.xlu0 %v894_v37, %s4259_s27  ;;  %v2799_v10 = vsel %vm332_vm0, %v7779_v28, %v2123_v20  ;;  %v899_v37 = vmul.f32 %v7791_v26, %v515_v8  ;;  %v898_v30 = vmul.f32 %v7792_v16, %v514_v48  ;;  %v962_v20 = vld [vmem:[#allocation2 + $0x1a0] sm:$0xff]  ;;  %v7808_v16 = vld [vmem:[#allocation125_spill] sm:$0xff] }
 0x324   :  { %v2635_v23 = vpop.permute.xlu0 %2634 }
 0x326   :  { %v2379_v6 = vpop.permute.xlu1 %2378 }
 0x327   :  { %v2864_v49 = vsel %vm2836_vm1, %v2799_v10, %v2379_v6  ;;  %2418 = vrot.lane.b32.xlu1 %v1279_v15, %s4260_s7  ;;  %2416 = vrot.lane.b32.xlu0 %v1278_v33, %s4260_s7  ;;  %v7793_v15 = vld [vmem:[#allocation122_spill] sm:$0xff]  ;;  %v7794_v33 = vld [vmem:[#allocation172_spill] sm:$0xff]  ;;  %v7795_v10 = vld [vmem:[#allocation31_spill] sm:$0xff] }
 0x328   :  { %v2125_v57 = vpop.permute.xlu0 %2124  ;;  %v2929_v50 = vsel %vm2901_vm2, %v2864_v49, %v2635_v23  ;;  %v1283_v39 = vmul.f32 %v7793_v15, %v963_v31  ;;  %v1282_v60 = vmul.f32 %v7794_v33, %v962_v20  ;;  %v7796_v6 = vmax.f32 %v7795_v10, 0.0  ;;  %v7809_v31 = vld [vmem:[#allocation177_spill] sm:$0xff]  ;;  %v966_v15 = vld [vmem:[#allocation2 + $0x1c0] sm:$0xff] }
 0x329   :  { %4138 = vmatmul.mubr.msk.f32.gmra.mrb[26].mxu0 %vm2966_vm3, %v2929_v50  ;;  %v2800_v1 = vsel %vm332_vm0, %v7784_v12, %v2125_v57  ;;  %v964_v12 = vld [vmem:[#allocation2 + $0x1b0] sm:$0xff]  ;;  %v7811_v10 = vld [vmem:[#allocation176_spill] sm:$0xff] }
 0x32a   :  { %v6590_v11 = vpop.permute.xlu1 %1918 }
 0x32b   :  { %2674 = vrot.lane.b32.xlu1 %v1983_v4, %s4261_s4  ;;  %2672 = vrot.lane.b32.xlu0 %v1982_v36, %s4261_s4  ;;  %v1986_v36 = vmul.f32 %v6182_v0, %v516_v51  ;;  %v1987_v4 = vmul.f32 %v7797_v17, %v1347_v42 }
 0x32c   :  { %v2381_v47 = vpop.permute.xlu0 %2380 }
 0x32d   :  { %v2865_v24 = vsel %vm2836_vm1, %v2800_v1, %v2381_v47  ;;  %v517_v47 = vld [vmem:[#allocation2 + $0x1a9] sm:$0xff] }
 0x32e   :  { %v6596_v62 = vpop.permute.xlu1 %1923 }
 0x32f   :  { %2166 = vrot.lane.b32.xlu1 %v897_v44, %s4259_s27  ;;  %2164 = vrot.lane.b32.xlu0 %v896_v56, %s4259_s27  ;;  %v901_v56 = vmul.f32 %v7798_v14, %v517_v47 }
 0x330   :  { %v2637_v13 = vpop.permute.xlu0 %2636 }
 0x331   :  { %v2930_v40 = vsel %vm2901_vm2, %v2865_v24, %v2637_v13  ;;  %v7800_v24 = vld [vmem:[#allocation124_spill] sm:$0xff] }
 0x332   :  { %v2127_v59 = vpop.permute.xlu1 %2126  ;;  %4140 = vmatprep.mubr.msk.f32.mxu0 %vm2966_vm3, %v2930_v40  ;;  %v1285_v13 = vmul.f32 %v7800_v24, %v965_v41 }
 0x333   :  { %2422 = vrot.lane.b32.xlu1 %v1281_v3, %s4260_s7  ;;  %2420 = vrot.lane.b32.xlu0 %v1280_v32, %s4260_s7  ;;  %v2801_v19 = vsel %vm332_vm0, %v7790_v43, %v2127_v59  ;;  %v1284_v3 = vmul.f32 %v7801_v53, %v964_v12  ;;  %v7803_v32 = vmax.f32 %v7802_v18, 0.0  ;;  %v7806_v43 = vld [vmem:[#allocation136_spill] sm:$0xff]  ;;  %v7816_v53 = vld [vmem:[#allocation138_spill] sm:$0xff]  ;;  %v7817_v18 = vld [vmem:[#allocation135_spill] sm:$0xff] }
 0x334   :  { %v2639_v5 = vpop.permute.xlu0 %2638  ;;  %v520_v12 = vld [vmem:[#allocation2 + $0x1c1] sm:$0xff] }
 0x336   :  { %v2383_v58 = vpop.permute.xlu1 %2382 }
 0x337   :  { %v2866_v55 = vsel %vm2836_vm1, %v2801_v19, %v2383_v58  ;;  %2678 = vrot.lane.b32.xlu1 %v1985_v9, %s4261_s4  ;;  %2676 = vrot.lane.b32.xlu0 %v1984_v61, %s4261_s4  ;;  %v518_v9 = vld [vmem:[#allocation2 + $0x1b1] sm:$0xff]  ;;  %v7807_v58 = vld [vmem:[#allocation68_spill] sm:$0xff] }
 0x338   :  { %v2129_v35 = vpop.permute.xlu0 %2128  ;;  %v2931_v38 = vsel %vm2901_vm2, %v2866_v55, %v2639_v5  ;;  %v7804_v5 = vld [vmem:[#allocation33_spill] sm:$0xff]  ;;  %v1988_v19 = vmul.f32 %v7806_v43, %v518_v9  ;;  %v1989_v55 = vmul.f32 %v7807_v58, %v1349_v52  ;;  %v902_v20 = vmul.f32 %v7809_v31, %v518_v9  ;;  %v7819_v9 = vld [vmem:[#allocation179_spill] sm:$0xff]  ;;  %v968_v43 = vld [vmem:[#allocation2 + $0x1d0] sm:$0xff] }
 0x339   :  { %4141 = vmatmul.mubr.msk.f32.gmra.mrb[28].mxu0 %vm2966_vm3, %v2931_v38  ;;  %v2802_v49 = vsel %vm332_vm0, %v7796_v6, %v2129_v35  ;;  %v7805_v22 = vmax.f32 %v7804_v5, 0.0  ;;  %v519_v38 = vld [vmem:[#allocation2 + $0x1b9] sm:$0xff]  ;;  %v1286_v6 = vmul.f32 %v7811_v10, %v966_v15  ;;  %v7824_v15 = vld [vmem:[#allocation37_spill] sm:$0xff] }
 0x33a   :  { %v6622_v23 = vpop.permute.xlu1 %1928 }
 0x33b   :  { %2170 = vrot.lane.b32.xlu1 %v899_v37, %s4259_s27  ;;  %2168 = vrot.lane.b32.xlu0 %v898_v30, %s4259_s27  ;;  %v903_v30 = vmul.f32 %v7808_v16, %v519_v38  ;;  %v7821_v38 = vld [vmem:[#allocation178_spill] sm:$0xff]  ;;  %v7822_v16 = vld [vmem:[#allocation36_spill] sm:$0xff] }
 0x33c   :  { %v2385_v45 = vpop.permute.xlu0 %2384 }
 0x33d   :  { %v2867_v57 = vsel %vm2836_vm1, %v2802_v49, %v2385_v45  ;;  %v967_v45 = vld [vmem:[#allocation2 + $0x1c8] sm:$0xff]  ;;  %v7812_v49 = vld [vmem:[#allocation34_spill] sm:$0xff] }
 0x33e   :  { %v6628_v28 = vpop.permute.xlu1 %1933  ;;  %v7813_v51 = vmax.f32 %v7812_v49, 0.0 }
 0x33f   :  { %2426 = vrot.lane.b32.xlu1 %v1283_v39, %s4260_s7  ;;  %2424 = vrot.lane.b32.xlu0 %v1282_v60, %s4260_s7  ;;  %v7810_v60 = vld [vmem:[#allocation126_spill] sm:$0xff] }
 0x340   :  { %v2641_v50 = vpop.permute.xlu0 %2640  ;;  %v1287_v42 = vmul.f32 %v7810_v60, %v967_v45  ;;  %v1353_v45 = vld [vmem:[#allocation2 + $0x1d9] sm:$0xff] }
 0x341   :  { %v2932_v46 = vsel %vm2901_vm2, %v2867_v57, %v2641_v50 }
 0x342   :  { %v2131_v63 = vpop.permute.xlu1 %2130  ;;  %4143 = vmatprep.mubr.msk.f32.mxu0 %vm2966_vm3, %v2932_v46 }
 0x343   :  { %2682 = vrot.lane.b32.xlu1 %v1987_v4, %s4261_s4  ;;  %2680 = vrot.lane.b32.xlu0 %v1986_v36, %s4261_s4  ;;  %v2803_v40 = vsel %vm332_vm0, %v7803_v32, %v2131_v63  ;;  %v1351_v36 = vld [vmem:[#allocation2 + $0x1c9] sm:$0xff] }
 0x344   :  { %v2133_v44 = vpop.permute.xlu0 %2132  ;;  %v1991_v32 = vmul.f32 %v7817_v18, %v1351_v36 }
 0x345   :  { %v2804_v61 = vsel %vm332_vm0, %v7805_v22, %v2133_v44  ;;  %v7814_v44 = vld [vmem:[#allocation35_spill] sm:$0xff] }
 0x346   :  { %v2387_v0 = vpop.permute.xlu1 %2386  ;;  %v7815_v14 = vmax.f32 %v7814_v44, 0.0 }
 0x347   :  { %2174 = vrot.lane.b32.xlu1 %v901_v56, %s4259_s27  ;;  %2172 = vrot.lane.b32.xlu0 %v900_v2, %s4259_s27  ;;  %v2868_v59 = vsel %vm2836_vm1, %v2803_v40, %v2387_v0 }
 0x348   :  { %v2389_v1 = vpop.permute.xlu0 %2388 }
 0x349   :  { %v2869_v8 = vsel %vm2836_vm1, %v2804_v61, %v2389_v1  ;;  %v7818_v61 = vld [vmem:[#allocation127_spill] sm:$0xff] }
 0x34a   :  { %v2643_v48 = vpop.permute.xlu1 %2642 }
 0x34b   :  { %v2933_v27 = vsel %vm2901_vm2, %v2868_v59, %v2643_v48  ;;  %2430 = vrot.lane.b32.xlu1 %v1285_v13, %s4260_s7  ;;  %2428 = vrot.lane.b32.xlu0 %v1284_v3, %s4260_s7  ;;  %v1990_v3 = vmul.f32 %v7816_v53, %v520_v12  ;;  %v521_v59 = vld [vmem:[#allocation2 + $0x1c9] sm:$0xff] }
 0x34c   :  { %4144 = vmatmul.mubr.msk.f32.gmra.mrb[30].mxu0 %vm2966_vm3, %v2933_v27  ;;  %v2645_v34 = vpop.permute.xlu0 %2644  ;;  %v905_v27 = vmul.f32 %v7818_v61, %v521_v59  ;;  %v971_v53 = vld [vmem:[#allocation2 + $0x1e8] sm:$0xff]  ;;  %v7829_v59 = vld [vmem:[#allocation180_spill] sm:$0xff] }
 0x34d   :  { %v2934_v35 = vsel %vm2901_vm2, %v2869_v8, %v2645_v34  ;;  %v904_v8 = vmul.f32 %v7819_v9, %v520_v12  ;;  %v969_v34 = vld [vmem:[#allocation2 + $0x1d8] sm:$0xff] }
 0x34e   :  { %v2135_v26 = vpop.permute.xlu1 %2134  ;;  %4146 = vmatprep.mubr.msk.f32.mxu1 %vm2966_vm3, %v2934_v35 }
 0x34f   :  { %2686 = vrot.lane.b32.xlu1 %v1989_v55, %s4261_s4  ;;  %2684 = vrot.lane.b32.xlu0 %v1988_v19, %s4261_s4  ;;  %v2805_v57 = vsel %vm332_vm0, %v7813_v51, %v2135_v26  ;;  %v7820_v55 = vld [vmem:[#allocation128_spill] sm:$0xff]  ;;  %v1288_v26 = vmul.f32 %v7821_v38, %v968_v43 }
 0x350   :  { %v2137_v37 = vpop.permute.xlu0 %2136  ;;  %v1289_v35 = vmul.f32 %v7820_v55, %v969_v34  ;;  %v7832_v34 = vld [vmem:[#allocation39_spill] sm:$0xff] }
 0x351   :  { %v2806_v56 = vsel %vm332_vm0, %v7815_v14, %v2137_v37  ;;  %v1352_v37 = vld [vmem:[#allocation2 + $0x1d1] sm:$0xff]  ;;  %v523_v14 = vld [vmem:[#allocation2 + $0x1d9] sm:$0xff]  ;;  %v7833_v43 = vmax.f32 %v7832_v34, 0.0 }
 0x352   :  { %v2391_v39 = vpop.permute.xlu1 %2390 }
 0x353   :  { %2178 = vrot.lane.b32.xlu1 %v903_v30, %s4259_s27  ;;  %2176 = vrot.lane.b32.xlu0 %v902_v20, %s4259_s27  ;;  %v2870_v17 = vsel %vm2836_vm1, %v2805_v57, %v2391_v39  ;;  %v7823_v30 = vmax.f32 %v7822_v16, 0.0  ;;  %v7825_v39 = vmax.f32 %v7824_v15, 0.0 }
 0x354   :  { %v2393_v33 = vpop.permute.xlu0 %2392 }
 0x355   :  { %v4100_v50 = vpop.f32.mrb[0].mxu0  ;;  %v2871_v0 = vsel %vm2836_vm1, %v2806_v56, %v2393_v33  ;;  %v522_v56 = vld [vmem:[#allocation2 + $0x1d1] sm:$0xff] }
 0x356   :  { %3545 = vst.msk [vmem:[%s7304_s5 + $0x8] sm:$0xff] %vm2966_vm3, %v4100_v50  ;;  %v3609_v4 = vsel %vm2966_vm3, %v4100_v50, 0.0  ;;  %v3742_v46 = vmul.f32 %v4100_v50, %v4100_v50  ;;  %v2647_v47 = vpop.permute.xlu1 %2646  ;;  %v3225_v63 = vpop.f32.mrb[1].mxu0  ;;  %v1992_v50 = vmul.f32 %v6526_v29, %v1352_v37 }
 0x357   :  { %v2935_v7 = vsel %vm2901_vm2, %v2870_v17, %v2647_v47  ;;  %3544 = vst.msk [vmem:[%s7304_s5] sm:$0xff] %vm2966_vm3, %v3225_v63  ;;  %v3608_v2 = vsel %vm2966_vm3, %v3225_v63, 0.0  ;;  %v3741_v41 = vmul.f32 %v3225_v63, %v3225_v63  ;;  %2434 = vrot.lane.b32.xlu1 %v1287_v42, %s4260_s7  ;;  %2432 = vrot.lane.b32.xlu0 %v1286_v6, %s4260_s7 }
 0x358   :  { %v3806_v1 = vsel %vm2966_vm3, %v3742_v46, 0.0  ;;  %v3610_v24 = vadd.f32 %v3609_v4, %v3608_v2  ;;  %4147 = vmatmul.mubr.msk.f32.vlgmr.msra.gmra.mrb[0].mxu1 %vm2966_vm3, %v2935_v7  ;;  %v2649_v13 = vpop.permute.xlu0 %2648  ;;  %v1993_v46 = vmul.f32 %v6532_v21, %v1353_v45 }
 0x359   :  { %v3805_v40 = vsel %vm2966_vm3, %v3741_v41, 0.0  ;;  %v2936_v52 = vsel %vm2901_vm2, %v2871_v0, %v2649_v13  ;;  %v7826_v0 = vld [vmem:[#allocation129_spill] sm:$0xff] }
 0x35a   :  { %v3807_v48 = vadd.f32 %v3806_v1, %v3805_v40  ;;  %v2139_v5 = vpop.permute.xlu1 %2138  ;;  %4149 = vmatprep.mubr.msk.f32.mxu1 %vm2966_vm3, %v2936_v52  ;;  %v907_v1 = vmul.f32 %v7826_v0, %v523_v14  ;;  %v7828_v40 = vld [vmem:[#allocation130_spill] sm:$0xff]  ;;  %v7836_v14 = vld [vmem:[#allocation132_spill] sm:$0xff] }
 0x35b   :  { %2690 = vrot.lane.b32.xlu1 %v1991_v32, %s4261_s4  ;;  %2688 = vrot.lane.b32.xlu0 %v1990_v3, %s4261_s4  ;;  %v2807_v31 = vsel %vm332_vm0, %v7823_v30, %v2139_v5  ;;  %v970_v3 = vld [vmem:[#allocation2 + $0x1e0] sm:$0xff]  ;;  %v1291_v52 = vmul.f32 %v7828_v40, %v971_v53 }
 0x35c   :  { %v2141_v22 = vpop.permute.xlu0 %2140  ;;  %v1354_v5 = vld [vmem:[#allocation2 + $0x1e1] sm:$0xff] }
 0x35d   :  { %v2808_v33 = vsel %vm332_vm0, %v7825_v39, %v2141_v22  ;;  %v7830_v22 = vld [vmem:[#allocation38_spill] sm:$0xff]  ;;  %v1994_v30 = vmul.f32 %v6558_v54, %v1354_v5 }
 0x35e   :  { %v2395_v19 = vpop.permute.xlu1 %2394  ;;  %v7831_v61 = vmax.f32 %v7830_v22, 0.0 }
 0x35f   :  { %2182 = vrot.lane.b32.xlu1 %v905_v27, %s4259_s27  ;;  %2180 = vrot.lane.b32.xlu0 %v904_v8, %s4259_s27  ;;  %v2872_v60 = vsel %vm2836_vm1, %v2807_v31, %v2395_v19  ;;  %v1355_v8 = vld [vmem:[#allocation2 + $0x1e9] sm:$0xff] }
 0x360   :  { %v2397_v58 = vpop.permute.xlu0 %2396  ;;  %v1995_v15 = vmul.f32 %v6564_v25, %v1355_v8 }
 0x361   :  { %v4103_v20 = vpop.f32.mrb[2].mxu0  ;;  %v2873_v36 = vsel %vm2836_vm1, %v2808_v33, %v2397_v58 }
 0x362   :  { %3547 = vst.msk [vmem:[%s7304_s5 + $0x18] sm:$0xff] %vm2966_vm3, %v4103_v20  ;;  %v2651_v42 = vpop.permute.xlu1 %2650  ;;  %v3235_v10 = vpop.f32.mrb[3].mxu0  ;;  %v3744_v6 = vmul.f32 %v4103_v20, %v4103_v20  ;;  %v3613_v47 = vsel %vm2966_vm3, %v4103_v20, 0.0 }
 0x363   :  { %v2937_v49 = vsel %vm2901_vm2, %v2872_v60, %v2651_v42  ;;  %3546 = vst.msk [vmem:[%s7304_s5 + $0x10] sm:$0xff] %vm2966_vm3, %v3235_v10  ;;  %v3611_v51 = vsel %vm2966_vm3, %v3235_v10, 0.0  ;;  %v3743_v57 = vmul.f32 %v3235_v10, %v3235_v10  ;;  %2438 = vrot.lane.b32.xlu1 %v1289_v35, %s4260_s7  ;;  %2436 = vrot.lane.b32.xlu0 %v1288_v26, %s4260_s7  ;;  %v525_v42 = vld [vmem:[#allocation2 + $0x1e9] sm:$0xff]  ;;  %v524_v10 = vld [vmem:[#allocation2 + $0x1e1] sm:$0xff] }
 0x364   :  { %v3612_v17 = vadd.f32 %v3611_v51, %v3610_v24  ;;  %4150 = vmatmul.mubr.msk.f32.gmra.mrb[2].mxu1 %vm2966_vm3, %v2937_v49  ;;  %v2653_v4 = vpop.permute.xlu0 %2652  ;;  %v3810_v41 = vsel %vm2966_vm3, %v3744_v6, 0.0  ;;  %v7827_v24 = vld [vmem:[#allocation181_spill] sm:$0xff] }
 0x365   :  { %v3808_v63 = vsel %vm2966_vm3, %v3743_v57, 0.0  ;;  %v2938_v44 = vsel %vm2901_vm2, %v2873_v36, %v2653_v4  ;;  %v906_v13 = vmul.f32 %v7827_v24, %v522_v56  ;;  %v7840_v24 = vld [vmem:[#allocation41_spill] sm:$0xff] }
 0x366   :  { %v3809_v7 = vadd.f32 %v3808_v63, %v3807_v48  ;;  %v2143_v2 = vpop.permute.xlu1 %2142  ;;  %4152 = vmatprep.mubr.msk.f32.mxu1 %vm2966_vm3, %v2938_v44  ;;  %v3614_v29 = vadd.f32 %v3613_v47, %v3612_v17  ;;  %v1290_v48 = vmul.f32 %v7829_v59, %v970_v3  ;;  %v7835_v17 = vld [vmem:[#allocation183_spill] sm:$0xff]  ;;  %v972_v47 = vld [vmem:[#allocation2 + $0x1f0] sm:$0xff] }
 0x367   :  { %2694 = vrot.lane.b32.xlu1 %v1993_v46, %s4261_s4  ;;  %2692 = vrot.lane.b32.xlu0 %v1992_v50, %s4261_s4  ;;  %v2809_v27 = vsel %vm332_vm0, %v7831_v61, %v2143_v2  ;;  %v7834_v50 = vld [vmem:[#allocation131_spill] sm:$0xff]  ;;  %v908_v4 = vmul.f32 %v7835_v17, %v524_v10 }
 0x368   :  { %v2145_v21 = vpop.permute.xlu0 %2144  ;;  %v3811_v12 = vadd.f32 %v3810_v41, %v3809_v7  ;;  %v909_v36 = vmul.f32 %v7834_v50, %v525_v42  ;;  %v973_v46 = vld [vmem:[#allocation2 + $0x1f8] sm:$0xff]  ;;  %v7837_v7 = vld [vmem:[#allocation182_spill] sm:$0xff]  ;;  %v7838_v41 = vld [vmem:[#allocation40_spill] sm:$0xff] }
 0x369   :  { %v2810_v19 = vsel %vm332_vm0, %v7833_v43, %v2145_v21  ;;  %v1293_v56 = vmul.f32 %v7836_v14, %v973_v46  ;;  %v1292_v2 = vmul.f32 %v7837_v7, %v972_v47  ;;  %v7839_v21 = vmax.f32 %v7838_v41, 0.0  ;;  %v7845_v42 = vld [vmem:[#allocation184_spill] sm:$0xff]  ;;  %v7848_v50 = vld [vmem:[#allocation43_spill] sm:$0xff] }
 0x36a   :  { %v2399_v18 = vpop.permute.xlu1 %2398 }
 0x36b   :  { %2186 = vrot.lane.b32.xlu1 %v907_v1, %s4259_s27  ;;  %2184 = vrot.lane.b32.xlu0 %v906_v13, %s4259_s27  ;;  %v2874_v58 = vsel %vm2836_vm1, %v2809_v27, %v2399_v18  ;;  %v1357_v1 = vld [vmem:[#allocation2 + $0x1f9] sm:$0xff]  ;;  %v7841_v13 = vmax.f32 %v7840_v24, 0.0 }
 0x36c   :  { %v2401_v32 = vpop.permute.xlu0 %2400 }
 0x36d   :  { %v4106_v9 = vpop.f32.mrb[4].mxu0  ;;  %v2875_v31 = vsel %vm2836_vm1, %v2810_v19, %v2401_v32  ;;  %v527_v19 = vld [vmem:[#allocation2 + $0x1f9] sm:$0xff] }
 0x36e   :  { %3549 = vst.msk [vmem:[%s7304_s5 + $0x28] sm:$0xff] %vm2966_vm3, %v4106_v9  ;;  %v2655_v55 = vpop.permute.xlu1 %2654  ;;  %v3245_v35 = vpop.f32.mrb[5].mxu0  ;;  %v3746_v38 = vmul.f32 %v4106_v9, %v4106_v9  ;;  %v3617_v39 = vsel %vm2966_vm3, %v4106_v9, 0.0  ;;  %v1997_v9 = vmul.f32 %v6596_v62, %v1357_v1 }
 0x36f   :  { %v2939_v26 = vsel %vm2901_vm2, %v2874_v58, %v2655_v55  ;;  %3548 = vst.msk [vmem:[%s7304_s5 + $0x20] sm:$0xff] %vm2966_vm3, %v3245_v35  ;;  %v3615_v37 = vsel %vm2966_vm3, %v3245_v35, 0.0  ;;  %v3745_v16 = vmul.f32 %v3245_v35, %v3245_v35  ;;  %2442 = vrot.lane.b32.xlu1 %v1291_v52, %s4260_s7  ;;  %2440 = vrot.lane.b32.xlu0 %v1290_v48, %s4260_s7  ;;  %v526_v58 = vld [vmem:[#allocation2 + $0x1f1] sm:$0xff] }
 0x370   :  { %v3616_v20 = vadd.f32 %v3615_v37, %v3614_v29  ;;  %4153 = vmatmul.mubr.msk.f32.gmra.mrb[4].mxu1 %vm2966_vm3, %v2939_v26  ;;  %v2657_v45 = vpop.permute.xlu0 %2656  ;;  %v3814_v51 = vsel %vm2966_vm3, %v3746_v38, 0.0  ;;  %v1356_v29 = vld [vmem:[#allocation2 + $0x1f1] sm:$0xff]  ;;  %v7842_v37 = vld [vmem:[#allocation133_spill] sm:$0xff] }
 0x371   :  { %v3812_v33 = vsel %vm2966_vm3, %v3745_v16, 0.0  ;;  %v2940_v60 = vsel %vm2901_vm2, %v2875_v31, %v2657_v45  ;;  %v1996_v5 = vmul.f32 %v6590_v11, %v1356_v29  ;;  %v911_v16 = vmul.f32 %v7842_v37, %v527_v19  ;;  %v974_v45 = vld [vmem:[#allocation2 + $0x200] sm:$0xff] }
 0x372   :  { %v3813_v6 = vadd.f32 %v3812_v33, %v3811_v12  ;;  %v2147_v49 = vpop.permute.xlu1 %2146  ;;  %4155 = vmatprep.mubr.msk.f32.mxu1 %vm2966_vm3, %v2940_v60  ;;  %v3618_v54 = vadd.f32 %v3617_v39, %v3616_v20  ;;  %v975_v20 = vld [vmem:[#allocation2 + $0x208] sm:$0xff]  ;;  %v7844_v33 = vld [vmem:[#allocation134_spill] sm:$0xff]  ;;  %v1294_v10 = vmul.f32 %v7845_v42, %v974_v45 }
 0x373   :  { %2698 = vrot.lane.b32.xlu1 %v1995_v15, %s4261_s4  ;;  %2696 = vrot.lane.b32.xlu0 %v1994_v30, %s4261_s4  ;;  %v2811_v12 = vsel %vm332_vm0, %v7839_v21, %v2147_v49  ;;  %v7843_v30 = vld [vmem:[#allocation185_spill] sm:$0xff]  ;;  %v1295_v60 = vmul.f32 %v7844_v33, %v975_v20  ;;  %v7846_v49 = vld [vmem:[#allocation42_spill] sm:$0xff] }
 0x374   :  { %v2149_v25 = vpop.permute.xlu0 %2148  ;;  %v3815_v57 = vadd.f32 %v3814_v51, %v3813_v6  ;;  %v910_v31 = vmul.f32 %v7843_v30, %v526_v58  ;;  %v1358_v6 = vld [vmem:[#allocation2 + $0x201] sm:$0xff]  ;;  %v7854_v33 = vld [vmem:[#allocation46_spill] sm:$0xff] }
 0x375   :  { %v2812_v53 = vsel %vm332_vm0, %v7841_v13, %v2149_v25  ;;  %v1998_v7 = vmul.f32 %v6622_v23, %v1358_v6  ;;  %v7856_v6 = vld [vmem:[#allocation47_spill] sm:$0xff] }
 0x376   :  { %v2403_v63 = vpop.permute.xlu1 %2402 }
 0x377   :  { %2190 = vrot.lane.b32.xlu1 %v909_v36, %s4259_s27  ;;  %2188 = vrot.lane.b32.xlu0 %v908_v4, %s4259_s27  ;;  %v2876_v3 = vsel %vm2836_vm1, %v2811_v12, %v2403_v63  ;;  %v7849_v36 = vmax.f32 %v7848_v50, 0.0 }
 0x378   :  { %v2405_v44 = vpop.permute.xlu0 %2404 }
 0x379   :  { %v4109_v0 = vpop.f32.mrb[6].mxu0  ;;  %v2877_v22 = vsel %vm2836_vm1, %v2812_v53, %v2405_v44 }
 0x37a   :  { %3551 = vst.msk [vmem:[%s7304_s5 + $0x38] sm:$0xff] %vm2966_vm3, %v4109_v0  ;;  %v2659_v18 = vpop.permute.xlu1 %2658  ;;  %v3255_v32 = vpop.f32.mrb[7].mxu0  ;;  %v3748_v40 = vmul.f32 %v4109_v0, %v4109_v0  ;;  %v3621_v8 = vsel %vm2966_vm3, %v4109_v0, 0.0 }
 0x37b   :  { %v2941_v52 = vsel %vm2901_vm2, %v2876_v3, %v2659_v18  ;;  %3550 = vst.msk [vmem:[%s7304_s5 + $0x30] sm:$0xff] %vm2966_vm3, %v3255_v32  ;;  %v3619_v59 = vsel %vm2966_vm3, %v3255_v32, 0.0  ;;  %v3747_v48 = vmul.f32 %v3255_v32, %v3255_v32  ;;  %2446 = vrot.lane.b32.xlu1 %v1293_v56, %s4260_s7  ;;  %2444 = vrot.lane.b32.xlu0 %v1292_v2, %s4260_s7 }
 0x37c   :  { %v3620_v61 = vadd.f32 %v3619_v59, %v3618_v54  ;;  %4156 = vmatmul.mubr.msk.f32.gmra.mrb[6].mxu1 %vm2966_vm3, %v2941_v52  ;;  %v2661_v27 = vpop.permute.xlu0 %2660  ;;  %v3818_v38 = vsel %vm2966_vm3, %v3748_v40, 0.0  ;;  %v7847_v54 = vmax.f32 %v7846_v49, 0.0  ;;  %v7850_v40 = vld [vmem:[#allocation44_spill] sm:$0xff]  ;;  %v7857_v49 = vmax.f32 %v7856_v6, 0.0 }
 0x37d   :  { %v3816_v34 = vsel %vm2966_vm3, %v3747_v48, 0.0  ;;  %v2942_v43 = vsel %vm2901_vm2, %v2877_v22, %v2661_v27  ;;  %v7851_v52 = vmax.f32 %v7850_v40, 0.0 }
 0x37e   :  { %v3817_v55 = vadd.f32 %v3816_v34, %v3815_v57  ;;  %v2151_v35 = vpop.permute.xlu1 %2150  ;;  %4158 = vmatprep.mubr.msk.f32.mxu1 %vm2966_vm3, %v2942_v43  ;;  %v3622_v11 = vadd.f32 %v3621_v8, %v3620_v61  ;;  %v1359_v57 = vld [vmem:[#allocation2 + $0x209] sm:$0xff] }
 0x37f   :  { %2702 = vrot.lane.b32.xlu1 %v1997_v9, %s4261_s4  ;;  %2700 = vrot.lane.b32.xlu0 %v1996_v5, %s4261_s4  ;;  %v2813_v51 = vsel %vm332_vm0, %v7847_v54, %v2151_v35  ;;  %v1999_v21 = vmul.f32 %v6628_v28, %v1359_v57  ;;  %v7852_v5 = vld [vmem:[#allocation45_spill] sm:$0xff] }
 0x380   :  { %v2153_v62 = vpop.permute.xlu0 %2152  ;;  %v3819_v26 = vadd.f32 %v3818_v38, %v3817_v55  ;;  %v7853_v22 = vmax.f32 %v7852_v5, 0.0 }
 0x381   :  { %v2814_v17 = vsel %vm332_vm0, %v7849_v36, %v2153_v62 }
 0x382   :  { %v2407_v15 = vpop.permute.xlu1 %2406 }
 0x383   :  { %2194 = vrot.lane.b32.xlu1 %v911_v16, %s4259_s27  ;;  %2192 = vrot.lane.b32.xlu0 %v910_v31, %s4259_s27  ;;  %v2878_v4 = vsel %vm2836_vm1, %v2813_v51, %v2407_v15 }
 0x384   :  { %v2409_v39 = vpop.permute.xlu0 %2408 }
 0x385   :  { %v4112_v25 = vpop.f32.mrb[8].mxu0  ;;  %v2879_v2 = vsel %vm2836_vm1, %v2814_v17, %v2409_v39 }
 0x386   :  { %3553 = vst.msk [vmem:[%s7304_s5 + $0x48] sm:$0xff] %vm2966_vm3, %v4112_v25  ;;  %v2663_v46 = vpop.permute.xlu1 %2662  ;;  %v3265_v47 = vpop.f32.mrb[9].mxu0  ;;  %v3750_v63 = vmul.f32 %v4112_v25, %v4112_v25  ;;  %v3625_v12 = vsel %vm2966_vm3, %v4112_v25, 0.0 }
 0x387   :  { %v2943_v44 = vsel %vm2901_vm2, %v2878_v4, %v2663_v46  ;;  %3552 = vst.msk [vmem:[%s7304_s5 + $0x40] sm:$0xff] %vm2966_vm3, %v3265_v47  ;;  %v3623_v14 = vsel %vm2966_vm3, %v3265_v47, 0.0  ;;  %v3749_v56 = vmul.f32 %v3265_v47, %v3265_v47  ;;  %2450 = vrot.lane.b32.xlu1 %v1295_v60, %s4260_s7  ;;  %2448 = vrot.lane.b32.xlu0 %v1294_v10, %s4260_s7  ;;  %v7855_v60 = vmax.f32 %v7854_v33, 0.0 }
 0x388   :  { %v3624_v29 = vadd.f32 %v3623_v14, %v3622_v11  ;;  %4159 = vmatmul.mubr.msk.f32.gmra.mrb[8].mxu1 %vm2966_vm3, %v2943_v44  ;;  %v2665_v41 = vpop.permute.xlu0 %2664  ;;  %v3822_v23 = vsel %vm2966_vm3, %v3750_v63, 0.0 }
 0x389   :  { %v3820_v0 = vsel %vm2966_vm3, %v3749_v56, 0.0  ;;  %v2944_v1 = vsel %vm2901_vm2, %v2879_v2, %v2665_v41 }
 0x38a   :  { %v3821_v24 = vadd.f32 %v3820_v0, %v3819_v26  ;;  %v2155_v13 = vpop.permute.xlu1 %2154  ;;  %4161 = vmatprep.mubr.msk.f32.mxu1 %vm2966_vm3, %v2944_v1  ;;  %v3626_v53 = vadd.f32 %v3625_v12, %v3624_v29 }
 0x38b   :  { %2706 = vrot.lane.b32.xlu1 %v1999_v21, %s4261_s4  ;;  %2704 = vrot.lane.b32.xlu0 %v1998_v7, %s4261_s4  ;;  %v2815_v59 = vsel %vm332_vm0, %v7851_v52, %v2155_v13 }
 0x38c   :  { %v2157_v3 = vpop.permute.xlu0 %2156  ;;  %v3823_v18 = vadd.f32 %v3822_v23, %v3821_v24  ;;  %v7858_v24 = vld [vmem:[#allocation48_spill] sm:$0xff] }
 0x38d   :  { %v2816_v61 = vsel %vm332_vm0, %v7853_v22, %v2157_v3  ;;  %v7859_v13 = vmax.f32 %v7858_v24, 0.0  ;;  %v7860_v3 = vld [vmem:[#allocation49_spill] sm:$0xff] }
 0x38e   :  { %v2411_v28 = vpop.permute.xlu1 %2410 }
 0x38f   :  { %v2880_v27 = vsel %vm2836_vm1, %v2815_v59, %v2411_v28 }
 0x390   :  { %v2413_v32 = vpop.permute.xlu0 %2412 }
 0x391   :  { %v4115_v48 = vpop.f32.mrb[10].mxu0  ;;  %v2881_v55 = vsel %vm2836_vm1, %v2816_v61, %v2413_v32 }
 0x392   :  { %3555 = vst.msk [vmem:[%s7304_s5 + $0x58] sm:$0xff] %vm2966_vm3, %v4115_v48  ;;  %v2667_v9 = vpop.permute.xlu1 %2666  ;;  %v3275_v8 = vpop.f32.mrb[11].mxu0  ;;  %v3752_v34 = vmul.f32 %v4115_v48, %v4115_v48  ;;  %v3629_v38 = vsel %vm2966_vm3, %v4115_v48, 0.0 }
 0x393   :  { %v2945_v43 = vsel %vm2901_vm2, %v2880_v27, %v2667_v9  ;;  %3554 = vst.msk [vmem:[%s7304_s5 + $0x50] sm:$0xff] %vm2966_vm3, %v3275_v8  ;;  %v3627_v19 = vsel %vm2966_vm3, %v3275_v8, 0.0  ;;  %v3751_v58 = vmul.f32 %v3275_v8, %v3275_v8 }
 0x394   :  { %v3628_v35 = vadd.f32 %v3627_v19, %v3626_v53  ;;  %4162 = vmatmul.mubr.msk.f32.gmra.mrb[10].mxu1 %vm2966_vm3, %v2945_v43  ;;  %v2669_v11 = vpop.permute.xlu0 %2668  ;;  %v3826_v31 = vsel %vm2966_vm3, %v3752_v34, 0.0 }
 0x395   :  { %v3824_v62 = vsel %vm2966_vm3, %v3751_v58, 0.0  ;;  %v2946_v26 = vsel %vm2901_vm2, %v2881_v55, %v2669_v11 }
 0x396   :  { %v3825_v37 = vadd.f32 %v3824_v62, %v3823_v18  ;;  %v2159_v16 = vpop.permute.xlu1 %2158  ;;  %4164 = vmatprep.mubr.msk.f32.mxu1 %vm2966_vm3, %v2946_v26  ;;  %v3630_v30 = vadd.f32 %v3629_v38, %v3628_v35  ;;  %v7861_v18 = vmax.f32 %v7860_v3, 0.0 }
 0x397   :  { %v2817_v42 = vsel %vm332_vm0, %v7855_v60, %v2159_v16 }
 0x398   :  { %v2161_v20 = vpop.permute.xlu0 %2160  ;;  %v3827_v45 = vadd.f32 %v3826_v31, %v3825_v37  ;;  %v7862_v37 = vld [vmem:[#allocation50_spill] sm:$0xff] }
 0x399   :  { %v2818_v54 = vsel %vm332_vm0, %v7857_v49, %v2161_v20  ;;  %v7863_v16 = vmax.f32 %v7862_v37, 0.0  ;;  %v7864_v20 = vld [vmem:[#allocation51_spill] sm:$0xff] }
 0x39a   :  { %v2415_v15 = vpop.permute.xlu1 %2414 }
 0x39b   :  { %v2882_v51 = vsel %vm2836_vm1, %v2817_v42, %v2415_v15 }
 0x39c   :  { %v2417_v39 = vpop.permute.xlu0 %2416 }
 0x39d   :  { %v4118_v10 = vpop.f32.mrb[12].mxu0  ;;  %v2883_v46 = vsel %vm2836_vm1, %v2818_v54, %v2417_v39 }
 0x39e   :  { %3557 = vst.msk [vmem:[%s7304_s5 + $0x68] sm:$0xff] %vm2966_vm3, %v4118_v10  ;;  %v2671_v25 = vpop.permute.xlu1 %2670  ;;  %v3285_v57 = vpop.f32.mrb[13].mxu0  ;;  %v3754_v50 = vmul.f32 %v4118_v10, %v4118_v10  ;;  %v3633_v44 = vsel %vm2966_vm3, %v4118_v10, 0.0 }
 0x39f   :  { %v2947_v36 = vsel %vm2901_vm2, %v2882_v51, %v2671_v25  ;;  %3556 = vst.msk [vmem:[%s7304_s5 + $0x60] sm:$0xff] %vm2966_vm3, %v3285_v57  ;;  %v3631_v17 = vsel %vm2966_vm3, %v3285_v57, 0.0  ;;  %v3753_v4 = vmul.f32 %v3285_v57, %v3285_v57 }
 0x3a0   :  { %v3632_v47 = vadd.f32 %v3631_v17, %v3630_v30  ;;  %4165 = vmatmul.mubr.msk.f32.gmra.mrb[12].mxu1 %vm2966_vm3, %v2947_v36  ;;  %v2673_v63 = vpop.permute.xlu0 %2672  ;;  %v3830_v41 = vsel %vm2966_vm3, %v3754_v50, 0.0 }
 0x3a1   :  { %v3828_v14 = vsel %vm2966_vm3, %v3753_v4, 0.0  ;;  %v2948_v56 = vsel %vm2901_vm2, %v2883_v46, %v2673_v63 }
 0x3a2   :  { %v3829_v7 = vadd.f32 %v3828_v14, %v3827_v45  ;;  %v2163_v2 = vpop.permute.xlu1 %2162  ;;  %4167 = vmatprep.mubr.msk.f32.mxu1 %vm2966_vm3, %v2948_v56  ;;  %v3634_v29 = vadd.f32 %v3633_v44, %v3632_v47  ;;  %v7865_v45 = vmax.f32 %v7864_v20, 0.0 }
 0x3a3   :  { %v2819_v53 = vsel %vm332_vm0, %v7859_v13, %v2163_v2 }
 0x3a4   :  { %v2165_v21 = vpop.permute.xlu0 %2164  ;;  %v3831_v12 = vadd.f32 %v3830_v41, %v3829_v7  ;;  %v7866_v7 = vld [vmem:[#allocation52_spill] sm:$0xff] }
 0x3a5   :  { %v2820_v28 = vsel %vm332_vm0, %v7861_v18, %v2165_v21  ;;  %v7867_v2 = vmax.f32 %v7866_v7, 0.0  ;;  %v7868_v21 = vld [vmem:[#allocation53_spill] sm:$0xff] }
 0x3a6   :  { %v2419_v0 = vpop.permute.xlu1 %2418 }
 0x3a7   :  { %v2884_v32 = vsel %vm2836_vm1, %v2819_v53, %v2419_v0 }
 0x3a8   :  { %v2421_v1 = vpop.permute.xlu0 %2420 }
 0x3a9   :  { %v4121_v23 = vpop.f32.mrb[14].mxu0  ;;  %v2885_v61 = vsel %vm2836_vm1, %v2820_v28, %v2421_v1 }
 0x3aa   :  { %3559 = vst.msk [vmem:[%s7304_s5 + $0x78] sm:$0xff] %vm2966_vm3, %v4121_v23  ;;  %v2675_v40 = vpop.permute.xlu1 %2674  ;;  %v3295_v52 = vpop.f32.mrb[15].mxu0  ;;  %v3756_v59 = vmul.f32 %v4121_v23, %v4121_v23  ;;  %v3637_v8 = vsel %vm2966_vm3, %v4121_v23, 0.0 }
 0x3ab   :  { %v2949_v48 = vsel %vm2901_vm2, %v2884_v32, %v2675_v40  ;;  %3558 = vst.msk [vmem:[%s7304_s5 + $0x70] sm:$0xff] %vm2966_vm3, %v3295_v52  ;;  %v3635_v5 = vsel %vm2966_vm3, %v3295_v52, 0.0  ;;  %v3755_v22 = vmul.f32 %v3295_v52, %v3295_v52 }
 0x3ac   :  { %v3636_v27 = vadd.f32 %v3635_v5, %v3634_v29  ;;  %4168 = vmatmul.mubr.msk.f32.gmra.mrb[14].mxu1 %vm2966_vm3, %v2949_v48  ;;  %v2677_v9 = vpop.permute.xlu0 %2676  ;;  %v3834_v35 = vsel %vm2966_vm3, %v3756_v59, 0.0 }
 0x3ad   :  { %v3832_v34 = vsel %vm2966_vm3, %v3755_v22, 0.0  ;;  %v2950_v43 = vsel %vm2901_vm2, %v2885_v61, %v2677_v9 }
 0x3ae   :  { %v3833_v19 = vadd.f32 %v3832_v34, %v3831_v12  ;;  %v2167_v58 = vpop.permute.xlu1 %2166  ;;  %4170 = vmatprep.mubr.msk.f32.mxu1 %vm2966_vm3, %v2950_v43  ;;  %v3638_v55 = vadd.f32 %v3637_v8, %v3636_v27  ;;  %v7869_v12 = vmax.f32 %v7868_v21, 0.0 }
 0x3af   :  { %v2821_v30 = vsel %vm332_vm0, %v7863_v16, %v2167_v58 }
 0x3b0   :  { %v2169_v11 = vpop.permute.xlu0 %2168  ;;  %v3835_v38 = vadd.f32 %v3834_v35, %v3833_v19  ;;  %v7870_v19 = vld [vmem:[#allocation54_spill] sm:$0xff] }
 0x3b1   :  { %v2822_v15 = vsel %vm332_vm0, %v7865_v45, %v2169_v11  ;;  %v7871_v58 = vmax.f32 %v7870_v19, 0.0  ;;  %v7872_v11 = vld [vmem:[#allocation55_spill] sm:$0xff] }
 0x3b2   :  { %v2423_v62 = vpop.permute.xlu1 %2422 }
 0x3b3   :  { %v2886_v39 = vsel %vm2836_vm1, %v2821_v30, %v2423_v62 }
 0x3b4   :  { %v2425_v26 = vpop.permute.xlu0 %2424 }
 0x3b5   :  { %v4124_v31 = vpop.f32.mrb[16].mxu0  ;;  %v2887_v54 = vsel %vm2836_vm1, %v2822_v15, %v2425_v26 }
 0x3b6   :  { %3561 = vst.msk [vmem:[%s7304_s5 + $0x88] sm:$0xff] %vm2966_vm3, %v4124_v31  ;;  %v2679_v33 = vpop.permute.xlu1 %2678  ;;  %v3305_v60 = vpop.f32.mrb[17].mxu0  ;;  %v3758_v42 = vmul.f32 %v4124_v31, %v4124_v31  ;;  %v3641_v57 = vsel %vm2966_vm3, %v4124_v31, 0.0 }
 0x3b7   :  { %v2951_v10 = vsel %vm2901_vm2, %v2886_v39, %v2679_v33  ;;  %3560 = vst.msk [vmem:[%s7304_s5 + $0x80] sm:$0xff] %vm2966_vm3, %v3305_v60  ;;  %v3639_v6 = vsel %vm2966_vm3, %v3305_v60, 0.0  ;;  %v3757_v49 = vmul.f32 %v3305_v60, %v3305_v60 }
 0x3b8   :  { %v3640_v51 = vadd.f32 %v3639_v6, %v3638_v55  ;;  %4171 = vmatmul.mubr.msk.f32.gmra.mrb[16].mxu1 %vm2966_vm3, %v2951_v10  ;;  %v2681_v25 = vpop.permute.xlu0 %2680  ;;  %v3838_v47 = vsel %vm2966_vm3, %v3758_v42, 0.0 }
 0x3b9   :  { %v3836_v50 = vsel %vm2966_vm3, %v3757_v49, 0.0  ;;  %v2952_v36 = vsel %vm2901_vm2, %v2887_v54, %v2681_v25 }
 0x3ba   :  { %v3837_v17 = vadd.f32 %v3836_v50, %v3835_v38  ;;  %v2171_v4 = vpop.permute.xlu1 %2170  ;;  %4173 = vmatprep.mubr.msk.f32.mxu1 %vm2966_vm3, %v2952_v36  ;;  %v3642_v46 = vadd.f32 %v3641_v57, %v3640_v51  ;;  %v7873_v38 = vmax.f32 %v7872_v11, 0.0 }
 0x3bb   :  { %v2823_v29 = vsel %vm332_vm0, %v7867_v2, %v2171_v4 }
 0x3bc   :  { %v2173_v63 = vpop.permute.xlu0 %2172  ;;  %v3839_v44 = vadd.f32 %v3838_v47, %v3837_v17  ;;  %v7874_v17 = vld [vmem:[#allocation56_spill] sm:$0xff] }
 0x3bd   :  { %v2824_v0 = vsel %vm332_vm0, %v7869_v12, %v2173_v63  ;;  %v7875_v4 = vmax.f32 %v7874_v17, 0.0  ;;  %v7876_v63 = vld [vmem:[#allocation57_spill] sm:$0xff] }
 0x3be   :  { %v2427_v14 = vpop.permute.xlu1 %2426 }
 0x3bf   :  { %v2888_v1 = vsel %vm2836_vm1, %v2823_v29, %v2427_v14 }
 0x3c0   :  { %v2429_v56 = vpop.permute.xlu0 %2428 }
 0x3c1   :  { %v4127_v41 = vpop.f32.mrb[18].mxu0  ;;  %v2889_v28 = vsel %vm2836_vm1, %v2824_v0, %v2429_v56 }
 0x3c2   :  { %3563 = vst.msk [vmem:[%s7304_s5 + $0x98] sm:$0xff] %vm2966_vm3, %v4127_v41  ;;  %v2683_v24 = vpop.permute.xlu1 %2682  ;;  %v3315_v13 = vpop.f32.mrb[19].mxu0  ;;  %v3760_v53 = vmul.f32 %v4127_v41, %v4127_v41  ;;  %v3645_v52 = vsel %vm2966_vm3, %v4127_v41, 0.0 }
 0x3c3   :  { %v2953_v23 = vsel %vm2901_vm2, %v2888_v1, %v2683_v24  ;;  %3562 = vst.msk [vmem:[%s7304_s5 + $0x90] sm:$0xff] %vm2966_vm3, %v3315_v13  ;;  %v3643_v3 = vsel %vm2966_vm3, %v3315_v13, 0.0  ;;  %v3759_v18 = vmul.f32 %v3315_v13, %v3315_v13 }
 0x3c4   :  { %v3644_v32 = vadd.f32 %v3643_v3, %v3642_v46  ;;  %4174 = vmatmul.mubr.msk.f32.gmra.mrb[18].mxu1 %vm2966_vm3, %v2953_v23  ;;  %v2685_v40 = vpop.permute.xlu0 %2684  ;;  %v3842_v27 = vsel %vm2966_vm3, %v3760_v53, 0.0 }
 0x3c5   :  { %v3840_v59 = vsel %vm2966_vm3, %v3759_v18, 0.0  ;;  %v2954_v48 = vsel %vm2901_vm2, %v2889_v28, %v2685_v40 }
 0x3c6   :  { %v3841_v5 = vadd.f32 %v3840_v59, %v3839_v44  ;;  %v2175_v22 = vpop.permute.xlu1 %2174  ;;  %4176 = vmatprep.mubr.msk.f32.mxu1 %vm2966_vm3, %v2954_v48  ;;  %v3646_v61 = vadd.f32 %v3645_v52, %v3644_v32  ;;  %v7877_v44 = vmax.f32 %v7876_v63, 0.0 }
 0x3c7   :  { %v2825_v55 = vsel %vm332_vm0, %v7871_v58, %v2175_v22 }
 0x3c8   :  { %v2177_v9 = vpop.permute.xlu0 %2176  ;;  %v3843_v8 = vadd.f32 %v3842_v27, %v3841_v5  ;;  %v7878_v5 = vld [vmem:[#allocation58_spill] sm:$0xff] }
 0x3c9   :  { %v2826_v62 = vsel %vm332_vm0, %v7873_v38, %v2177_v9  ;;  %v7879_v22 = vmax.f32 %v7878_v5, 0.0 }
 0x3ca   :  { %v2431_v34 = vpop.permute.xlu1 %2430 }
 0x3cb   :  { %v2890_v26 = vsel %vm2836_vm1, %v2825_v55, %v2431_v34 }
 0x3cc   :  { %v2433_v43 = vpop.permute.xlu0 %2432 }
 0x3cd   :  { %v4130_v35 = vpop.f32.mrb[20].mxu0  ;;  %v2891_v15 = vsel %vm2836_vm1, %v2826_v62, %v2433_v43 }
 0x3ce   :  { %3565 = vst.msk [vmem:[%s7304_s5 + $0xa8] sm:$0xff] %vm2966_vm3, %v4130_v35  ;;  %v2687_v37 = vpop.permute.xlu1 %2686  ;;  %v3325_v16 = vpop.f32.mrb[21].mxu0  ;;  %v3762_v30 = vmul.f32 %v4130_v35, %v4130_v35  ;;  %v3649_v60 = vsel %vm2966_vm3, %v4130_v35, 0.0 }
 0x3cf   :  { %v2955_v31 = vsel %vm2901_vm2, %v2890_v26, %v2687_v37  ;;  %3564 = vst.msk [vmem:[%s7304_s5 + $0xa0] sm:$0xff] %vm2966_vm3, %v3325_v16  ;;  %v3647_v20 = vsel %vm2966_vm3, %v3325_v16, 0.0  ;;  %v3761_v45 = vmul.f32 %v3325_v16, %v3325_v16 }
 0x3d0   :  { %v3648_v39 = vadd.f32 %v3647_v20, %v3646_v61  ;;  %4177 = vmatmul.mubr.msk.f32.gmra.mrb[20].mxu1 %vm2966_vm3, %v2955_v31  ;;  %v2689_v33 = vpop.permute.xlu0 %2688  ;;  %v3846_v51 = vsel %vm2966_vm3, %v3762_v30, 0.0 }
 0x3d1   :  { %v3844_v42 = vsel %vm2966_vm3, %v3761_v45, 0.0  ;;  %v2956_v10 = vsel %vm2901_vm2, %v2891_v15, %v2689_v33  ;;  %v7882_v33 = vld [vmem:[#allocation60_spill] sm:$0xff] }
 0x3d2   :  { %v3845_v6 = vadd.f32 %v3844_v42, %v3843_v8  ;;  %v2179_v49 = vpop.permute.xlu1 %2178  ;;  %4179 = vmatprep.mubr.msk.f32.mxu1 %vm2966_vm3, %v2956_v10  ;;  %v3650_v54 = vadd.f32 %v3649_v60, %v3648_v39  ;;  %v7880_v8 = vld [vmem:[#allocation59_spill] sm:$0xff]  ;;  %v7883_v60 = vmax.f32 %v7882_v33, 0.0 }
 0x3d3   :  { %v2827_v46 = vsel %vm332_vm0, %v7875_v4, %v2179_v49  ;;  %v7881_v34 = vmax.f32 %v7880_v8, 0.0 }
 0x3d4   :  { %v2181_v25 = vpop.permute.xlu0 %2180  ;;  %v3847_v57 = vadd.f32 %v3846_v51, %v3845_v6 }
 0x3d5   :  { %v2828_v14 = vsel %vm332_vm0, %v7877_v44, %v2181_v25  ;;  %v7884_v25 = vld [vmem:[#allocation61_spill] sm:$0xff] }
 0x3d6   :  { %v2435_v50 = vpop.permute.xlu1 %2434 }
 0x3d7   :  { %v2892_v56 = vsel %vm2836_vm1, %v2827_v46, %v2435_v50 }
 0x3d8   :  { %v2437_v36 = vpop.permute.xlu0 %2436 }
 0x3d9   :  { %v4133_v47 = vpop.f32.mrb[22].mxu0  ;;  %v2893_v0 = vsel %vm2836_vm1, %v2828_v14, %v2437_v36 }
 0x3da   :  { %3567 = vst.msk [vmem:[%s7304_s5 + $0xb8] sm:$0xff] %vm2966_vm3, %v4133_v47  ;;  %v2691_v7 = vpop.permute.xlu1 %2690  ;;  %v3335_v2 = vpop.f32.mrb[23].mxu0  ;;  %v3764_v29 = vmul.f32 %v4133_v47, %v4133_v47  ;;  %v3653_v13 = vsel %vm2966_vm3, %v4133_v47, 0.0 }
 0x3db   :  { %v2957_v41 = vsel %vm2901_vm2, %v2892_v56, %v2691_v7  ;;  %3566 = vst.msk [vmem:[%s7304_s5 + $0xb0] sm:$0xff] %vm2966_vm3, %v3335_v2  ;;  %v3651_v21 = vsel %vm2966_vm3, %v3335_v2, 0.0  ;;  %v3763_v12 = vmul.f32 %v3335_v2, %v3335_v2  ;;  %v7886_v2 = vld [vmem:[#allocation62_spill] sm:$0xff] }
 0x3dc   :  { %v3652_v1 = vadd.f32 %v3651_v21, %v3650_v54  ;;  %4180 = vmatmul.mubr.msk.f32.gmra.mrb[22].mxu1 %vm2966_vm3, %v2957_v41  ;;  %v2693_v24 = vpop.permute.xlu0 %2692  ;;  %v3850_v32 = vsel %vm2966_vm3, %v3764_v29, 0.0  ;;  %v7887_v29 = vmax.f32 %v7886_v2, 0.0 }
 0x3dd   :  { %v3848_v53 = vsel %vm2966_vm3, %v3763_v12, 0.0  ;;  %v2958_v23 = vsel %vm2901_vm2, %v2893_v0, %v2693_v24 }
 0x3de   :  { %v3849_v3 = vadd.f32 %v3848_v53, %v3847_v57  ;;  %v2183_v18 = vpop.permute.xlu1 %2182  ;;  %4182 = vmatprep.mubr.msk.f32.mxu1 %vm2966_vm3, %v2958_v23  ;;  %v3654_v28 = vadd.f32 %v3653_v13, %v3652_v1  ;;  %v7885_v57 = vmax.f32 %v7884_v25, 0.0  ;;  %v7888_v53 = vld [vmem:[#allocation63_spill] sm:$0xff] }
 0x3df   :  { %v2829_v61 = vsel %vm332_vm0, %v7879_v22, %v2183_v18  ;;  %v7889_v23 = vmax.f32 %v7888_v53, 0.0 }
 0x3e0   :  { %v2185_v40 = vpop.permute.xlu0 %2184  ;;  %v3851_v52 = vadd.f32 %v3850_v32, %v3849_v3 }
 0x3e1   :  { %v2830_v43 = vsel %vm332_vm0, %v7881_v34, %v2185_v40  ;;  %v7890_v34 = vld [vmem:[#allocation64_spill] sm:$0xff] }
 0x3e2   :  { %v2439_v59 = vpop.permute.xlu1 %2438 }
 0x3e3   :  { %v2894_v27 = vsel %vm2836_vm1, %v2829_v61, %v2439_v59 }
 0x3e4   :  { %v2441_v48 = vpop.permute.xlu0 %2440 }
 0x3e5   :  { %v2895_v58 = vsel %vm2836_vm1, %v2830_v43, %v2441_v48  ;;  %v7891_v43 = vmax.f32 %v7890_v34, 0.0 }
 0x3e6   :  { %v2695_v9 = vpop.permute.xlu1 %2694 }
 0x3e7   :  { %v2959_v19 = vsel %vm2901_vm2, %v2894_v27, %v2695_v9 }
 0x3e8   :  { %4183 = vmatmul.mubr.msk.f32.gmra.mrb[24].mxu1 %vm2966_vm3, %v2959_v19  ;;  %v2697_v55 = vpop.permute.xlu0 %2696 }
 0x3e9   :  { %v2960_v35 = vsel %vm2901_vm2, %v2895_v58, %v2697_v55 }
 0x3ea   :  { %v2187_v11 = vpop.permute.xlu1 %2186  ;;  %4185 = vmatprep.mubr.msk.f32.mxu1 %vm2966_vm3, %v2960_v35 }
 0x3eb   :  { %v2831_v42 = vsel %vm332_vm0, %v7883_v60, %v2187_v11 }
 0x3ec   :  { %v4136_v38 = vpop.f32.mrb[24].mxu0  ;;  %v2189_v62 = vpop.permute.xlu0 %2188 }
 0x3ed   :  { %3569 = vst.msk [vmem:[%s7304_s5 + $0xc8] sm:$0xff] %vm2966_vm3, %v4136_v38  ;;  %v3345_v26 = vpop.f32.mrb[25].mxu0  ;;  %v3766_v37 = vmul.f32 %v4136_v38, %v4136_v38  ;;  %v3657_v45 = vsel %vm2966_vm3, %v4136_v38, 0.0  ;;  %v2832_v50 = vsel %vm332_vm0, %v7885_v57, %v2189_v62 }
 0x3ee   :  { %3568 = vst.msk [vmem:[%s7304_s5 + $0xc0] sm:$0xff] %vm2966_vm3, %v3345_v26  ;;  %v3655_v16 = vsel %vm2966_vm3, %v3345_v26, 0.0  ;;  %v3765_v30 = vmul.f32 %v3345_v26, %v3345_v26  ;;  %v2443_v31 = vpop.permute.xlu1 %2442 }
 0x3ef   :  { %v3656_v20 = vadd.f32 %v3655_v16, %v3654_v28  ;;  %v3854_v49 = vsel %vm2966_vm3, %v3766_v37, 0.0  ;;  %v2896_v54 = vsel %vm2836_vm1, %v2831_v42, %v2443_v31 }
 0x3f0   :  { %v3852_v15 = vsel %vm2966_vm3, %v3765_v30, 0.0  ;;  %v2445_v39 = vpop.permute.xlu0 %2444 }
 0x3f1   :  { %v3853_v10 = vadd.f32 %v3852_v15, %v3851_v52  ;;  %v3658_v6 = vadd.f32 %v3657_v45, %v3656_v20  ;;  %v2897_v4 = vsel %vm2836_vm1, %v2832_v50, %v2445_v39 }
 0x3f2   :  { %v2699_v51 = vpop.permute.xlu1 %2698 }
 0x3f3   :  { %v2961_v36 = vsel %vm2901_vm2, %v2896_v54, %v2699_v51  ;;  %v3855_v17 = vadd.f32 %v3854_v49, %v3853_v10 }
 0x3f4   :  { %4186 = vmatmul.mubr.msk.f32.gmra.mrb[26].mxu1 %vm2966_vm3, %v2961_v36  ;;  %v2701_v46 = vpop.permute.xlu0 %2700 }
 0x3f5   :  { %v2962_v47 = vsel %vm2901_vm2, %v2897_v4, %v2701_v46 }
 0x3f6   :  { %v2191_v63 = vpop.permute.xlu1 %2190  ;;  %4188 = vmatprep.mubr.msk.f32.mxu1 %vm2966_vm3, %v2962_v47 }
 0x3f7   :  { %v2833_v41 = vsel %vm332_vm0, %v7887_v29, %v2191_v63 }
 0x3f8   :  { %v2193_v44 = vpop.permute.xlu0 %2192 }
 0x3f9   :  { %v2834_v3 = vsel %vm332_vm0, %v7889_v23, %v2193_v44 }
 0x3fa   :  { %v2447_v14 = vpop.permute.xlu1 %2446 }
 0x3fb   :  { %v2898_v12 = vsel %vm2836_vm1, %v2833_v41, %v2447_v14 }
 0x3fc   :  { %v4139_v56 = vpop.f32.mrb[26].mxu0  ;;  %v2449_v7 = vpop.permute.xlu0 %2448 }
 0x3fd   :  { %3571 = vst.msk [vmem:[%s7304_s5 + $0xd8] sm:$0xff] %vm2966_vm3, %v4139_v56  ;;  %v3355_v21 = vpop.f32.mrb[27].mxu0  ;;  %v3768_v0 = vmul.f32 %v4139_v56, %v4139_v56  ;;  %v3661_v32 = vsel %vm2966_vm3, %v4139_v56, 0.0  ;;  %v2899_v40 = vsel %vm2836_vm1, %v2834_v3, %v2449_v7 }
 0x3fe   :  { %3570 = vst.msk [vmem:[%s7304_s5 + $0xd0] sm:$0xff] %vm2966_vm3, %v3355_v21  ;;  %v3659_v1 = vsel %vm2966_vm3, %v3355_v21, 0.0  ;;  %v3767_v24 = vmul.f32 %v3355_v21, %v3355_v21  ;;  %v2703_v13 = vpop.permute.xlu1 %2702 }
 0x3ff   :  { %v3660_v18 = vadd.f32 %v3659_v1, %v3658_v6  ;;  %v2963_v28 = vsel %vm2901_vm2, %v2898_v12, %v2703_v13  ;;  %v3858_v61 = vsel %vm2966_vm3, %v3768_v0, 0.0 }
 0x400   :  { %v3856_v52 = vsel %vm2966_vm3, %v3767_v24, 0.0  ;;  %4189 = vmatmul.mubr.msk.f32.gmra.mrb[28].mxu1 %vm2966_vm3, %v2963_v28  ;;  %v2705_v59 = vpop.permute.xlu0 %2704 }
 0x401   :  { %v3857_v48 = vadd.f32 %v3856_v52, %v3855_v17  ;;  %v2964_v5 = vsel %vm2901_vm2, %v2899_v40, %v2705_v59  ;;  %v3662_v22 = vadd.f32 %v3661_v32, %v3660_v18 }
 0x402   :  { %v2195_v27 = vpop.permute.xlu1 %2194  ;;  %4191 = vmatprep.mubr.msk.f32.mxu1 %vm2966_vm3, %v2964_v5 }
 0x403   :  { %v3859_v9 = vadd.f32 %v3858_v61, %v3857_v48  ;;  %v2835_v19 = vsel %vm332_vm0, %v7891_v43, %v2195_v27 }
 0x406   :  { %v2451_v8 = vpop.permute.xlu1 %2450 }
 0x407   :  { %v2900_v58 = vsel %vm2836_vm1, %v2835_v19, %v2451_v8 }
 0x40a   :  { %v2707_v55 = vpop.permute.xlu1 %2706 }
 0x40b   :  { %v2965_v35 = vsel %vm2901_vm2, %v2900_v58, %v2707_v55 }
 0x40c   :  { %v4142_v11 = vpop.f32.mrb[28].mxu0  ;;  %4192 = vmatmul.mubr.msk.f32.gmra.mrb[30].mxu1 %vm2966_vm3, %v2965_v35 }
 0x40d   :  { %3573 = vst.msk [vmem:[%s7304_s5 + $0xe8] sm:$0xff] %vm2966_vm3, %v4142_v11  ;;  %v3365_v38 = vpop.f32.mrb[29].mxu0  ;;  %v3770_v62 = vmul.f32 %v4142_v11, %v4142_v11  ;;  %v3665_v30 = vsel %vm2966_vm3, %v4142_v11, 0.0 }
 0x40e   :  { %3572 = vst.msk [vmem:[%s7304_s5 + $0xe0] sm:$0xff] %vm2966_vm3, %v3365_v38  ;;  %v3663_v26 = vsel %vm2966_vm3, %v3365_v38, 0.0  ;;  %v3769_v37 = vmul.f32 %v3365_v38, %v3365_v38 }
 0x40f   :  { %v3664_v16 = vadd.f32 %v3663_v26, %v3662_v22  ;;  %v3862_v15 = vsel %vm2966_vm3, %v3770_v62, 0.0 }
 0x410   :  { %v3860_v31 = vsel %vm2966_vm3, %v3769_v37, 0.0 }
 0x411   :  { %v3861_v20 = vadd.f32 %v3860_v31, %v3859_v9  ;;  %v3666_v45 = vadd.f32 %v3665_v30, %v3664_v16 }
 0x413   :  { %v3863_v39 = vadd.f32 %v3862_v15, %v3861_v20 }
 0x41f   :  { %v4145_v33 = vpop.f32.mrb[30].mxu0 }
 0x420   :  { %3575 = vst.msk [vmem:[%s7304_s5 + $0xf8] sm:$0xff] %vm2966_vm3, %v4145_v33  ;;  %v3375_v60 = vpop.f32.mrb[31].mxu0  ;;  %v3772_v42 = vmul.f32 %v4145_v33, %v4145_v33  ;;  %v3669_v54 = vsel %vm2966_vm3, %v4145_v33, 0.0 }
 0x421   :  { %3574 = vst.msk [vmem:[%s7304_s5 + $0xf0] sm:$0xff] %vm2966_vm3, %v3375_v60  ;;  %v3667_v10 = vsel %vm2966_vm3, %v3375_v60, 0.0  ;;  %v3771_v6 = vmul.f32 %v3375_v60, %v3375_v60 }
 0x422   :  { %v3668_v49 = vadd.f32 %v3667_v10, %v3666_v45  ;;  %v3866_v50 = vsel %vm2966_vm3, %v3772_v42, 0.0 }
 0x423   :  { %v3864_v51 = vsel %vm2966_vm3, %v3771_v6, 0.0 }
 0x424   :  { %v3670_v25 = vadd.f32 %v3669_v54, %v3668_v49  ;;  %v3865_v57 = vadd.f32 %v3864_v51, %v3863_v39 }
 0x426   :  { %v3867_v36 = vadd.f32 %v3866_v50, %v3865_v57 }
 0x42b   :  { %v4148_v17 = vpop.f32.mrb[0].mxu1 }
 0x42c   :  { %3577 = vst.msk [vmem:[%s7304_s5 + $0x108] sm:$0xff] %vm2966_vm3, %v4148_v17  ;;  %v3385_v4 = vpop.f32.mrb[1].mxu1  ;;  %v3774_v46 = vmul.f32 %v4148_v17, %v4148_v17  ;;  %v3673_v14 = vsel %vm2966_vm3, %v4148_v17, 0.0 }
 0x42d   :  { %3576 = vst.msk [vmem:[%s7304_s5 + $0x100] sm:$0xff] %vm2966_vm3, %v3385_v4  ;;  %v3671_v47 = vsel %vm2966_vm3, %v3385_v4, 0.0  ;;  %v3773_v63 = vmul.f32 %v3385_v4, %v3385_v4 }
 0x42e   :  { %v3672_v44 = vadd.f32 %v3671_v47, %v3670_v25  ;;  %v3870_v29 = vsel %vm2966_vm3, %v3774_v46, 0.0 }
 0x42f   :  { %v3868_v56 = vsel %vm2966_vm3, %v3773_v63, 0.0 }
 0x430   :  { %v3869_v7 = vadd.f32 %v3868_v56, %v3867_v36  ;;  %v3674_v2 = vadd.f32 %v3673_v14, %v3672_v44 }
 0x432   :  { %v3871_v41 = vadd.f32 %v3870_v29, %v3869_v7 }
 0x437   :  { %v4151_v21 = vpop.f32.mrb[2].mxu1 }
 0x438   :  { %3579 = vst.msk [vmem:[%s7304_s5 + $0x118] sm:$0xff] %vm2966_vm3, %v4151_v21  ;;  %v3395_v12 = vpop.f32.mrb[3].mxu1  ;;  %v3776_v0 = vmul.f32 %v4151_v21, %v4151_v21  ;;  %v3677_v53 = vsel %vm2966_vm3, %v4151_v21, 0.0 }
 0x439   :  { %3578 = vst.msk [vmem:[%s7304_s5 + $0x110] sm:$0xff] %vm2966_vm3, %v3395_v12  ;;  %v3675_v1 = vsel %vm2966_vm3, %v3395_v12, 0.0  ;;  %v3775_v24 = vmul.f32 %v3395_v12, %v3395_v12 }
 0x43a   :  { %v3676_v13 = vadd.f32 %v3675_v1, %v3674_v2  ;;  %v3874_v28 = vsel %vm2966_vm3, %v3776_v0, 0.0 }
 0x43b   :  { %v3872_v23 = vsel %vm2966_vm3, %v3775_v24, 0.0 }
 0x43c   :  { %v3873_v3 = vadd.f32 %v3872_v23, %v3871_v41  ;;  %v3678_v18 = vadd.f32 %v3677_v53, %v3676_v13 }
 0x43e   :  { %v3875_v32 = vadd.f32 %v3874_v28, %v3873_v3 }
 0x443   :  { %v4154_v40 = vpop.f32.mrb[4].mxu1 }
 0x444   :  { %3581 = vst.msk [vmem:[%s7304_s5 + $0x128] sm:$0xff] %vm2966_vm3, %v4154_v40  ;;  %v3405_v52 = vpop.f32.mrb[5].mxu1  ;;  %v3778_v59 = vmul.f32 %v4154_v40, %v4154_v40  ;;  %v3681_v61 = vsel %vm2966_vm3, %v4154_v40, 0.0 }
 0x445   :  { %3580 = vst.msk [vmem:[%s7304_s5 + $0x120] sm:$0xff] %vm2966_vm3, %v3405_v52  ;;  %v3679_v48 = vsel %vm2966_vm3, %v3405_v52, 0.0  ;;  %v3777_v5 = vmul.f32 %v3405_v52, %v3405_v52 }
 0x446   :  { %v3680_v22 = vadd.f32 %v3679_v48, %v3678_v18  ;;  %v3878_v34 = vsel %vm2966_vm3, %v3778_v59, 0.0 }
 0x447   :  { %v3876_v27 = vsel %vm2966_vm3, %v3777_v5, 0.0 }
 0x448   :  { %v3877_v9 = vadd.f32 %v3876_v27, %v3875_v32  ;;  %v3682_v8 = vadd.f32 %v3681_v61, %v3680_v22 }
 0x44a   :  { %v3879_v43 = vadd.f32 %v3878_v34, %v3877_v9 }
 0x44f   :  { %v4157_v19 = vpop.f32.mrb[6].mxu1 }
 0x450   :  { %3583 = vst.msk [vmem:[%s7304_s5 + $0x138] sm:$0xff] %vm2966_vm3, %v4157_v19  ;;  %v3415_v58 = vpop.f32.mrb[7].mxu1  ;;  %v3780_v55 = vmul.f32 %v4157_v19, %v4157_v19  ;;  %v3685_v62 = vsel %vm2966_vm3, %v4157_v19, 0.0 }
 0x451   :  { %3582 = vst.msk [vmem:[%s7304_s5 + $0x130] sm:$0xff] %vm2966_vm3, %v3415_v58  ;;  %v3683_v35 = vsel %vm2966_vm3, %v3415_v58, 0.0  ;;  %v3779_v11 = vmul.f32 %v3415_v58, %v3415_v58 }
 0x452   :  { %v3684_v38 = vadd.f32 %v3683_v35, %v3682_v8  ;;  %v3882_v30 = vsel %vm2966_vm3, %v3780_v55, 0.0 }
 0x453   :  { %v3880_v26 = vsel %vm2966_vm3, %v3779_v11, 0.0 }
 0x454   :  { %v3881_v37 = vadd.f32 %v3880_v26, %v3879_v43  ;;  %v3686_v16 = vadd.f32 %v3685_v62, %v3684_v38 }
 0x456   :  { %v3883_v31 = vadd.f32 %v3882_v30, %v3881_v37 }
 0x45b   :  { %v4160_v20 = vpop.f32.mrb[8].mxu1 }
 0x45c   :  { %3585 = vst.msk [vmem:[%s7304_s5 + $0x148] sm:$0xff] %vm2966_vm3, %v4160_v20  ;;  %v3425_v45 = vpop.f32.mrb[9].mxu1  ;;  %v3782_v15 = vmul.f32 %v4160_v20, %v4160_v20  ;;  %v3689_v42 = vsel %vm2966_vm3, %v4160_v20, 0.0 }
 0x45d   :  { %3584 = vst.msk [vmem:[%s7304_s5 + $0x140] sm:$0xff] %vm2966_vm3, %v3425_v45  ;;  %v3687_v39 = vsel %vm2966_vm3, %v3425_v45, 0.0  ;;  %v3781_v33 = vmul.f32 %v3425_v45, %v3425_v45 }
 0x45e   :  { %v3688_v60 = vadd.f32 %v3687_v39, %v3686_v16  ;;  %v3886_v54 = vsel %vm2966_vm3, %v3782_v15, 0.0 }
 0x45f   :  { %v3884_v10 = vsel %vm2966_vm3, %v3781_v33, 0.0 }
 0x460   :  { %v3885_v6 = vadd.f32 %v3884_v10, %v3883_v31  ;;  %v3690_v49 = vadd.f32 %v3689_v42, %v3688_v60 }
 0x462   :  { %v3887_v51 = vadd.f32 %v3886_v54, %v3885_v6 }
 0x467   :  { %v4163_v25 = vpop.f32.mrb[10].mxu1 }
 0x468   :  { %3587 = vst.msk [vmem:[%s7304_s5 + $0x158] sm:$0xff] %vm2966_vm3, %v4163_v25  ;;  %v3435_v57 = vpop.f32.mrb[11].mxu1  ;;  %v3784_v50 = vmul.f32 %v4163_v25, %v4163_v25  ;;  %v3693_v46 = vsel %vm2966_vm3, %v4163_v25, 0.0 }
 0x469   :  { %3586 = vst.msk [vmem:[%s7304_s5 + $0x150] sm:$0xff] %vm2966_vm3, %v3435_v57  ;;  %v3691_v36 = vsel %vm2966_vm3, %v3435_v57, 0.0  ;;  %v3783_v17 = vmul.f32 %v3435_v57, %v3435_v57 }
 0x46a   :  { %v3692_v4 = vadd.f32 %v3691_v36, %v3690_v49  ;;  %v3890_v14 = vsel %vm2966_vm3, %v3784_v50, 0.0 }
 0x46b   :  { %v3888_v47 = vsel %vm2966_vm3, %v3783_v17, 0.0 }
 0x46c   :  { %v3889_v63 = vadd.f32 %v3888_v47, %v3887_v51  ;;  %v3694_v44 = vadd.f32 %v3693_v46, %v3692_v4 }
 0x46e   :  { %v3891_v56 = vadd.f32 %v3890_v14, %v3889_v63 }
 0x473   :  { %v4166_v7 = vpop.f32.mrb[12].mxu1 }
 0x474   :  { %3589 = vst.msk [vmem:[%s7304_s5 + $0x168] sm:$0xff] %vm2966_vm3, %v4166_v7  ;;  %v3445_v2 = vpop.f32.mrb[13].mxu1  ;;  %v3786_v29 = vmul.f32 %v4166_v7, %v4166_v7  ;;  %v3697_v0 = vsel %vm2966_vm3, %v4166_v7, 0.0 }
 0x475   :  { %3588 = vst.msk [vmem:[%s7304_s5 + $0x160] sm:$0xff] %vm2966_vm3, %v3445_v2  ;;  %v3695_v41 = vsel %vm2966_vm3, %v3445_v2, 0.0  ;;  %v3785_v21 = vmul.f32 %v3445_v2, %v3445_v2 }
 0x476   :  { %v3696_v12 = vadd.f32 %v3695_v41, %v3694_v44  ;;  %v3894_v53 = vsel %vm2966_vm3, %v3786_v29, 0.0 }
 0x477   :  { %v3892_v1 = vsel %vm2966_vm3, %v3785_v21, 0.0 }
 0x478   :  { %v3893_v24 = vadd.f32 %v3892_v1, %v3891_v56  ;;  %v3698_v13 = vadd.f32 %v3697_v0, %v3696_v12 }
 0x47a   :  { %v3895_v23 = vadd.f32 %v3894_v53, %v3893_v24 }
 0x47f   :  { %v4169_v3 = vpop.f32.mrb[14].mxu1 }
 0x480   :  { %3591 = vst.msk [vmem:[%s7304_s5 + $0x178] sm:$0xff] %vm2966_vm3, %v4169_v3  ;;  %v3455_v18 = vpop.f32.mrb[15].mxu1  ;;  %v3788_v28 = vmul.f32 %v4169_v3, %v4169_v3  ;;  %v3701_v59 = vsel %vm2966_vm3, %v4169_v3, 0.0 }
 0x481   :  { %3590 = vst.msk [vmem:[%s7304_s5 + $0x170] sm:$0xff] %vm2966_vm3, %v3455_v18  ;;  %v3699_v32 = vsel %vm2966_vm3, %v3455_v18, 0.0  ;;  %v3787_v40 = vmul.f32 %v3455_v18, %v3455_v18 }
 0x482   :  { %v3700_v52 = vadd.f32 %v3699_v32, %v3698_v13  ;;  %v3898_v61 = vsel %vm2966_vm3, %v3788_v28, 0.0 }
 0x483   :  { %v3896_v48 = vsel %vm2966_vm3, %v3787_v40, 0.0 }
 0x484   :  { %v3897_v5 = vadd.f32 %v3896_v48, %v3895_v23  ;;  %v3702_v22 = vadd.f32 %v3701_v59, %v3700_v52 }
 0x486   :  { %v3899_v27 = vadd.f32 %v3898_v61, %v3897_v5 }
 0x48b   :  { %v4172_v9 = vpop.f32.mrb[16].mxu1 }
 0x48c   :  { %3593 = vst.msk [vmem:[%s7304_s5 + $0x188] sm:$0xff] %vm2966_vm3, %v4172_v9  ;;  %v3465_v8 = vpop.f32.mrb[17].mxu1  ;;  %v3790_v34 = vmul.f32 %v4172_v9, %v4172_v9  ;;  %v3705_v55 = vsel %vm2966_vm3, %v4172_v9, 0.0 }
 0x48d   :  { %3592 = vst.msk [vmem:[%s7304_s5 + $0x180] sm:$0xff] %vm2966_vm3, %v3465_v8  ;;  %v3703_v43 = vsel %vm2966_vm3, %v3465_v8, 0.0  ;;  %v3789_v19 = vmul.f32 %v3465_v8, %v3465_v8 }
 0x48e   :  { %v3704_v58 = vadd.f32 %v3703_v43, %v3702_v22  ;;  %v3902_v62 = vsel %vm2966_vm3, %v3790_v34, 0.0 }
 0x48f   :  { %v3900_v35 = vsel %vm2966_vm3, %v3789_v19, 0.0 }
 0x490   :  { %v3901_v11 = vadd.f32 %v3900_v35, %v3899_v27  ;;  %v3706_v38 = vadd.f32 %v3705_v55, %v3704_v58 }
 0x492   :  { %v3903_v26 = vadd.f32 %v3902_v62, %v3901_v11 }
 0x497   :  { %v4175_v37 = vpop.f32.mrb[18].mxu1 }
 0x498   :  { %3595 = vst.msk [vmem:[%s7304_s5 + $0x198] sm:$0xff] %vm2966_vm3, %v4175_v37  ;;  %v3475_v16 = vpop.f32.mrb[19].mxu1  ;;  %v3792_v30 = vmul.f32 %v4175_v37, %v4175_v37  ;;  %v3709_v15 = vsel %vm2966_vm3, %v4175_v37, 0.0 }
 0x499   :  { %3594 = vst.msk [vmem:[%s7304_s5 + $0x190] sm:$0xff] %vm2966_vm3, %v3475_v16  ;;  %v3707_v31 = vsel %vm2966_vm3, %v3475_v16, 0.0  ;;  %v3791_v20 = vmul.f32 %v3475_v16, %v3475_v16 }
 0x49a   :  { %v3708_v45 = vadd.f32 %v3707_v31, %v3706_v38  ;;  %v3906_v42 = vsel %vm2966_vm3, %v3792_v30, 0.0 }
 0x49b   :  { %v3904_v39 = vsel %vm2966_vm3, %v3791_v20, 0.0 }
 0x49c   :  { %v3905_v33 = vadd.f32 %v3904_v39, %v3903_v26  ;;  %v3710_v60 = vadd.f32 %v3709_v15, %v3708_v45 }
 0x49e   :  { %v3907_v10 = vadd.f32 %v3906_v42, %v3905_v33 }
 0x4a3   :  { %v4178_v6 = vpop.f32.mrb[20].mxu1 }
 0x4a4   :  { %3597 = vst.msk [vmem:[%s7304_s5 + $0x1a8] sm:$0xff] %vm2966_vm3, %v4178_v6  ;;  %v3485_v49 = vpop.f32.mrb[21].mxu1  ;;  %v3794_v54 = vmul.f32 %v4178_v6, %v4178_v6  ;;  %v3713_v50 = vsel %vm2966_vm3, %v4178_v6, 0.0 }
 0x4a5   :  { %3596 = vst.msk [vmem:[%s7304_s5 + $0x1a0] sm:$0xff] %vm2966_vm3, %v3485_v49  ;;  %v3711_v51 = vsel %vm2966_vm3, %v3485_v49, 0.0  ;;  %v3793_v25 = vmul.f32 %v3485_v49, %v3485_v49 }
 0x4a6   :  { %v3712_v57 = vadd.f32 %v3711_v51, %v3710_v60  ;;  %v3910_v46 = vsel %vm2966_vm3, %v3794_v54, 0.0 }
 0x4a7   :  { %v3908_v36 = vsel %vm2966_vm3, %v3793_v25, 0.0 }
 0x4a8   :  { %v3909_v17 = vadd.f32 %v3908_v36, %v3907_v10  ;;  %v3714_v4 = vadd.f32 %v3713_v50, %v3712_v57 }
 0x4aa   :  { %v3911_v47 = vadd.f32 %v3910_v46, %v3909_v17 }
 0x4af   :  { %v4181_v63 = vpop.f32.mrb[22].mxu1 }
 0x4b0   :  { %3599 = vst.msk [vmem:[%s7304_s5 + $0x1b8] sm:$0xff] %vm2966_vm3, %v4181_v63  ;;  %v3495_v44 = vpop.f32.mrb[23].mxu1  ;;  %v3796_v14 = vmul.f32 %v4181_v63, %v4181_v63  ;;  %v3717_v29 = vsel %vm2966_vm3, %v4181_v63, 0.0 }
 0x4b1   :  { %3598 = vst.msk [vmem:[%s7304_s5 + $0x1b0] sm:$0xff] %vm2966_vm3, %v3495_v44  ;;  %v3715_v56 = vsel %vm2966_vm3, %v3495_v44, 0.0  ;;  %v3795_v7 = vmul.f32 %v3495_v44, %v3495_v44 }
 0x4b2   :  { %v3716_v2 = vadd.f32 %v3715_v56, %v3714_v4  ;;  %v3914_v0 = vsel %vm2966_vm3, %v3796_v14, 0.0 }
 0x4b3   :  { %v3912_v41 = vsel %vm2966_vm3, %v3795_v7, 0.0 }
 0x4b4   :  { %v3913_v21 = vadd.f32 %v3912_v41, %v3911_v47  ;;  %v3718_v12 = vadd.f32 %v3717_v29, %v3716_v2 }
 0x4b6   :  { %v3915_v1 = vadd.f32 %v3914_v0, %v3913_v21 }
 0x4bb   :  { %v4184_v24 = vpop.f32.mrb[24].mxu1 }
 0x4bc   :  { %3601 = vst.msk [vmem:[%s7304_s5 + $0x1c8] sm:$0xff] %vm2966_vm3, %v4184_v24  ;;  %v3505_v13 = vpop.f32.mrb[25].mxu1  ;;  %v3798_v53 = vmul.f32 %v4184_v24, %v4184_v24  ;;  %v3721_v28 = vsel %vm2966_vm3, %v4184_v24, 0.0 }
 0x4bd   :  { %3600 = vst.msk [vmem:[%s7304_s5 + $0x1c0] sm:$0xff] %vm2966_vm3, %v3505_v13  ;;  %v3719_v23 = vsel %vm2966_vm3, %v3505_v13, 0.0  ;;  %v3797_v3 = vmul.f32 %v3505_v13, %v3505_v13 }
 0x4be   :  { %v3720_v18 = vadd.f32 %v3719_v23, %v3718_v12  ;;  %v3918_v59 = vsel %vm2966_vm3, %v3798_v53, 0.0 }
 0x4bf   :  { %v3916_v32 = vsel %vm2966_vm3, %v3797_v3, 0.0 }
 0x4c0   :  { %v3917_v40 = vadd.f32 %v3916_v32, %v3915_v1  ;;  %v3722_v52 = vadd.f32 %v3721_v28, %v3720_v18 }
 0x4c2   :  { %v3919_v48 = vadd.f32 %v3918_v59, %v3917_v40 }
 0x4c7   :  { %v4187_v5 = vpop.f32.mrb[26].mxu1 }
 0x4c8   :  { %3603 = vst.msk [vmem:[%s7304_s5 + $0x1d8] sm:$0xff] %vm2966_vm3, %v4187_v5  ;;  %v3515_v22 = vpop.f32.mrb[27].mxu1  ;;  %v3800_v61 = vmul.f32 %v4187_v5, %v4187_v5  ;;  %v3725_v34 = vsel %vm2966_vm3, %v4187_v5, 0.0 }
 0x4c9   :  { %3602 = vst.msk [vmem:[%s7304_s5 + $0x1d0] sm:$0xff] %vm2966_vm3, %v3515_v22  ;;  %v3723_v27 = vsel %vm2966_vm3, %v3515_v22, 0.0  ;;  %v3799_v9 = vmul.f32 %v3515_v22, %v3515_v22 }
 0x4ca   :  { %v3724_v8 = vadd.f32 %v3723_v27, %v3722_v52  ;;  %v3922_v55 = vsel %vm2966_vm3, %v3800_v61, 0.0 }
 0x4cb   :  { %v3920_v43 = vsel %vm2966_vm3, %v3799_v9, 0.0 }
 0x4cc   :  { %v3921_v19 = vadd.f32 %v3920_v43, %v3919_v48  ;;  %v3726_v58 = vadd.f32 %v3725_v34, %v3724_v8 }
 0x4ce   :  { %v3923_v35 = vadd.f32 %v3922_v55, %v3921_v19 }
 0x4d3   :  { %v4190_v11 = vpop.f32.mrb[28].mxu1 }
 0x4d4   :  { %3605 = vst.msk [vmem:[%s7304_s5 + $0x1e8] sm:$0xff] %vm2966_vm3, %v4190_v11  ;;  %v3525_v38 = vpop.f32.mrb[29].mxu1  ;;  %v3802_v62 = vmul.f32 %v4190_v11, %v4190_v11  ;;  %v3729_v30 = vsel %vm2966_vm3, %v4190_v11, 0.0 }
 0x4d5   :  { %3604 = vst.msk [vmem:[%s7304_s5 + $0x1e0] sm:$0xff] %vm2966_vm3, %v3525_v38  ;;  %v3727_v26 = vsel %vm2966_vm3, %v3525_v38, 0.0  ;;  %v3801_v37 = vmul.f32 %v3525_v38, %v3525_v38 }
 0x4d6   :  { %v3728_v16 = vadd.f32 %v3727_v26, %v3726_v58  ;;  %v3926_v15 = vsel %vm2966_vm3, %v3802_v62, 0.0 }
 0x4d7   :  { %v3924_v31 = vsel %vm2966_vm3, %v3801_v37, 0.0 }
 0x4d8   :  { %v3925_v20 = vadd.f32 %v3924_v31, %v3923_v35  ;;  %v3730_v45 = vadd.f32 %v3729_v30, %v3728_v16 }
 0x4da   :  { %v3927_v39 = vadd.f32 %v3926_v15, %v3925_v20 }
 0x4df   :  { %v4193_v33 = vpop.f32.mrb[30].mxu1 }
 0x4e0   :  { %3607 = vst.msk [vmem:[%s7304_s5 + $0x1f8] sm:$0xff] %vm2966_vm3, %v4193_v33  ;;  %v3535_v60 = vpop.f32.mrb[31].mxu1  ;;  %v3804_v42 = vmul.f32 %v4193_v33, %v4193_v33  ;;  %v3733_v54 = vsel %vm2966_vm3, %v4193_v33, 0.0 }
 0x4e1   :  { %3606 = vst.msk [vmem:[%s7304_s5 + $0x1f0] sm:$0xff] %vm2966_vm3, %v3535_v60  ;;  %v3731_v10 = vsel %vm2966_vm3, %v3535_v60, 0.0  ;;  %v3803_v6 = vmul.f32 %v3535_v60, %v3535_v60 }
 0x4e2   :  { %v3732_v49 = vadd.f32 %v3731_v10, %v3730_v45  ;;  %v3930_v50 = vsel %vm2966_vm3, %v3804_v42, 0.0 }
 0x4e3   :  { %v3928_v51 = vsel %vm2966_vm3, %v3803_v6, 0.0 }
 0x4e4   :  { %v3734_v25 = vadd.f32 %v3733_v54, %v3732_v49  ;;  %v3929_v57 = vadd.f32 %v3928_v51, %v3927_v39 }
 0x4e6   :  { %v3735_v36 = vrot.slane %v3734_v25, 4  ;;  %v3931_v17 = vadd.f32 %v3930_v50, %v3929_v57 }
 0x4e8   :  { %v3736_v4 = vadd.f32 %v3735_v36, %v3734_v25  ;;  %v3932_v46 = vrot.slane %v3931_v17, 4 }
 0x4ea   :  { %v3737_v47 = vrot.slane %v3736_v4, 2  ;;  %v3933_v63 = vadd.f32 %v3932_v46, %v3931_v17 }
 0x4ec   :  { %v3738_v44 = vadd.f32 %v3737_v47, %v3736_v4  ;;  %v3934_v14 = vrot.slane %v3933_v63, 2 }
 0x4ee   :  { %v3739_v56 = vrot.slane %v3738_v44, 1  ;;  %v3935_v7 = vadd.f32 %v3934_v14, %v3933_v63 }
 0x4f0   :  { %v3936_v2 = vrot.slane %v3935_v7, 1  ;;  %v3740_v29 = vadd.f32 %v3739_v56, %v3738_v44 }
 0x4f2   :  { %v3937_v41 = vadd.f32 %v3936_v2, %v3935_v7 }
 0x4f4   :  { %v3939_v21 = vsel %vm3938_vm4, %v3740_v29, %v3937_v41 }
 0x4f5   :  { %3941 = vst.msk [vmem:[%s7305_s6] sm:$0x3] %vm3940_vm5, %v3939_v21 }

</bundles_post_ra>
